<compile_context>
chip_gen: v7x
topology: tpu7x:2x2x1
jax: 0.10.0
libtpu: 0.0.40
codegen_flags: <defaults>
</compile_context>

<pallas_src>
import jax
import jax.numpy as jnp
from jax.experimental import pallas as pl
from jax.experimental.pallas import tpu as pltpu


# ---------------------------------------------------------------------------
# Glue: skew / unskew via a single pad + reshape (pure JAX, wrapper side)
# ---------------------------------------------------------------------------
def skew_features(x):
    """[B, C, H, W] -> [B, C, H, W + H - 1], row i shifted right by i."""
    B, C, H, W = x.shape
    Wp = W + H - 1
    xp = jnp.pad(x, ((0, 0), (0, 0), (0, 0), (0, H)))          # [B, C, H, W+H]
    flat = xp.reshape(B, C, H * (W + H))[:, :, :H * Wp]
    return flat.reshape(B, C, H, Wp)


def unskew_features(y, W):
    """[B, C, H, W + H - 1] -> [B, C, H, W], inverse of skew_features."""
    B, C, H, Wp = y.shape
    flat = y.reshape(B, C, H * Wp)
    flat = jnp.pad(flat, ((0, 0), (0, 0), (0, H)))
    return flat.reshape(B, C, H, W + H)[:, :, :, :W]


# ---------------------------------------------------------------------------
# Pallas kernel: whole diagonal recurrence for one batch image
# ---------------------------------------------------------------------------
def dlstm_kernel(x_ref, w_is_ref, bias_ref, w_ss_ref, o_ref,
                 is_sc, hcat_sc, c_sc):
    H, C = c_sc.shape
    Wp = is_sc.shape[0] // H

    # Hoisted input-to-state: one batched matmul over ALL diagonal steps,
    # with both biases (b_is + b_ss) folded in.
    is_sc[...] = (jnp.dot(x_ref[0], w_is_ref[...],
                          preferred_element_type=jnp.float32)
                  + bias_ref[...])

    # Recurrent state:
    #   hcat_sc[:, :C] = previous h shifted down one row (row 0 stays zero)
    #   hcat_sc[:, C:] = previous h
    # so s_s = hcat_sc @ [W_tap0 ; W_tap1] is a single fused matmul.
    hcat_sc[...] = jnp.zeros_like(hcat_sc)
    c_sc[...] = jnp.zeros_like(c_sc)

    w_ss = w_ss_ref[...]                                        # [2C, 4C]

    for t in range(Wp):                                         # fully unrolled
        i_s = is_sc[t * H:(t + 1) * H, :]                       # [H, 4C]
        s_s = jnp.dot(hcat_sc[...], w_ss,
                      preferred_element_type=jnp.float32)       # [H, 4C]
        z = i_s + s_s

        # gate order matches torch.split: (o, f, i) sigmoid, g tanh
        ofi = jax.nn.sigmoid(z[:, :3 * C])
        o = ofi[:, 0 * C:1 * C]
        f = ofi[:, 1 * C:2 * C]
        i = ofi[:, 2 * C:3 * C]
        g = jnp.tanh(z[:, 3 * C:])

        c = f * c_sc[...] + i * g
        h = o * jnp.tanh(c)

        c_sc[...] = c
        hcat_sc[:, C:] = h                     # current-row tap for next step
        hcat_sc[1:, :C] = h[:H - 1, :]         # shifted-row tap (row 0 stays 0)
        o_ref[0, t * H:(t + 1) * H, :] = h


# ---------------------------------------------------------------------------
# Wrapper
# ---------------------------------------------------------------------------
@jax.jit
def diagonal_lstm_pallas(x, w_is_t, b_is, w_ss_t, b_ss):
    """x: [B, C, H, W] NCHW. w_is_t: [C, 4C]. w_ss_t: [2, C, 4C]. biases: [4C]."""
    B, C, H, W = x.shape
    Wp = W + H - 1

    xs = skew_features(x)                                       # [B, C, H, Wp]
    # step-major, channel-last, flattened per image: row t*H + j <-> (t, j)
    x_k = jnp.transpose(xs, (0, 3, 2, 1)).reshape(B, Wp * H, C)

    bias = (b_is + b_ss).reshape(1, 4 * C)                      # folded biases
    w_ss = w_ss_t.reshape(2 * C, 4 * C)                         # [tap0 ; tap1]

    out = pl.pallas_call(
        dlstm_kernel,
        out_shape=jax.ShapeDtypeStruct((B, Wp * H, C), jnp.float32),
        grid_spec=pltpu.PrefetchScalarGridSpec(
            num_scalar_prefetch=0,
            grid=(B,),
            in_specs=[
                pl.BlockSpec((1, Wp * H, C), lambda b: (b, 0, 0)),   # skewed x
                pl.BlockSpec((C, 4 * C), lambda b: (0, 0)),          # input->state W
                pl.BlockSpec((1, 4 * C), lambda b: (0, 0)),          # folded bias
                pl.BlockSpec((2 * C, 4 * C), lambda b: (0, 0)),      # fused ss W
            ],
            out_specs=pl.BlockSpec((1, Wp * H, C), lambda b: (b, 0, 0)),
            scratch_shapes=[
                pltpu.VMEM((Wp * H, 4 * C), jnp.float32),            # i_s slab
                pltpu.VMEM((H, 2 * C), jnp.float32),                 # [h_shift | h]
                pltpu.VMEM((H, C), jnp.float32),                     # c state
            ],
        ),
        compiler_params=pltpu.CompilerParams(
            dimension_semantics=("parallel",)),                      # v7x: 2 TCs
    )(x_k, w_is_t, bias, w_ss)

    y = out.reshape(B, Wp, H, C).transpose(0, 3, 2, 1)          # [B, C, H, Wp]
    return unskew_features(y, W)


# ---------------------------------------------------------------------------
# Pure-JAX reference (mirrors the PyTorch forward) for a correctness check
# ---------------------------------------------------------------------------
def diagonal_lstm_ref(x, w_is_t, b_is, w_ss_t, b_ss):
    B, C, H, W = x.shape
    xs = skew_features(x)
    Wp = xs.shape[-1]
    i_s = jnp.einsum('bchw,cd->bdhw', xs, w_is_t) + b_is[None, :, None, None]
    h = jnp.zeros((B, C, H), jnp.float32)
    c = jnp.zeros((B, C, H), jnp.float32)
    outs = []
    for t in range(Wp):
        pis = i_s[:, :, :, t]                                   # [B, 4C, H]
        h_shift = jnp.concatenate(
            [jnp.zeros((B, C, 1), jnp.float32), h[:, :, :H - 1]], axis=2)
        s_s = (jnp.einsum('bch,cd->bdh', h_shift, w_ss_t[0])
               + jnp.einsum('bch,cd->bdh', h, w_ss_t[1])
               + b_ss[None, :, None])
        z = pis + s_s
        o = jax.nn.sigmoid(z[:, 0 * C:1 * C])
        f = jax.nn.sigmoid(z[:, 1 * C:2 * C])
        i = jax.nn.sigmoid(z[:, 2 * C:3 * C])
        g = jnp.tanh(z[:, 3 * C:4 * C])
        c = f * c + i * g
        h = o * jnp.tanh(c)
        outs.append(h)
    y = jnp.stack(outs, axis=3)                                 # [B, C, H, Wp]
    return unskew_features(y, W)


# ---------------------------------------------------------------------------
if __name__ == "__main__":
    B, C, H, W = 2, 4, 16, 16        # input_dim = C = 4
    # is_filter_size = 1 (1x1 mask-'B' conv), ss_filter_size = 2

    key = jax.random.PRNGKey(0)
    k1, k2, k3, k4, k5 = jax.random.split(key, 5)
    # Conv2D(C, 4C, 1): torch weight [4C, C, 1, 1] -> stored transposed [C, 4C]
    w_is_t = 0.2 * jax.random.normal(k1, (C, 4 * C), jnp.float32)
    b_is = 0.1 * jax.random.normal(k2, (4 * C,), jnp.float32)
    # Conv1D(C, 4C, 2): torch weight [4C, C, 2] -> stored as [2, C, 4C]
    w_ss_t = 0.2 * jax.random.normal(k3, (2, C, 4 * C), jnp.float32)
    b_ss = 0.1 * jax.random.normal(k4, (4 * C,), jnp.float32)

    x = jax.random.normal(k5, (B, C, H, W), jnp.float32)

    out = diagonal_lstm_pallas(x, w_is_t, b_is, w_ss_t, b_ss)
    out = jax.block_until_ready(out)

    ref = diagonal_lstm_ref(x, w_is_t, b_is, w_ss_t, b_ss)
    assert out.shape == (B, C, H, W), out.shape
    assert jnp.allclose(out, ref, atol=1e-5, rtol=1e-5), (
        float(jnp.max(jnp.abs(out - ref))))

    print("KERNEL_OK")
</pallas_src>

<mosaic_0001>
module attributes {stable_mosaic.version = 11 : i64} {
  func.func @dlstm_kernel(%arg0: i32, %arg1: memref<1x496x4xf32, #tpu.memory_space<vmem>>, %arg2: memref<4x16xf32, #tpu.memory_space<vmem>>, %arg3: memref<1x16xf32, #tpu.memory_space<vmem>>, %arg4: memref<8x16xf32, #tpu.memory_space<vmem>>, %arg5: memref<1x496x4xf32, #tpu.memory_space<vmem>>, %arg6: memref<496x16xf32, #tpu.memory_space<vmem>>, %arg7: memref<16x8xf32, #tpu.memory_space<vmem>>, %arg8: memref<16x4xf32, #tpu.memory_space<vmem>>) attributes {dimension_semantics = [#tpu.dimension_semantics<parallel>], iteration_bounds = array<i64: 2>, scalar_prefetch = 0 : i64, scratch_operands = 3 : i64, tpu.core_type = #tpu.core_type<tc>, window_params = [{transform_indices = @transform_0, window_bounds = array<i64: 1, 496, 4>}, {pipeline_mode = #tpu.pipeline_mode<synchronous>, transform_indices = @transform_1, window_bounds = array<i64: 4, 16>}, {pipeline_mode = #tpu.pipeline_mode<synchronous>, transform_indices = @transform_2, window_bounds = array<i64: 1, 16>}, {pipeline_mode = #tpu.pipeline_mode<synchronous>, transform_indices = @transform_3, window_bounds = array<i64: 8, 16>}, {transform_indices = @transform_4, window_bounds = array<i64: 1, 496, 4>}]} {
    %c0 = arith.constant 0 : index
    %c0_0 = arith.constant 0 : index
    %c0_1 = arith.constant 0 : index
    %0 = vector.load %arg1[%c0, %c0_0, %c0_1] : memref<1x496x4xf32, #tpu.memory_space<vmem>>, vector<1x496x4xf32>
    %1 = vector.shape_cast %0 : vector<1x496x4xf32> to vector<496x4xf32>
    %c0_2 = arith.constant 0 : index
    %c0_3 = arith.constant 0 : index
    %2 = vector.load %arg2[%c0_2, %c0_3] : memref<4x16xf32, #tpu.memory_space<vmem>>, vector<4x16xf32>
    %cst = arith.constant dense<0.000000e+00> : vector<496x16xf32>
    %3 = tpu.matmul %1, %2, %cst {dimension_numbers = #tpu.dot_dimension_numbers<[1], [0], [0], [1], [0, 0, 1, 1], [], []>} : vector<496x4xf32>, vector<4x16xf32>, vector<496x16xf32> -> vector<496x16xf32>
    %c0_4 = arith.constant 0 : index
    %c0_5 = arith.constant 0 : index
    %4 = vector.load %arg3[%c0_4, %c0_5] : memref<1x16xf32, #tpu.memory_space<vmem>>, vector<1x16xf32>
    %5 = vector.broadcast %4 : vector<1x16xf32> to vector<496x16xf32>
    %6 = arith.addf %3, %5 : vector<496x16xf32>
    %c0_6 = arith.constant 0 : index
    %c0_7 = arith.constant 0 : index
    %7 = vector.load %arg6[%c0_6, %c0_7] : memref<496x16xf32, #tpu.memory_space<vmem>>, vector<496x16xf32>
    tpu.vector_store %arg6[%c0_6, %c0_7], %6 {strides = array<i32>} : memref<496x16xf32, #tpu.memory_space<vmem>>, vector<496x16xf32>,
    %cst_8 = arith.constant 0.000000e+00 : f32
    %8 = vector.broadcast %cst_8 : f32 to vector<16x8xf32>
    %c0_9 = arith.constant 0 : index
    %c0_10 = arith.constant 0 : index
    %9 = vector.load %arg7[%c0_9, %c0_10] : memref<16x8xf32, #tpu.memory_space<vmem>>, vector<16x8xf32>
    tpu.vector_store %arg7[%c0_9, %c0_10], %8 {strides = array<i32>} : memref<16x8xf32, #tpu.memory_space<vmem>>, vector<16x8xf32>,
    %cst_11 = arith.constant 0.000000e+00 : f32
    %10 = vector.broadcast %cst_11 : f32 to vector<16x4xf32>
    %c0_12 = arith.constant 0 : index
    %c0_13 = arith.constant 0 : index
    %11 = vector.load %arg8[%c0_12, %c0_13] : memref<16x4xf32, #tpu.memory_space<vmem>>, vector<16x4xf32>
    tpu.vector_store %arg8[%c0_12, %c0_13], %10 {strides = array<i32>} : memref<16x4xf32, #tpu.memory_space<vmem>>, vector<16x4xf32>,
    %c0_14 = arith.constant 0 : index
    %c0_15 = arith.constant 0 : index
    %12 = vector.load %arg4[%c0_14, %c0_15] : memref<8x16xf32, #tpu.memory_space<vmem>>, vector<8x16xf32>
    %c0_16 = arith.constant 0 : index
    %c0_17 = arith.constant 0 : index
    %13 = vector.load %arg6[%c0_16, %c0_17] : memref<496x16xf32, #tpu.memory_space<vmem>>, vector<16x16xf32>
    %c0_18 = arith.constant 0 : index
    %c0_19 = arith.constant 0 : index
    %14 = vector.load %arg7[%c0_18, %c0_19] : memref<16x8xf32, #tpu.memory_space<vmem>>, vector<16x8xf32>
    %cst_20 = arith.constant dense<0.000000e+00> : vector<16x16xf32>
    %15 = tpu.matmul %14, %12, %cst_20 {dimension_numbers = #tpu.dot_dimension_numbers<[1], [0], [0], [1], [0, 0, 1, 1], [], []>} : vector<16x8xf32>, vector<8x16xf32>, vector<16x16xf32> -> vector<16x16xf32>
    %16 = arith.addf %13, %15 : vector<16x16xf32>
    %17 = vector.extract_strided_slice %16 {offsets = [0, 0], sizes = [16, 12], strides = [1, 1]} : vector<16x16xf32> to vector<16x12xf32>
    %18 = arith.negf %17 : vector<16x12xf32>
    %19 = math.exp %18 : vector<16x12xf32>
    %cst_21 = arith.constant 1.000000e+00 : f32
    %20 = vector.broadcast %cst_21 : f32 to vector<16x12xf32>
    %21 = arith.addf %20, %19 : vector<16x12xf32>
    %22 = arith.divf %20, %21 : vector<16x12xf32>
    %23 = vector.extract_strided_slice %22 {offsets = [0, 0], sizes = [16, 4], strides = [1, 1]} : vector<16x12xf32> to vector<16x4xf32>
    %24 = vector.extract_strided_slice %22 {offsets = [0, 4], sizes = [16, 4], strides = [1, 1]} : vector<16x12xf32> to vector<16x4xf32>
    %25 = vector.extract_strided_slice %22 {offsets = [0, 8], sizes = [16, 4], strides = [1, 1]} : vector<16x12xf32> to vector<16x4xf32>
    %26 = vector.extract_strided_slice %16 {offsets = [0, 12], sizes = [16, 4], strides = [1, 1]} : vector<16x16xf32> to vector<16x4xf32>
    %27 = math.tanh %26 : vector<16x4xf32>
    %c0_22 = arith.constant 0 : index
    %c0_23 = arith.constant 0 : index
    %28 = vector.load %arg8[%c0_22, %c0_23] : memref<16x4xf32, #tpu.memory_space<vmem>>, vector<16x4xf32>
    %29 = arith.mulf %24, %28 : vector<16x4xf32>
    %30 = arith.mulf %25, %27 : vector<16x4xf32>
    %31 = arith.addf %29, %30 : vector<16x4xf32>
    %32 = math.tanh %31 : vector<16x4xf32>
    %33 = arith.mulf %23, %32 : vector<16x4xf32>
    %c0_24 = arith.constant 0 : index
    %c0_25 = arith.constant 0 : index
    %34 = vector.load %arg8[%c0_24, %c0_25] : memref<16x4xf32, #tpu.memory_space<vmem>>, vector<16x4xf32>
    tpu.vector_store %arg8[%c0_24, %c0_25], %31 {strides = array<i32>} : memref<16x4xf32, #tpu.memory_space<vmem>>, vector<16x4xf32>,
    %c0_26 = arith.constant 0 : index
    %c4 = arith.constant 4 : index
    %35 = vector.load %arg7[%c0_26, %c4] : memref<16x8xf32, #tpu.memory_space<vmem>>, vector<16x4xf32>
    tpu.vector_store %arg7[%c0_26, %c4], %33 {strides = array<i32>} : memref<16x8xf32, #tpu.memory_space<vmem>>, vector<16x4xf32>,
    %36 = vector.extract_strided_slice %33 {offsets = [0, 0], sizes = [15, 4], strides = [1, 1]} : vector<16x4xf32> to vector<15x4xf32>
    %c1 = arith.constant 1 : index
    %c0_27 = arith.constant 0 : index
    %37 = vector.load %arg7[%c1, %c0_27] : memref<16x8xf32, #tpu.memory_space<vmem>>, vector<15x4xf32>
    tpu.vector_store %arg7[%c1, %c0_27], %36 {strides = array<i32>} : memref<16x8xf32, #tpu.memory_space<vmem>>, vector<15x4xf32>,
    %c0_28 = arith.constant 0 : index
    %c0_29 = arith.constant 0 : index
    %c0_30 = arith.constant 0 : index
    %38 = vector.load %arg5[%c0_28, %c0_29, %c0_30] : memref<1x496x4xf32, #tpu.memory_space<vmem>>, vector<1x16x4xf32>
    %39 = vector.shape_cast %38 : vector<1x16x4xf32> to vector<16x4xf32>
    %40 = vector.shape_cast %33 : vector<16x4xf32> to vector<1x16x4xf32>
    tpu.vector_store %arg5[%c0_28, %c0_29, %c0_30], %40 {strides = array<i32>} : memref<1x496x4xf32, #tpu.memory_space<vmem>>, vector<1x16x4xf32>,
    %c16 = arith.constant 16 : index
    %c0_31 = arith.constant 0 : index
    %41 = vector.load %arg6[%c16, %c0_31] : memref<496x16xf32, #tpu.memory_space<vmem>>, vector<16x16xf32>
    %c0_32 = arith.constant 0 : index
    %c0_33 = arith.constant 0 : index
    %42 = vector.load %arg7[%c0_32, %c0_33] : memref<16x8xf32, #tpu.memory_space<vmem>>, vector<16x8xf32>
    %cst_34 = arith.constant dense<0.000000e+00> : vector<16x16xf32>
    %43 = tpu.matmul %42, %12, %cst_34 {dimension_numbers = #tpu.dot_dimension_numbers<[1], [0], [0], [1], [0, 0, 1, 1], [], []>} : vector<16x8xf32>, vector<8x16xf32>, vector<16x16xf32> -> vector<16x16xf32>
    %44 = arith.addf %41, %43 : vector<16x16xf32>
    %45 = vector.extract_strided_slice %44 {offsets = [0, 0], sizes = [16, 12], strides = [1, 1]} : vector<16x16xf32> to vector<16x12xf32>
    %46 = arith.negf %45 : vector<16x12xf32>
    %47 = math.exp %46 : vector<16x12xf32>
    %cst_35 = arith.constant 1.000000e+00 : f32
    %48 = vector.broadcast %cst_35 : f32 to vector<16x12xf32>
    %49 = arith.addf %48, %47 : vector<16x12xf32>
    %50 = arith.divf %48, %49 : vector<16x12xf32>
    %51 = vector.extract_strided_slice %50 {offsets = [0, 0], sizes = [16, 4], strides = [1, 1]} : vector<16x12xf32> to vector<16x4xf32>
    %52 = vector.extract_strided_slice %50 {offsets = [0, 4], sizes = [16, 4], strides = [1, 1]} : vector<16x12xf32> to vector<16x4xf32>
    %53 = vector.extract_strided_slice %50 {offsets = [0, 8], sizes = [16, 4], strides = [1, 1]} : vector<16x12xf32> to vector<16x4xf32>
    %54 = vector.extract_strided_slice %44 {offsets = [0, 12], sizes = [16, 4], strides = [1, 1]} : vector<16x16xf32> to vector<16x4xf32>
    %55 = math.tanh %54 : vector<16x4xf32>
    %c0_36 = arith.constant 0 : index
    %c0_37 = arith.constant 0 : index
    %56 = vector.load %arg8[%c0_36, %c0_37] : memref<16x4xf32, #tpu.memory_space<vmem>>, vector<16x4xf32>
    %57 = arith.mulf %52, %56 : vector<16x4xf32>
    %58 = arith.mulf %53, %55 : vector<16x4xf32>
    %59 = arith.addf %57, %58 : vector<16x4xf32>
    %60 = math.tanh %59 : vector<16x4xf32>
    %61 = arith.mulf %51, %60 : vector<16x4xf32>
    %c0_38 = arith.constant 0 : index
    %c0_39 = arith.constant 0 : index
    %62 = vector.load %arg8[%c0_38, %c0_39] : memref<16x4xf32, #tpu.memory_space<vmem>>, vector<16x4xf32>
    tpu.vector_store %arg8[%c0_38, %c0_39], %59 {strides = array<i32>} : memref<16x4xf32, #tpu.memory_space<vmem>>, vector<16x4xf32>,
    %c0_40 = arith.constant 0 : index
    %c4_41 = arith.constant 4 : index
    %63 = vector.load %arg7[%c0_40, %c4_41] : memref<16x8xf32, #tpu.memory_space<vmem>>, vector<16x4xf32>
    tpu.vector_store %arg7[%c0_40, %c4_41], %61 {strides = array<i32>} : memref<16x8xf32, #tpu.memory_space<vmem>>, vector<16x4xf32>,
    %64 = vector.extract_strided_slice %61 {offsets = [0, 0], sizes = [15, 4], strides = [1, 1]} : vector<16x4xf32> to vector<15x4xf32>
    %c1_42 = arith.constant 1 : index
    %c0_43 = arith.constant 0 : index
    %65 = vector.load %arg7[%c1_42, %c0_43] : memref<16x8xf32, #tpu.memory_space<vmem>>, vector<15x4xf32>
    tpu.vector_store %arg7[%c1_42, %c0_43], %64 {strides = array<i32>} : memref<16x8xf32, #tpu.memory_space<vmem>>, vector<15x4xf32>,
    %c0_44 = arith.constant 0 : index
    %c16_45 = arith.constant 16 : index
    %c0_46 = arith.constant 0 : index
    %66 = vector.load %arg5[%c0_44, %c16_45, %c0_46] : memref<1x496x4xf32, #tpu.memory_space<vmem>>, vector<1x16x4xf32>
    %67 = vector.shape_cast %66 : vector<1x16x4xf32> to vector<16x4xf32>
    %68 = vector.shape_cast %61 : vector<16x4xf32> to vector<1x16x4xf32>
    tpu.vector_store %arg5[%c0_44, %c16_45, %c0_46], %68 {strides = array<i32>} : memref<1x496x4xf32, #tpu.memory_space<vmem>>, vector<1x16x4xf32>,
    %c32 = arith.constant 32 : index
    %c0_47 = arith.constant 0 : index
    %69 = vector.load %arg6[%c32, %c0_47] : memref<496x16xf32, #tpu.memory_space<vmem>>, vector<16x16xf32>
    %c0_48 = arith.constant 0 : index
    %c0_49 = arith.constant 0 : index
    %70 = vector.load %arg7[%c0_48, %c0_49] : memref<16x8xf32, #tpu.memory_space<vmem>>, vector<16x8xf32>
    %cst_50 = arith.constant dense<0.000000e+00> : vector<16x16xf32>
    %71 = tpu.matmul %70, %12, %cst_50 {dimension_numbers = #tpu.dot_dimension_numbers<[1], [0], [0], [1], [0, 0, 1, 1], [], []>} : vector<16x8xf32>, vector<8x16xf32>, vector<16x16xf32> -> vector<16x16xf32>
    %72 = arith.addf %69, %71 : vector<16x16xf32>
    %73 = vector.extract_strided_slice %72 {offsets = [0, 0], sizes = [16, 12], strides = [1, 1]} : vector<16x16xf32> to vector<16x12xf32>
    %74 = arith.negf %73 : vector<16x12xf32>
    %75 = math.exp %74 : vector<16x12xf32>
    %cst_51 = arith.constant 1.000000e+00 : f32
    %76 = vector.broadcast %cst_51 : f32 to vector<16x12xf32>
    %77 = arith.addf %76, %75 : vector<16x12xf32>
    %78 = arith.divf %76, %77 : vector<16x12xf32>
    %79 = vector.extract_strided_slice %78 {offsets = [0, 0], sizes = [16, 4], strides = [1, 1]} : vector<16x12xf32> to vector<16x4xf32>
    %80 = vector.extract_strided_slice %78 {offsets = [0, 4], sizes = [16, 4], strides = [1, 1]} : vector<16x12xf32> to vector<16x4xf32>
    %81 = vector.extract_strided_slice %78 {offsets = [0, 8], sizes = [16, 4], strides = [1, 1]} : vector<16x12xf32> to vector<16x4xf32>
    %82 = vector.extract_strided_slice %72 {offsets = [0, 12], sizes = [16, 4], strides = [1, 1]} : vector<16x16xf32> to vector<16x4xf32>
    %83 = math.tanh %82 : vector<16x4xf32>
    %c0_52 = arith.constant 0 : index
    %c0_53 = arith.constant 0 : index
    %84 = vector.load %arg8[%c0_52, %c0_53] : memref<16x4xf32, #tpu.memory_space<vmem>>, vector<16x4xf32>
    %85 = arith.mulf %80, %84 : vector<16x4xf32>
    %86 = arith.mulf %81, %83 : vector<16x4xf32>
    %87 = arith.addf %85, %86 : vector<16x4xf32>
    %88 = math.tanh %87 : vector<16x4xf32>
    %89 = arith.mulf %79, %88 : vector<16x4xf32>
    %c0_54 = arith.constant 0 : index
    %c0_55 = arith.constant 0 : index
    %90 = vector.load %arg8[%c0_54, %c0_55] : memref<16x4xf32, #tpu.memory_space<vmem>>, vector<16x4xf32>
    tpu.vector_store %arg8[%c0_54, %c0_55], %87 {strides = array<i32>} : memref<16x4xf32, #tpu.memory_space<vmem>>, vector<16x4xf32>,
    %c0_56 = arith.constant 0 : index
    %c4_57 = arith.constant 4 : index
    %91 = vector.load %arg7[%c0_56, %c4_57] : memref<16x8xf32, #tpu.memory_space<vmem>>, vector<16x4xf32>
    tpu.vector_store %arg7[%c0_56, %c4_57], %89 {strides = array<i32>} : memref<16x8xf32, #tpu.memory_space<vmem>>, vector<16x4xf32>,
    %92 = vector.extract_strided_slice %89 {offsets = [0, 0], sizes = [15, 4], strides = [1, 1]} : vector<16x4xf32> to vector<15x4xf32>
    %c1_58 = arith.constant 1 : index
    %c0_59 = arith.constant 0 : index
    %93 = vector.load %arg7[%c1_58, %c0_59] : memref<16x8xf32, #tpu.memory_space<vmem>>, vector<15x4xf32>
    tpu.vector_store %arg7[%c1_58, %c0_59], %92 {strides = array<i32>} : memref<16x8xf32, #tpu.memory_space<vmem>>, vector<15x4xf32>,
    %c0_60 = arith.constant 0 : index
    %c32_61 = arith.constant 32 : index
    %c0_62 = arith.constant 0 : index
    %94 = vector.load %arg5[%c0_60, %c32_61, %c0_62] : memref<1x496x4xf32, #tpu.memory_space<vmem>>, vector<1x16x4xf32>
    %95 = vector.shape_cast %94 : vector<1x16x4xf32> to vector<16x4xf32>
    %96 = vector.shape_cast %89 : vector<16x4xf32> to vector<1x16x4xf32>
    tpu.vector_store %arg5[%c0_60, %c32_61, %c0_62], %96 {strides = array<i32>} : memref<1x496x4xf32, #tpu.memory_space<vmem>>, vector<1x16x4xf32>,
    %c48 = arith.constant 48 : index
    %c0_63 = arith.constant 0 : index
    %97 = vector.load %arg6[%c48, %c0_63] : memref<496x16xf32, #tpu.memory_space<vmem>>, vector<16x16xf32>
    %c0_64 = arith.constant 0 : index
    %c0_65 = arith.constant 0 : index
    %98 = vector.load %arg7[%c0_64, %c0_65] : memref<16x8xf32, #tpu.memory_space<vmem>>, vector<16x8xf32>
    %cst_66 = arith.constant dense<0.000000e+00> : vector<16x16xf32>
    %99 = tpu.matmul %98, %12, %cst_66 {dimension_numbers = #tpu.dot_dimension_numbers<[1], [0], [0], [1], [0, 0, 1, 1], [], []>} : vector<16x8xf32>, vector<8x16xf32>, vector<16x16xf32> -> vector<16x16xf32>
    %100 = arith.addf %97, %99 : vector<16x16xf32>
    %101 = vector.extract_strided_slice %100 {offsets = [0, 0], sizes = [16, 12], strides = [1, 1]} : vector<16x16xf32> to vector<16x12xf32>
    %102 = arith.negf %101 : vector<16x12xf32>
    %103 = math.exp %102 : vector<16x12xf32>
    %cst_67 = arith.constant 1.000000e+00 : f32
    %104 = vector.broadcast %cst_67 : f32 to vector<16x12xf32>
    %105 = arith.addf %104, %103 : vector<16x12xf32>
    %106 = arith.divf %104, %105 : vector<16x12xf32>
    %107 = vector.extract_strided_slice %106 {offsets = [0, 0], sizes = [16, 4], strides = [1, 1]} : vector<16x12xf32> to vector<16x4xf32>
    %108 = vector.extract_strided_slice %106 {offsets = [0, 4], sizes = [16, 4], strides = [1, 1]} : vector<16x12xf32> to vector<16x4xf32>
    %109 = vector.extract_strided_slice %106 {offsets = [0, 8], sizes = [16, 4], strides = [1, 1]} : vector<16x12xf32> to vector<16x4xf32>
    %110 = vector.extract_strided_slice %100 {offsets = [0, 12], sizes = [16, 4], strides = [1, 1]} : vector<16x16xf32> to vector<16x4xf32>
    %111 = math.tanh %110 : vector<16x4xf32>
    %c0_68 = arith.constant 0 : index
    %c0_69 = arith.constant 0 : index
    %112 = vector.load %arg8[%c0_68, %c0_69] : memref<16x4xf32, #tpu.memory_space<vmem>>, vector<16x4xf32>
    %113 = arith.mulf %108, %112 : vector<16x4xf32>
    %114 = arith.mulf %109, %111 : vector<16x4xf32>
    %115 = arith.addf %113, %114 : vector<16x4xf32>
    %116 = math.tanh %115 : vector<16x4xf32>
    %117 = arith.mulf %107, %116 : vector<16x4xf32>
    %c0_70 = arith.constant 0 : index
    %c0_71 = arith.constant 0 : index
    %118 = vector.load %arg8[%c0_70, %c0_71] : memref<16x4xf32, #tpu.memory_space<vmem>>, vector<16x4xf32>
    tpu.vector_store %arg8[%c0_70, %c0_71], %115 {strides = array<i32>} : memref<16x4xf32, #tpu.memory_space<vmem>>, vector<16x4xf32>,
    %c0_72 = arith.constant 0 : index
    %c4_73 = arith.constant 4 : index
    %119 = vector.load %arg7[%c0_72, %c4_73] : memref<16x8xf32, #tpu.memory_space<vmem>>, vector<16x4xf32>
    tpu.vector_store %arg7[%c0_72, %c4_73], %117 {strides = array<i32>} : memref<16x8xf32, #tpu.memory_space<vmem>>, vector<16x4xf32>,
    %120 = vector.extract_strided_slice %117 {offsets = [0, 0], sizes = [15, 4], strides = [1, 1]} : vector<16x4xf32> to vector<15x4xf32>
    %c1_74 = arith.constant 1 : index
    %c0_75 = arith.constant 0 : index
    %121 = vector.load %arg7[%c1_74, %c0_75] : memref<16x8xf32, #tpu.memory_space<vmem>>, vector<15x4xf32>
    tpu.vector_store %arg7[%c1_74, %c0_75], %120 {strides = array<i32>} : memref<16x8xf32, #tpu.memory_space<vmem>>, vector<15x4xf32>,
    %c0_76 = arith.constant 0 : index
    %c48_77 = arith.constant 48 : index
    %c0_78 = arith.constant 0 : index
    %122 = vector.load %arg5[%c0_76, %c48_77, %c0_78] : memref<1x496x4xf32, #tpu.memory_space<vmem>>, vector<1x16x4xf32>
    %123 = vector.shape_cast %122 : vector<1x16x4xf32> to vector<16x4xf32>
    %124 = vector.shape_cast %117 : vector<16x4xf32> to vector<1x16x4xf32>
    tpu.vector_store %arg5[%c0_76, %c48_77, %c0_78], %124 {strides = array<i32>} : memref<1x496x4xf32, #tpu.memory_space<vmem>>, vector<1x16x4xf32>,
    %c64 = arith.constant 64 : index
    %c0_79 = arith.constant 0 : index
    %125 = vector.load %arg6[%c64, %c0_79] : memref<496x16xf32, #tpu.memory_space<vmem>>, vector<16x16xf32>
    %c0_80 = arith.constant 0 : index
    %c0_81 = arith.constant 0 : index
    %126 = vector.load %arg7[%c0_80, %c0_81] : memref<16x8xf32, #tpu.memory_space<vmem>>, vector<16x8xf32>
    %cst_82 = arith.constant dense<0.000000e+00> : vector<16x16xf32>
    %127 = tpu.matmul %126, %12, %cst_82 {dimension_numbers = #tpu.dot_dimension_numbers<[1], [0], [0], [1], [0, 0, 1, 1], [], []>} : vector<16x8xf32>, vector<8x16xf32>, vector<16x16xf32> -> vector<16x16xf32>
    %128 = arith.addf %125, %127 : vector<16x16xf32>
    %129 = vector.extract_strided_slice %128 {offsets = [0, 0], sizes = [16, 12], strides = [1, 1]} : vector<16x16xf32> to vector<16x12xf32>
    %130 = arith.negf %129 : vector<16x12xf32>
    %131 = math.exp %130 : vector<16x12xf32>
    %cst_83 = arith.constant 1.000000e+00 : f32
    %132 = vector.broadcast %cst_83 : f32 to vector<16x12xf32>
    %133 = arith.addf %132, %131 : vector<16x12xf32>
    %134 = arith.divf %132, %133 : vector<16x12xf32>
    %135 = vector.extract_strided_slice %134 {offsets = [0, 0], sizes = [16, 4], strides = [1, 1]} : vector<16x12xf32> to vector<16x4xf32>
    %136 = vector.extract_strided_slice %134 {offsets = [0, 4], sizes = [16, 4], strides = [1, 1]} : vector<16x12xf32> to vector<16x4xf32>
    %137 = vector.extract_strided_slice %134 {offsets = [0, 8], sizes = [16, 4], strides = [1, 1]} : vector<16x12xf32> to vector<16x4xf32>
    %138 = vector.extract_strided_slice %128 {offsets = [0, 12], sizes = [16, 4], strides = [1, 1]} : vector<16x16xf32> to vector<16x4xf32>
    %139 = math.tanh %138 : vector<16x4xf32>
    %c0_84 = arith.constant 0 : index
    %c0_85 = arith.constant 0 : index
    %140 = vector.load %arg8[%c0_84, %c0_85] : memref<16x4xf32, #tpu.memory_space<vmem>>, vector<16x4xf32>
    %141 = arith.mulf %136, %140 : vector<16x4xf32>
    %142 = arith.mulf %137, %139 : vector<16x4xf32>
    %143 = arith.addf %141, %142 : vector<16x4xf32>
    %144 = math.tanh %143 : vector<16x4xf32>
    %145 = arith.mulf %135, %144 : vector<16x4xf32>
    %c0_86 = arith.constant 0 : index
    %c0_87 = arith.constant 0 : index
    %146 = vector.load %arg8[%c0_86, %c0_87] : memref<16x4xf32, #tpu.memory_space<vmem>>, vector<16x4xf32>
    tpu.vector_store %arg8[%c0_86, %c0_87], %143 {strides = array<i32>} : memref<16x4xf32, #tpu.memory_space<vmem>>, vector<16x4xf32>,
    %c0_88 = arith.constant 0 : index
    %c4_89 = arith.constant 4 : index
    %147 = vector.load %arg7[%c0_88, %c4_89] : memref<16x8xf32, #tpu.memory_space<vmem>>, vector<16x4xf32>
    tpu.vector_store %arg7[%c0_88, %c4_89], %145 {strides = array<i32>} : memref<16x8xf32, #tpu.memory_space<vmem>>, vector<16x4xf32>,
    %148 = vector.extract_strided_slice %145 {offsets = [0, 0], sizes = [15, 4], strides = [1, 1]} : vector<16x4xf32> to vector<15x4xf32>
    %c1_90 = arith.constant 1 : index
    %c0_91 = arith.constant 0 : index
    %149 = vector.load %arg7[%c1_90, %c0_91] : memref<16x8xf32, #tpu.memory_space<vmem>>, vector<15x4xf32>
    tpu.vector_store %arg7[%c1_90, %c0_91], %148 {strides = array<i32>} : memref<16x8xf32, #tpu.memory_space<vmem>>, vector<15x4xf32>,
    %c0_92 = arith.constant 0 : index
    %c64_93 = arith.constant 64 : index
    %c0_94 = arith.constant 0 : index
    %150 = vector.load %arg5[%c0_92, %c64_93, %c0_94] : memref<1x496x4xf32, #tpu.memory_space<vmem>>, vector<1x16x4xf32>
    %151 = vector.shape_cast %150 : vector<1x16x4xf32> to vector<16x4xf32>
    %152 = vector.shape_cast %145 : vector<16x4xf32> to vector<1x16x4xf32>
    tpu.vector_store %arg5[%c0_92, %c64_93, %c0_94], %152 {strides = array<i32>} : memref<1x496x4xf32, #tpu.memory_space<vmem>>, vector<1x16x4xf32>,
    %c80 = arith.constant 80 : index
    %c0_95 = arith.constant 0 : index
    %153 = vector.load %arg6[%c80, %c0_95] : memref<496x16xf32, #tpu.memory_space<vmem>>, vector<16x16xf32>
    %c0_96 = arith.constant 0 : index
    %c0_97 = arith.constant 0 : index
    %154 = vector.load %arg7[%c0_96, %c0_97] : memref<16x8xf32, #tpu.memory_space<vmem>>, vector<16x8xf32>
    %cst_98 = arith.constant dense<0.000000e+00> : vector<16x16xf32>
    %155 = tpu.matmul %154, %12, %cst_98 {dimension_numbers = #tpu.dot_dimension_numbers<[1], [0], [0], [1], [0, 0, 1, 1], [], []>} : vector<16x8xf32>, vector<8x16xf32>, vector<16x16xf32> -> vector<16x16xf32>
    %156 = arith.addf %153, %155 : vector<16x16xf32>
    %157 = vector.extract_strided_slice %156 {offsets = [0, 0], sizes = [16, 12], strides = [1, 1]} : vector<16x16xf32> to vector<16x12xf32>
    %158 = arith.negf %157 : vector<16x12xf32>
    %159 = math.exp %158 : vector<16x12xf32>
    %cst_99 = arith.constant 1.000000e+00 : f32
    %160 = vector.broadcast %cst_99 : f32 to vector<16x12xf32>
    %161 = arith.addf %160, %159 : vector<16x12xf32>
    %162 = arith.divf %160, %161 : vector<16x12xf32>
    %163 = vector.extract_strided_slice %162 {offsets = [0, 0], sizes = [16, 4], strides = [1, 1]} : vector<16x12xf32> to vector<16x4xf32>
    %164 = vector.extract_strided_slice %162 {offsets = [0, 4], sizes = [16, 4], strides = [1, 1]} : vector<16x12xf32> to vector<16x4xf32>
    %165 = vector.extract_strided_slice %162 {offsets = [0, 8], sizes = [16, 4], strides = [1, 1]} : vector<16x12xf32> to vector<16x4xf32>
    %166 = vector.extract_strided_slice %156 {offsets = [0, 12], sizes = [16, 4], strides = [1, 1]} : vector<16x16xf32> to vector<16x4xf32>
    %167 = math.tanh %166 : vector<16x4xf32>
    %c0_100 = arith.constant 0 : index
    %c0_101 = arith.constant 0 : index
    %168 = vector.load %arg8[%c0_100, %c0_101] : memref<16x4xf32, #tpu.memory_space<vmem>>, vector<16x4xf32>
    %169 = arith.mulf %164, %168 : vector<16x4xf32>
    %170 = arith.mulf %165, %167 : vector<16x4xf32>
    %171 = arith.addf %169, %170 : vector<16x4xf32>
    %172 = math.tanh %171 : vector<16x4xf32>
    %173 = arith.mulf %163, %172 : vector<16x4xf32>
    %c0_102 = arith.constant 0 : index
    %c0_103 = arith.constant 0 : index
    %174 = vector.load %arg8[%c0_102, %c0_103] : memref<16x4xf32, #tpu.memory_space<vmem>>, vector<16x4xf32>
    tpu.vector_store %arg8[%c0_102, %c0_103], %171 {strides = array<i32>} : memref<16x4xf32, #tpu.memory_space<vmem>>, vector<16x4xf32>,
    %c0_104 = arith.constant 0 : index
    %c4_105 = arith.constant 4 : index
    %175 = vector.load %arg7[%c0_104, %c4_105] : memref<16x8xf32, #tpu.memory_space<vmem>>, vector<16x4xf32>
    tpu.vector_store %arg7[%c0_104, %c4_105], %173 {strides = array<i32>} : memref<16x8xf32, #tpu.memory_space<vmem>>, vector<16x4xf32>,
    %176 = vector.extract_strided_slice %173 {offsets = [0, 0], sizes = [15, 4], strides = [1, 1]} : vector<16x4xf32> to vector<15x4xf32>
    %c1_106 = arith.constant 1 : index
    %c0_107 = arith.constant 0 : index
    %177 = vector.load %arg7[%c1_106, %c0_107] : memref<16x8xf32, #tpu.memory_space<vmem>>, vector<15x4xf32>
    tpu.vector_store %arg7[%c1_106, %c0_107], %176 {strides = array<i32>} : memref<16x8xf32, #tpu.memory_space<vmem>>, vector<15x4xf32>,
    %c0_108 = arith.constant 0 : index
    %c80_109 = arith.constant 80 : index
    %c0_110 = arith.constant 0 : index
    %178 = vector.load %arg5[%c0_108, %c80_109, %c0_110] : memref<1x496x4xf32, #tpu.memory_space<vmem>>, vector<1x16x4xf32>
    %179 = vector.shape_cast %178 : vector<1x16x4xf32> to vector<16x4xf32>
    %180 = vector.shape_cast %173 : vector<16x4xf32> to vector<1x16x4xf32>
    tpu.vector_store %arg5[%c0_108, %c80_109, %c0_110], %180 {strides = array<i32>} : memref<1x496x4xf32, #tpu.memory_space<vmem>>, vector<1x16x4xf32>,
    %c96 = arith.constant 96 : index
    %c0_111 = arith.constant 0 : index
    %181 = vector.load %arg6[%c96, %c0_111] : memref<496x16xf32, #tpu.memory_space<vmem>>, vector<16x16xf32>
    %c0_112 = arith.constant 0 : index
    %c0_113 = arith.constant 0 : index
    %182 = vector.load %arg7[%c0_112, %c0_113] : memref<16x8xf32, #tpu.memory_space<vmem>>, vector<16x8xf32>
    %cst_114 = arith.constant dense<0.000000e+00> : vector<16x16xf32>
    %183 = tpu.matmul %182, %12, %cst_114 {dimension_numbers = #tpu.dot_dimension_numbers<[1], [0], [0], [1], [0, 0, 1, 1], [], []>} : vector<16x8xf32>, vector<8x16xf32>, vector<16x16xf32> -> vector<16x16xf32>
    %184 = arith.addf %181, %183 : vector<16x16xf32>
    %185 = vector.extract_strided_slice %184 {offsets = [0, 0], sizes = [16, 12], strides = [1, 1]} : vector<16x16xf32> to vector<16x12xf32>
    %186 = arith.negf %185 : vector<16x12xf32>
    %187 = math.exp %186 : vector<16x12xf32>
    %cst_115 = arith.constant 1.000000e+00 : f32
    %188 = vector.broadcast %cst_115 : f32 to vector<16x12xf32>
    %189 = arith.addf %188, %187 : vector<16x12xf32>
    %190 = arith.divf %188, %189 : vector<16x12xf32>
    %191 = vector.extract_strided_slice %190 {offsets = [0, 0], sizes = [16, 4], strides = [1, 1]} : vector<16x12xf32> to vector<16x4xf32>
    %192 = vector.extract_strided_slice %190 {offsets = [0, 4], sizes = [16, 4], strides = [1, 1]} : vector<16x12xf32> to vector<16x4xf32>
    %193 = vector.extract_strided_slice %190 {offsets = [0, 8], sizes = [16, 4], strides = [1, 1]} : vector<16x12xf32> to vector<16x4xf32>
    %194 = vector.extract_strided_slice %184 {offsets = [0, 12], sizes = [16, 4], strides = [1, 1]} : vector<16x16xf32> to vector<16x4xf32>
    %195 = math.tanh %194 : vector<16x4xf32>
    %c0_116 = arith.constant 0 : index
    %c0_117 = arith.constant 0 : index
    %196 = vector.load %arg8[%c0_116, %c0_117] : memref<16x4xf32, #tpu.memory_space<vmem>>, vector<16x4xf32>
    %197 = arith.mulf %192, %196 : vector<16x4xf32>
    %198 = arith.mulf %193, %195 : vector<16x4xf32>
    %199 = arith.addf %197, %198 : vector<16x4xf32>
    %200 = math.tanh %199 : vector<16x4xf32>
    %201 = arith.mulf %191, %200 : vector<16x4xf32>
    %c0_118 = arith.constant 0 : index
    %c0_119 = arith.constant 0 : index
    %202 = vector.load %arg8[%c0_118, %c0_119] : memref<16x4xf32, #tpu.memory_space<vmem>>, vector<16x4xf32>
    tpu.vector_store %arg8[%c0_118, %c0_119], %199 {strides = array<i32>} : memref<16x4xf32, #tpu.memory_space<vmem>>, vector<16x4xf32>,
    %c0_120 = arith.constant 0 : index
    %c4_121 = arith.constant 4 : index
    %203 = vector.load %arg7[%c0_120, %c4_121] : memref<16x8xf32, #tpu.memory_space<vmem>>, vector<16x4xf32>
    tpu.vector_store %arg7[%c0_120, %c4_121], %201 {strides = array<i32>} : memref<16x8xf32, #tpu.memory_space<vmem>>, vector<16x4xf32>,
    %204 = vector.extract_strided_slice %201 {offsets = [0, 0], sizes = [15, 4], strides = [1, 1]} : vector<16x4xf32> to vector<15x4xf32>
    %c1_122 = arith.constant 1 : index
    %c0_123 = arith.constant 0 : index
    %205 = vector.load %arg7[%c1_122, %c0_123] : memref<16x8xf32, #tpu.memory_space<vmem>>, vector<15x4xf32>
    tpu.vector_store %arg7[%c1_122, %c0_123], %204 {strides = array<i32>} : memref<16x8xf32, #tpu.memory_space<vmem>>, vector<15x4xf32>,
    %c0_124 = arith.constant 0 : index
    %c96_125 = arith.constant 96 : index
    %c0_126 = arith.constant 0 : index
    %206 = vector.load %arg5[%c0_124, %c96_125, %c0_126] : memref<1x496x4xf32, #tpu.memory_space<vmem>>, vector<1x16x4xf32>
    %207 = vector.shape_cast %206 : vector<1x16x4xf32> to vector<16x4xf32>
    %208 = vector.shape_cast %201 : vector<16x4xf32> to vector<1x16x4xf32>
    tpu.vector_store %arg5[%c0_124, %c96_125, %c0_126], %208 {strides = array<i32>} : memref<1x496x4xf32, #tpu.memory_space<vmem>>, vector<1x16x4xf32>,
    %c112 = arith.constant 112 : index
    %c0_127 = arith.constant 0 : index
    %209 = vector.load %arg6[%c112, %c0_127] : memref<496x16xf32, #tpu.memory_space<vmem>>, vector<16x16xf32>
    %c0_128 = arith.constant 0 : index
    %c0_129 = arith.constant 0 : index
    %210 = vector.load %arg7[%c0_128, %c0_129] : memref<16x8xf32, #tpu.memory_space<vmem>>, vector<16x8xf32>
    %cst_130 = arith.constant dense<0.000000e+00> : vector<16x16xf32>
    %211 = tpu.matmul %210, %12, %cst_130 {dimension_numbers = #tpu.dot_dimension_numbers<[1], [0], [0], [1], [0, 0, 1, 1], [], []>} : vector<16x8xf32>, vector<8x16xf32>, vector<16x16xf32> -> vector<16x16xf32>
    %212 = arith.addf %209, %211 : vector<16x16xf32>
    %213 = vector.extract_strided_slice %212 {offsets = [0, 0], sizes = [16, 12], strides = [1, 1]} : vector<16x16xf32> to vector<16x12xf32>
    %214 = arith.negf %213 : vector<16x12xf32>
    %215 = math.exp %214 : vector<16x12xf32>
    %cst_131 = arith.constant 1.000000e+00 : f32
    %216 = vector.broadcast %cst_131 : f32 to vector<16x12xf32>
    %217 = arith.addf %216, %215 : vector<16x12xf32>
    %218 = arith.divf %216, %217 : vector<16x12xf32>
    %219 = vector.extract_strided_slice %218 {offsets = [0, 0], sizes = [16, 4], strides = [1, 1]} : vector<16x12xf32> to vector<16x4xf32>
    %220 = vector.extract_strided_slice %218 {offsets = [0, 4], sizes = [16, 4], strides = [1, 1]} : vector<16x12xf32> to vector<16x4xf32>
    %221 = vector.extract_strided_slice %218 {offsets = [0, 8], sizes = [16, 4], strides = [1, 1]} : vector<16x12xf32> to vector<16x4xf32>
    %222 = vector.extract_strided_slice %212 {offsets = [0, 12], sizes = [16, 4], strides = [1, 1]} : vector<16x16xf32> to vector<16x4xf32>
    %223 = math.tanh %222 : vector<16x4xf32>
    %c0_132 = arith.constant 0 : index
    %c0_133 = arith.constant 0 : index
    %224 = vector.load %arg8[%c0_132, %c0_133] : memref<16x4xf32, #tpu.memory_space<vmem>>, vector<16x4xf32>
    %225 = arith.mulf %220, %224 : vector<16x4xf32>
    %226 = arith.mulf %221, %223 : vector<16x4xf32>
    %227 = arith.addf %225, %226 : vector<16x4xf32>
    %228 = math.tanh %227 : vector<16x4xf32>
    %229 = arith.mulf %219, %228 : vector<16x4xf32>
    %c0_134 = arith.constant 0 : index
    %c0_135 = arith.constant 0 : index
    %230 = vector.load %arg8[%c0_134, %c0_135] : memref<16x4xf32, #tpu.memory_space<vmem>>, vector<16x4xf32>
    tpu.vector_store %arg8[%c0_134, %c0_135], %227 {strides = array<i32>} : memref<16x4xf32, #tpu.memory_space<vmem>>, vector<16x4xf32>,
    %c0_136 = arith.constant 0 : index
    %c4_137 = arith.constant 4 : index
    %231 = vector.load %arg7[%c0_136, %c4_137] : memref<16x8xf32, #tpu.memory_space<vmem>>, vector<16x4xf32>
    tpu.vector_store %arg7[%c0_136, %c4_137], %229 {strides = array<i32>} : memref<16x8xf32, #tpu.memory_space<vmem>>, vector<16x4xf32>,
    %232 = vector.extract_strided_slice %229 {offsets = [0, 0], sizes = [15, 4], strides = [1, 1]} : vector<16x4xf32> to vector<15x4xf32>
    %c1_138 = arith.constant 1 : index
    %c0_139 = arith.constant 0 : index
    %233 = vector.load %arg7[%c1_138, %c0_139] : memref<16x8xf32, #tpu.memory_space<vmem>>, vector<15x4xf32>
    tpu.vector_store %arg7[%c1_138, %c0_139], %232 {strides = array<i32>} : memref<16x8xf32, #tpu.memory_space<vmem>>, vector<15x4xf32>,
    %c0_140 = arith.constant 0 : index
    %c112_141 = arith.constant 112 : index
    %c0_142 = arith.constant 0 : index
    %234 = vector.load %arg5[%c0_140, %c112_141, %c0_142] : memref<1x496x4xf32, #tpu.memory_space<vmem>>, vector<1x16x4xf32>
    %235 = vector.shape_cast %234 : vector<1x16x4xf32> to vector<16x4xf32>
    %236 = vector.shape_cast %229 : vector<16x4xf32> to vector<1x16x4xf32>
    tpu.vector_store %arg5[%c0_140, %c112_141, %c0_142], %236 {strides = array<i32>} : memref<1x496x4xf32, #tpu.memory_space<vmem>>, vector<1x16x4xf32>,
    %c128 = arith.constant 128 : index
    %c0_143 = arith.constant 0 : index
    %237 = vector.load %arg6[%c128, %c0_143] : memref<496x16xf32, #tpu.memory_space<vmem>>, vector<16x16xf32>
    %c0_144 = arith.constant 0 : index
    %c0_145 = arith.constant 0 : index
    %238 = vector.load %arg7[%c0_144, %c0_145] : memref<16x8xf32, #tpu.memory_space<vmem>>, vector<16x8xf32>
    %cst_146 = arith.constant dense<0.000000e+00> : vector<16x16xf32>
    %239 = tpu.matmul %238, %12, %cst_146 {dimension_numbers = #tpu.dot_dimension_numbers<[1], [0], [0], [1], [0, 0, 1, 1], [], []>} : vector<16x8xf32>, vector<8x16xf32>, vector<16x16xf32> -> vector<16x16xf32>
    %240 = arith.addf %237, %239 : vector<16x16xf32>
    %241 = vector.extract_strided_slice %240 {offsets = [0, 0], sizes = [16, 12], strides = [1, 1]} : vector<16x16xf32> to vector<16x12xf32>
    %242 = arith.negf %241 : vector<16x12xf32>
    %243 = math.exp %242 : vector<16x12xf32>
    %cst_147 = arith.constant 1.000000e+00 : f32
    %244 = vector.broadcast %cst_147 : f32 to vector<16x12xf32>
    %245 = arith.addf %244, %243 : vector<16x12xf32>
    %246 = arith.divf %244, %245 : vector<16x12xf32>
    %247 = vector.extract_strided_slice %246 {offsets = [0, 0], sizes = [16, 4], strides = [1, 1]} : vector<16x12xf32> to vector<16x4xf32>
    %248 = vector.extract_strided_slice %246 {offsets = [0, 4], sizes = [16, 4], strides = [1, 1]} : vector<16x12xf32> to vector<16x4xf32>
    %249 = vector.extract_strided_slice %246 {offsets = [0, 8], sizes = [16, 4], strides = [1, 1]} : vector<16x12xf32> to vector<16x4xf32>
    %250 = vector.extract_strided_slice %240 {offsets = [0, 12], sizes = [16, 4], strides = [1, 1]} : vector<16x16xf32> to vector<16x4xf32>
    %251 = math.tanh %250 : vector<16x4xf32>
    %c0_148 = arith.constant 0 : index
    %c0_149 = arith.constant 0 : index
    %252 = vector.load %arg8[%c0_148, %c0_149] : memref<16x4xf32, #tpu.memory_space<vmem>>, vector<16x4xf32>
    %253 = arith.mulf %248, %252 : vector<16x4xf32>
    %254 = arith.mulf %249, %251 : vector<16x4xf32>
    %255 = arith.addf %253, %254 : vector<16x4xf32>
    %256 = math.tanh %255 : vector<16x4xf32>
    %257 = arith.mulf %247, %256 : vector<16x4xf32>
    %c0_150 = arith.constant 0 : index
    %c0_151 = arith.constant 0 : index
    %258 = vector.load %arg8[%c0_150, %c0_151] : memref<16x4xf32, #tpu.memory_space<vmem>>, vector<16x4xf32>
    tpu.vector_store %arg8[%c0_150, %c0_151], %255 {strides = array<i32>} : memref<16x4xf32, #tpu.memory_space<vmem>>, vector<16x4xf32>,
    %c0_152 = arith.constant 0 : index
    %c4_153 = arith.constant 4 : index
    %259 = vector.load %arg7[%c0_152, %c4_153] : memref<16x8xf32, #tpu.memory_space<vmem>>, vector<16x4xf32>
    tpu.vector_store %arg7[%c0_152, %c4_153], %257 {strides = array<i32>} : memref<16x8xf32, #tpu.memory_space<vmem>>, vector<16x4xf32>,
    %260 = vector.extract_strided_slice %257 {offsets = [0, 0], sizes = [15, 4], strides = [1, 1]} : vector<16x4xf32> to vector<15x4xf32>
    %c1_154 = arith.constant 1 : index
    %c0_155 = arith.constant 0 : index
    %261 = vector.load %arg7[%c1_154, %c0_155] : memref<16x8xf32, #tpu.memory_space<vmem>>, vector<15x4xf32>
    tpu.vector_store %arg7[%c1_154, %c0_155], %260 {strides = array<i32>} : memref<16x8xf32, #tpu.memory_space<vmem>>, vector<15x4xf32>,
    %c0_156 = arith.constant 0 : index
    %c128_157 = arith.constant 128 : index
    %c0_158 = arith.constant 0 : index
    %262 = vector.load %arg5[%c0_156, %c128_157, %c0_158] : memref<1x496x4xf32, #tpu.memory_space<vmem>>, vector<1x16x4xf32>
    %263 = vector.shape_cast %262 : vector<1x16x4xf32> to vector<16x4xf32>
    %264 = vector.shape_cast %257 : vector<16x4xf32> to vector<1x16x4xf32>
    tpu.vector_store %arg5[%c0_156, %c128_157, %c0_158], %264 {strides = array<i32>} : memref<1x496x4xf32, #tpu.memory_space<vmem>>, vector<1x16x4xf32>,
    %c144 = arith.constant 144 : index
    %c0_159 = arith.constant 0 : index
    %265 = vector.load %arg6[%c144, %c0_159] : memref<496x16xf32, #tpu.memory_space<vmem>>, vector<16x16xf32>
    %c0_160 = arith.constant 0 : index
    %c0_161 = arith.constant 0 : index
    %266 = vector.load %arg7[%c0_160, %c0_161] : memref<16x8xf32, #tpu.memory_space<vmem>>, vector<16x8xf32>
    %cst_162 = arith.constant dense<0.000000e+00> : vector<16x16xf32>
    %267 = tpu.matmul %266, %12, %cst_162 {dimension_numbers = #tpu.dot_dimension_numbers<[1], [0], [0], [1], [0, 0, 1, 1], [], []>} : vector<16x8xf32>, vector<8x16xf32>, vector<16x16xf32> -> vector<16x16xf32>
    %268 = arith.addf %265, %267 : vector<16x16xf32>
    %269 = vector.extract_strided_slice %268 {offsets = [0, 0], sizes = [16, 12], strides = [1, 1]} : vector<16x16xf32> to vector<16x12xf32>
    %270 = arith.negf %269 : vector<16x12xf32>
    %271 = math.exp %270 : vector<16x12xf32>
    %cst_163 = arith.constant 1.000000e+00 : f32
    %272 = vector.broadcast %cst_163 : f32 to vector<16x12xf32>
    %273 = arith.addf %272, %271 : vector<16x12xf32>
    %274 = arith.divf %272, %273 : vector<16x12xf32>
    %275 = vector.extract_strided_slice %274 {offsets = [0, 0], sizes = [16, 4], strides = [1, 1]} : vector<16x12xf32> to vector<16x4xf32>
    %276 = vector.extract_strided_slice %274 {offsets = [0, 4], sizes = [16, 4], strides = [1, 1]} : vector<16x12xf32> to vector<16x4xf32>
    %277 = vector.extract_strided_slice %274 {offsets = [0, 8], sizes = [16, 4], strides = [1, 1]} : vector<16x12xf32> to vector<16x4xf32>
    %278 = vector.extract_strided_slice %268 {offsets = [0, 12], sizes = [16, 4], strides = [1, 1]} : vector<16x16xf32> to vector<16x4xf32>
    %279 = math.tanh %278 : vector<16x4xf32>
    %c0_164 = arith.constant 0 : index
    %c0_165 = arith.constant 0 : index
    %280 = vector.load %arg8[%c0_164, %c0_165] : memref<16x4xf32, #tpu.memory_space<vmem>>, vector<16x4xf32>
    %281 = arith.mulf %276, %280 : vector<16x4xf32>
    %282 = arith.mulf %277, %279 : vector<16x4xf32>
    %283 = arith.addf %281, %282 : vector<16x4xf32>
    %284 = math.tanh %283 : vector<16x4xf32>
    %285 = arith.mulf %275, %284 : vector<16x4xf32>
    %c0_166 = arith.constant 0 : index
    %c0_167 = arith.constant 0 : index
    %286 = vector.load %arg8[%c0_166, %c0_167] : memref<16x4xf32, #tpu.memory_space<vmem>>, vector<16x4xf32>
    tpu.vector_store %arg8[%c0_166, %c0_167], %283 {strides = array<i32>} : memref<16x4xf32, #tpu.memory_space<vmem>>, vector<16x4xf32>,
    %c0_168 = arith.constant 0 : index
    %c4_169 = arith.constant 4 : index
    %287 = vector.load %arg7[%c0_168, %c4_169] : memref<16x8xf32, #tpu.memory_space<vmem>>, vector<16x4xf32>
    tpu.vector_store %arg7[%c0_168, %c4_169], %285 {strides = array<i32>} : memref<16x8xf32, #tpu.memory_space<vmem>>, vector<16x4xf32>,
    %288 = vector.extract_strided_slice %285 {offsets = [0, 0], sizes = [15, 4], strides = [1, 1]} : vector<16x4xf32> to vector<15x4xf32>
    %c1_170 = arith.constant 1 : index
    %c0_171 = arith.constant 0 : index
    %289 = vector.load %arg7[%c1_170, %c0_171] : memref<16x8xf32, #tpu.memory_space<vmem>>, vector<15x4xf32>
    tpu.vector_store %arg7[%c1_170, %c0_171], %288 {strides = array<i32>} : memref<16x8xf32, #tpu.memory_space<vmem>>, vector<15x4xf32>,
    %c0_172 = arith.constant 0 : index
    %c144_173 = arith.constant 144 : index
    %c0_174 = arith.constant 0 : index
    %290 = vector.load %arg5[%c0_172, %c144_173, %c0_174] : memref<1x496x4xf32, #tpu.memory_space<vmem>>, vector<1x16x4xf32>
    %291 = vector.shape_cast %290 : vector<1x16x4xf32> to vector<16x4xf32>
    %292 = vector.shape_cast %285 : vector<16x4xf32> to vector<1x16x4xf32>
    tpu.vector_store %arg5[%c0_172, %c144_173, %c0_174], %292 {strides = array<i32>} : memref<1x496x4xf32, #tpu.memory_space<vmem>>, vector<1x16x4xf32>,
    %c160 = arith.constant 160 : index
    %c0_175 = arith.constant 0 : index
    %293 = vector.load %arg6[%c160, %c0_175] : memref<496x16xf32, #tpu.memory_space<vmem>>, vector<16x16xf32>
    %c0_176 = arith.constant 0 : index
    %c0_177 = arith.constant 0 : index
    %294 = vector.load %arg7[%c0_176, %c0_177] : memref<16x8xf32, #tpu.memory_space<vmem>>, vector<16x8xf32>
    %cst_178 = arith.constant dense<0.000000e+00> : vector<16x16xf32>
    %295 = tpu.matmul %294, %12, %cst_178 {dimension_numbers = #tpu.dot_dimension_numbers<[1], [0], [0], [1], [0, 0, 1, 1], [], []>} : vector<16x8xf32>, vector<8x16xf32>, vector<16x16xf32> -> vector<16x16xf32>
    %296 = arith.addf %293, %295 : vector<16x16xf32>
    %297 = vector.extract_strided_slice %296 {offsets = [0, 0], sizes = [16, 12], strides = [1, 1]} : vector<16x16xf32> to vector<16x12xf32>
    %298 = arith.negf %297 : vector<16x12xf32>
    %299 = math.exp %298 : vector<16x12xf32>
    %cst_179 = arith.constant 1.000000e+00 : f32
    %300 = vector.broadcast %cst_179 : f32 to vector<16x12xf32>
    %301 = arith.addf %300, %299 : vector<16x12xf32>
    %302 = arith.divf %300, %301 : vector<16x12xf32>
    %303 = vector.extract_strided_slice %302 {offsets = [0, 0], sizes = [16, 4], strides = [1, 1]} : vector<16x12xf32> to vector<16x4xf32>
    %304 = vector.extract_strided_slice %302 {offsets = [0, 4], sizes = [16, 4], strides = [1, 1]} : vector<16x12xf32> to vector<16x4xf32>
    %305 = vector.extract_strided_slice %302 {offsets = [0, 8], sizes = [16, 4], strides = [1, 1]} : vector<16x12xf32> to vector<16x4xf32>
    %306 = vector.extract_strided_slice %296 {offsets = [0, 12], sizes = [16, 4], strides = [1, 1]} : vector<16x16xf32> to vector<16x4xf32>
    %307 = math.tanh %306 : vector<16x4xf32>
    %c0_180 = arith.constant 0 : index
    %c0_181 = arith.constant 0 : index
    %308 = vector.load %arg8[%c0_180, %c0_181] : memref<16x4xf32, #tpu.memory_space<vmem>>, vector<16x4xf32>
    %309 = arith.mulf %304, %308 : vector<16x4xf32>
    %310 = arith.mulf %305, %307 : vector<16x4xf32>
    %311 = arith.addf %309, %310 : vector<16x4xf32>
    %312 = math.tanh %311 : vector<16x4xf32>
    %313 = arith.mulf %303, %312 : vector<16x4xf32>
    %c0_182 = arith.constant 0 : index
    %c0_183 = arith.constant 0 : index
    %314 = vector.load %arg8[%c0_182, %c0_183] : memref<16x4xf32, #tpu.memory_space<vmem>>, vector<16x4xf32>
    tpu.vector_store %arg8[%c0_182, %c0_183], %311 {strides = array<i32>} : memref<16x4xf32, #tpu.memory_space<vmem>>, vector<16x4xf32>,
    %c0_184 = arith.constant 0 : index
    %c4_185 = arith.constant 4 : index
    %315 = vector.load %arg7[%c0_184, %c4_185] : memref<16x8xf32, #tpu.memory_space<vmem>>, vector<16x4xf32>
    tpu.vector_store %arg7[%c0_184, %c4_185], %313 {strides = array<i32>} : memref<16x8xf32, #tpu.memory_space<vmem>>, vector<16x4xf32>,
    %316 = vector.extract_strided_slice %313 {offsets = [0, 0], sizes = [15, 4], strides = [1, 1]} : vector<16x4xf32> to vector<15x4xf32>
    %c1_186 = arith.constant 1 : index
    %c0_187 = arith.constant 0 : index
    %317 = vector.load %arg7[%c1_186, %c0_187] : memref<16x8xf32, #tpu.memory_space<vmem>>, vector<15x4xf32>
    tpu.vector_store %arg7[%c1_186, %c0_187], %316 {strides = array<i32>} : memref<16x8xf32, #tpu.memory_space<vmem>>, vector<15x4xf32>,
    %c0_188 = arith.constant 0 : index
    %c160_189 = arith.constant 160 : index
    %c0_190 = arith.constant 0 : index
    %318 = vector.load %arg5[%c0_188, %c160_189, %c0_190] : memref<1x496x4xf32, #tpu.memory_space<vmem>>, vector<1x16x4xf32>
    %319 = vector.shape_cast %318 : vector<1x16x4xf32> to vector<16x4xf32>
    %320 = vector.shape_cast %313 : vector<16x4xf32> to vector<1x16x4xf32>
    tpu.vector_store %arg5[%c0_188, %c160_189, %c0_190], %320 {strides = array<i32>} : memref<1x496x4xf32, #tpu.memory_space<vmem>>, vector<1x16x4xf32>,
    %c176 = arith.constant 176 : index
    %c0_191 = arith.constant 0 : index
    %321 = vector.load %arg6[%c176, %c0_191] : memref<496x16xf32, #tpu.memory_space<vmem>>, vector<16x16xf32>
    %c0_192 = arith.constant 0 : index
    %c0_193 = arith.constant 0 : index
    %322 = vector.load %arg7[%c0_192, %c0_193] : memref<16x8xf32, #tpu.memory_space<vmem>>, vector<16x8xf32>
    %cst_194 = arith.constant dense<0.000000e+00> : vector<16x16xf32>
    %323 = tpu.matmul %322, %12, %cst_194 {dimension_numbers = #tpu.dot_dimension_numbers<[1], [0], [0], [1], [0, 0, 1, 1], [], []>} : vector<16x8xf32>, vector<8x16xf32>, vector<16x16xf32> -> vector<16x16xf32>
    %324 = arith.addf %321, %323 : vector<16x16xf32>
    %325 = vector.extract_strided_slice %324 {offsets = [0, 0], sizes = [16, 12], strides = [1, 1]} : vector<16x16xf32> to vector<16x12xf32>
    %326 = arith.negf %325 : vector<16x12xf32>
    %327 = math.exp %326 : vector<16x12xf32>
    %cst_195 = arith.constant 1.000000e+00 : f32
    %328 = vector.broadcast %cst_195 : f32 to vector<16x12xf32>
    %329 = arith.addf %328, %327 : vector<16x12xf32>
    %330 = arith.divf %328, %329 : vector<16x12xf32>
    %331 = vector.extract_strided_slice %330 {offsets = [0, 0], sizes = [16, 4], strides = [1, 1]} : vector<16x12xf32> to vector<16x4xf32>
    %332 = vector.extract_strided_slice %330 {offsets = [0, 4], sizes = [16, 4], strides = [1, 1]} : vector<16x12xf32> to vector<16x4xf32>
    %333 = vector.extract_strided_slice %330 {offsets = [0, 8], sizes = [16, 4], strides = [1, 1]} : vector<16x12xf32> to vector<16x4xf32>
    %334 = vector.extract_strided_slice %324 {offsets = [0, 12], sizes = [16, 4], strides = [1, 1]} : vector<16x16xf32> to vector<16x4xf32>
    %335 = math.tanh %334 : vector<16x4xf32>
    %c0_196 = arith.constant 0 : index
    %c0_197 = arith.constant 0 : index
    %336 = vector.load %arg8[%c0_196, %c0_197] : memref<16x4xf32, #tpu.memory_space<vmem>>, vector<16x4xf32>
    %337 = arith.mulf %332, %336 : vector<16x4xf32>
    %338 = arith.mulf %333, %335 : vector<16x4xf32>
    %339 = arith.addf %337, %338 : vector<16x4xf32>
    %340 = math.tanh %339 : vector<16x4xf32>
    %341 = arith.mulf %331, %340 : vector<16x4xf32>
    %c0_198 = arith.constant 0 : index
    %c0_199 = arith.constant 0 : index
    %342 = vector.load %arg8[%c0_198, %c0_199] : memref<16x4xf32, #tpu.memory_space<vmem>>, vector<16x4xf32>
    tpu.vector_store %arg8[%c0_198, %c0_199], %339 {strides = array<i32>} : memref<16x4xf32, #tpu.memory_space<vmem>>, vector<16x4xf32>,
    %c0_200 = arith.constant 0 : index
    %c4_201 = arith.constant 4 : index
    %343 = vector.load %arg7[%c0_200, %c4_201] : memref<16x8xf32, #tpu.memory_space<vmem>>, vector<16x4xf32>
    tpu.vector_store %arg7[%c0_200, %c4_201], %341 {strides = array<i32>} : memref<16x8xf32, #tpu.memory_space<vmem>>, vector<16x4xf32>,
    %344 = vector.extract_strided_slice %341 {offsets = [0, 0], sizes = [15, 4], strides = [1, 1]} : vector<16x4xf32> to vector<15x4xf32>
    %c1_202 = arith.constant 1 : index
    %c0_203 = arith.constant 0 : index
    %345 = vector.load %arg7[%c1_202, %c0_203] : memref<16x8xf32, #tpu.memory_space<vmem>>, vector<15x4xf32>
    tpu.vector_store %arg7[%c1_202, %c0_203], %344 {strides = array<i32>} : memref<16x8xf32, #tpu.memory_space<vmem>>, vector<15x4xf32>,
    %c0_204 = arith.constant 0 : index
    %c176_205 = arith.constant 176 : index
    %c0_206 = arith.constant 0 : index
    %346 = vector.load %arg5[%c0_204, %c176_205, %c0_206] : memref<1x496x4xf32, #tpu.memory_space<vmem>>, vector<1x16x4xf32>
    %347 = vector.shape_cast %346 : vector<1x16x4xf32> to vector<16x4xf32>
    %348 = vector.shape_cast %341 : vector<16x4xf32> to vector<1x16x4xf32>
    tpu.vector_store %arg5[%c0_204, %c176_205, %c0_206], %348 {strides = array<i32>} : memref<1x496x4xf32, #tpu.memory_space<vmem>>, vector<1x16x4xf32>,
    %c192 = arith.constant 192 : index
    %c0_207 = arith.constant 0 : index
    %349 = vector.load %arg6[%c192, %c0_207] : memref<496x16xf32, #tpu.memory_space<vmem>>, vector<16x16xf32>
    %c0_208 = arith.constant 0 : index
    %c0_209 = arith.constant 0 : index
    %350 = vector.load %arg7[%c0_208, %c0_209] : memref<16x8xf32, #tpu.memory_space<vmem>>, vector<16x8xf32>
    %cst_210 = arith.constant dense<0.000000e+00> : vector<16x16xf32>
    %351 = tpu.matmul %350, %12, %cst_210 {dimension_numbers = #tpu.dot_dimension_numbers<[1], [0], [0], [1], [0, 0, 1, 1], [], []>} : vector<16x8xf32>, vector<8x16xf32>, vector<16x16xf32> -> vector<16x16xf32>
    %352 = arith.addf %349, %351 : vector<16x16xf32>
    %353 = vector.extract_strided_slice %352 {offsets = [0, 0], sizes = [16, 12], strides = [1, 1]} : vector<16x16xf32> to vector<16x12xf32>
    %354 = arith.negf %353 : vector<16x12xf32>
    %355 = math.exp %354 : vector<16x12xf32>
    %cst_211 = arith.constant 1.000000e+00 : f32
    %356 = vector.broadcast %cst_211 : f32 to vector<16x12xf32>
    %357 = arith.addf %356, %355 : vector<16x12xf32>
    %358 = arith.divf %356, %357 : vector<16x12xf32>
    %359 = vector.extract_strided_slice %358 {offsets = [0, 0], sizes = [16, 4], strides = [1, 1]} : vector<16x12xf32> to vector<16x4xf32>
    %360 = vector.extract_strided_slice %358 {offsets = [0, 4], sizes = [16, 4], strides = [1, 1]} : vector<16x12xf32> to vector<16x4xf32>
    %361 = vector.extract_strided_slice %358 {offsets = [0, 8], sizes = [16, 4], strides = [1, 1]} : vector<16x12xf32> to vector<16x4xf32>
    %362 = vector.extract_strided_slice %352 {offsets = [0, 12], sizes = [16, 4], strides = [1, 1]} : vector<16x16xf32> to vector<16x4xf32>
    %363 = math.tanh %362 : vector<16x4xf32>
    %c0_212 = arith.constant 0 : index
    %c0_213 = arith.constant 0 : index
    %364 = vector.load %arg8[%c0_212, %c0_213] : memref<16x4xf32, #tpu.memory_space<vmem>>, vector<16x4xf32>
    %365 = arith.mulf %360, %364 : vector<16x4xf32>
    %366 = arith.mulf %361, %363 : vector<16x4xf32>
    %367 = arith.addf %365, %366 : vector<16x4xf32>
    %368 = math.tanh %367 : vector<16x4xf32>
    %369 = arith.mulf %359, %368 : vector<16x4xf32>
    %c0_214 = arith.constant 0 : index
    %c0_215 = arith.constant 0 : index
    %370 = vector.load %arg8[%c0_214, %c0_215] : memref<16x4xf32, #tpu.memory_space<vmem>>, vector<16x4xf32>
    tpu.vector_store %arg8[%c0_214, %c0_215], %367 {strides = array<i32>} : memref<16x4xf32, #tpu.memory_space<vmem>>, vector<16x4xf32>,
    %c0_216 = arith.constant 0 : index
    %c4_217 = arith.constant 4 : index
    %371 = vector.load %arg7[%c0_216, %c4_217] : memref<16x8xf32, #tpu.memory_space<vmem>>, vector<16x4xf32>
    tpu.vector_store %arg7[%c0_216, %c4_217], %369 {strides = array<i32>} : memref<16x8xf32, #tpu.memory_space<vmem>>, vector<16x4xf32>,
    %372 = vector.extract_strided_slice %369 {offsets = [0, 0], sizes = [15, 4], strides = [1, 1]} : vector<16x4xf32> to vector<15x4xf32>
    %c1_218 = arith.constant 1 : index
    %c0_219 = arith.constant 0 : index
    %373 = vector.load %arg7[%c1_218, %c0_219] : memref<16x8xf32, #tpu.memory_space<vmem>>, vector<15x4xf32>
    tpu.vector_store %arg7[%c1_218, %c0_219], %372 {strides = array<i32>} : memref<16x8xf32, #tpu.memory_space<vmem>>, vector<15x4xf32>,
    %c0_220 = arith.constant 0 : index
    %c192_221 = arith.constant 192 : index
    %c0_222 = arith.constant 0 : index
    %374 = vector.load %arg5[%c0_220, %c192_221, %c0_222] : memref<1x496x4xf32, #tpu.memory_space<vmem>>, vector<1x16x4xf32>
    %375 = vector.shape_cast %374 : vector<1x16x4xf32> to vector<16x4xf32>
    %376 = vector.shape_cast %369 : vector<16x4xf32> to vector<1x16x4xf32>
    tpu.vector_store %arg5[%c0_220, %c192_221, %c0_222], %376 {strides = array<i32>} : memref<1x496x4xf32, #tpu.memory_space<vmem>>, vector<1x16x4xf32>,
    %c208 = arith.constant 208 : index
    %c0_223 = arith.constant 0 : index
    %377 = vector.load %arg6[%c208, %c0_223] : memref<496x16xf32, #tpu.memory_space<vmem>>, vector<16x16xf32>
    %c0_224 = arith.constant 0 : index
    %c0_225 = arith.constant 0 : index
    %378 = vector.load %arg7[%c0_224, %c0_225] : memref<16x8xf32, #tpu.memory_space<vmem>>, vector<16x8xf32>
    %cst_226 = arith.constant dense<0.000000e+00> : vector<16x16xf32>
    %379 = tpu.matmul %378, %12, %cst_226 {dimension_numbers = #tpu.dot_dimension_numbers<[1], [0], [0], [1], [0, 0, 1, 1], [], []>} : vector<16x8xf32>, vector<8x16xf32>, vector<16x16xf32> -> vector<16x16xf32>
    %380 = arith.addf %377, %379 : vector<16x16xf32>
    %381 = vector.extract_strided_slice %380 {offsets = [0, 0], sizes = [16, 12], strides = [1, 1]} : vector<16x16xf32> to vector<16x12xf32>
    %382 = arith.negf %381 : vector<16x12xf32>
    %383 = math.exp %382 : vector<16x12xf32>
    %cst_227 = arith.constant 1.000000e+00 : f32
    %384 = vector.broadcast %cst_227 : f32 to vector<16x12xf32>
    %385 = arith.addf %384, %383 : vector<16x12xf32>
    %386 = arith.divf %384, %385 : vector<16x12xf32>
    %387 = vector.extract_strided_slice %386 {offsets = [0, 0], sizes = [16, 4], strides = [1, 1]} : vector<16x12xf32> to vector<16x4xf32>
    %388 = vector.extract_strided_slice %386 {offsets = [0, 4], sizes = [16, 4], strides = [1, 1]} : vector<16x12xf32> to vector<16x4xf32>
    %389 = vector.extract_strided_slice %386 {offsets = [0, 8], sizes = [16, 4], strides = [1, 1]} : vector<16x12xf32> to vector<16x4xf32>
    %390 = vector.extract_strided_slice %380 {offsets = [0, 12], sizes = [16, 4], strides = [1, 1]} : vector<16x16xf32> to vector<16x4xf32>
    %391 = math.tanh %390 : vector<16x4xf32>
    %c0_228 = arith.constant 0 : index
    %c0_229 = arith.constant 0 : index
    %392 = vector.load %arg8[%c0_228, %c0_229] : memref<16x4xf32, #tpu.memory_space<vmem>>, vector<16x4xf32>
    %393 = arith.mulf %388, %392 : vector<16x4xf32>
    %394 = arith.mulf %389, %391 : vector<16x4xf32>
    %395 = arith.addf %393, %394 : vector<16x4xf32>
    %396 = math.tanh %395 : vector<16x4xf32>
    %397 = arith.mulf %387, %396 : vector<16x4xf32>
    %c0_230 = arith.constant 0 : index
    %c0_231 = arith.constant 0 : index
    %398 = vector.load %arg8[%c0_230, %c0_231] : memref<16x4xf32, #tpu.memory_space<vmem>>, vector<16x4xf32>
    tpu.vector_store %arg8[%c0_230, %c0_231], %395 {strides = array<i32>} : memref<16x4xf32, #tpu.memory_space<vmem>>, vector<16x4xf32>,
    %c0_232 = arith.constant 0 : index
    %c4_233 = arith.constant 4 : index
    %399 = vector.load %arg7[%c0_232, %c4_233] : memref<16x8xf32, #tpu.memory_space<vmem>>, vector<16x4xf32>
    tpu.vector_store %arg7[%c0_232, %c4_233], %397 {strides = array<i32>} : memref<16x8xf32, #tpu.memory_space<vmem>>, vector<16x4xf32>,
    %400 = vector.extract_strided_slice %397 {offsets = [0, 0], sizes = [15, 4], strides = [1, 1]} : vector<16x4xf32> to vector<15x4xf32>
    %c1_234 = arith.constant 1 : index
    %c0_235 = arith.constant 0 : index
    %401 = vector.load %arg7[%c1_234, %c0_235] : memref<16x8xf32, #tpu.memory_space<vmem>>, vector<15x4xf32>
    tpu.vector_store %arg7[%c1_234, %c0_235], %400 {strides = array<i32>} : memref<16x8xf32, #tpu.memory_space<vmem>>, vector<15x4xf32>,
    %c0_236 = arith.constant 0 : index
    %c208_237 = arith.constant 208 : index
    %c0_238 = arith.constant 0 : index
    %402 = vector.load %arg5[%c0_236, %c208_237, %c0_238] : memref<1x496x4xf32, #tpu.memory_space<vmem>>, vector<1x16x4xf32>
    %403 = vector.shape_cast %402 : vector<1x16x4xf32> to vector<16x4xf32>
    %404 = vector.shape_cast %397 : vector<16x4xf32> to vector<1x16x4xf32>
    tpu.vector_store %arg5[%c0_236, %c208_237, %c0_238], %404 {strides = array<i32>} : memref<1x496x4xf32, #tpu.memory_space<vmem>>, vector<1x16x4xf32>,
    %c224 = arith.constant 224 : index
    %c0_239 = arith.constant 0 : index
    %405 = vector.load %arg6[%c224, %c0_239] : memref<496x16xf32, #tpu.memory_space<vmem>>, vector<16x16xf32>
    %c0_240 = arith.constant 0 : index
    %c0_241 = arith.constant 0 : index
    %406 = vector.load %arg7[%c0_240, %c0_241] : memref<16x8xf32, #tpu.memory_space<vmem>>, vector<16x8xf32>
    %cst_242 = arith.constant dense<0.000000e+00> : vector<16x16xf32>
    %407 = tpu.matmul %406, %12, %cst_242 {dimension_numbers = #tpu.dot_dimension_numbers<[1], [0], [0], [1], [0, 0, 1, 1], [], []>} : vector<16x8xf32>, vector<8x16xf32>, vector<16x16xf32> -> vector<16x16xf32>
    %408 = arith.addf %405, %407 : vector<16x16xf32>
    %409 = vector.extract_strided_slice %408 {offsets = [0, 0], sizes = [16, 12], strides = [1, 1]} : vector<16x16xf32> to vector<16x12xf32>
    %410 = arith.negf %409 : vector<16x12xf32>
    %411 = math.exp %410 : vector<16x12xf32>
    %cst_243 = arith.constant 1.000000e+00 : f32
    %412 = vector.broadcast %cst_243 : f32 to vector<16x12xf32>
    %413 = arith.addf %412, %411 : vector<16x12xf32>
    %414 = arith.divf %412, %413 : vector<16x12xf32>
    %415 = vector.extract_strided_slice %414 {offsets = [0, 0], sizes = [16, 4], strides = [1, 1]} : vector<16x12xf32> to vector<16x4xf32>
    %416 = vector.extract_strided_slice %414 {offsets = [0, 4], sizes = [16, 4], strides = [1, 1]} : vector<16x12xf32> to vector<16x4xf32>
    %417 = vector.extract_strided_slice %414 {offsets = [0, 8], sizes = [16, 4], strides = [1, 1]} : vector<16x12xf32> to vector<16x4xf32>
    %418 = vector.extract_strided_slice %408 {offsets = [0, 12], sizes = [16, 4], strides = [1, 1]} : vector<16x16xf32> to vector<16x4xf32>
    %419 = math.tanh %418 : vector<16x4xf32>
    %c0_244 = arith.constant 0 : index
    %c0_245 = arith.constant 0 : index
    %420 = vector.load %arg8[%c0_244, %c0_245] : memref<16x4xf32, #tpu.memory_space<vmem>>, vector<16x4xf32>
    %421 = arith.mulf %416, %420 : vector<16x4xf32>
    %422 = arith.mulf %417, %419 : vector<16x4xf32>
    %423 = arith.addf %421, %422 : vector<16x4xf32>
    %424 = math.tanh %423 : vector<16x4xf32>
    %425 = arith.mulf %415, %424 : vector<16x4xf32>
    %c0_246 = arith.constant 0 : index
    %c0_247 = arith.constant 0 : index
    %426 = vector.load %arg8[%c0_246, %c0_247] : memref<16x4xf32, #tpu.memory_space<vmem>>, vector<16x4xf32>
    tpu.vector_store %arg8[%c0_246, %c0_247], %423 {strides = array<i32>} : memref<16x4xf32, #tpu.memory_space<vmem>>, vector<16x4xf32>,
    %c0_248 = arith.constant 0 : index
    %c4_249 = arith.constant 4 : index
    %427 = vector.load %arg7[%c0_248, %c4_249] : memref<16x8xf32, #tpu.memory_space<vmem>>, vector<16x4xf32>
    tpu.vector_store %arg7[%c0_248, %c4_249], %425 {strides = array<i32>} : memref<16x8xf32, #tpu.memory_space<vmem>>, vector<16x4xf32>,
    %428 = vector.extract_strided_slice %425 {offsets = [0, 0], sizes = [15, 4], strides = [1, 1]} : vector<16x4xf32> to vector<15x4xf32>
    %c1_250 = arith.constant 1 : index
    %c0_251 = arith.constant 0 : index
    %429 = vector.load %arg7[%c1_250, %c0_251] : memref<16x8xf32, #tpu.memory_space<vmem>>, vector<15x4xf32>
    tpu.vector_store %arg7[%c1_250, %c0_251], %428 {strides = array<i32>} : memref<16x8xf32, #tpu.memory_space<vmem>>, vector<15x4xf32>,
    %c0_252 = arith.constant 0 : index
    %c224_253 = arith.constant 224 : index
    %c0_254 = arith.constant 0 : index
    %430 = vector.load %arg5[%c0_252, %c224_253, %c0_254] : memref<1x496x4xf32, #tpu.memory_space<vmem>>, vector<1x16x4xf32>
    %431 = vector.shape_cast %430 : vector<1x16x4xf32> to vector<16x4xf32>
    %432 = vector.shape_cast %425 : vector<16x4xf32> to vector<1x16x4xf32>
    tpu.vector_store %arg5[%c0_252, %c224_253, %c0_254], %432 {strides = array<i32>} : memref<1x496x4xf32, #tpu.memory_space<vmem>>, vector<1x16x4xf32>,
    %c240 = arith.constant 240 : index
    %c0_255 = arith.constant 0 : index
    %433 = vector.load %arg6[%c240, %c0_255] : memref<496x16xf32, #tpu.memory_space<vmem>>, vector<16x16xf32>
    %c0_256 = arith.constant 0 : index
    %c0_257 = arith.constant 0 : index
    %434 = vector.load %arg7[%c0_256, %c0_257] : memref<16x8xf32, #tpu.memory_space<vmem>>, vector<16x8xf32>
    %cst_258 = arith.constant dense<0.000000e+00> : vector<16x16xf32>
    %435 = tpu.matmul %434, %12, %cst_258 {dimension_numbers = #tpu.dot_dimension_numbers<[1], [0], [0], [1], [0, 0, 1, 1], [], []>} : vector<16x8xf32>, vector<8x16xf32>, vector<16x16xf32> -> vector<16x16xf32>
    %436 = arith.addf %433, %435 : vector<16x16xf32>
    %437 = vector.extract_strided_slice %436 {offsets = [0, 0], sizes = [16, 12], strides = [1, 1]} : vector<16x16xf32> to vector<16x12xf32>
    %438 = arith.negf %437 : vector<16x12xf32>
    %439 = math.exp %438 : vector<16x12xf32>
    %cst_259 = arith.constant 1.000000e+00 : f32
    %440 = vector.broadcast %cst_259 : f32 to vector<16x12xf32>
    %441 = arith.addf %440, %439 : vector<16x12xf32>
    %442 = arith.divf %440, %441 : vector<16x12xf32>
    %443 = vector.extract_strided_slice %442 {offsets = [0, 0], sizes = [16, 4], strides = [1, 1]} : vector<16x12xf32> to vector<16x4xf32>
    %444 = vector.extract_strided_slice %442 {offsets = [0, 4], sizes = [16, 4], strides = [1, 1]} : vector<16x12xf32> to vector<16x4xf32>
    %445 = vector.extract_strided_slice %442 {offsets = [0, 8], sizes = [16, 4], strides = [1, 1]} : vector<16x12xf32> to vector<16x4xf32>
    %446 = vector.extract_strided_slice %436 {offsets = [0, 12], sizes = [16, 4], strides = [1, 1]} : vector<16x16xf32> to vector<16x4xf32>
    %447 = math.tanh %446 : vector<16x4xf32>
    %c0_260 = arith.constant 0 : index
    %c0_261 = arith.constant 0 : index
    %448 = vector.load %arg8[%c0_260, %c0_261] : memref<16x4xf32, #tpu.memory_space<vmem>>, vector<16x4xf32>
    %449 = arith.mulf %444, %448 : vector<16x4xf32>
    %450 = arith.mulf %445, %447 : vector<16x4xf32>
    %451 = arith.addf %449, %450 : vector<16x4xf32>
    %452 = math.tanh %451 : vector<16x4xf32>
    %453 = arith.mulf %443, %452 : vector<16x4xf32>
    %c0_262 = arith.constant 0 : index
    %c0_263 = arith.constant 0 : index
    %454 = vector.load %arg8[%c0_262, %c0_263] : memref<16x4xf32, #tpu.memory_space<vmem>>, vector<16x4xf32>
    tpu.vector_store %arg8[%c0_262, %c0_263], %451 {strides = array<i32>} : memref<16x4xf32, #tpu.memory_space<vmem>>, vector<16x4xf32>,
    %c0_264 = arith.constant 0 : index
    %c4_265 = arith.constant 4 : index
    %455 = vector.load %arg7[%c0_264, %c4_265] : memref<16x8xf32, #tpu.memory_space<vmem>>, vector<16x4xf32>
    tpu.vector_store %arg7[%c0_264, %c4_265], %453 {strides = array<i32>} : memref<16x8xf32, #tpu.memory_space<vmem>>, vector<16x4xf32>,
    %456 = vector.extract_strided_slice %453 {offsets = [0, 0], sizes = [15, 4], strides = [1, 1]} : vector<16x4xf32> to vector<15x4xf32>
    %c1_266 = arith.constant 1 : index
    %c0_267 = arith.constant 0 : index
    %457 = vector.load %arg7[%c1_266, %c0_267] : memref<16x8xf32, #tpu.memory_space<vmem>>, vector<15x4xf32>
    tpu.vector_store %arg7[%c1_266, %c0_267], %456 {strides = array<i32>} : memref<16x8xf32, #tpu.memory_space<vmem>>, vector<15x4xf32>,
    %c0_268 = arith.constant 0 : index
    %c240_269 = arith.constant 240 : index
    %c0_270 = arith.constant 0 : index
    %458 = vector.load %arg5[%c0_268, %c240_269, %c0_270] : memref<1x496x4xf32, #tpu.memory_space<vmem>>, vector<1x16x4xf32>
    %459 = vector.shape_cast %458 : vector<1x16x4xf32> to vector<16x4xf32>
    %460 = vector.shape_cast %453 : vector<16x4xf32> to vector<1x16x4xf32>
    tpu.vector_store %arg5[%c0_268, %c240_269, %c0_270], %460 {strides = array<i32>} : memref<1x496x4xf32, #tpu.memory_space<vmem>>, vector<1x16x4xf32>,
    %c256 = arith.constant 256 : index
    %c0_271 = arith.constant 0 : index
    %461 = vector.load %arg6[%c256, %c0_271] : memref<496x16xf32, #tpu.memory_space<vmem>>, vector<16x16xf32>
    %c0_272 = arith.constant 0 : index
    %c0_273 = arith.constant 0 : index
    %462 = vector.load %arg7[%c0_272, %c0_273] : memref<16x8xf32, #tpu.memory_space<vmem>>, vector<16x8xf32>
    %cst_274 = arith.constant dense<0.000000e+00> : vector<16x16xf32>
    %463 = tpu.matmul %462, %12, %cst_274 {dimension_numbers = #tpu.dot_dimension_numbers<[1], [0], [0], [1], [0, 0, 1, 1], [], []>} : vector<16x8xf32>, vector<8x16xf32>, vector<16x16xf32> -> vector<16x16xf32>
    %464 = arith.addf %461, %463 : vector<16x16xf32>
    %465 = vector.extract_strided_slice %464 {offsets = [0, 0], sizes = [16, 12], strides = [1, 1]} : vector<16x16xf32> to vector<16x12xf32>
    %466 = arith.negf %465 : vector<16x12xf32>
    %467 = math.exp %466 : vector<16x12xf32>
    %cst_275 = arith.constant 1.000000e+00 : f32
    %468 = vector.broadcast %cst_275 : f32 to vector<16x12xf32>
    %469 = arith.addf %468, %467 : vector<16x12xf32>
    %470 = arith.divf %468, %469 : vector<16x12xf32>
    %471 = vector.extract_strided_slice %470 {offsets = [0, 0], sizes = [16, 4], strides = [1, 1]} : vector<16x12xf32> to vector<16x4xf32>
    %472 = vector.extract_strided_slice %470 {offsets = [0, 4], sizes = [16, 4], strides = [1, 1]} : vector<16x12xf32> to vector<16x4xf32>
    %473 = vector.extract_strided_slice %470 {offsets = [0, 8], sizes = [16, 4], strides = [1, 1]} : vector<16x12xf32> to vector<16x4xf32>
    %474 = vector.extract_strided_slice %464 {offsets = [0, 12], sizes = [16, 4], strides = [1, 1]} : vector<16x16xf32> to vector<16x4xf32>
    %475 = math.tanh %474 : vector<16x4xf32>
    %c0_276 = arith.constant 0 : index
    %c0_277 = arith.constant 0 : index
    %476 = vector.load %arg8[%c0_276, %c0_277] : memref<16x4xf32, #tpu.memory_space<vmem>>, vector<16x4xf32>
    %477 = arith.mulf %472, %476 : vector<16x4xf32>
    %478 = arith.mulf %473, %475 : vector<16x4xf32>
    %479 = arith.addf %477, %478 : vector<16x4xf32>
    %480 = math.tanh %479 : vector<16x4xf32>
    %481 = arith.mulf %471, %480 : vector<16x4xf32>
    %c0_278 = arith.constant 0 : index
    %c0_279 = arith.constant 0 : index
    %482 = vector.load %arg8[%c0_278, %c0_279] : memref<16x4xf32, #tpu.memory_space<vmem>>, vector<16x4xf32>
    tpu.vector_store %arg8[%c0_278, %c0_279], %479 {strides = array<i32>} : memref<16x4xf32, #tpu.memory_space<vmem>>, vector<16x4xf32>,
    %c0_280 = arith.constant 0 : index
    %c4_281 = arith.constant 4 : index
    %483 = vector.load %arg7[%c0_280, %c4_281] : memref<16x8xf32, #tpu.memory_space<vmem>>, vector<16x4xf32>
    tpu.vector_store %arg7[%c0_280, %c4_281], %481 {strides = array<i32>} : memref<16x8xf32, #tpu.memory_space<vmem>>, vector<16x4xf32>,
    %484 = vector.extract_strided_slice %481 {offsets = [0, 0], sizes = [15, 4], strides = [1, 1]} : vector<16x4xf32> to vector<15x4xf32>
    %c1_282 = arith.constant 1 : index
    %c0_283 = arith.constant 0 : index
    %485 = vector.load %arg7[%c1_282, %c0_283] : memref<16x8xf32, #tpu.memory_space<vmem>>, vector<15x4xf32>
    tpu.vector_store %arg7[%c1_282, %c0_283], %484 {strides = array<i32>} : memref<16x8xf32, #tpu.memory_space<vmem>>, vector<15x4xf32>,
    %c0_284 = arith.constant 0 : index
    %c256_285 = arith.constant 256 : index
    %c0_286 = arith.constant 0 : index
    %486 = vector.load %arg5[%c0_284, %c256_285, %c0_286] : memref<1x496x4xf32, #tpu.memory_space<vmem>>, vector<1x16x4xf32>
    %487 = vector.shape_cast %486 : vector<1x16x4xf32> to vector<16x4xf32>
    %488 = vector.shape_cast %481 : vector<16x4xf32> to vector<1x16x4xf32>
    tpu.vector_store %arg5[%c0_284, %c256_285, %c0_286], %488 {strides = array<i32>} : memref<1x496x4xf32, #tpu.memory_space<vmem>>, vector<1x16x4xf32>,
    %c272 = arith.constant 272 : index
    %c0_287 = arith.constant 0 : index
    %489 = vector.load %arg6[%c272, %c0_287] : memref<496x16xf32, #tpu.memory_space<vmem>>, vector<16x16xf32>
    %c0_288 = arith.constant 0 : index
    %c0_289 = arith.constant 0 : index
    %490 = vector.load %arg7[%c0_288, %c0_289] : memref<16x8xf32, #tpu.memory_space<vmem>>, vector<16x8xf32>
    %cst_290 = arith.constant dense<0.000000e+00> : vector<16x16xf32>
    %491 = tpu.matmul %490, %12, %cst_290 {dimension_numbers = #tpu.dot_dimension_numbers<[1], [0], [0], [1], [0, 0, 1, 1], [], []>} : vector<16x8xf32>, vector<8x16xf32>, vector<16x16xf32> -> vector<16x16xf32>
    %492 = arith.addf %489, %491 : vector<16x16xf32>
    %493 = vector.extract_strided_slice %492 {offsets = [0, 0], sizes = [16, 12], strides = [1, 1]} : vector<16x16xf32> to vector<16x12xf32>
    %494 = arith.negf %493 : vector<16x12xf32>
    %495 = math.exp %494 : vector<16x12xf32>
    %cst_291 = arith.constant 1.000000e+00 : f32
    %496 = vector.broadcast %cst_291 : f32 to vector<16x12xf32>
    %497 = arith.addf %496, %495 : vector<16x12xf32>
    %498 = arith.divf %496, %497 : vector<16x12xf32>
    %499 = vector.extract_strided_slice %498 {offsets = [0, 0], sizes = [16, 4], strides = [1, 1]} : vector<16x12xf32> to vector<16x4xf32>
    %500 = vector.extract_strided_slice %498 {offsets = [0, 4], sizes = [16, 4], strides = [1, 1]} : vector<16x12xf32> to vector<16x4xf32>
    %501 = vector.extract_strided_slice %498 {offsets = [0, 8], sizes = [16, 4], strides = [1, 1]} : vector<16x12xf32> to vector<16x4xf32>
    %502 = vector.extract_strided_slice %492 {offsets = [0, 12], sizes = [16, 4], strides = [1, 1]} : vector<16x16xf32> to vector<16x4xf32>
    %503 = math.tanh %502 : vector<16x4xf32>
    %c0_292 = arith.constant 0 : index
    %c0_293 = arith.constant 0 : index
    %504 = vector.load %arg8[%c0_292, %c0_293] : memref<16x4xf32, #tpu.memory_space<vmem>>, vector<16x4xf32>
    %505 = arith.mulf %500, %504 : vector<16x4xf32>
    %506 = arith.mulf %501, %503 : vector<16x4xf32>
    %507 = arith.addf %505, %506 : vector<16x4xf32>
    %508 = math.tanh %507 : vector<16x4xf32>
    %509 = arith.mulf %499, %508 : vector<16x4xf32>
    %c0_294 = arith.constant 0 : index
    %c0_295 = arith.constant 0 : index
    %510 = vector.load %arg8[%c0_294, %c0_295] : memref<16x4xf32, #tpu.memory_space<vmem>>, vector<16x4xf32>
    tpu.vector_store %arg8[%c0_294, %c0_295], %507 {strides = array<i32>} : memref<16x4xf32, #tpu.memory_space<vmem>>, vector<16x4xf32>,
    %c0_296 = arith.constant 0 : index
    %c4_297 = arith.constant 4 : index
    %511 = vector.load %arg7[%c0_296, %c4_297] : memref<16x8xf32, #tpu.memory_space<vmem>>, vector<16x4xf32>
    tpu.vector_store %arg7[%c0_296, %c4_297], %509 {strides = array<i32>} : memref<16x8xf32, #tpu.memory_space<vmem>>, vector<16x4xf32>,
    %512 = vector.extract_strided_slice %509 {offsets = [0, 0], sizes = [15, 4], strides = [1, 1]} : vector<16x4xf32> to vector<15x4xf32>
    %c1_298 = arith.constant 1 : index
    %c0_299 = arith.constant 0 : index
    %513 = vector.load %arg7[%c1_298, %c0_299] : memref<16x8xf32, #tpu.memory_space<vmem>>, vector<15x4xf32>
    tpu.vector_store %arg7[%c1_298, %c0_299], %512 {strides = array<i32>} : memref<16x8xf32, #tpu.memory_space<vmem>>, vector<15x4xf32>,
    %c0_300 = arith.constant 0 : index
    %c272_301 = arith.constant 272 : index
    %c0_302 = arith.constant 0 : index
    %514 = vector.load %arg5[%c0_300, %c272_301, %c0_302] : memref<1x496x4xf32, #tpu.memory_space<vmem>>, vector<1x16x4xf32>
    %515 = vector.shape_cast %514 : vector<1x16x4xf32> to vector<16x4xf32>
    %516 = vector.shape_cast %509 : vector<16x4xf32> to vector<1x16x4xf32>
    tpu.vector_store %arg5[%c0_300, %c272_301, %c0_302], %516 {strides = array<i32>} : memref<1x496x4xf32, #tpu.memory_space<vmem>>, vector<1x16x4xf32>,
    %c288 = arith.constant 288 : index
    %c0_303 = arith.constant 0 : index
    %517 = vector.load %arg6[%c288, %c0_303] : memref<496x16xf32, #tpu.memory_space<vmem>>, vector<16x16xf32>
    %c0_304 = arith.constant 0 : index
    %c0_305 = arith.constant 0 : index
    %518 = vector.load %arg7[%c0_304, %c0_305] : memref<16x8xf32, #tpu.memory_space<vmem>>, vector<16x8xf32>
    %cst_306 = arith.constant dense<0.000000e+00> : vector<16x16xf32>
    %519 = tpu.matmul %518, %12, %cst_306 {dimension_numbers = #tpu.dot_dimension_numbers<[1], [0], [0], [1], [0, 0, 1, 1], [], []>} : vector<16x8xf32>, vector<8x16xf32>, vector<16x16xf32> -> vector<16x16xf32>
    %520 = arith.addf %517, %519 : vector<16x16xf32>
    %521 = vector.extract_strided_slice %520 {offsets = [0, 0], sizes = [16, 12], strides = [1, 1]} : vector<16x16xf32> to vector<16x12xf32>
    %522 = arith.negf %521 : vector<16x12xf32>
    %523 = math.exp %522 : vector<16x12xf32>
    %cst_307 = arith.constant 1.000000e+00 : f32
    %524 = vector.broadcast %cst_307 : f32 to vector<16x12xf32>
    %525 = arith.addf %524, %523 : vector<16x12xf32>
    %526 = arith.divf %524, %525 : vector<16x12xf32>
    %527 = vector.extract_strided_slice %526 {offsets = [0, 0], sizes = [16, 4], strides = [1, 1]} : vector<16x12xf32> to vector<16x4xf32>
    %528 = vector.extract_strided_slice %526 {offsets = [0, 4], sizes = [16, 4], strides = [1, 1]} : vector<16x12xf32> to vector<16x4xf32>
    %529 = vector.extract_strided_slice %526 {offsets = [0, 8], sizes = [16, 4], strides = [1, 1]} : vector<16x12xf32> to vector<16x4xf32>
    %530 = vector.extract_strided_slice %520 {offsets = [0, 12], sizes = [16, 4], strides = [1, 1]} : vector<16x16xf32> to vector<16x4xf32>
    %531 = math.tanh %530 : vector<16x4xf32>
    %c0_308 = arith.constant 0 : index
    %c0_309 = arith.constant 0 : index
    %532 = vector.load %arg8[%c0_308, %c0_309] : memref<16x4xf32, #tpu.memory_space<vmem>>, vector<16x4xf32>
    %533 = arith.mulf %528, %532 : vector<16x4xf32>
    %534 = arith.mulf %529, %531 : vector<16x4xf32>
    %535 = arith.addf %533, %534 : vector<16x4xf32>
    %536 = math.tanh %535 : vector<16x4xf32>
    %537 = arith.mulf %527, %536 : vector<16x4xf32>
    %c0_310 = arith.constant 0 : index
    %c0_311 = arith.constant 0 : index
    %538 = vector.load %arg8[%c0_310, %c0_311] : memref<16x4xf32, #tpu.memory_space<vmem>>, vector<16x4xf32>
    tpu.vector_store %arg8[%c0_310, %c0_311], %535 {strides = array<i32>} : memref<16x4xf32, #tpu.memory_space<vmem>>, vector<16x4xf32>,
    %c0_312 = arith.constant 0 : index
    %c4_313 = arith.constant 4 : index
    %539 = vector.load %arg7[%c0_312, %c4_313] : memref<16x8xf32, #tpu.memory_space<vmem>>, vector<16x4xf32>
    tpu.vector_store %arg7[%c0_312, %c4_313], %537 {strides = array<i32>} : memref<16x8xf32, #tpu.memory_space<vmem>>, vector<16x4xf32>,
    %540 = vector.extract_strided_slice %537 {offsets = [0, 0], sizes = [15, 4], strides = [1, 1]} : vector<16x4xf32> to vector<15x4xf32>
    %c1_314 = arith.constant 1 : index
    %c0_315 = arith.constant 0 : index
    %541 = vector.load %arg7[%c1_314, %c0_315] : memref<16x8xf32, #tpu.memory_space<vmem>>, vector<15x4xf32>
    tpu.vector_store %arg7[%c1_314, %c0_315], %540 {strides = array<i32>} : memref<16x8xf32, #tpu.memory_space<vmem>>, vector<15x4xf32>,
    %c0_316 = arith.constant 0 : index
    %c288_317 = arith.constant 288 : index
    %c0_318 = arith.constant 0 : index
    %542 = vector.load %arg5[%c0_316, %c288_317, %c0_318] : memref<1x496x4xf32, #tpu.memory_space<vmem>>, vector<1x16x4xf32>
    %543 = vector.shape_cast %542 : vector<1x16x4xf32> to vector<16x4xf32>
    %544 = vector.shape_cast %537 : vector<16x4xf32> to vector<1x16x4xf32>
    tpu.vector_store %arg5[%c0_316, %c288_317, %c0_318], %544 {strides = array<i32>} : memref<1x496x4xf32, #tpu.memory_space<vmem>>, vector<1x16x4xf32>,
    %c304 = arith.constant 304 : index
    %c0_319 = arith.constant 0 : index
    %545 = vector.load %arg6[%c304, %c0_319] : memref<496x16xf32, #tpu.memory_space<vmem>>, vector<16x16xf32>
    %c0_320 = arith.constant 0 : index
    %c0_321 = arith.constant 0 : index
    %546 = vector.load %arg7[%c0_320, %c0_321] : memref<16x8xf32, #tpu.memory_space<vmem>>, vector<16x8xf32>
    %cst_322 = arith.constant dense<0.000000e+00> : vector<16x16xf32>
    %547 = tpu.matmul %546, %12, %cst_322 {dimension_numbers = #tpu.dot_dimension_numbers<[1], [0], [0], [1], [0, 0, 1, 1], [], []>} : vector<16x8xf32>, vector<8x16xf32>, vector<16x16xf32> -> vector<16x16xf32>
    %548 = arith.addf %545, %547 : vector<16x16xf32>
    %549 = vector.extract_strided_slice %548 {offsets = [0, 0], sizes = [16, 12], strides = [1, 1]} : vector<16x16xf32> to vector<16x12xf32>
    %550 = arith.negf %549 : vector<16x12xf32>
    %551 = math.exp %550 : vector<16x12xf32>
    %cst_323 = arith.constant 1.000000e+00 : f32
    %552 = vector.broadcast %cst_323 : f32 to vector<16x12xf32>
    %553 = arith.addf %552, %551 : vector<16x12xf32>
    %554 = arith.divf %552, %553 : vector<16x12xf32>
    %555 = vector.extract_strided_slice %554 {offsets = [0, 0], sizes = [16, 4], strides = [1, 1]} : vector<16x12xf32> to vector<16x4xf32>
    %556 = vector.extract_strided_slice %554 {offsets = [0, 4], sizes = [16, 4], strides = [1, 1]} : vector<16x12xf32> to vector<16x4xf32>
    %557 = vector.extract_strided_slice %554 {offsets = [0, 8], sizes = [16, 4], strides = [1, 1]} : vector<16x12xf32> to vector<16x4xf32>
    %558 = vector.extract_strided_slice %548 {offsets = [0, 12], sizes = [16, 4], strides = [1, 1]} : vector<16x16xf32> to vector<16x4xf32>
    %559 = math.tanh %558 : vector<16x4xf32>
    %c0_324 = arith.constant 0 : index
    %c0_325 = arith.constant 0 : index
    %560 = vector.load %arg8[%c0_324, %c0_325] : memref<16x4xf32, #tpu.memory_space<vmem>>, vector<16x4xf32>
    %561 = arith.mulf %556, %560 : vector<16x4xf32>
    %562 = arith.mulf %557, %559 : vector<16x4xf32>
    %563 = arith.addf %561, %562 : vector<16x4xf32>
    %564 = math.tanh %563 : vector<16x4xf32>
    %565 = arith.mulf %555, %564 : vector<16x4xf32>
    %c0_326 = arith.constant 0 : index
    %c0_327 = arith.constant 0 : index
    %566 = vector.load %arg8[%c0_326, %c0_327] : memref<16x4xf32, #tpu.memory_space<vmem>>, vector<16x4xf32>
    tpu.vector_store %arg8[%c0_326, %c0_327], %563 {strides = array<i32>} : memref<16x4xf32, #tpu.memory_space<vmem>>, vector<16x4xf32>,
    %c0_328 = arith.constant 0 : index
    %c4_329 = arith.constant 4 : index
    %567 = vector.load %arg7[%c0_328, %c4_329] : memref<16x8xf32, #tpu.memory_space<vmem>>, vector<16x4xf32>
    tpu.vector_store %arg7[%c0_328, %c4_329], %565 {strides = array<i32>} : memref<16x8xf32, #tpu.memory_space<vmem>>, vector<16x4xf32>,
    %568 = vector.extract_strided_slice %565 {offsets = [0, 0], sizes = [15, 4], strides = [1, 1]} : vector<16x4xf32> to vector<15x4xf32>
    %c1_330 = arith.constant 1 : index
    %c0_331 = arith.constant 0 : index
    %569 = vector.load %arg7[%c1_330, %c0_331] : memref<16x8xf32, #tpu.memory_space<vmem>>, vector<15x4xf32>
    tpu.vector_store %arg7[%c1_330, %c0_331], %568 {strides = array<i32>} : memref<16x8xf32, #tpu.memory_space<vmem>>, vector<15x4xf32>,
    %c0_332 = arith.constant 0 : index
    %c304_333 = arith.constant 304 : index
    %c0_334 = arith.constant 0 : index
    %570 = vector.load %arg5[%c0_332, %c304_333, %c0_334] : memref<1x496x4xf32, #tpu.memory_space<vmem>>, vector<1x16x4xf32>
    %571 = vector.shape_cast %570 : vector<1x16x4xf32> to vector<16x4xf32>
    %572 = vector.shape_cast %565 : vector<16x4xf32> to vector<1x16x4xf32>
    tpu.vector_store %arg5[%c0_332, %c304_333, %c0_334], %572 {strides = array<i32>} : memref<1x496x4xf32, #tpu.memory_space<vmem>>, vector<1x16x4xf32>,
    %c320 = arith.constant 320 : index
    %c0_335 = arith.constant 0 : index
    %573 = vector.load %arg6[%c320, %c0_335] : memref<496x16xf32, #tpu.memory_space<vmem>>, vector<16x16xf32>
    %c0_336 = arith.constant 0 : index
    %c0_337 = arith.constant 0 : index
    %574 = vector.load %arg7[%c0_336, %c0_337] : memref<16x8xf32, #tpu.memory_space<vmem>>, vector<16x8xf32>
    %cst_338 = arith.constant dense<0.000000e+00> : vector<16x16xf32>
    %575 = tpu.matmul %574, %12, %cst_338 {dimension_numbers = #tpu.dot_dimension_numbers<[1], [0], [0], [1], [0, 0, 1, 1], [], []>} : vector<16x8xf32>, vector<8x16xf32>, vector<16x16xf32> -> vector<16x16xf32>
    %576 = arith.addf %573, %575 : vector<16x16xf32>
    %577 = vector.extract_strided_slice %576 {offsets = [0, 0], sizes = [16, 12], strides = [1, 1]} : vector<16x16xf32> to vector<16x12xf32>
    %578 = arith.negf %577 : vector<16x12xf32>
    %579 = math.exp %578 : vector<16x12xf32>
    %cst_339 = arith.constant 1.000000e+00 : f32
    %580 = vector.broadcast %cst_339 : f32 to vector<16x12xf32>
    %581 = arith.addf %580, %579 : vector<16x12xf32>
    %582 = arith.divf %580, %581 : vector<16x12xf32>
    %583 = vector.extract_strided_slice %582 {offsets = [0, 0], sizes = [16, 4], strides = [1, 1]} : vector<16x12xf32> to vector<16x4xf32>
    %584 = vector.extract_strided_slice %582 {offsets = [0, 4], sizes = [16, 4], strides = [1, 1]} : vector<16x12xf32> to vector<16x4xf32>
    %585 = vector.extract_strided_slice %582 {offsets = [0, 8], sizes = [16, 4], strides = [1, 1]} : vector<16x12xf32> to vector<16x4xf32>
    %586 = vector.extract_strided_slice %576 {offsets = [0, 12], sizes = [16, 4], strides = [1, 1]} : vector<16x16xf32> to vector<16x4xf32>
    %587 = math.tanh %586 : vector<16x4xf32>
    %c0_340 = arith.constant 0 : index
    %c0_341 = arith.constant 0 : index
    %588 = vector.load %arg8[%c0_340, %c0_341] : memref<16x4xf32, #tpu.memory_space<vmem>>, vector<16x4xf32>
    %589 = arith.mulf %584, %588 : vector<16x4xf32>
    %590 = arith.mulf %585, %587 : vector<16x4xf32>
    %591 = arith.addf %589, %590 : vector<16x4xf32>
    %592 = math.tanh %591 : vector<16x4xf32>
    %593 = arith.mulf %583, %592 : vector<16x4xf32>
    %c0_342 = arith.constant 0 : index
    %c0_343 = arith.constant 0 : index
    %594 = vector.load %arg8[%c0_342, %c0_343] : memref<16x4xf32, #tpu.memory_space<vmem>>, vector<16x4xf32>
    tpu.vector_store %arg8[%c0_342, %c0_343], %591 {strides = array<i32>} : memref<16x4xf32, #tpu.memory_space<vmem>>, vector<16x4xf32>,
    %c0_344 = arith.constant 0 : index
    %c4_345 = arith.constant 4 : index
    %595 = vector.load %arg7[%c0_344, %c4_345] : memref<16x8xf32, #tpu.memory_space<vmem>>, vector<16x4xf32>
    tpu.vector_store %arg7[%c0_344, %c4_345], %593 {strides = array<i32>} : memref<16x8xf32, #tpu.memory_space<vmem>>, vector<16x4xf32>,
    %596 = vector.extract_strided_slice %593 {offsets = [0, 0], sizes = [15, 4], strides = [1, 1]} : vector<16x4xf32> to vector<15x4xf32>
    %c1_346 = arith.constant 1 : index
    %c0_347 = arith.constant 0 : index
    %597 = vector.load %arg7[%c1_346, %c0_347] : memref<16x8xf32, #tpu.memory_space<vmem>>, vector<15x4xf32>
    tpu.vector_store %arg7[%c1_346, %c0_347], %596 {strides = array<i32>} : memref<16x8xf32, #tpu.memory_space<vmem>>, vector<15x4xf32>,
    %c0_348 = arith.constant 0 : index
    %c320_349 = arith.constant 320 : index
    %c0_350 = arith.constant 0 : index
    %598 = vector.load %arg5[%c0_348, %c320_349, %c0_350] : memref<1x496x4xf32, #tpu.memory_space<vmem>>, vector<1x16x4xf32>
    %599 = vector.shape_cast %598 : vector<1x16x4xf32> to vector<16x4xf32>
    %600 = vector.shape_cast %593 : vector<16x4xf32> to vector<1x16x4xf32>
    tpu.vector_store %arg5[%c0_348, %c320_349, %c0_350], %600 {strides = array<i32>} : memref<1x496x4xf32, #tpu.memory_space<vmem>>, vector<1x16x4xf32>,
    %c336 = arith.constant 336 : index
    %c0_351 = arith.constant 0 : index
    %601 = vector.load %arg6[%c336, %c0_351] : memref<496x16xf32, #tpu.memory_space<vmem>>, vector<16x16xf32>
    %c0_352 = arith.constant 0 : index
    %c0_353 = arith.constant 0 : index
    %602 = vector.load %arg7[%c0_352, %c0_353] : memref<16x8xf32, #tpu.memory_space<vmem>>, vector<16x8xf32>
    %cst_354 = arith.constant dense<0.000000e+00> : vector<16x16xf32>
    %603 = tpu.matmul %602, %12, %cst_354 {dimension_numbers = #tpu.dot_dimension_numbers<[1], [0], [0], [1], [0, 0, 1, 1], [], []>} : vector<16x8xf32>, vector<8x16xf32>, vector<16x16xf32> -> vector<16x16xf32>
    %604 = arith.addf %601, %603 : vector<16x16xf32>
    %605 = vector.extract_strided_slice %604 {offsets = [0, 0], sizes = [16, 12], strides = [1, 1]} : vector<16x16xf32> to vector<16x12xf32>
    %606 = arith.negf %605 : vector<16x12xf32>
    %607 = math.exp %606 : vector<16x12xf32>
    %cst_355 = arith.constant 1.000000e+00 : f32
    %608 = vector.broadcast %cst_355 : f32 to vector<16x12xf32>
    %609 = arith.addf %608, %607 : vector<16x12xf32>
    %610 = arith.divf %608, %609 : vector<16x12xf32>
    %611 = vector.extract_strided_slice %610 {offsets = [0, 0], sizes = [16, 4], strides = [1, 1]} : vector<16x12xf32> to vector<16x4xf32>
    %612 = vector.extract_strided_slice %610 {offsets = [0, 4], sizes = [16, 4], strides = [1, 1]} : vector<16x12xf32> to vector<16x4xf32>
    %613 = vector.extract_strided_slice %610 {offsets = [0, 8], sizes = [16, 4], strides = [1, 1]} : vector<16x12xf32> to vector<16x4xf32>
    %614 = vector.extract_strided_slice %604 {offsets = [0, 12], sizes = [16, 4], strides = [1, 1]} : vector<16x16xf32> to vector<16x4xf32>
    %615 = math.tanh %614 : vector<16x4xf32>
    %c0_356 = arith.constant 0 : index
    %c0_357 = arith.constant 0 : index
    %616 = vector.load %arg8[%c0_356, %c0_357] : memref<16x4xf32, #tpu.memory_space<vmem>>, vector<16x4xf32>
    %617 = arith.mulf %612, %616 : vector<16x4xf32>
    %618 = arith.mulf %613, %615 : vector<16x4xf32>
    %619 = arith.addf %617, %618 : vector<16x4xf32>
    %620 = math.tanh %619 : vector<16x4xf32>
    %621 = arith.mulf %611, %620 : vector<16x4xf32>
    %c0_358 = arith.constant 0 : index
    %c0_359 = arith.constant 0 : index
    %622 = vector.load %arg8[%c0_358, %c0_359] : memref<16x4xf32, #tpu.memory_space<vmem>>, vector<16x4xf32>
    tpu.vector_store %arg8[%c0_358, %c0_359], %619 {strides = array<i32>} : memref<16x4xf32, #tpu.memory_space<vmem>>, vector<16x4xf32>,
    %c0_360 = arith.constant 0 : index
    %c4_361 = arith.constant 4 : index
    %623 = vector.load %arg7[%c0_360, %c4_361] : memref<16x8xf32, #tpu.memory_space<vmem>>, vector<16x4xf32>
    tpu.vector_store %arg7[%c0_360, %c4_361], %621 {strides = array<i32>} : memref<16x8xf32, #tpu.memory_space<vmem>>, vector<16x4xf32>,
    %624 = vector.extract_strided_slice %621 {offsets = [0, 0], sizes = [15, 4], strides = [1, 1]} : vector<16x4xf32> to vector<15x4xf32>
    %c1_362 = arith.constant 1 : index
    %c0_363 = arith.constant 0 : index
    %625 = vector.load %arg7[%c1_362, %c0_363] : memref<16x8xf32, #tpu.memory_space<vmem>>, vector<15x4xf32>
    tpu.vector_store %arg7[%c1_362, %c0_363], %624 {strides = array<i32>} : memref<16x8xf32, #tpu.memory_space<vmem>>, vector<15x4xf32>,
    %c0_364 = arith.constant 0 : index
    %c336_365 = arith.constant 336 : index
    %c0_366 = arith.constant 0 : index
    %626 = vector.load %arg5[%c0_364, %c336_365, %c0_366] : memref<1x496x4xf32, #tpu.memory_space<vmem>>, vector<1x16x4xf32>
    %627 = vector.shape_cast %626 : vector<1x16x4xf32> to vector<16x4xf32>
    %628 = vector.shape_cast %621 : vector<16x4xf32> to vector<1x16x4xf32>
    tpu.vector_store %arg5[%c0_364, %c336_365, %c0_366], %628 {strides = array<i32>} : memref<1x496x4xf32, #tpu.memory_space<vmem>>, vector<1x16x4xf32>,
    %c352 = arith.constant 352 : index
    %c0_367 = arith.constant 0 : index
    %629 = vector.load %arg6[%c352, %c0_367] : memref<496x16xf32, #tpu.memory_space<vmem>>, vector<16x16xf32>
    %c0_368 = arith.constant 0 : index
    %c0_369 = arith.constant 0 : index
    %630 = vector.load %arg7[%c0_368, %c0_369] : memref<16x8xf32, #tpu.memory_space<vmem>>, vector<16x8xf32>
    %cst_370 = arith.constant dense<0.000000e+00> : vector<16x16xf32>
    %631 = tpu.matmul %630, %12, %cst_370 {dimension_numbers = #tpu.dot_dimension_numbers<[1], [0], [0], [1], [0, 0, 1, 1], [], []>} : vector<16x8xf32>, vector<8x16xf32>, vector<16x16xf32> -> vector<16x16xf32>
    %632 = arith.addf %629, %631 : vector<16x16xf32>
    %633 = vector.extract_strided_slice %632 {offsets = [0, 0], sizes = [16, 12], strides = [1, 1]} : vector<16x16xf32> to vector<16x12xf32>
    %634 = arith.negf %633 : vector<16x12xf32>
    %635 = math.exp %634 : vector<16x12xf32>
    %cst_371 = arith.constant 1.000000e+00 : f32
    %636 = vector.broadcast %cst_371 : f32 to vector<16x12xf32>
    %637 = arith.addf %636, %635 : vector<16x12xf32>
    %638 = arith.divf %636, %637 : vector<16x12xf32>
    %639 = vector.extract_strided_slice %638 {offsets = [0, 0], sizes = [16, 4], strides = [1, 1]} : vector<16x12xf32> to vector<16x4xf32>
    %640 = vector.extract_strided_slice %638 {offsets = [0, 4], sizes = [16, 4], strides = [1, 1]} : vector<16x12xf32> to vector<16x4xf32>
    %641 = vector.extract_strided_slice %638 {offsets = [0, 8], sizes = [16, 4], strides = [1, 1]} : vector<16x12xf32> to vector<16x4xf32>
    %642 = vector.extract_strided_slice %632 {offsets = [0, 12], sizes = [16, 4], strides = [1, 1]} : vector<16x16xf32> to vector<16x4xf32>
    %643 = math.tanh %642 : vector<16x4xf32>
    %c0_372 = arith.constant 0 : index
    %c0_373 = arith.constant 0 : index
    %644 = vector.load %arg8[%c0_372, %c0_373] : memref<16x4xf32, #tpu.memory_space<vmem>>, vector<16x4xf32>
    %645 = arith.mulf %640, %644 : vector<16x4xf32>
    %646 = arith.mulf %641, %643 : vector<16x4xf32>
    %647 = arith.addf %645, %646 : vector<16x4xf32>
    %648 = math.tanh %647 : vector<16x4xf32>
    %649 = arith.mulf %639, %648 : vector<16x4xf32>
    %c0_374 = arith.constant 0 : index
    %c0_375 = arith.constant 0 : index
    %650 = vector.load %arg8[%c0_374, %c0_375] : memref<16x4xf32, #tpu.memory_space<vmem>>, vector<16x4xf32>
    tpu.vector_store %arg8[%c0_374, %c0_375], %647 {strides = array<i32>} : memref<16x4xf32, #tpu.memory_space<vmem>>, vector<16x4xf32>,
    %c0_376 = arith.constant 0 : index
    %c4_377 = arith.constant 4 : index
    %651 = vector.load %arg7[%c0_376, %c4_377] : memref<16x8xf32, #tpu.memory_space<vmem>>, vector<16x4xf32>
    tpu.vector_store %arg7[%c0_376, %c4_377], %649 {strides = array<i32>} : memref<16x8xf32, #tpu.memory_space<vmem>>, vector<16x4xf32>,
    %652 = vector.extract_strided_slice %649 {offsets = [0, 0], sizes = [15, 4], strides = [1, 1]} : vector<16x4xf32> to vector<15x4xf32>
    %c1_378 = arith.constant 1 : index
    %c0_379 = arith.constant 0 : index
    %653 = vector.load %arg7[%c1_378, %c0_379] : memref<16x8xf32, #tpu.memory_space<vmem>>, vector<15x4xf32>
    tpu.vector_store %arg7[%c1_378, %c0_379], %652 {strides = array<i32>} : memref<16x8xf32, #tpu.memory_space<vmem>>, vector<15x4xf32>,
    %c0_380 = arith.constant 0 : index
    %c352_381 = arith.constant 352 : index
    %c0_382 = arith.constant 0 : index
    %654 = vector.load %arg5[%c0_380, %c352_381, %c0_382] : memref<1x496x4xf32, #tpu.memory_space<vmem>>, vector<1x16x4xf32>
    %655 = vector.shape_cast %654 : vector<1x16x4xf32> to vector<16x4xf32>
    %656 = vector.shape_cast %649 : vector<16x4xf32> to vector<1x16x4xf32>
    tpu.vector_store %arg5[%c0_380, %c352_381, %c0_382], %656 {strides = array<i32>} : memref<1x496x4xf32, #tpu.memory_space<vmem>>, vector<1x16x4xf32>,
    %c368 = arith.constant 368 : index
    %c0_383 = arith.constant 0 : index
    %657 = vector.load %arg6[%c368, %c0_383] : memref<496x16xf32, #tpu.memory_space<vmem>>, vector<16x16xf32>
    %c0_384 = arith.constant 0 : index
    %c0_385 = arith.constant 0 : index
    %658 = vector.load %arg7[%c0_384, %c0_385] : memref<16x8xf32, #tpu.memory_space<vmem>>, vector<16x8xf32>
    %cst_386 = arith.constant dense<0.000000e+00> : vector<16x16xf32>
    %659 = tpu.matmul %658, %12, %cst_386 {dimension_numbers = #tpu.dot_dimension_numbers<[1], [0], [0], [1], [0, 0, 1, 1], [], []>} : vector<16x8xf32>, vector<8x16xf32>, vector<16x16xf32> -> vector<16x16xf32>
    %660 = arith.addf %657, %659 : vector<16x16xf32>
    %661 = vector.extract_strided_slice %660 {offsets = [0, 0], sizes = [16, 12], strides = [1, 1]} : vector<16x16xf32> to vector<16x12xf32>
    %662 = arith.negf %661 : vector<16x12xf32>
    %663 = math.exp %662 : vector<16x12xf32>
    %cst_387 = arith.constant 1.000000e+00 : f32
    %664 = vector.broadcast %cst_387 : f32 to vector<16x12xf32>
    %665 = arith.addf %664, %663 : vector<16x12xf32>
    %666 = arith.divf %664, %665 : vector<16x12xf32>
    %667 = vector.extract_strided_slice %666 {offsets = [0, 0], sizes = [16, 4], strides = [1, 1]} : vector<16x12xf32> to vector<16x4xf32>
    %668 = vector.extract_strided_slice %666 {offsets = [0, 4], sizes = [16, 4], strides = [1, 1]} : vector<16x12xf32> to vector<16x4xf32>
    %669 = vector.extract_strided_slice %666 {offsets = [0, 8], sizes = [16, 4], strides = [1, 1]} : vector<16x12xf32> to vector<16x4xf32>
    %670 = vector.extract_strided_slice %660 {offsets = [0, 12], sizes = [16, 4], strides = [1, 1]} : vector<16x16xf32> to vector<16x4xf32>
    %671 = math.tanh %670 : vector<16x4xf32>
    %c0_388 = arith.constant 0 : index
    %c0_389 = arith.constant 0 : index
    %672 = vector.load %arg8[%c0_388, %c0_389] : memref<16x4xf32, #tpu.memory_space<vmem>>, vector<16x4xf32>
    %673 = arith.mulf %668, %672 : vector<16x4xf32>
    %674 = arith.mulf %669, %671 : vector<16x4xf32>
    %675 = arith.addf %673, %674 : vector<16x4xf32>
    %676 = math.tanh %675 : vector<16x4xf32>
    %677 = arith.mulf %667, %676 : vector<16x4xf32>
    %c0_390 = arith.constant 0 : index
    %c0_391 = arith.constant 0 : index
    %678 = vector.load %arg8[%c0_390, %c0_391] : memref<16x4xf32, #tpu.memory_space<vmem>>, vector<16x4xf32>
    tpu.vector_store %arg8[%c0_390, %c0_391], %675 {strides = array<i32>} : memref<16x4xf32, #tpu.memory_space<vmem>>, vector<16x4xf32>,
    %c0_392 = arith.constant 0 : index
    %c4_393 = arith.constant 4 : index
    %679 = vector.load %arg7[%c0_392, %c4_393] : memref<16x8xf32, #tpu.memory_space<vmem>>, vector<16x4xf32>
    tpu.vector_store %arg7[%c0_392, %c4_393], %677 {strides = array<i32>} : memref<16x8xf32, #tpu.memory_space<vmem>>, vector<16x4xf32>,
    %680 = vector.extract_strided_slice %677 {offsets = [0, 0], sizes = [15, 4], strides = [1, 1]} : vector<16x4xf32> to vector<15x4xf32>
    %c1_394 = arith.constant 1 : index
    %c0_395 = arith.constant 0 : index
    %681 = vector.load %arg7[%c1_394, %c0_395] : memref<16x8xf32, #tpu.memory_space<vmem>>, vector<15x4xf32>
    tpu.vector_store %arg7[%c1_394, %c0_395], %680 {strides = array<i32>} : memref<16x8xf32, #tpu.memory_space<vmem>>, vector<15x4xf32>,
    %c0_396 = arith.constant 0 : index
    %c368_397 = arith.constant 368 : index
    %c0_398 = arith.constant 0 : index
    %682 = vector.load %arg5[%c0_396, %c368_397, %c0_398] : memref<1x496x4xf32, #tpu.memory_space<vmem>>, vector<1x16x4xf32>
    %683 = vector.shape_cast %682 : vector<1x16x4xf32> to vector<16x4xf32>
    %684 = vector.shape_cast %677 : vector<16x4xf32> to vector<1x16x4xf32>
    tpu.vector_store %arg5[%c0_396, %c368_397, %c0_398], %684 {strides = array<i32>} : memref<1x496x4xf32, #tpu.memory_space<vmem>>, vector<1x16x4xf32>,
    %c384 = arith.constant 384 : index
    %c0_399 = arith.constant 0 : index
    %685 = vector.load %arg6[%c384, %c0_399] : memref<496x16xf32, #tpu.memory_space<vmem>>, vector<16x16xf32>
    %c0_400 = arith.constant 0 : index
    %c0_401 = arith.constant 0 : index
    %686 = vector.load %arg7[%c0_400, %c0_401] : memref<16x8xf32, #tpu.memory_space<vmem>>, vector<16x8xf32>
    %cst_402 = arith.constant dense<0.000000e+00> : vector<16x16xf32>
    %687 = tpu.matmul %686, %12, %cst_402 {dimension_numbers = #tpu.dot_dimension_numbers<[1], [0], [0], [1], [0, 0, 1, 1], [], []>} : vector<16x8xf32>, vector<8x16xf32>, vector<16x16xf32> -> vector<16x16xf32>
    %688 = arith.addf %685, %687 : vector<16x16xf32>
    %689 = vector.extract_strided_slice %688 {offsets = [0, 0], sizes = [16, 12], strides = [1, 1]} : vector<16x16xf32> to vector<16x12xf32>
    %690 = arith.negf %689 : vector<16x12xf32>
    %691 = math.exp %690 : vector<16x12xf32>
    %cst_403 = arith.constant 1.000000e+00 : f32
    %692 = vector.broadcast %cst_403 : f32 to vector<16x12xf32>
    %693 = arith.addf %692, %691 : vector<16x12xf32>
    %694 = arith.divf %692, %693 : vector<16x12xf32>
    %695 = vector.extract_strided_slice %694 {offsets = [0, 0], sizes = [16, 4], strides = [1, 1]} : vector<16x12xf32> to vector<16x4xf32>
    %696 = vector.extract_strided_slice %694 {offsets = [0, 4], sizes = [16, 4], strides = [1, 1]} : vector<16x12xf32> to vector<16x4xf32>
    %697 = vector.extract_strided_slice %694 {offsets = [0, 8], sizes = [16, 4], strides = [1, 1]} : vector<16x12xf32> to vector<16x4xf32>
    %698 = vector.extract_strided_slice %688 {offsets = [0, 12], sizes = [16, 4], strides = [1, 1]} : vector<16x16xf32> to vector<16x4xf32>
    %699 = math.tanh %698 : vector<16x4xf32>
    %c0_404 = arith.constant 0 : index
    %c0_405 = arith.constant 0 : index
    %700 = vector.load %arg8[%c0_404, %c0_405] : memref<16x4xf32, #tpu.memory_space<vmem>>, vector<16x4xf32>
    %701 = arith.mulf %696, %700 : vector<16x4xf32>
    %702 = arith.mulf %697, %699 : vector<16x4xf32>
    %703 = arith.addf %701, %702 : vector<16x4xf32>
    %704 = math.tanh %703 : vector<16x4xf32>
    %705 = arith.mulf %695, %704 : vector<16x4xf32>
    %c0_406 = arith.constant 0 : index
    %c0_407 = arith.constant 0 : index
    %706 = vector.load %arg8[%c0_406, %c0_407] : memref<16x4xf32, #tpu.memory_space<vmem>>, vector<16x4xf32>
    tpu.vector_store %arg8[%c0_406, %c0_407], %703 {strides = array<i32>} : memref<16x4xf32, #tpu.memory_space<vmem>>, vector<16x4xf32>,
    %c0_408 = arith.constant 0 : index
    %c4_409 = arith.constant 4 : index
    %707 = vector.load %arg7[%c0_408, %c4_409] : memref<16x8xf32, #tpu.memory_space<vmem>>, vector<16x4xf32>
    tpu.vector_store %arg7[%c0_408, %c4_409], %705 {strides = array<i32>} : memref<16x8xf32, #tpu.memory_space<vmem>>, vector<16x4xf32>,
    %708 = vector.extract_strided_slice %705 {offsets = [0, 0], sizes = [15, 4], strides = [1, 1]} : vector<16x4xf32> to vector<15x4xf32>
    %c1_410 = arith.constant 1 : index
    %c0_411 = arith.constant 0 : index
    %709 = vector.load %arg7[%c1_410, %c0_411] : memref<16x8xf32, #tpu.memory_space<vmem>>, vector<15x4xf32>
    tpu.vector_store %arg7[%c1_410, %c0_411], %708 {strides = array<i32>} : memref<16x8xf32, #tpu.memory_space<vmem>>, vector<15x4xf32>,
    %c0_412 = arith.constant 0 : index
    %c384_413 = arith.constant 384 : index
    %c0_414 = arith.constant 0 : index
    %710 = vector.load %arg5[%c0_412, %c384_413, %c0_414] : memref<1x496x4xf32, #tpu.memory_space<vmem>>, vector<1x16x4xf32>
    %711 = vector.shape_cast %710 : vector<1x16x4xf32> to vector<16x4xf32>
    %712 = vector.shape_cast %705 : vector<16x4xf32> to vector<1x16x4xf32>
    tpu.vector_store %arg5[%c0_412, %c384_413, %c0_414], %712 {strides = array<i32>} : memref<1x496x4xf32, #tpu.memory_space<vmem>>, vector<1x16x4xf32>,
    %c400 = arith.constant 400 : index
    %c0_415 = arith.constant 0 : index
    %713 = vector.load %arg6[%c400, %c0_415] : memref<496x16xf32, #tpu.memory_space<vmem>>, vector<16x16xf32>
    %c0_416 = arith.constant 0 : index
    %c0_417 = arith.constant 0 : index
    %714 = vector.load %arg7[%c0_416, %c0_417] : memref<16x8xf32, #tpu.memory_space<vmem>>, vector<16x8xf32>
    %cst_418 = arith.constant dense<0.000000e+00> : vector<16x16xf32>
    %715 = tpu.matmul %714, %12, %cst_418 {dimension_numbers = #tpu.dot_dimension_numbers<[1], [0], [0], [1], [0, 0, 1, 1], [], []>} : vector<16x8xf32>, vector<8x16xf32>, vector<16x16xf32> -> vector<16x16xf32>
    %716 = arith.addf %713, %715 : vector<16x16xf32>
    %717 = vector.extract_strided_slice %716 {offsets = [0, 0], sizes = [16, 12], strides = [1, 1]} : vector<16x16xf32> to vector<16x12xf32>
    %718 = arith.negf %717 : vector<16x12xf32>
    %719 = math.exp %718 : vector<16x12xf32>
    %cst_419 = arith.constant 1.000000e+00 : f32
    %720 = vector.broadcast %cst_419 : f32 to vector<16x12xf32>
    %721 = arith.addf %720, %719 : vector<16x12xf32>
    %722 = arith.divf %720, %721 : vector<16x12xf32>
    %723 = vector.extract_strided_slice %722 {offsets = [0, 0], sizes = [16, 4], strides = [1, 1]} : vector<16x12xf32> to vector<16x4xf32>
    %724 = vector.extract_strided_slice %722 {offsets = [0, 4], sizes = [16, 4], strides = [1, 1]} : vector<16x12xf32> to vector<16x4xf32>
    %725 = vector.extract_strided_slice %722 {offsets = [0, 8], sizes = [16, 4], strides = [1, 1]} : vector<16x12xf32> to vector<16x4xf32>
    %726 = vector.extract_strided_slice %716 {offsets = [0, 12], sizes = [16, 4], strides = [1, 1]} : vector<16x16xf32> to vector<16x4xf32>
    %727 = math.tanh %726 : vector<16x4xf32>
    %c0_420 = arith.constant 0 : index
    %c0_421 = arith.constant 0 : index
    %728 = vector.load %arg8[%c0_420, %c0_421] : memref<16x4xf32, #tpu.memory_space<vmem>>, vector<16x4xf32>
    %729 = arith.mulf %724, %728 : vector<16x4xf32>
    %730 = arith.mulf %725, %727 : vector<16x4xf32>
    %731 = arith.addf %729, %730 : vector<16x4xf32>
    %732 = math.tanh %731 : vector<16x4xf32>
    %733 = arith.mulf %723, %732 : vector<16x4xf32>
    %c0_422 = arith.constant 0 : index
    %c0_423 = arith.constant 0 : index
    %734 = vector.load %arg8[%c0_422, %c0_423] : memref<16x4xf32, #tpu.memory_space<vmem>>, vector<16x4xf32>
    tpu.vector_store %arg8[%c0_422, %c0_423], %731 {strides = array<i32>} : memref<16x4xf32, #tpu.memory_space<vmem>>, vector<16x4xf32>,
    %c0_424 = arith.constant 0 : index
    %c4_425 = arith.constant 4 : index
    %735 = vector.load %arg7[%c0_424, %c4_425] : memref<16x8xf32, #tpu.memory_space<vmem>>, vector<16x4xf32>
    tpu.vector_store %arg7[%c0_424, %c4_425], %733 {strides = array<i32>} : memref<16x8xf32, #tpu.memory_space<vmem>>, vector<16x4xf32>,
    %736 = vector.extract_strided_slice %733 {offsets = [0, 0], sizes = [15, 4], strides = [1, 1]} : vector<16x4xf32> to vector<15x4xf32>
    %c1_426 = arith.constant 1 : index
    %c0_427 = arith.constant 0 : index
    %737 = vector.load %arg7[%c1_426, %c0_427] : memref<16x8xf32, #tpu.memory_space<vmem>>, vector<15x4xf32>
    tpu.vector_store %arg7[%c1_426, %c0_427], %736 {strides = array<i32>} : memref<16x8xf32, #tpu.memory_space<vmem>>, vector<15x4xf32>,
    %c0_428 = arith.constant 0 : index
    %c400_429 = arith.constant 400 : index
    %c0_430 = arith.constant 0 : index
    %738 = vector.load %arg5[%c0_428, %c400_429, %c0_430] : memref<1x496x4xf32, #tpu.memory_space<vmem>>, vector<1x16x4xf32>
    %739 = vector.shape_cast %738 : vector<1x16x4xf32> to vector<16x4xf32>
    %740 = vector.shape_cast %733 : vector<16x4xf32> to vector<1x16x4xf32>
    tpu.vector_store %arg5[%c0_428, %c400_429, %c0_430], %740 {strides = array<i32>} : memref<1x496x4xf32, #tpu.memory_space<vmem>>, vector<1x16x4xf32>,
    %c416 = arith.constant 416 : index
    %c0_431 = arith.constant 0 : index
    %741 = vector.load %arg6[%c416, %c0_431] : memref<496x16xf32, #tpu.memory_space<vmem>>, vector<16x16xf32>
    %c0_432 = arith.constant 0 : index
    %c0_433 = arith.constant 0 : index
    %742 = vector.load %arg7[%c0_432, %c0_433] : memref<16x8xf32, #tpu.memory_space<vmem>>, vector<16x8xf32>
    %cst_434 = arith.constant dense<0.000000e+00> : vector<16x16xf32>
    %743 = tpu.matmul %742, %12, %cst_434 {dimension_numbers = #tpu.dot_dimension_numbers<[1], [0], [0], [1], [0, 0, 1, 1], [], []>} : vector<16x8xf32>, vector<8x16xf32>, vector<16x16xf32> -> vector<16x16xf32>
    %744 = arith.addf %741, %743 : vector<16x16xf32>
    %745 = vector.extract_strided_slice %744 {offsets = [0, 0], sizes = [16, 12], strides = [1, 1]} : vector<16x16xf32> to vector<16x12xf32>
    %746 = arith.negf %745 : vector<16x12xf32>
    %747 = math.exp %746 : vector<16x12xf32>
    %cst_435 = arith.constant 1.000000e+00 : f32
    %748 = vector.broadcast %cst_435 : f32 to vector<16x12xf32>
    %749 = arith.addf %748, %747 : vector<16x12xf32>
    %750 = arith.divf %748, %749 : vector<16x12xf32>
    %751 = vector.extract_strided_slice %750 {offsets = [0, 0], sizes = [16, 4], strides = [1, 1]} : vector<16x12xf32> to vector<16x4xf32>
    %752 = vector.extract_strided_slice %750 {offsets = [0, 4], sizes = [16, 4], strides = [1, 1]} : vector<16x12xf32> to vector<16x4xf32>
    %753 = vector.extract_strided_slice %750 {offsets = [0, 8], sizes = [16, 4], strides = [1, 1]} : vector<16x12xf32> to vector<16x4xf32>
    %754 = vector.extract_strided_slice %744 {offsets = [0, 12], sizes = [16, 4], strides = [1, 1]} : vector<16x16xf32> to vector<16x4xf32>
    %755 = math.tanh %754 : vector<16x4xf32>
    %c0_436 = arith.constant 0 : index
    %c0_437 = arith.constant 0 : index
    %756 = vector.load %arg8[%c0_436, %c0_437] : memref<16x4xf32, #tpu.memory_space<vmem>>, vector<16x4xf32>
    %757 = arith.mulf %752, %756 : vector<16x4xf32>
    %758 = arith.mulf %753, %755 : vector<16x4xf32>
    %759 = arith.addf %757, %758 : vector<16x4xf32>
    %760 = math.tanh %759 : vector<16x4xf32>
    %761 = arith.mulf %751, %760 : vector<16x4xf32>
    %c0_438 = arith.constant 0 : index
    %c0_439 = arith.constant 0 : index
    %762 = vector.load %arg8[%c0_438, %c0_439] : memref<16x4xf32, #tpu.memory_space<vmem>>, vector<16x4xf32>
    tpu.vector_store %arg8[%c0_438, %c0_439], %759 {strides = array<i32>} : memref<16x4xf32, #tpu.memory_space<vmem>>, vector<16x4xf32>,
    %c0_440 = arith.constant 0 : index
    %c4_441 = arith.constant 4 : index
    %763 = vector.load %arg7[%c0_440, %c4_441] : memref<16x8xf32, #tpu.memory_space<vmem>>, vector<16x4xf32>
    tpu.vector_store %arg7[%c0_440, %c4_441], %761 {strides = array<i32>} : memref<16x8xf32, #tpu.memory_space<vmem>>, vector<16x4xf32>,
    %764 = vector.extract_strided_slice %761 {offsets = [0, 0], sizes = [15, 4], strides = [1, 1]} : vector<16x4xf32> to vector<15x4xf32>
    %c1_442 = arith.constant 1 : index
    %c0_443 = arith.constant 0 : index
    %765 = vector.load %arg7[%c1_442, %c0_443] : memref<16x8xf32, #tpu.memory_space<vmem>>, vector<15x4xf32>
    tpu.vector_store %arg7[%c1_442, %c0_443], %764 {strides = array<i32>} : memref<16x8xf32, #tpu.memory_space<vmem>>, vector<15x4xf32>,
    %c0_444 = arith.constant 0 : index
    %c416_445 = arith.constant 416 : index
    %c0_446 = arith.constant 0 : index
    %766 = vector.load %arg5[%c0_444, %c416_445, %c0_446] : memref<1x496x4xf32, #tpu.memory_space<vmem>>, vector<1x16x4xf32>
    %767 = vector.shape_cast %766 : vector<1x16x4xf32> to vector<16x4xf32>
    %768 = vector.shape_cast %761 : vector<16x4xf32> to vector<1x16x4xf32>
    tpu.vector_store %arg5[%c0_444, %c416_445, %c0_446], %768 {strides = array<i32>} : memref<1x496x4xf32, #tpu.memory_space<vmem>>, vector<1x16x4xf32>,
    %c432 = arith.constant 432 : index
    %c0_447 = arith.constant 0 : index
    %769 = vector.load %arg6[%c432, %c0_447] : memref<496x16xf32, #tpu.memory_space<vmem>>, vector<16x16xf32>
    %c0_448 = arith.constant 0 : index
    %c0_449 = arith.constant 0 : index
    %770 = vector.load %arg7[%c0_448, %c0_449] : memref<16x8xf32, #tpu.memory_space<vmem>>, vector<16x8xf32>
    %cst_450 = arith.constant dense<0.000000e+00> : vector<16x16xf32>
    %771 = tpu.matmul %770, %12, %cst_450 {dimension_numbers = #tpu.dot_dimension_numbers<[1], [0], [0], [1], [0, 0, 1, 1], [], []>} : vector<16x8xf32>, vector<8x16xf32>, vector<16x16xf32> -> vector<16x16xf32>
    %772 = arith.addf %769, %771 : vector<16x16xf32>
    %773 = vector.extract_strided_slice %772 {offsets = [0, 0], sizes = [16, 12], strides = [1, 1]} : vector<16x16xf32> to vector<16x12xf32>
    %774 = arith.negf %773 : vector<16x12xf32>
    %775 = math.exp %774 : vector<16x12xf32>
    %cst_451 = arith.constant 1.000000e+00 : f32
    %776 = vector.broadcast %cst_451 : f32 to vector<16x12xf32>
    %777 = arith.addf %776, %775 : vector<16x12xf32>
    %778 = arith.divf %776, %777 : vector<16x12xf32>
    %779 = vector.extract_strided_slice %778 {offsets = [0, 0], sizes = [16, 4], strides = [1, 1]} : vector<16x12xf32> to vector<16x4xf32>
    %780 = vector.extract_strided_slice %778 {offsets = [0, 4], sizes = [16, 4], strides = [1, 1]} : vector<16x12xf32> to vector<16x4xf32>
    %781 = vector.extract_strided_slice %778 {offsets = [0, 8], sizes = [16, 4], strides = [1, 1]} : vector<16x12xf32> to vector<16x4xf32>
    %782 = vector.extract_strided_slice %772 {offsets = [0, 12], sizes = [16, 4], strides = [1, 1]} : vector<16x16xf32> to vector<16x4xf32>
    %783 = math.tanh %782 : vector<16x4xf32>
    %c0_452 = arith.constant 0 : index
    %c0_453 = arith.constant 0 : index
    %784 = vector.load %arg8[%c0_452, %c0_453] : memref<16x4xf32, #tpu.memory_space<vmem>>, vector<16x4xf32>
    %785 = arith.mulf %780, %784 : vector<16x4xf32>
    %786 = arith.mulf %781, %783 : vector<16x4xf32>
    %787 = arith.addf %785, %786 : vector<16x4xf32>
    %788 = math.tanh %787 : vector<16x4xf32>
    %789 = arith.mulf %779, %788 : vector<16x4xf32>
    %c0_454 = arith.constant 0 : index
    %c0_455 = arith.constant 0 : index
    %790 = vector.load %arg8[%c0_454, %c0_455] : memref<16x4xf32, #tpu.memory_space<vmem>>, vector<16x4xf32>
    tpu.vector_store %arg8[%c0_454, %c0_455], %787 {strides = array<i32>} : memref<16x4xf32, #tpu.memory_space<vmem>>, vector<16x4xf32>,
    %c0_456 = arith.constant 0 : index
    %c4_457 = arith.constant 4 : index
    %791 = vector.load %arg7[%c0_456, %c4_457] : memref<16x8xf32, #tpu.memory_space<vmem>>, vector<16x4xf32>
    tpu.vector_store %arg7[%c0_456, %c4_457], %789 {strides = array<i32>} : memref<16x8xf32, #tpu.memory_space<vmem>>, vector<16x4xf32>,
    %792 = vector.extract_strided_slice %789 {offsets = [0, 0], sizes = [15, 4], strides = [1, 1]} : vector<16x4xf32> to vector<15x4xf32>
    %c1_458 = arith.constant 1 : index
    %c0_459 = arith.constant 0 : index
    %793 = vector.load %arg7[%c1_458, %c0_459] : memref<16x8xf32, #tpu.memory_space<vmem>>, vector<15x4xf32>
    tpu.vector_store %arg7[%c1_458, %c0_459], %792 {strides = array<i32>} : memref<16x8xf32, #tpu.memory_space<vmem>>, vector<15x4xf32>,
    %c0_460 = arith.constant 0 : index
    %c432_461 = arith.constant 432 : index
    %c0_462 = arith.constant 0 : index
    %794 = vector.load %arg5[%c0_460, %c432_461, %c0_462] : memref<1x496x4xf32, #tpu.memory_space<vmem>>, vector<1x16x4xf32>
    %795 = vector.shape_cast %794 : vector<1x16x4xf32> to vector<16x4xf32>
    %796 = vector.shape_cast %789 : vector<16x4xf32> to vector<1x16x4xf32>
    tpu.vector_store %arg5[%c0_460, %c432_461, %c0_462], %796 {strides = array<i32>} : memref<1x496x4xf32, #tpu.memory_space<vmem>>, vector<1x16x4xf32>,
    %c448 = arith.constant 448 : index
    %c0_463 = arith.constant 0 : index
    %797 = vector.load %arg6[%c448, %c0_463] : memref<496x16xf32, #tpu.memory_space<vmem>>, vector<16x16xf32>
    %c0_464 = arith.constant 0 : index
    %c0_465 = arith.constant 0 : index
    %798 = vector.load %arg7[%c0_464, %c0_465] : memref<16x8xf32, #tpu.memory_space<vmem>>, vector<16x8xf32>
    %cst_466 = arith.constant dense<0.000000e+00> : vector<16x16xf32>
    %799 = tpu.matmul %798, %12, %cst_466 {dimension_numbers = #tpu.dot_dimension_numbers<[1], [0], [0], [1], [0, 0, 1, 1], [], []>} : vector<16x8xf32>, vector<8x16xf32>, vector<16x16xf32> -> vector<16x16xf32>
    %800 = arith.addf %797, %799 : vector<16x16xf32>
    %801 = vector.extract_strided_slice %800 {offsets = [0, 0], sizes = [16, 12], strides = [1, 1]} : vector<16x16xf32> to vector<16x12xf32>
    %802 = arith.negf %801 : vector<16x12xf32>
    %803 = math.exp %802 : vector<16x12xf32>
    %cst_467 = arith.constant 1.000000e+00 : f32
    %804 = vector.broadcast %cst_467 : f32 to vector<16x12xf32>
    %805 = arith.addf %804, %803 : vector<16x12xf32>
    %806 = arith.divf %804, %805 : vector<16x12xf32>
    %807 = vector.extract_strided_slice %806 {offsets = [0, 0], sizes = [16, 4], strides = [1, 1]} : vector<16x12xf32> to vector<16x4xf32>
    %808 = vector.extract_strided_slice %806 {offsets = [0, 4], sizes = [16, 4], strides = [1, 1]} : vector<16x12xf32> to vector<16x4xf32>
    %809 = vector.extract_strided_slice %806 {offsets = [0, 8], sizes = [16, 4], strides = [1, 1]} : vector<16x12xf32> to vector<16x4xf32>
    %810 = vector.extract_strided_slice %800 {offsets = [0, 12], sizes = [16, 4], strides = [1, 1]} : vector<16x16xf32> to vector<16x4xf32>
    %811 = math.tanh %810 : vector<16x4xf32>
    %c0_468 = arith.constant 0 : index
    %c0_469 = arith.constant 0 : index
    %812 = vector.load %arg8[%c0_468, %c0_469] : memref<16x4xf32, #tpu.memory_space<vmem>>, vector<16x4xf32>
    %813 = arith.mulf %808, %812 : vector<16x4xf32>
    %814 = arith.mulf %809, %811 : vector<16x4xf32>
    %815 = arith.addf %813, %814 : vector<16x4xf32>
    %816 = math.tanh %815 : vector<16x4xf32>
    %817 = arith.mulf %807, %816 : vector<16x4xf32>
    %c0_470 = arith.constant 0 : index
    %c0_471 = arith.constant 0 : index
    %818 = vector.load %arg8[%c0_470, %c0_471] : memref<16x4xf32, #tpu.memory_space<vmem>>, vector<16x4xf32>
    tpu.vector_store %arg8[%c0_470, %c0_471], %815 {strides = array<i32>} : memref<16x4xf32, #tpu.memory_space<vmem>>, vector<16x4xf32>,
    %c0_472 = arith.constant 0 : index
    %c4_473 = arith.constant 4 : index
    %819 = vector.load %arg7[%c0_472, %c4_473] : memref<16x8xf32, #tpu.memory_space<vmem>>, vector<16x4xf32>
    tpu.vector_store %arg7[%c0_472, %c4_473], %817 {strides = array<i32>} : memref<16x8xf32, #tpu.memory_space<vmem>>, vector<16x4xf32>,
    %820 = vector.extract_strided_slice %817 {offsets = [0, 0], sizes = [15, 4], strides = [1, 1]} : vector<16x4xf32> to vector<15x4xf32>
    %c1_474 = arith.constant 1 : index
    %c0_475 = arith.constant 0 : index
    %821 = vector.load %arg7[%c1_474, %c0_475] : memref<16x8xf32, #tpu.memory_space<vmem>>, vector<15x4xf32>
    tpu.vector_store %arg7[%c1_474, %c0_475], %820 {strides = array<i32>} : memref<16x8xf32, #tpu.memory_space<vmem>>, vector<15x4xf32>,
    %c0_476 = arith.constant 0 : index
    %c448_477 = arith.constant 448 : index
    %c0_478 = arith.constant 0 : index
    %822 = vector.load %arg5[%c0_476, %c448_477, %c0_478] : memref<1x496x4xf32, #tpu.memory_space<vmem>>, vector<1x16x4xf32>
    %823 = vector.shape_cast %822 : vector<1x16x4xf32> to vector<16x4xf32>
    %824 = vector.shape_cast %817 : vector<16x4xf32> to vector<1x16x4xf32>
    tpu.vector_store %arg5[%c0_476, %c448_477, %c0_478], %824 {strides = array<i32>} : memref<1x496x4xf32, #tpu.memory_space<vmem>>, vector<1x16x4xf32>,
    %c464 = arith.constant 464 : index
    %c0_479 = arith.constant 0 : index
    %825 = vector.load %arg6[%c464, %c0_479] : memref<496x16xf32, #tpu.memory_space<vmem>>, vector<16x16xf32>
    %c0_480 = arith.constant 0 : index
    %c0_481 = arith.constant 0 : index
    %826 = vector.load %arg7[%c0_480, %c0_481] : memref<16x8xf32, #tpu.memory_space<vmem>>, vector<16x8xf32>
    %cst_482 = arith.constant dense<0.000000e+00> : vector<16x16xf32>
    %827 = tpu.matmul %826, %12, %cst_482 {dimension_numbers = #tpu.dot_dimension_numbers<[1], [0], [0], [1], [0, 0, 1, 1], [], []>} : vector<16x8xf32>, vector<8x16xf32>, vector<16x16xf32> -> vector<16x16xf32>
    %828 = arith.addf %825, %827 : vector<16x16xf32>
    %829 = vector.extract_strided_slice %828 {offsets = [0, 0], sizes = [16, 12], strides = [1, 1]} : vector<16x16xf32> to vector<16x12xf32>
    %830 = arith.negf %829 : vector<16x12xf32>
    %831 = math.exp %830 : vector<16x12xf32>
    %cst_483 = arith.constant 1.000000e+00 : f32
    %832 = vector.broadcast %cst_483 : f32 to vector<16x12xf32>
    %833 = arith.addf %832, %831 : vector<16x12xf32>
    %834 = arith.divf %832, %833 : vector<16x12xf32>
    %835 = vector.extract_strided_slice %834 {offsets = [0, 0], sizes = [16, 4], strides = [1, 1]} : vector<16x12xf32> to vector<16x4xf32>
    %836 = vector.extract_strided_slice %834 {offsets = [0, 4], sizes = [16, 4], strides = [1, 1]} : vector<16x12xf32> to vector<16x4xf32>
    %837 = vector.extract_strided_slice %834 {offsets = [0, 8], sizes = [16, 4], strides = [1, 1]} : vector<16x12xf32> to vector<16x4xf32>
    %838 = vector.extract_strided_slice %828 {offsets = [0, 12], sizes = [16, 4], strides = [1, 1]} : vector<16x16xf32> to vector<16x4xf32>
    %839 = math.tanh %838 : vector<16x4xf32>
    %c0_484 = arith.constant 0 : index
    %c0_485 = arith.constant 0 : index
    %840 = vector.load %arg8[%c0_484, %c0_485] : memref<16x4xf32, #tpu.memory_space<vmem>>, vector<16x4xf32>
    %841 = arith.mulf %836, %840 : vector<16x4xf32>
    %842 = arith.mulf %837, %839 : vector<16x4xf32>
    %843 = arith.addf %841, %842 : vector<16x4xf32>
    %844 = math.tanh %843 : vector<16x4xf32>
    %845 = arith.mulf %835, %844 : vector<16x4xf32>
    %c0_486 = arith.constant 0 : index
    %c0_487 = arith.constant 0 : index
    %846 = vector.load %arg8[%c0_486, %c0_487] : memref<16x4xf32, #tpu.memory_space<vmem>>, vector<16x4xf32>
    tpu.vector_store %arg8[%c0_486, %c0_487], %843 {strides = array<i32>} : memref<16x4xf32, #tpu.memory_space<vmem>>, vector<16x4xf32>,
    %c0_488 = arith.constant 0 : index
    %c4_489 = arith.constant 4 : index
    %847 = vector.load %arg7[%c0_488, %c4_489] : memref<16x8xf32, #tpu.memory_space<vmem>>, vector<16x4xf32>
    tpu.vector_store %arg7[%c0_488, %c4_489], %845 {strides = array<i32>} : memref<16x8xf32, #tpu.memory_space<vmem>>, vector<16x4xf32>,
    %848 = vector.extract_strided_slice %845 {offsets = [0, 0], sizes = [15, 4], strides = [1, 1]} : vector<16x4xf32> to vector<15x4xf32>
    %c1_490 = arith.constant 1 : index
    %c0_491 = arith.constant 0 : index
    %849 = vector.load %arg7[%c1_490, %c0_491] : memref<16x8xf32, #tpu.memory_space<vmem>>, vector<15x4xf32>
    tpu.vector_store %arg7[%c1_490, %c0_491], %848 {strides = array<i32>} : memref<16x8xf32, #tpu.memory_space<vmem>>, vector<15x4xf32>,
    %c0_492 = arith.constant 0 : index
    %c464_493 = arith.constant 464 : index
    %c0_494 = arith.constant 0 : index
    %850 = vector.load %arg5[%c0_492, %c464_493, %c0_494] : memref<1x496x4xf32, #tpu.memory_space<vmem>>, vector<1x16x4xf32>
    %851 = vector.shape_cast %850 : vector<1x16x4xf32> to vector<16x4xf32>
    %852 = vector.shape_cast %845 : vector<16x4xf32> to vector<1x16x4xf32>
    tpu.vector_store %arg5[%c0_492, %c464_493, %c0_494], %852 {strides = array<i32>} : memref<1x496x4xf32, #tpu.memory_space<vmem>>, vector<1x16x4xf32>,
    %c480 = arith.constant 480 : index
    %c0_495 = arith.constant 0 : index
    %853 = vector.load %arg6[%c480, %c0_495] : memref<496x16xf32, #tpu.memory_space<vmem>>, vector<16x16xf32>
    %c0_496 = arith.constant 0 : index
    %c0_497 = arith.constant 0 : index
    %854 = vector.load %arg7[%c0_496, %c0_497] : memref<16x8xf32, #tpu.memory_space<vmem>>, vector<16x8xf32>
    %cst_498 = arith.constant dense<0.000000e+00> : vector<16x16xf32>
    %855 = tpu.matmul %854, %12, %cst_498 {dimension_numbers = #tpu.dot_dimension_numbers<[1], [0], [0], [1], [0, 0, 1, 1], [], []>} : vector<16x8xf32>, vector<8x16xf32>, vector<16x16xf32> -> vector<16x16xf32>
    %856 = arith.addf %853, %855 : vector<16x16xf32>
    %857 = vector.extract_strided_slice %856 {offsets = [0, 0], sizes = [16, 12], strides = [1, 1]} : vector<16x16xf32> to vector<16x12xf32>
    %858 = arith.negf %857 : vector<16x12xf32>
    %859 = math.exp %858 : vector<16x12xf32>
    %cst_499 = arith.constant 1.000000e+00 : f32
    %860 = vector.broadcast %cst_499 : f32 to vector<16x12xf32>
    %861 = arith.addf %860, %859 : vector<16x12xf32>
    %862 = arith.divf %860, %861 : vector<16x12xf32>
    %863 = vector.extract_strided_slice %862 {offsets = [0, 0], sizes = [16, 4], strides = [1, 1]} : vector<16x12xf32> to vector<16x4xf32>
    %864 = vector.extract_strided_slice %862 {offsets = [0, 4], sizes = [16, 4], strides = [1, 1]} : vector<16x12xf32> to vector<16x4xf32>
    %865 = vector.extract_strided_slice %862 {offsets = [0, 8], sizes = [16, 4], strides = [1, 1]} : vector<16x12xf32> to vector<16x4xf32>
    %866 = vector.extract_strided_slice %856 {offsets = [0, 12], sizes = [16, 4], strides = [1, 1]} : vector<16x16xf32> to vector<16x4xf32>
    %867 = math.tanh %866 : vector<16x4xf32>
    %c0_500 = arith.constant 0 : index
    %c0_501 = arith.constant 0 : index
    %868 = vector.load %arg8[%c0_500, %c0_501] : memref<16x4xf32, #tpu.memory_space<vmem>>, vector<16x4xf32>
    %869 = arith.mulf %864, %868 : vector<16x4xf32>
    %870 = arith.mulf %865, %867 : vector<16x4xf32>
    %871 = arith.addf %869, %870 : vector<16x4xf32>
    %872 = math.tanh %871 : vector<16x4xf32>
    %873 = arith.mulf %863, %872 : vector<16x4xf32>
    %c0_502 = arith.constant 0 : index
    %c0_503 = arith.constant 0 : index
    %874 = vector.load %arg8[%c0_502, %c0_503] : memref<16x4xf32, #tpu.memory_space<vmem>>, vector<16x4xf32>
    tpu.vector_store %arg8[%c0_502, %c0_503], %871 {strides = array<i32>} : memref<16x4xf32, #tpu.memory_space<vmem>>, vector<16x4xf32>,
    %c0_504 = arith.constant 0 : index
    %c4_505 = arith.constant 4 : index
    %875 = vector.load %arg7[%c0_504, %c4_505] : memref<16x8xf32, #tpu.memory_space<vmem>>, vector<16x4xf32>
    tpu.vector_store %arg7[%c0_504, %c4_505], %873 {strides = array<i32>} : memref<16x8xf32, #tpu.memory_space<vmem>>, vector<16x4xf32>,
    %876 = vector.extract_strided_slice %873 {offsets = [0, 0], sizes = [15, 4], strides = [1, 1]} : vector<16x4xf32> to vector<15x4xf32>
    %c1_506 = arith.constant 1 : index
    %c0_507 = arith.constant 0 : index
    %877 = vector.load %arg7[%c1_506, %c0_507] : memref<16x8xf32, #tpu.memory_space<vmem>>, vector<15x4xf32>
    tpu.vector_store %arg7[%c1_506, %c0_507], %876 {strides = array<i32>} : memref<16x8xf32, #tpu.memory_space<vmem>>, vector<15x4xf32>,
    %c0_508 = arith.constant 0 : index
    %c480_509 = arith.constant 480 : index
    %c0_510 = arith.constant 0 : index
    %878 = vector.load %arg5[%c0_508, %c480_509, %c0_510] : memref<1x496x4xf32, #tpu.memory_space<vmem>>, vector<1x16x4xf32>
    %879 = vector.shape_cast %878 : vector<1x16x4xf32> to vector<16x4xf32>
    %880 = vector.shape_cast %873 : vector<16x4xf32> to vector<1x16x4xf32>
    tpu.vector_store %arg5[%c0_508, %c480_509, %c0_510], %880 {strides = array<i32>} : memref<1x496x4xf32, #tpu.memory_space<vmem>>, vector<1x16x4xf32>,
    return
  }
  func.func @transform_0(%arg0: i32) -> (i32, i32, i32) {
    %c0_i32 = arith.constant 0 : i32
    %c0_i32_0 = arith.constant 0 : i32
    %c0_i32_1 = arith.constant 0 : i32
    return %arg0, %c0_i32, %c0_i32_0 : i32, i32, i32
  }
  func.func @transform_1(%arg0: i32) -> (i32, i32) {
    %c0_i32 = arith.constant 0 : i32
    %c0_i32_0 = arith.constant 0 : i32
    %c0_i32_1 = arith.constant 0 : i32
    return %c0_i32, %c0_i32_0 : i32, i32
  }
  func.func @transform_2(%arg0: i32) -> (i32, i32) {
    %c0_i32 = arith.constant 0 : i32
    %c0_i32_0 = arith.constant 0 : i32
    %c0_i32_1 = arith.constant 0 : i32
    return %c0_i32, %c0_i32_0 : i32, i32
  }
  func.func @transform_3(%arg0: i32) -> (i32, i32) {
    %c0_i32 = arith.constant 0 : i32
    %c0_i32_0 = arith.constant 0 : i32
    %c0_i32_1 = arith.constant 0 : i32
    return %c0_i32, %c0_i32_0 : i32, i32
  }
  func.func @transform_4(%arg0: i32) -> (i32, i32, i32) {
    %c0_i32 = arith.constant 0 : i32
    %c0_i32_0 = arith.constant 0 : i32
    %c0_i32_1 = arith.constant 0 : i32
    return %arg0, %c0_i32, %c0_i32_0 : i32, i32, i32
  }
}

</mosaic_0001>

<bundles_post_ra>
// kernel: diagonal_lstm_pallas.1
= control target key start
LH: loop header
LB: loop body
LE: loop exit
PB: predicated region body
PF: predicated region fallthrough
CT: control target
= control target key end

     0   :  { %s7354_s15 = smov 0   ;;  %s8493_s0 = inlined_call_operand.vmem [shape: f32[2,496,4], index: 0, kind: input, shape index: {}]   ;;  %s8494_s1 = inlined_call_operand.vmem [shape: f32[4,16], index: 1, kind: input, shape index: {}]   ;;  %s8495_s2 = inlined_call_operand.vmem [shape: f32[1,16], index: 2, kind: input, shape index: {}]   ;;  %s8496_s3 = inlined_call_operand.vmem [shape: f32[8,16], index: 3, kind: input, shape index: {}]   ;;  %s8497_s4 = inlined_call_operand.vmem [shape: f32[2,496,4], index: 4, kind: output, shape index: {}]  }
   0x1 LB: > { %s6199_s16 = sadd.s32 4294967295, %s7324_s15   ;;  %p6203_p0 = scmp.ge.s32.totalorder %s7324_s15, 1  ;;  %s7324_s15 = sphi %s7354_s15, %s14_s15  }
   0x2   : > { %p162_p1 = scmp.lt.s32.totalorder %s7324_s15, 3 }
   0x4   : > { %p163_p2 = pnand %p6203_p0, %p162_p1 }
   0x5   : > { %v260_v0 = vld [vmem:[%s8494_s1] sm:$0xf] (!%p163_p2)  ;;  %vm455_vm0 = vcmask (!%p163_p2), 1043456   ;;  %p188_p3 = scmp.lt.s32.totalorder (!%p163_p2), %s6199_s16, 1  ;;  %vm268_vm1 = vcmask (!%p163_p2), 31744   ;;  %vm897_vm2 = vcmask (!%p163_p2), 64512  }
   0x6   : > { %166 = sbr.rel (%p163_p2) target bundleno = 22160 (0x5690), region = 36  ;;  %v7368_v1 = vld [vmem:[%s8496_s3] sm:$0xff] (!%p163_p2)  ;;  %6552 = vmatprep.subr.msk.mxu0 (!%p163_p2), %vm455_vm0, %v260_v0  ;;  %v7326_v2 = vmov (!%p163_p2), 0.0   ;;  %s7327_s25 = smov (!%p163_p2), 4   ;;  %vm834_vm3 = vcmask (!%p163_p2), 130048   ;;  %vm1066_vm4 = vcmask (!%p163_p2), 64544  }
   0x7   : > { %6647 = vmatprep.subr.mxu1 (!%p163_p2), %v7368_v1  ;;  %6553 = vmatpush3.msk.msra.mxu0 (!%p163_p2), %vm455_vm0, %v260_v0  ;;  %898 = vst.msk [vmem:[#allocation3] sm:$0xff] (!%p163_p2), %vm897_vm2, %v7326_v2  ;;  %899 = vst.msk [vmem:[#allocation3 + $0x8] sm:$0xff] (!%p163_p2), %vm897_vm2, %v7326_v2  ;;  %v7400_v9 = vld [vmem:[%s8495_s2] ss:$0 sm:$0xff] (!%p163_p2)  ;;  %s7328_s28 = smov (!%p163_p2), 124   ;;  %vm1070_vm5 = vcmask (!%p163_p2), 30720  }
   0x8   : > { %6648 = vmatpush3.msra.mxu1 (!%p163_p2), %v7368_v1  ;;  %900 = vst.msk [vmem:[#allocation4] sm:$0xff] (!%p163_p2), %vm268_vm1, %v7326_v2  ;;  %901 = vst.msk [vmem:[#allocation4 + $0x8] sm:$0xff] (!%p163_p2), %vm268_vm1, %v7326_v2 }
   0x9   : > { %6652 = vmatprep.subr.mxu1 (!%p163_p2), %v7368_v1 }
   0xd   : > { %s8499_s16 = smov (!%p188_p3, %s6199_s16), 1 }
   0xe   : > { %s6802_s21 = smul.u32 496, %s8499_s16  ;;  %v905_v5 = vld [vmem:[#allocation3] sm:$0xff]  ;;  %v906_v6 = vld [vmem:[#allocation3 + $0x8] sm:$0xff] }
   0xf   : > { %v1004_v7 = vld [vmem:[#allocation4] sm:$0xff]  ;;  %6649 = vmatprep.mubr.msk.f32.mxu1 %vm897_vm2, %v905_v5  ;;  %v1005_v8 = vld [vmem:[#allocation4 + $0x8] sm:$0xff] }
  0x10   : > { %s7385_s24 = scalar_lea.vmem %s8493_s0, %s6802_s21  ;;  %1008 = vrot.lane.b32.xlu1 %v1004_v7, %s7327_s25  ;;  %6650 = vmatmul.mubr.msk.f32.vlgmr.msra.gmra.mrb[0].mxu1 %vm897_vm2, %v906_v6  ;;  %s7421_s5 = scalar_lea.vmem %s8497_s4, %s6802_s21 }
  0x11   : > { %v198_v3 = vld [vmem:[%s7385_s24] sm:$0xff]  ;;  %v199_v4 = vld [vmem:[%s7385_s24 + $0x8] sm:$0xff]  ;;  %6653 = vmatpush3.msra.mxu1 %v7368_v1  ;;  %v200_v44 = vld [vmem:[%s7385_s24 + $0x10] sm:$0xff] }
  0x12   : > { %6554 = vmatprep.mubr.msk.f32.mxu0 %vm268_vm1, %v198_v3  ;;  %6657 = vmatprep.subr.mxu1 %v7368_v1  ;;  %v201_v45 = vld [vmem:[%s7385_s24 + $0x18] sm:$0xff] }
  0x13   : > { %6555 = vmatmul.mubr.msk.f32.vlgmr.msra.gmra.mrb[0].mxu0 %vm268_vm1, %v199_v4 }
  0x14   : > { %1010 = vrot.lane.b32.xlu1 %v1005_v8, %s7327_s25  ;;  %6557 = vmatprep.mubr.msk.f32.mxu0 %vm268_vm1, %v200_v44 }
  0x17   : > { %6558 = vmatmul.mubr.msk.f32.gmra.mrb[2].mxu0 %vm268_vm1, %v201_v45 }
  0x82   : > { %v1009_v34 = vpop.permute.xlu1 %1008 }
  0x86   : > { %v1011_v36 = vpop.permute.xlu1 %1010 }
  0xe3   : > { %v6651_v14 = vpop.f32.mrb[0].mxu1 }
  0xe4   : > { %v979_v15 = vpop.f32.mrb[1].mxu1 }
  0xe6   : > { %v6556_v10 = vpop.f32.mrb[0].mxu0 }
  0xe7   : > { %v531_v11 = vadd.f32 %v6556_v10, %v7400_v9  ;;  %v525_v12 = vpop.f32.mrb[1].mxu0 }
  0xe8   : > { %v526_v13 = vadd.f32 %v7400_v9, %v525_v12 }
  0xe9   : > { %836 = vst.msk [vmem:[#allocation2 + $0x8] sm:$0xff] %vm834_vm3, %v531_v11 }
  0xea   : > { %835 = vst.msk [vmem:[#allocation2] sm:$0xff] %vm834_vm3, %v526_v13  ;;  %v6559_v56 = vpop.f32.mrb[2].mxu0 }
  0xeb   : > { %v541_v57 = vadd.f32 %v6559_v56, %v7400_v9  ;;  %v535_v58 = vpop.f32.mrb[3].mxu0 }
  0xec   : > { %v536_v59 = vadd.f32 %v7400_v9, %v535_v58 }
  0xed   : > { %838 = vst.msk [vmem:[#allocation2 + $0x18] sm:$0xff] %vm834_vm3, %v541_v57 }
  0xee   : > { %837 = vst.msk [vmem:[#allocation2 + $0x10] sm:$0xff] %vm834_vm3, %v536_v59 }
  0xf0   : > { %v904_v16 = vld [vmem:[#allocation2 + $0x8] sm:$0xff] }
  0xf1   : > { %v903_v17 = vld [vmem:[#allocation2] sm:$0xff]  ;;  %v989_v19 = vadd.f32 %v6651_v14, %v904_v16 }
  0xf2   : > { %v988_v18 = vadd.f32 %v979_v15, %v903_v17 }
  0xf3   : > { %v6273_v23 = vmul.f32 -1.442695, %v989_v19 }
  0xf4   : > { %6814 = vtanh.f32 %v988_v18  ;;  %v6272_v22 = vmul.f32 -1.442695, %v988_v18  ;;  %v1075_v60 = vld [vmem:[#allocation2 + $0x18] sm:$0xff] }
  0xf5   : > { %6816 = vtanh.f32 %v989_v19  ;;  %v1074_v61 = vld [vmem:[#allocation2 + $0x10] sm:$0xff] }
  0xf6   : > { %6818 = vpow2.f32 %v6272_v22 }
  0xf7   : > { %6820 = vpow2.f32 %v6273_v23 }
  0xfe   : > { %v6815_v20 = vpop.eup %6814 }
  0xff   : > { %1018 = vrot.lane.b32.xlu0 %v6815_v20, %s7328_s28  ;;  %v6817_v21 = vpop.eup %6816 }
 0x100   : > { %v6819_v24 = vpop.eup %6818 }
 0x101   : > { %v996_v25 = vadd.f32 1.0, %v6819_v24  ;;  %v6821_v26 = vpop.eup %6820 }
 0x102   : > { %v997_v27 = vadd.f32 1.0, %v6821_v26 }
 0x103   : > { %1020 = vrot.lane.b32.xlu0 %v6817_v21, %s7328_s28  ;;  %6822 = vrcp.f32 %v996_v25 }
 0x104   : > { %6824 = vrcp.f32 %v997_v27 }
 0x10d   : > { %v6823_v28 = vpop.eup %6822 }
 0x10e   : > { %v6825_v31 = vpop.eup %6824  ;;  %v1014_v35 = vmul.f32 %v6823_v28, %v1009_v34 }
 0x10f   : > { %v1015_v39 = vmul.f32 %v6825_v31, %v1011_v36 }
 0x171   : > { %v1019_v29 = vpop.permute.xlu0 %1018 }
 0x172   : > { %v1024_v30 = vmul.f32 %v6823_v28, %v1019_v29 }
 0x174   : > { %1028 = vrot.lane.b32.xlu0 %v1024_v30, %s7328_s28 }
 0x175   : > { %v1021_v32 = vpop.permute.xlu0 %1020 }
 0x176   : > { %v1025_v33 = vmul.f32 %v6825_v31, %v1021_v32 }
 0x178   : > { %1030 = vrot.lane.b32.xlu1 %v1025_v33, %s7328_s28 }
 0x1e6   : > { %v1029_v37 = vpop.permute.xlu0 %1028 }
 0x1e7   : > { %v1034_v38 = vadd.f32 %v1029_v37, %v1014_v35 }
 0x1e9   : > { %6826 = vtanh.f32 %v1034_v38 }
 0x1ea   : > { %v1031_v40 = vpop.permute.xlu1 %1030 }
 0x1eb   : > { %v1035_v41 = vadd.f32 %v1031_v40, %v1015_v39 }
 0x1ed   : > { %6828 = vtanh.f32 %v1035_v41 }
 0x1f3   : > { %v6827_v42 = vpop.eup %6826 }
 0x1f4   : > { %1040 = vrot.lane.b32.xlu0 %v6827_v42, %s7328_s28 }
 0x1f7   : > { %v6829_v43 = vpop.eup %6828 }
 0x1f8   : > { %1042 = vrot.lane.b32.xlu1 %v6829_v43, %s7328_s28 }
 0x266   : > { %v1041_v46 = vpop.permute.xlu0 %1040 }
 0x267   : > { %v1046_v47 = vmul.f32 %v6823_v28, %v1041_v46  ;;  %v202_v28 = vld [vmem:[%s7385_s24 + $0x20] sm:$0xff] }
 0x268   : > { %6560 = vmatprep.mubr.msk.f32.mxu0 %vm268_vm1, %v202_v28 }
 0x269   : > { %1072 = vst.msk [vmem:[%s7421_s5] sm:$0xff] %vm268_vm1, %v1046_v47  ;;  %1060 = vrot.lane.b32.xlu0 %v1046_v47, %s7327_s25 }
 0x26a   : > { %v1043_v48 = vpop.permute.xlu1 %1042 }
 0x26b   : > { %v1047_v49 = vmul.f32 %v6825_v31, %v1043_v48  ;;  %v203_v31 = vld [vmem:[%s7385_s24 + $0x28] sm:$0xff] }
 0x26c   : > { %6561 = vmatmul.mubr.msk.f32.gmra.mrb[4].mxu0 %vm268_vm1, %v203_v31 }
 0x26d   : > { %1073 = vst.msk [vmem:[%s7421_s5 + $0x8] sm:$0xff] %vm268_vm1, %v1047_v49  ;;  %1062 = vrot.lane.b32.xlu1 %v1047_v49, %s7327_s25  ;;  %1050 = vrot.lane.b32.xlu0 %v1034_v38, %s7328_s28 }
 0x271   : > { %1052 = vrot.lane.b32.xlu1 %v1035_v41, %s7328_s28 }
 0x2db   : > { %v1061_v50 = vpop.permute.xlu0 %1060 }
 0x2dc   : > { %1067 = vst.msk [vmem:[#allocation3] sm:$0xff] %vm1066_vm4, %v1061_v50 }
 0x2df   : > { %v1063_v51 = vpop.permute.xlu1 %1062  ;;  %v1051_v52 = vpop.permute.xlu0 %1050 }
 0x2e0   : > { %1068 = vst.msk [vmem:[#allocation3 + $0x8] sm:$0xff] %vm1066_vm4, %v1063_v51 }
 0x2e1   : > { %1056 = vst.msk [vmem:[#allocation4] sm:$0xff] %vm268_vm1, %v1051_v52  ;;  %1069 = vst.msk [vmem:[#allocation3 + $0x1] sm:$0xff] %vm268_vm1, %v1046_v47 }
 0x2e2   : > { %1071 = vst.msk [vmem:[#allocation3 + $0x9] sm:$0x7f] %vm1070_vm5, %v1047_v49 }
 0x2e3   : > { %v1053_v53 = vpop.permute.xlu1 %1052 }
 0x2e4   : > { %1057 = vst.msk [vmem:[#allocation4 + $0x8] sm:$0xff] %vm268_vm1, %v1053_v53 }
 0x2e8   : > { %v1076_v54 = vld [vmem:[#allocation3] sm:$0xff]  ;;  %v1175_v6 = vld [vmem:[#allocation4] sm:$0xff] }
 0x2e9   : > { %v1077_v55 = vld [vmem:[#allocation3 + $0x8] sm:$0xff]  ;;  %6654 = vmatprep.mubr.msk.f32.mxu1 %vm897_vm2, %v1076_v54 }
 0x2ea   : > { %6655 = vmatmul.mubr.msk.f32.vlgmr.msra.gmra.mrb[2].mxu1 %vm897_vm2, %v1077_v55 }
 0x2eb   : > { %6658 = vmatpush3.msra.mxu1 %v7368_v1  ;;  %v1176_v5 = vld [vmem:[#allocation4 + $0x8] sm:$0xff] }
 0x2ec   : > { %6662 = vmatprep.subr.mxu1 %v7368_v1 }
 0x33f   : > { %v6562_v42 = vpop.f32.mrb[4].mxu0 }
 0x340   : > { %v551_v43 = vadd.f32 %v6562_v42, %v7400_v9  ;;  %v545_v44 = vpop.f32.mrb[5].mxu0 }
 0x341   : > { %v546_v45 = vadd.f32 %v7400_v9, %v545_v44 }
 0x342   : > { %840 = vst.msk [vmem:[#allocation2 + $0x28] sm:$0xff] %vm834_vm3, %v551_v43 }
 0x343   : > { %839 = vst.msk [vmem:[#allocation2 + $0x20] sm:$0xff] %vm834_vm3, %v546_v45 }
 0x349   : > { %v1244_v46 = vld [vmem:[#allocation2 + $0x28] sm:$0xff] }
 0x34a   : > { %v1243_v47 = vld [vmem:[#allocation2 + $0x20] sm:$0xff] }
 0x3bd   : > { %v6656_v62 = vpop.f32.mrb[2].mxu1 }
 0x3be   : > { %v1160_v63 = vadd.f32 %v6656_v62, %v1075_v60  ;;  %v1150_v0 = vpop.f32.mrb[3].mxu1 }
 0x3bf   : > { %v1159_v2 = vadd.f32 %v1150_v0, %v1074_v61 }
 0x3c0   : > { %6830 = vtanh.f32 %v1160_v63  ;;  %v6277_v7 = vmul.f32 -1.442695, %v1160_v63 }
 0x3c1   : > { %6832 = vtanh.f32 %v1159_v2  ;;  %v6276_v8 = vmul.f32 -1.442695, %v1159_v2 }
 0x3c2   : > { %6834 = vpow2.f32 %v6277_v7 }
 0x3c3   : > { %6836 = vpow2.f32 %v6276_v8 }
 0x3ca   : > { %v6831_v3 = vpop.eup %6830 }
 0x3cb   : > { %v6833_v4 = vpop.eup %6832  ;;  %1191 = vrot.lane.b32.xlu1 %v6831_v3, %s7328_s28 }
 0x3cc   : > { %1189 = vrot.lane.b32.xlu0 %v6833_v4, %s7328_s28  ;;  %v6835_v10 = vpop.eup %6834 }
 0x3cd   : > { %v6837_v11 = vpop.eup %6836  ;;  %v1168_v12 = vadd.f32 1.0, %v6835_v10 }
 0x3ce   : > { %v1167_v13 = vadd.f32 1.0, %v6837_v11 }
 0x3cf   : > { %1181 = vrot.lane.b32.xlu1 %v1176_v5, %s7327_s25  ;;  %6838 = vrcp.f32 %v1168_v12 }
 0x3d0   : > { %1179 = vrot.lane.b32.xlu0 %v1175_v6, %s7327_s25  ;;  %6840 = vrcp.f32 %v1167_v13 }
 0x3d9   : > { %v6839_v14 = vpop.eup %6838 }
 0x3da   : > { %v6841_v16 = vpop.eup %6840 }
 0x43d   : > { %v1192_v15 = vpop.permute.xlu1 %1191 }
 0x43e   : > { %v1196_v17 = vmul.f32 %v6839_v14, %v1192_v15  ;;  %v1190_v18 = vpop.permute.xlu0 %1189 }
 0x43f   : > { %v1195_v19 = vmul.f32 %v6841_v16, %v1190_v18 }
 0x440   : > { %1201 = vrot.lane.b32.xlu1 %v1196_v17, %s7328_s28  ;;  %v205_v17 = vld [vmem:[%s7385_s24 + $0x38] sm:$0xff] }
 0x441   : > { %1199 = vrot.lane.b32.xlu0 %v1195_v19, %s7328_s28  ;;  %v1182_v20 = vpop.permute.xlu1 %1181 }
 0x442   : > { %v1180_v21 = vpop.permute.xlu0 %1179  ;;  %v1186_v22 = vmul.f32 %v6839_v14, %v1182_v20 }
 0x443   : > { %v1185_v23 = vmul.f32 %v6841_v16, %v1180_v21 }
 0x4b2   : > { %v1202_v24 = vpop.permute.xlu1 %1201 }
 0x4b3   : > { %v1206_v25 = vadd.f32 %v1202_v24, %v1186_v22  ;;  %v1200_v26 = vpop.permute.xlu0 %1199 }
 0x4b4   : > { %v1205_v27 = vadd.f32 %v1200_v26, %v1185_v23 }
 0x4b5   : > { %6842 = vtanh.f32 %v1206_v25 }
 0x4b6   : > { %6844 = vtanh.f32 %v1205_v27 }
 0x4bf   : > { %v6843_v29 = vpop.eup %6842 }
 0x4c0   : > { %v6845_v30 = vpop.eup %6844  ;;  %1213 = vrot.lane.b32.xlu1 %v6843_v29, %s7328_s28 }
 0x4c1   : > { %1211 = vrot.lane.b32.xlu0 %v6845_v30, %s7328_s28 }
 0x532   : > { %v1214_v32 = vpop.permute.xlu1 %1213 }
 0x533   : > { %v1218_v33 = vmul.f32 %v6839_v14, %v1214_v32  ;;  %v1212_v34 = vpop.permute.xlu0 %1211  ;;  %v204_v14 = vld [vmem:[%s7385_s24 + $0x30] sm:$0xff] }
 0x534   : > { %v1217_v35 = vmul.f32 %v6841_v16, %v1212_v34  ;;  %6563 = vmatprep.mubr.msk.f32.mxu0 %vm268_vm1, %v204_v14 }
 0x535   : > { %1242 = vst.msk [vmem:[%s7421_s5 + $0x18] sm:$0xff] %vm268_vm1, %v1218_v33  ;;  %1233 = vrot.lane.b32.xlu1 %v1218_v33, %s7327_s25  ;;  %6564 = vmatmul.mubr.msk.f32.gmra.mrb[6].mxu0 %vm268_vm1, %v205_v17 }
 0x536   : > { %1241 = vst.msk [vmem:[%s7421_s5 + $0x10] sm:$0xff] %vm268_vm1, %v1217_v35  ;;  %1231 = vrot.lane.b32.xlu0 %v1217_v35, %s7327_s25 }
 0x539   : > { %1223 = vrot.lane.b32.xlu1 %v1206_v25, %s7328_s28 }
 0x53a   : > { %1221 = vrot.lane.b32.xlu0 %v1205_v27, %s7328_s28 }
 0x5a7   : > { %v1234_v36 = vpop.permute.xlu1 %1233 }
 0x5a8   : > { %1238 = vst.msk [vmem:[#allocation3 + $0x8] sm:$0xff] %vm1066_vm4, %v1234_v36  ;;  %v1232_v37 = vpop.permute.xlu0 %1231 }
 0x5a9   : > { %1240 = vst.msk [vmem:[#allocation3 + $0x9] sm:$0x7f] %vm1070_vm5, %v1218_v33 }
 0x5aa   : > { %1237 = vst.msk [vmem:[#allocation3] sm:$0xff] %vm1066_vm4, %v1232_v37 }
 0x5ab   : > { %1239 = vst.msk [vmem:[#allocation3 + $0x1] sm:$0xff] %vm268_vm1, %v1217_v35  ;;  %v1224_v38 = vpop.permute.xlu1 %1223 }
 0x5ac   : > { %1228 = vst.msk [vmem:[#allocation4 + $0x8] sm:$0xff] %vm268_vm1, %v1224_v38  ;;  %v1222_v39 = vpop.permute.xlu0 %1221 }
 0x5ad   : > { %1227 = vst.msk [vmem:[#allocation4] sm:$0xff] %vm268_vm1, %v1222_v39 }
 0x5b2   : > { %v1245_v40 = vld [vmem:[#allocation3] sm:$0xff]  ;;  %v1246_v41 = vld [vmem:[#allocation3 + $0x8] sm:$0xff] }
 0x5b3   : > { %6659 = vmatprep.mubr.msk.f32.mxu1 %vm897_vm2, %v1245_v40  ;;  %v1345_v54 = vld [vmem:[#allocation4 + $0x8] sm:$0xff] }
 0x5b4   : > { %6660 = vmatmul.mubr.msk.f32.vlgmr.msra.gmra.mrb[4].mxu1 %vm897_vm2, %v1246_v41  ;;  %v1344_v55 = vld [vmem:[#allocation4] sm:$0xff] }
 0x5b5   : > { %6663 = vmatpush3.msra.mxu1 %v7368_v1 }
 0x5b6   : > { %6667 = vmatprep.subr.mxu1 %v7368_v1 }
 0x608   : > { %v6565_v28 = vpop.f32.mrb[6].mxu0 }
 0x609   : > { %v561_v29 = vadd.f32 %v6565_v28, %v7400_v9  ;;  %v555_v30 = vpop.f32.mrb[7].mxu0 }
 0x60a   : > { %v556_v31 = vadd.f32 %v7400_v9, %v555_v30 }
 0x60b   : > { %842 = vst.msk [vmem:[#allocation2 + $0x38] sm:$0xff] %vm834_vm3, %v561_v29 }
 0x60c   : > { %841 = vst.msk [vmem:[#allocation2 + $0x30] sm:$0xff] %vm834_vm3, %v556_v31 }
 0x612   : > { %v1413_v32 = vld [vmem:[#allocation2 + $0x38] sm:$0xff] }
 0x613   : > { %v1412_v33 = vld [vmem:[#allocation2 + $0x30] sm:$0xff] }
 0x687   : > { %v6661_v48 = vpop.f32.mrb[4].mxu1 }
 0x688   : > { %v1329_v49 = vadd.f32 %v6661_v48, %v1244_v46  ;;  %v1319_v50 = vpop.f32.mrb[5].mxu1 }
 0x689   : > { %v1328_v51 = vadd.f32 %v1319_v50, %v1243_v47 }
 0x68a   : > { %6846 = vtanh.f32 %v1329_v49  ;;  %v6281_v56 = vmul.f32 -1.442695, %v1329_v49 }
 0x68b   : > { %6848 = vtanh.f32 %v1328_v51  ;;  %v6280_v57 = vmul.f32 -1.442695, %v1328_v51 }
 0x68c   : > { %6850 = vpow2.f32 %v6281_v56 }
 0x68d   : > { %6852 = vpow2.f32 %v6280_v57 }
 0x694   : > { %v6847_v52 = vpop.eup %6846 }
 0x695   : > { %v6849_v53 = vpop.eup %6848  ;;  %1360 = vrot.lane.b32.xlu1 %v6847_v52, %s7328_s28 }
 0x696   : > { %1358 = vrot.lane.b32.xlu0 %v6849_v53, %s7328_s28  ;;  %v6851_v58 = vpop.eup %6850 }
 0x697   : > { %v6853_v59 = vpop.eup %6852  ;;  %v1337_v60 = vadd.f32 1.0, %v6851_v58 }
 0x698   : > { %v1336_v61 = vadd.f32 1.0, %v6853_v59 }
 0x699   : > { %1350 = vrot.lane.b32.xlu1 %v1345_v54, %s7327_s25  ;;  %6854 = vrcp.f32 %v1337_v60 }
 0x69a   : > { %1348 = vrot.lane.b32.xlu0 %v1344_v55, %s7327_s25  ;;  %6856 = vrcp.f32 %v1336_v61 }
 0x6a3   : > { %v6855_v62 = vpop.eup %6854 }
 0x6a4   : > { %v6857_v0 = vpop.eup %6856 }
 0x707   : > { %v1361_v63 = vpop.permute.xlu1 %1360 }
 0x708   : > { %v1365_v2 = vmul.f32 %v6855_v62, %v1361_v63  ;;  %v1359_v3 = vpop.permute.xlu0 %1358 }
 0x709   : > { %v1364_v4 = vmul.f32 %v6857_v0, %v1359_v3 }
 0x70a   : > { %1370 = vrot.lane.b32.xlu1 %v1365_v2, %s7328_s28  ;;  %v207_v2 = vld [vmem:[%s7385_s24 + $0x48] sm:$0xff] }
 0x70b   : > { %1368 = vrot.lane.b32.xlu0 %v1364_v4, %s7328_s28  ;;  %v1351_v5 = vpop.permute.xlu1 %1350 }
 0x70c   : > { %v1349_v6 = vpop.permute.xlu0 %1348  ;;  %v1355_v7 = vmul.f32 %v6855_v62, %v1351_v5 }
 0x70d   : > { %v1354_v8 = vmul.f32 %v6857_v0, %v1349_v6 }
 0x77c   : > { %v1371_v10 = vpop.permute.xlu1 %1370 }
 0x77d   : > { %v1375_v11 = vadd.f32 %v1371_v10, %v1355_v7  ;;  %v1369_v12 = vpop.permute.xlu0 %1368 }
 0x77e   : > { %v1374_v13 = vadd.f32 %v1369_v12, %v1354_v8 }
 0x77f   : > { %6858 = vtanh.f32 %v1375_v11 }
 0x780   : > { %6860 = vtanh.f32 %v1374_v13 }
 0x789   : > { %v6859_v15 = vpop.eup %6858 }
 0x78a   : > { %v6861_v16 = vpop.eup %6860  ;;  %1382 = vrot.lane.b32.xlu1 %v6859_v15, %s7328_s28 }
 0x78b   : > { %1380 = vrot.lane.b32.xlu0 %v6861_v16, %s7328_s28 }
 0x7fc   : > { %v1383_v18 = vpop.permute.xlu1 %1382 }
 0x7fd   : > { %v1387_v19 = vmul.f32 %v6855_v62, %v1383_v18  ;;  %v1381_v20 = vpop.permute.xlu0 %1380  ;;  %v206_v62 = vld [vmem:[%s7385_s24 + $0x40] sm:$0xff] }
 0x7fe   : > { %v1386_v21 = vmul.f32 %v6857_v0, %v1381_v20  ;;  %6566 = vmatprep.mubr.msk.f32.mxu0 %vm268_vm1, %v206_v62 }
 0x7ff   : > { %1411 = vst.msk [vmem:[%s7421_s5 + $0x28] sm:$0xff] %vm268_vm1, %v1387_v19  ;;  %1402 = vrot.lane.b32.xlu1 %v1387_v19, %s7327_s25  ;;  %6567 = vmatmul.mubr.msk.f32.gmra.mrb[8].mxu0 %vm268_vm1, %v207_v2 }
 0x800   : > { %1410 = vst.msk [vmem:[%s7421_s5 + $0x20] sm:$0xff] %vm268_vm1, %v1386_v21  ;;  %1400 = vrot.lane.b32.xlu0 %v1386_v21, %s7327_s25 }
 0x803   : > { %1392 = vrot.lane.b32.xlu1 %v1375_v11, %s7328_s28 }
 0x804   : > { %1390 = vrot.lane.b32.xlu0 %v1374_v13, %s7328_s28 }
 0x871   : > { %v1403_v22 = vpop.permute.xlu1 %1402 }
 0x872   : > { %1407 = vst.msk [vmem:[#allocation3 + $0x8] sm:$0xff] %vm1066_vm4, %v1403_v22  ;;  %v1401_v23 = vpop.permute.xlu0 %1400 }
 0x873   : > { %1409 = vst.msk [vmem:[#allocation3 + $0x9] sm:$0x7f] %vm1070_vm5, %v1387_v19 }
 0x874   : > { %1406 = vst.msk [vmem:[#allocation3] sm:$0xff] %vm1066_vm4, %v1401_v23 }
 0x875   : > { %1408 = vst.msk [vmem:[#allocation3 + $0x1] sm:$0xff] %vm268_vm1, %v1386_v21  ;;  %v1393_v24 = vpop.permute.xlu1 %1392 }
 0x876   : > { %1397 = vst.msk [vmem:[#allocation4 + $0x8] sm:$0xff] %vm268_vm1, %v1393_v24  ;;  %v1391_v25 = vpop.permute.xlu0 %1390 }
 0x877   : > { %1396 = vst.msk [vmem:[#allocation4] sm:$0xff] %vm268_vm1, %v1391_v25 }
 0x87c   : > { %v1414_v26 = vld [vmem:[#allocation3] sm:$0xff]  ;;  %v1415_v27 = vld [vmem:[#allocation3 + $0x8] sm:$0xff] }
 0x87d   : > { %6664 = vmatprep.mubr.msk.f32.mxu1 %vm897_vm2, %v1414_v26  ;;  %v1514_v40 = vld [vmem:[#allocation4 + $0x8] sm:$0xff] }
 0x87e   : > { %6665 = vmatmul.mubr.msk.f32.vlgmr.msra.gmra.mrb[6].mxu1 %vm897_vm2, %v1415_v27  ;;  %v1513_v41 = vld [vmem:[#allocation4] sm:$0xff] }
 0x87f   : > { %6668 = vmatpush3.msra.mxu1 %v7368_v1 }
 0x880   : > { %6672 = vmatprep.subr.mxu1 %v7368_v1 }
 0x8d2   : > { %v6568_v14 = vpop.f32.mrb[8].mxu0 }
 0x8d3   : > { %v571_v15 = vadd.f32 %v6568_v14, %v7400_v9  ;;  %v565_v16 = vpop.f32.mrb[9].mxu0 }
 0x8d4   : > { %v566_v17 = vadd.f32 %v7400_v9, %v565_v16 }
 0x8d5   : > { %844 = vst.msk [vmem:[#allocation2 + $0x48] sm:$0xff] %vm834_vm3, %v571_v15 }
 0x8d6   : > { %843 = vst.msk [vmem:[#allocation2 + $0x40] sm:$0xff] %vm834_vm3, %v566_v17 }
 0x8dc   : > { %v1582_v18 = vld [vmem:[#allocation2 + $0x48] sm:$0xff] }
 0x8dd   : > { %v1581_v19 = vld [vmem:[#allocation2 + $0x40] sm:$0xff] }
 0x951   : > { %v6666_v34 = vpop.f32.mrb[6].mxu1 }
 0x952   : > { %v1498_v35 = vadd.f32 %v6666_v34, %v1413_v32  ;;  %v1488_v36 = vpop.f32.mrb[7].mxu1 }
 0x953   : > { %v1497_v37 = vadd.f32 %v1488_v36, %v1412_v33 }
 0x954   : > { %6862 = vtanh.f32 %v1498_v35  ;;  %v6285_v42 = vmul.f32 -1.442695, %v1498_v35 }
 0x955   : > { %6864 = vtanh.f32 %v1497_v37  ;;  %v6284_v43 = vmul.f32 -1.442695, %v1497_v37 }
 0x956   : > { %6866 = vpow2.f32 %v6285_v42 }
 0x957   : > { %6868 = vpow2.f32 %v6284_v43 }
 0x95e   : > { %v6863_v38 = vpop.eup %6862 }
 0x95f   : > { %v6865_v39 = vpop.eup %6864  ;;  %1529 = vrot.lane.b32.xlu1 %v6863_v38, %s7328_s28 }
 0x960   : > { %1527 = vrot.lane.b32.xlu0 %v6865_v39, %s7328_s28  ;;  %v6867_v44 = vpop.eup %6866 }
 0x961   : > { %v6869_v45 = vpop.eup %6868  ;;  %v1506_v46 = vadd.f32 1.0, %v6867_v44 }
 0x962   : > { %v1505_v47 = vadd.f32 1.0, %v6869_v45 }
 0x963   : > { %1519 = vrot.lane.b32.xlu1 %v1514_v40, %s7327_s25  ;;  %6870 = vrcp.f32 %v1506_v46 }
 0x964   : > { %1517 = vrot.lane.b32.xlu0 %v1513_v41, %s7327_s25  ;;  %6872 = vrcp.f32 %v1505_v47 }
 0x96d   : > { %v6871_v48 = vpop.eup %6870 }
 0x96e   : > { %v6873_v50 = vpop.eup %6872 }
 0x9d1   : > { %v1530_v49 = vpop.permute.xlu1 %1529 }
 0x9d2   : > { %v1534_v51 = vmul.f32 %v6871_v48, %v1530_v49  ;;  %v1528_v52 = vpop.permute.xlu0 %1527 }
 0x9d3   : > { %v1533_v53 = vmul.f32 %v6873_v50, %v1528_v52 }
 0x9d4   : > { %1539 = vrot.lane.b32.xlu1 %v1534_v51, %s7328_s28  ;;  %v209_v51 = vld [vmem:[%s7385_s24 + $0x58] sm:$0xff] }
 0x9d5   : > { %1537 = vrot.lane.b32.xlu0 %v1533_v53, %s7328_s28  ;;  %v1520_v54 = vpop.permute.xlu1 %1519 }
 0x9d6   : > { %v1518_v55 = vpop.permute.xlu0 %1517  ;;  %v1524_v56 = vmul.f32 %v6871_v48, %v1520_v54 }
 0x9d7   : > { %v1523_v57 = vmul.f32 %v6873_v50, %v1518_v55 }
 0xa46   : > { %v1540_v58 = vpop.permute.xlu1 %1539 }
 0xa47   : > { %v1544_v59 = vadd.f32 %v1540_v58, %v1524_v56  ;;  %v1538_v60 = vpop.permute.xlu0 %1537 }
 0xa48   : > { %v1543_v61 = vadd.f32 %v1538_v60, %v1523_v57 }
 0xa49   : > { %6874 = vtanh.f32 %v1544_v59 }
 0xa4a   : > { %6876 = vtanh.f32 %v1543_v61 }
 0xa53   : > { %v6875_v63 = vpop.eup %6874 }
 0xa54   : > { %v6877_v0 = vpop.eup %6876  ;;  %1551 = vrot.lane.b32.xlu1 %v6875_v63, %s7328_s28 }
 0xa55   : > { %1549 = vrot.lane.b32.xlu0 %v6877_v0, %s7328_s28 }
 0xac6   : > { %v1552_v3 = vpop.permute.xlu1 %1551 }
 0xac7   : > { %v1556_v4 = vmul.f32 %v6871_v48, %v1552_v3  ;;  %v1550_v5 = vpop.permute.xlu0 %1549  ;;  %v208_v48 = vld [vmem:[%s7385_s24 + $0x50] sm:$0xff] }
 0xac8   : > { %v1555_v6 = vmul.f32 %v6873_v50, %v1550_v5  ;;  %6569 = vmatprep.mubr.msk.f32.mxu0 %vm268_vm1, %v208_v48 }
 0xac9   : > { %1580 = vst.msk [vmem:[%s7421_s5 + $0x38] sm:$0xff] %vm268_vm1, %v1556_v4  ;;  %1571 = vrot.lane.b32.xlu1 %v1556_v4, %s7327_s25  ;;  %6570 = vmatmul.mubr.msk.f32.gmra.mrb[10].mxu0 %vm268_vm1, %v209_v51 }
 0xaca   : > { %1579 = vst.msk [vmem:[%s7421_s5 + $0x30] sm:$0xff] %vm268_vm1, %v1555_v6  ;;  %1569 = vrot.lane.b32.xlu0 %v1555_v6, %s7327_s25 }
 0xacd   : > { %1561 = vrot.lane.b32.xlu1 %v1544_v59, %s7328_s28 }
 0xace   : > { %1559 = vrot.lane.b32.xlu0 %v1543_v61, %s7328_s28 }
 0xb3b   : > { %v1572_v7 = vpop.permute.xlu1 %1571 }
 0xb3c   : > { %1576 = vst.msk [vmem:[#allocation3 + $0x8] sm:$0xff] %vm1066_vm4, %v1572_v7  ;;  %v1570_v8 = vpop.permute.xlu0 %1569 }
 0xb3d   : > { %1578 = vst.msk [vmem:[#allocation3 + $0x9] sm:$0x7f] %vm1070_vm5, %v1556_v4 }
 0xb3e   : > { %1575 = vst.msk [vmem:[#allocation3] sm:$0xff] %vm1066_vm4, %v1570_v8 }
 0xb3f   : > { %1577 = vst.msk [vmem:[#allocation3 + $0x1] sm:$0xff] %vm268_vm1, %v1555_v6  ;;  %v1562_v10 = vpop.permute.xlu1 %1561 }
 0xb40   : > { %1566 = vst.msk [vmem:[#allocation4 + $0x8] sm:$0xff] %vm268_vm1, %v1562_v10  ;;  %v1560_v11 = vpop.permute.xlu0 %1559 }
 0xb41   : > { %1565 = vst.msk [vmem:[#allocation4] sm:$0xff] %vm268_vm1, %v1560_v11 }
 0xb46   : > { %v1583_v12 = vld [vmem:[#allocation3] sm:$0xff]  ;;  %v1584_v13 = vld [vmem:[#allocation3 + $0x8] sm:$0xff] }
 0xb47   : > { %6669 = vmatprep.mubr.msk.f32.mxu1 %vm897_vm2, %v1583_v12  ;;  %v1683_v26 = vld [vmem:[#allocation4 + $0x8] sm:$0xff] }
 0xb48   : > { %6670 = vmatmul.mubr.msk.f32.vlgmr.msra.gmra.mrb[8].mxu1 %vm897_vm2, %v1584_v13  ;;  %v1682_v27 = vld [vmem:[#allocation4] sm:$0xff] }
 0xb49   : > { %6673 = vmatpush3.msra.mxu1 %v7368_v1 }
 0xb4a   : > { %6677 = vmatprep.subr.mxu1 %v7368_v1 }
 0xb9c   : > { %v6571_v62 = vpop.f32.mrb[10].mxu0 }
 0xb9d   : > { %v581_v63 = vadd.f32 %v6571_v62, %v7400_v9  ;;  %v575_v0 = vpop.f32.mrb[11].mxu0 }
 0xb9e   : > { %v576_v2 = vadd.f32 %v7400_v9, %v575_v0 }
 0xb9f   : > { %846 = vst.msk [vmem:[#allocation2 + $0x58] sm:$0xff] %vm834_vm3, %v581_v63 }
 0xba0   : > { %845 = vst.msk [vmem:[#allocation2 + $0x50] sm:$0xff] %vm834_vm3, %v576_v2 }
 0xba6   : > { %v1751_v3 = vld [vmem:[#allocation2 + $0x58] sm:$0xff] }
 0xba7   : > { %v1750_v4 = vld [vmem:[#allocation2 + $0x50] sm:$0xff] }
 0xc1b   : > { %v6671_v20 = vpop.f32.mrb[8].mxu1 }
 0xc1c   : > { %v1667_v21 = vadd.f32 %v6671_v20, %v1582_v18  ;;  %v1657_v22 = vpop.f32.mrb[9].mxu1 }
 0xc1d   : > { %v1666_v23 = vadd.f32 %v1657_v22, %v1581_v19 }
 0xc1e   : > { %6878 = vtanh.f32 %v1667_v21  ;;  %v6289_v28 = vmul.f32 -1.442695, %v1667_v21 }
 0xc1f   : > { %6880 = vtanh.f32 %v1666_v23  ;;  %v6288_v29 = vmul.f32 -1.442695, %v1666_v23 }
 0xc20   : > { %6882 = vpow2.f32 %v6289_v28 }
 0xc21   : > { %6884 = vpow2.f32 %v6288_v29 }
 0xc28   : > { %v6879_v24 = vpop.eup %6878 }
 0xc29   : > { %v6881_v25 = vpop.eup %6880  ;;  %1698 = vrot.lane.b32.xlu1 %v6879_v24, %s7328_s28 }
 0xc2a   : > { %1696 = vrot.lane.b32.xlu0 %v6881_v25, %s7328_s28  ;;  %v6883_v30 = vpop.eup %6882 }
 0xc2b   : > { %v6885_v31 = vpop.eup %6884  ;;  %v1675_v32 = vadd.f32 1.0, %v6883_v30 }
 0xc2c   : > { %v1674_v33 = vadd.f32 1.0, %v6885_v31 }
 0xc2d   : > { %1688 = vrot.lane.b32.xlu1 %v1683_v26, %s7327_s25  ;;  %6886 = vrcp.f32 %v1675_v32 }
 0xc2e   : > { %1686 = vrot.lane.b32.xlu0 %v1682_v27, %s7327_s25  ;;  %6888 = vrcp.f32 %v1674_v33  ;;  %v210_v33 = vld [vmem:[%s7385_s24 + $0x60] sm:$0xff] }
 0xc2f   : > { %6572 = vmatprep.mubr.msk.f32.mxu0 %vm268_vm1, %v210_v33  ;;  %v7653_v33 = vld [vmem:[%s8495_s2] ss:$0 sm:$0xff] }
 0xc37   : > { %v6887_v34 = vpop.eup %6886 }
 0xc38   : > { %v6889_v36 = vpop.eup %6888 }
 0xc9b   : > { %v1699_v35 = vpop.permute.xlu1 %1698 }
 0xc9c   : > { %v1703_v37 = vmul.f32 %v6887_v34, %v1699_v35  ;;  %v1697_v38 = vpop.permute.xlu0 %1696 }
 0xc9d   : > { %v1702_v39 = vmul.f32 %v6889_v36, %v1697_v38 }
 0xc9e   : > { %1708 = vrot.lane.b32.xlu1 %v1703_v37, %s7328_s28 }
 0xc9f   : > { %1706 = vrot.lane.b32.xlu0 %v1702_v39, %s7328_s28  ;;  %v1689_v40 = vpop.permute.xlu1 %1688 }
 0xca0   : > { %v1687_v41 = vpop.permute.xlu0 %1686  ;;  %v1693_v42 = vmul.f32 %v6887_v34, %v1689_v40 }
 0xca1   : > { %v1692_v43 = vmul.f32 %v6889_v36, %v1687_v41 }
 0xd10   : > { %v1709_v44 = vpop.permute.xlu1 %1708 }
 0xd11   : > { %v1713_v45 = vadd.f32 %v1709_v44, %v1693_v42  ;;  %v1707_v46 = vpop.permute.xlu0 %1706 }
 0xd12   : > { %v1712_v47 = vadd.f32 %v1707_v46, %v1692_v43 }
 0xd13   : > { %6890 = vtanh.f32 %v1713_v45 }
 0xd14   : > { %6892 = vtanh.f32 %v1712_v47 }
 0xd1d   : > { %v6891_v49 = vpop.eup %6890 }
 0xd1e   : > { %v6893_v50 = vpop.eup %6892  ;;  %1720 = vrot.lane.b32.xlu1 %v6891_v49, %s7328_s28 }
 0xd1f   : > { %1718 = vrot.lane.b32.xlu0 %v6893_v50, %s7328_s28 }
 0xd90   : > { %v1721_v52 = vpop.permute.xlu1 %1720 }
 0xd91   : > { %v1725_v53 = vmul.f32 %v6887_v34, %v1721_v52  ;;  %v1719_v54 = vpop.permute.xlu0 %1718 }
 0xd92   : > { %v1724_v55 = vmul.f32 %v6889_v36, %v1719_v54  ;;  %v211_v36 = vld [vmem:[%s7385_s24 + $0x68] sm:$0xff] }
 0xd93   : > { %1749 = vst.msk [vmem:[%s7421_s5 + $0x48] sm:$0xff] %vm268_vm1, %v1725_v53  ;;  %1740 = vrot.lane.b32.xlu1 %v1725_v53, %s7327_s25  ;;  %6573 = vmatmul.mubr.msk.f32.gmra.mrb[12].mxu0 %vm268_vm1, %v211_v36 }
 0xd94   : > { %1748 = vst.msk [vmem:[%s7421_s5 + $0x40] sm:$0xff] %vm268_vm1, %v1724_v55  ;;  %1738 = vrot.lane.b32.xlu0 %v1724_v55, %s7327_s25 }
 0xd97   : > { %1730 = vrot.lane.b32.xlu1 %v1713_v45, %s7328_s28 }
 0xd98   : > { %1728 = vrot.lane.b32.xlu0 %v1712_v47, %s7328_s28  ;;  %v7612_v47 = vld [vmem:[%s8496_s3] sm:$0xff] }
 0xe05   : > { %v1741_v56 = vpop.permute.xlu1 %1740 }
 0xe06   : > { %1745 = vst.msk [vmem:[#allocation3 + $0x8] sm:$0xff] %vm1066_vm4, %v1741_v56  ;;  %v1739_v57 = vpop.permute.xlu0 %1738 }
 0xe07   : > { %1747 = vst.msk [vmem:[#allocation3 + $0x9] sm:$0x7f] %vm1070_vm5, %v1725_v53 }
 0xe08   : > { %1744 = vst.msk [vmem:[#allocation3] sm:$0xff] %vm1066_vm4, %v1739_v57 }
 0xe09   : > { %1746 = vst.msk [vmem:[#allocation3 + $0x1] sm:$0xff] %vm268_vm1, %v1724_v55  ;;  %v1731_v58 = vpop.permute.xlu1 %1730 }
 0xe0a   : > { %1735 = vst.msk [vmem:[#allocation4 + $0x8] sm:$0xff] %vm268_vm1, %v1731_v58  ;;  %v1729_v59 = vpop.permute.xlu0 %1728 }
 0xe0b   : > { %1734 = vst.msk [vmem:[#allocation4] sm:$0xff] %vm268_vm1, %v1729_v59 }
 0xe10   : > { %v1752_v60 = vld [vmem:[#allocation3] sm:$0xff]  ;;  %v1753_v61 = vld [vmem:[#allocation3 + $0x8] sm:$0xff] }
 0xe11   : > { %6674 = vmatprep.mubr.msk.f32.mxu1 %vm897_vm2, %v1752_v60  ;;  %v1852_v11 = vld [vmem:[#allocation4 + $0x8] sm:$0xff] }
 0xe12   : > { %6675 = vmatmul.mubr.msk.f32.vlgmr.msra.gmra.mrb[10].mxu1 %vm897_vm2, %v1753_v61  ;;  %v1851_v12 = vld [vmem:[#allocation4] sm:$0xff] }
 0xe13   : > { %6678 = vmatpush3.msra.mxu1 %v7368_v1 }
 0xe14   : > { %6682 = vmatprep.subr.mxu1 %v7368_v1 }
 0xe66   : > { %v6574_v48 = vpop.f32.mrb[12].mxu0 }
 0xe67   : > { %v591_v49 = vadd.f32 %v6574_v48, %v7400_v9  ;;  %v585_v50 = vpop.f32.mrb[13].mxu0 }
 0xe68   : > { %v586_v51 = vadd.f32 %v7400_v9, %v585_v50 }
 0xe69   : > { %848 = vst.msk [vmem:[#allocation2 + $0x68] sm:$0xff] %vm834_vm3, %v591_v49 }
 0xe6a   : > { %847 = vst.msk [vmem:[#allocation2 + $0x60] sm:$0xff] %vm834_vm3, %v586_v51 }
 0xe70   : > { %v1920_v52 = vld [vmem:[#allocation2 + $0x68] sm:$0xff] }
 0xe71   : > { %v1919_v53 = vld [vmem:[#allocation2 + $0x60] sm:$0xff] }
 0xee5   : > { %v6676_v5 = vpop.f32.mrb[10].mxu1 }
 0xee6   : > { %v1836_v6 = vadd.f32 %v6676_v5, %v1751_v3  ;;  %v1826_v7 = vpop.f32.mrb[11].mxu1 }
 0xee7   : > { %v1835_v8 = vadd.f32 %v1826_v7, %v1750_v4 }
 0xee8   : > { %6894 = vtanh.f32 %v1836_v6  ;;  %v6293_v13 = vmul.f32 -1.442695, %v1836_v6 }
 0xee9   : > { %6896 = vtanh.f32 %v1835_v8  ;;  %v6292_v14 = vmul.f32 -1.442695, %v1835_v8 }
 0xeea   : > { %6898 = vpow2.f32 %v6293_v13 }
 0xeeb   : > { %6900 = vpow2.f32 %v6292_v14 }
 0xef2   : > { %v6895_v10 = vpop.eup %6894 }
 0xef3   : > { %v6897_v1 = vpop.eup %6896  ;;  %1867 = vrot.lane.b32.xlu1 %v6895_v10, %s7328_s28 }
 0xef4   : > { %1865 = vrot.lane.b32.xlu0 %v6897_v1, %s7328_s28  ;;  %v6899_v15 = vpop.eup %6898 }
 0xef5   : > { %v6901_v16 = vpop.eup %6900  ;;  %v1844_v17 = vadd.f32 1.0, %v6899_v15 }
 0xef6   : > { %v1843_v18 = vadd.f32 1.0, %v6901_v16 }
 0xef7   : > { %1857 = vrot.lane.b32.xlu1 %v1852_v11, %s7327_s25  ;;  %6902 = vrcp.f32 %v1844_v17 }
 0xef8   : > { %1855 = vrot.lane.b32.xlu0 %v1851_v12, %s7327_s25  ;;  %6904 = vrcp.f32 %v1843_v18  ;;  %v212_v18 = vld [vmem:[%s7385_s24 + $0x70] sm:$0xff] }
 0xef9   : > { %6575 = vmatprep.mubr.msk.f32.mxu0 %vm268_vm1, %v212_v18 }
 0xf01   : > { %v6903_v19 = vpop.eup %6902 }
 0xf02   : > { %v6905_v21 = vpop.eup %6904 }
 0xf65   : > { %v1868_v20 = vpop.permute.xlu1 %1867 }
 0xf66   : > { %v1872_v22 = vmul.f32 %v6903_v19, %v1868_v20  ;;  %v1866_v23 = vpop.permute.xlu0 %1865 }
 0xf67   : > { %v1871_v24 = vmul.f32 %v6905_v21, %v1866_v23 }
 0xf68   : > { %1877 = vrot.lane.b32.xlu1 %v1872_v22, %s7328_s28 }
 0xf69   : > { %1875 = vrot.lane.b32.xlu0 %v1871_v24, %s7328_s28  ;;  %v1858_v25 = vpop.permute.xlu1 %1857 }
 0xf6a   : > { %v1856_v26 = vpop.permute.xlu0 %1855  ;;  %v1862_v27 = vmul.f32 %v6903_v19, %v1858_v25 }
 0xf6b   : > { %v1861_v28 = vmul.f32 %v6905_v21, %v1856_v26 }
 0xfda   : > { %v1878_v29 = vpop.permute.xlu1 %1877 }
 0xfdb   : > { %v1882_v30 = vadd.f32 %v1878_v29, %v1862_v27  ;;  %v1876_v31 = vpop.permute.xlu0 %1875 }
 0xfdc   : > { %v1881_v32 = vadd.f32 %v1876_v31, %v1861_v28 }
 0xfdd   : > { %6906 = vtanh.f32 %v1882_v30 }
 0xfde   : > { %6908 = vtanh.f32 %v1881_v32 }
 0xfe7   : > { %v6907_v34 = vpop.eup %6906 }
 0xfe8   : > { %v6909_v35 = vpop.eup %6908  ;;  %1889 = vrot.lane.b32.xlu1 %v6907_v34, %s7328_s28 }
 0xfe9   : > { %1887 = vrot.lane.b32.xlu0 %v6909_v35, %s7328_s28 }
0x105a   : > { %v1890_v37 = vpop.permute.xlu1 %1889 }
0x105b   : > { %v1894_v38 = vmul.f32 %v6903_v19, %v1890_v37  ;;  %v1888_v39 = vpop.permute.xlu0 %1887 }
0x105c   : > { %v1893_v40 = vmul.f32 %v6905_v21, %v1888_v39  ;;  %v213_v21 = vld [vmem:[%s7385_s24 + $0x78] sm:$0xff] }
0x105d   : > { %1918 = vst.msk [vmem:[%s7421_s5 + $0x58] sm:$0xff] %vm268_vm1, %v1894_v38  ;;  %1909 = vrot.lane.b32.xlu1 %v1894_v38, %s7327_s25  ;;  %6576 = vmatmul.mubr.msk.f32.gmra.mrb[14].mxu0 %vm268_vm1, %v213_v21 }
0x105e   : > { %1917 = vst.msk [vmem:[%s7421_s5 + $0x50] sm:$0xff] %vm268_vm1, %v1893_v40  ;;  %1907 = vrot.lane.b32.xlu0 %v1893_v40, %s7327_s25 }
0x1061   : > { %1899 = vrot.lane.b32.xlu1 %v1882_v30, %s7328_s28 }
0x1062   : > { %1897 = vrot.lane.b32.xlu0 %v1881_v32, %s7328_s28 }
0x10cf   : > { %v1910_v41 = vpop.permute.xlu1 %1909 }
0x10d0   : > { %1914 = vst.msk [vmem:[#allocation3 + $0x8] sm:$0xff] %vm1066_vm4, %v1910_v41  ;;  %v1908_v42 = vpop.permute.xlu0 %1907 }
0x10d1   : > { %1916 = vst.msk [vmem:[#allocation3 + $0x9] sm:$0x7f] %vm1070_vm5, %v1894_v38 }
0x10d2   : > { %1913 = vst.msk [vmem:[#allocation3] sm:$0xff] %vm1066_vm4, %v1908_v42 }
0x10d3   : > { %1915 = vst.msk [vmem:[#allocation3 + $0x1] sm:$0xff] %vm268_vm1, %v1893_v40  ;;  %v1900_v43 = vpop.permute.xlu1 %1899 }
0x10d4   : > { %1904 = vst.msk [vmem:[#allocation4 + $0x8] sm:$0xff] %vm268_vm1, %v1900_v43  ;;  %v1898_v44 = vpop.permute.xlu0 %1897 }
0x10d5   : > { %1903 = vst.msk [vmem:[#allocation4] sm:$0xff] %vm268_vm1, %v1898_v44 }
0x10da   : > { %v1921_v45 = vld [vmem:[#allocation3] sm:$0xff]  ;;  %v1922_v46 = vld [vmem:[#allocation3 + $0x8] sm:$0xff] }
0x10db   : > { %6679 = vmatprep.mubr.msk.f32.mxu1 %vm897_vm2, %v1921_v45  ;;  %v2021_v60 = vld [vmem:[#allocation4 + $0x8] sm:$0xff] }
0x10dc   : > { %6680 = vmatmul.mubr.msk.f32.vlgmr.msra.gmra.mrb[12].mxu1 %vm897_vm2, %v1922_v46  ;;  %v2020_v9 = vld [vmem:[#allocation4] sm:$0xff] }
0x10dd   : > { %6683 = vmatpush3.msra.mxu1 %v7612_v47 }
0x10de   : > { %6687 = vmatprep.subr.mxu1 %v7612_v47 }
0x1130   : > { %v6577_v32 = vpop.f32.mrb[14].mxu0 }
0x1131   : > { %v601_v34 = vadd.f32 %v7653_v33, %v6577_v32  ;;  %v595_v35 = vpop.f32.mrb[15].mxu0 }
0x1132   : > { %v596_v36 = vadd.f32 %v7653_v33, %v595_v35 }
0x1133   : > { %850 = vst.msk [vmem:[#allocation2 + $0x78] sm:$0xff] %vm834_vm3, %v601_v34 }
0x1134   : > { %849 = vst.msk [vmem:[#allocation2 + $0x70] sm:$0xff] %vm834_vm3, %v596_v36 }
0x113a   : > { %v2089_v37 = vld [vmem:[#allocation2 + $0x78] sm:$0xff] }
0x113b   : > { %v2088_v38 = vld [vmem:[#allocation2 + $0x70] sm:$0xff] }
0x11af   : > { %v6681_v54 = vpop.f32.mrb[12].mxu1 }
0x11b0   : > { %v2005_v55 = vadd.f32 %v6681_v54, %v1920_v52  ;;  %v1995_v56 = vpop.f32.mrb[13].mxu1 }
0x11b1   : > { %v2004_v57 = vadd.f32 %v1995_v56, %v1919_v53 }
0x11b2   : > { %6910 = vtanh.f32 %v2005_v55  ;;  %v6297_v61 = vmul.f32 -1.442695, %v2005_v55 }
0x11b3   : > { %6912 = vtanh.f32 %v2004_v57  ;;  %v6296_v62 = vmul.f32 -1.442695, %v2004_v57 }
0x11b4   : > { %6914 = vpow2.f32 %v6297_v61 }
0x11b5   : > { %6916 = vpow2.f32 %v6296_v62 }
0x11bc   : > { %v6911_v58 = vpop.eup %6910 }
0x11bd   : > { %v6913_v59 = vpop.eup %6912  ;;  %2036 = vrot.lane.b32.xlu1 %v6911_v58, %s7328_s28 }
0x11be   : > { %2034 = vrot.lane.b32.xlu0 %v6913_v59, %s7328_s28  ;;  %v6915_v63 = vpop.eup %6914 }
0x11bf   : > { %v6917_v0 = vpop.eup %6916  ;;  %v2013_v2 = vadd.f32 1.0, %v6915_v63 }
0x11c0   : > { %v2012_v3 = vadd.f32 1.0, %v6917_v0 }
0x11c1   : > { %2026 = vrot.lane.b32.xlu1 %v2021_v60, %s7327_s25  ;;  %6918 = vrcp.f32 %v2013_v2 }
0x11c2   : > { %2024 = vrot.lane.b32.xlu0 %v2020_v9, %s7327_s25  ;;  %6920 = vrcp.f32 %v2012_v3 }
0x11cb   : > { %v6919_v4 = vpop.eup %6918 }
0x11cc   : > { %v6921_v6 = vpop.eup %6920 }
0x122f   : > { %v2037_v5 = vpop.permute.xlu1 %2036 }
0x1230   : > { %v2041_v7 = vmul.f32 %v6919_v4, %v2037_v5  ;;  %v2035_v8 = vpop.permute.xlu0 %2034 }
0x1231   : > { %v2040_v10 = vmul.f32 %v6921_v6, %v2035_v8 }
0x1232   : > { %2046 = vrot.lane.b32.xlu1 %v2041_v7, %s7328_s28  ;;  %v215_v7 = vld [vmem:[%s7385_s24 + $0x88] sm:$0xff] }
0x1233   : > { %2044 = vrot.lane.b32.xlu0 %v2040_v10, %s7328_s28  ;;  %v2027_v1 = vpop.permute.xlu1 %2026 }
0x1234   : > { %v2025_v11 = vpop.permute.xlu0 %2024  ;;  %v2031_v12 = vmul.f32 %v6919_v4, %v2027_v1 }
0x1235   : > { %v2030_v13 = vmul.f32 %v6921_v6, %v2025_v11 }
0x12a4   : > { %v2047_v14 = vpop.permute.xlu1 %2046 }
0x12a5   : > { %v2051_v15 = vadd.f32 %v2047_v14, %v2031_v12  ;;  %v2045_v16 = vpop.permute.xlu0 %2044 }
0x12a6   : > { %v2050_v17 = vadd.f32 %v2045_v16, %v2030_v13 }
0x12a7   : > { %6922 = vtanh.f32 %v2051_v15 }
0x12a8   : > { %6924 = vtanh.f32 %v2050_v17 }
0x12b1   : > { %v6923_v19 = vpop.eup %6922 }
0x12b2   : > { %v6925_v20 = vpop.eup %6924  ;;  %2058 = vrot.lane.b32.xlu1 %v6923_v19, %s7328_s28 }
0x12b3   : > { %2056 = vrot.lane.b32.xlu0 %v6925_v20, %s7328_s28 }
0x1324   : > { %v2059_v22 = vpop.permute.xlu1 %2058 }
0x1325   : > { %v2063_v23 = vmul.f32 %v6919_v4, %v2059_v22  ;;  %v2057_v24 = vpop.permute.xlu0 %2056  ;;  %v214_v4 = vld [vmem:[%s7385_s24 + $0x80] sm:$0xff] }
0x1326   : > { %v2062_v25 = vmul.f32 %v6921_v6, %v2057_v24  ;;  %6578 = vmatprep.mubr.msk.f32.mxu0 %vm268_vm1, %v214_v4 }
0x1327   : > { %2087 = vst.msk [vmem:[%s7421_s5 + $0x68] sm:$0xff] %vm268_vm1, %v2063_v23  ;;  %2078 = vrot.lane.b32.xlu1 %v2063_v23, %s7327_s25  ;;  %6579 = vmatmul.mubr.msk.f32.gmra.mrb[16].mxu0 %vm268_vm1, %v215_v7 }
0x1328   : > { %2086 = vst.msk [vmem:[%s7421_s5 + $0x60] sm:$0xff] %vm268_vm1, %v2062_v25  ;;  %2076 = vrot.lane.b32.xlu0 %v2062_v25, %s7327_s25 }
0x132b   : > { %2068 = vrot.lane.b32.xlu1 %v2051_v15, %s7328_s28 }
0x132c   : > { %2066 = vrot.lane.b32.xlu0 %v2050_v17, %s7328_s28 }
0x1399   : > { %v2079_v26 = vpop.permute.xlu1 %2078 }
0x139a   : > { %2083 = vst.msk [vmem:[#allocation3 + $0x8] sm:$0xff] %vm1066_vm4, %v2079_v26  ;;  %v2077_v27 = vpop.permute.xlu0 %2076 }
0x139b   : > { %2085 = vst.msk [vmem:[#allocation3 + $0x9] sm:$0x7f] %vm1070_vm5, %v2063_v23 }
0x139c   : > { %2082 = vst.msk [vmem:[#allocation3] sm:$0xff] %vm1066_vm4, %v2077_v27 }
0x139d   : > { %2084 = vst.msk [vmem:[#allocation3 + $0x1] sm:$0xff] %vm268_vm1, %v2062_v25  ;;  %v2069_v28 = vpop.permute.xlu1 %2068 }
0x139e   : > { %2073 = vst.msk [vmem:[#allocation4 + $0x8] sm:$0xff] %vm268_vm1, %v2069_v28  ;;  %v2067_v29 = vpop.permute.xlu0 %2066 }
0x139f   : > { %2072 = vst.msk [vmem:[#allocation4] sm:$0xff] %vm268_vm1, %v2067_v29 }
0x13a4   : > { %v2090_v30 = vld [vmem:[#allocation3] sm:$0xff]  ;;  %v2091_v31 = vld [vmem:[#allocation3 + $0x8] sm:$0xff] }
0x13a5   : > { %6684 = vmatprep.mubr.msk.f32.mxu1 %vm897_vm2, %v2090_v30  ;;  %v2190_v45 = vld [vmem:[#allocation4 + $0x8] sm:$0xff] }
0x13a6   : > { %6685 = vmatmul.mubr.msk.f32.vlgmr.msra.gmra.mrb[14].mxu1 %vm897_vm2, %v2091_v31  ;;  %v2189_v46 = vld [vmem:[#allocation4] sm:$0xff] }
0x13a7   : > { %6688 = vmatpush3.msra.mxu1 %v7612_v47 }
0x13a8   : > { %6692 = vmatprep.subr.mxu1 %v7612_v47 }
0x13fa   : > { %v6580_v18 = vpop.f32.mrb[16].mxu0 }
0x13fb   : > { %v611_v19 = vadd.f32 %v7653_v33, %v6580_v18  ;;  %v605_v20 = vpop.f32.mrb[17].mxu0 }
0x13fc   : > { %v606_v21 = vadd.f32 %v7653_v33, %v605_v20 }
0x13fd   : > { %852 = vst.msk [vmem:[#allocation2 + $0x88] sm:$0xff] %vm834_vm3, %v611_v19 }
0x13fe   : > { %851 = vst.msk [vmem:[#allocation2 + $0x80] sm:$0xff] %vm834_vm3, %v606_v21 }
0x1404   : > { %v2258_v22 = vld [vmem:[#allocation2 + $0x88] sm:$0xff] }
0x1405   : > { %v2257_v23 = vld [vmem:[#allocation2 + $0x80] sm:$0xff] }
0x1479   : > { %v6686_v39 = vpop.f32.mrb[14].mxu1 }
0x147a   : > { %v2174_v40 = vadd.f32 %v6686_v39, %v2089_v37  ;;  %v2164_v41 = vpop.f32.mrb[15].mxu1 }
0x147b   : > { %v2173_v42 = vadd.f32 %v2164_v41, %v2088_v38 }
0x147c   : > { %6926 = vtanh.f32 %v2174_v40  ;;  %v6301_v48 = vmul.f32 -1.442695, %v2174_v40 }
0x147d   : > { %6928 = vtanh.f32 %v2173_v42  ;;  %v6300_v49 = vmul.f32 -1.442695, %v2173_v42 }
0x147e   : > { %6930 = vpow2.f32 %v6301_v48 }
0x147f   : > { %6932 = vpow2.f32 %v6300_v49 }
0x1486   : > { %v6927_v43 = vpop.eup %6926 }
0x1487   : > { %v6929_v44 = vpop.eup %6928  ;;  %2205 = vrot.lane.b32.xlu1 %v6927_v43, %s7328_s28 }
0x1488   : > { %2203 = vrot.lane.b32.xlu0 %v6929_v44, %s7328_s28  ;;  %v6931_v50 = vpop.eup %6930 }
0x1489   : > { %v6933_v51 = vpop.eup %6932  ;;  %v2182_v52 = vadd.f32 1.0, %v6931_v50 }
0x148a   : > { %v2181_v53 = vadd.f32 1.0, %v6933_v51 }
0x148b   : > { %2195 = vrot.lane.b32.xlu1 %v2190_v45, %s7327_s25  ;;  %6934 = vrcp.f32 %v2182_v52 }
0x148c   : > { %2193 = vrot.lane.b32.xlu0 %v2189_v46, %s7327_s25  ;;  %6936 = vrcp.f32 %v2181_v53 }
0x1495   : > { %v6935_v54 = vpop.eup %6934 }
0x1496   : > { %v6937_v56 = vpop.eup %6936 }
0x14f9   : > { %v2206_v55 = vpop.permute.xlu1 %2205 }
0x14fa   : > { %v2210_v57 = vmul.f32 %v6935_v54, %v2206_v55  ;;  %v2204_v58 = vpop.permute.xlu0 %2203 }
0x14fb   : > { %v2209_v59 = vmul.f32 %v6937_v56, %v2204_v58 }
0x14fc   : > { %2215 = vrot.lane.b32.xlu1 %v2210_v57, %s7328_s28  ;;  %v217_v57 = vld [vmem:[%s7385_s24 + $0x98] sm:$0xff] }
0x14fd   : > { %2213 = vrot.lane.b32.xlu0 %v2209_v59, %s7328_s28  ;;  %v2196_v60 = vpop.permute.xlu1 %2195 }
0x14fe   : > { %v2194_v9 = vpop.permute.xlu0 %2193  ;;  %v2200_v61 = vmul.f32 %v6935_v54, %v2196_v60 }
0x14ff   : > { %v2199_v62 = vmul.f32 %v6937_v56, %v2194_v9 }
0x156e   : > { %v2216_v63 = vpop.permute.xlu1 %2215 }
0x156f   : > { %v2220_v0 = vadd.f32 %v2216_v63, %v2200_v61  ;;  %v2214_v2 = vpop.permute.xlu0 %2213 }
0x1570   : > { %v2219_v3 = vadd.f32 %v2214_v2, %v2199_v62 }
0x1571   : > { %6938 = vtanh.f32 %v2220_v0 }
0x1572   : > { %6940 = vtanh.f32 %v2219_v3 }
0x157b   : > { %v6939_v5 = vpop.eup %6938 }
0x157c   : > { %v6941_v6 = vpop.eup %6940  ;;  %2227 = vrot.lane.b32.xlu1 %v6939_v5, %s7328_s28 }
0x157d   : > { %2225 = vrot.lane.b32.xlu0 %v6941_v6, %s7328_s28 }
0x15ee   : > { %v2228_v8 = vpop.permute.xlu1 %2227 }
0x15ef   : > { %v2232_v10 = vmul.f32 %v6935_v54, %v2228_v8  ;;  %v2226_v1 = vpop.permute.xlu0 %2225  ;;  %v216_v54 = vld [vmem:[%s7385_s24 + $0x90] sm:$0xff] }
0x15f0   : > { %v2231_v11 = vmul.f32 %v6937_v56, %v2226_v1  ;;  %6581 = vmatprep.mubr.msk.f32.mxu0 %vm268_vm1, %v216_v54 }
0x15f1   : > { %2256 = vst.msk [vmem:[%s7421_s5 + $0x78] sm:$0xff] %vm268_vm1, %v2232_v10  ;;  %2247 = vrot.lane.b32.xlu1 %v2232_v10, %s7327_s25  ;;  %6582 = vmatmul.mubr.msk.f32.gmra.mrb[18].mxu0 %vm268_vm1, %v217_v57 }
0x15f2   : > { %2255 = vst.msk [vmem:[%s7421_s5 + $0x70] sm:$0xff] %vm268_vm1, %v2231_v11  ;;  %2245 = vrot.lane.b32.xlu0 %v2231_v11, %s7327_s25 }
0x15f5   : > { %2237 = vrot.lane.b32.xlu1 %v2220_v0, %s7328_s28 }
0x15f6   : > { %2235 = vrot.lane.b32.xlu0 %v2219_v3, %s7328_s28 }
0x1663   : > { %v2248_v12 = vpop.permute.xlu1 %2247 }
0x1664   : > { %2252 = vst.msk [vmem:[#allocation3 + $0x8] sm:$0xff] %vm1066_vm4, %v2248_v12  ;;  %v2246_v13 = vpop.permute.xlu0 %2245 }
0x1665   : > { %2254 = vst.msk [vmem:[#allocation3 + $0x9] sm:$0x7f] %vm1070_vm5, %v2232_v10 }
0x1666   : > { %2251 = vst.msk [vmem:[#allocation3] sm:$0xff] %vm1066_vm4, %v2246_v13 }
0x1667   : > { %2253 = vst.msk [vmem:[#allocation3 + $0x1] sm:$0xff] %vm268_vm1, %v2231_v11  ;;  %v2238_v14 = vpop.permute.xlu1 %2237 }
0x1668   : > { %2242 = vst.msk [vmem:[#allocation4 + $0x8] sm:$0xff] %vm268_vm1, %v2238_v14  ;;  %v2236_v15 = vpop.permute.xlu0 %2235 }
0x1669   : > { %2241 = vst.msk [vmem:[#allocation4] sm:$0xff] %vm268_vm1, %v2236_v15 }
0x166e   : > { %v2259_v16 = vld [vmem:[#allocation3] sm:$0xff]  ;;  %v2260_v17 = vld [vmem:[#allocation3 + $0x8] sm:$0xff] }
0x166f   : > { %6689 = vmatprep.mubr.msk.f32.mxu1 %vm897_vm2, %v2259_v16  ;;  %v2359_v30 = vld [vmem:[#allocation4 + $0x8] sm:$0xff] }
0x1670   : > { %6690 = vmatmul.mubr.msk.f32.vlgmr.msra.gmra.mrb[16].mxu1 %vm897_vm2, %v2260_v17  ;;  %v2358_v31 = vld [vmem:[#allocation4] sm:$0xff] }
0x1671   : > { %6693 = vmatpush3.msra.mxu1 %v7612_v47 }
0x1672   : > { %6697 = vmatprep.subr.mxu1 %v7612_v47 }
0x16c4   : > { %v6583_v4 = vpop.f32.mrb[18].mxu0 }
0x16c5   : > { %v621_v5 = vadd.f32 %v7653_v33, %v6583_v4  ;;  %v615_v6 = vpop.f32.mrb[19].mxu0 }
0x16c6   : > { %v616_v7 = vadd.f32 %v7653_v33, %v615_v6 }
0x16c7   : > { %854 = vst.msk [vmem:[#allocation2 + $0x98] sm:$0xff] %vm834_vm3, %v621_v5 }
0x16c8   : > { %853 = vst.msk [vmem:[#allocation2 + $0x90] sm:$0xff] %vm834_vm3, %v616_v7 }
0x16ce   : > { %v2427_v8 = vld [vmem:[#allocation2 + $0x98] sm:$0xff] }
0x16cf   : > { %v2426_v10 = vld [vmem:[#allocation2 + $0x90] sm:$0xff] }
0x1743   : > { %v6691_v24 = vpop.f32.mrb[16].mxu1 }
0x1744   : > { %v2343_v25 = vadd.f32 %v6691_v24, %v2258_v22  ;;  %v2333_v26 = vpop.f32.mrb[17].mxu1 }
0x1745   : > { %v2342_v27 = vadd.f32 %v2333_v26, %v2257_v23 }
0x1746   : > { %6942 = vtanh.f32 %v2343_v25  ;;  %v6305_v32 = vmul.f32 -1.442695, %v2343_v25 }
0x1747   : > { %6944 = vtanh.f32 %v2342_v27  ;;  %v6304_v34 = vmul.f32 -1.442695, %v2342_v27 }
0x1748   : > { %6946 = vpow2.f32 %v6305_v32 }
0x1749   : > { %6948 = vpow2.f32 %v6304_v34 }
0x1750   : > { %v6943_v28 = vpop.eup %6942 }
0x1751   : > { %v6945_v29 = vpop.eup %6944  ;;  %2374 = vrot.lane.b32.xlu1 %v6943_v28, %s7328_s28 }
0x1752   : > { %2372 = vrot.lane.b32.xlu0 %v6945_v29, %s7328_s28  ;;  %v6947_v35 = vpop.eup %6946 }
0x1753   : > { %v6949_v36 = vpop.eup %6948  ;;  %v2351_v37 = vadd.f32 1.0, %v6947_v35 }
0x1754   : > { %v2350_v38 = vadd.f32 1.0, %v6949_v36 }
0x1755   : > { %2364 = vrot.lane.b32.xlu1 %v2359_v30, %s7327_s25  ;;  %6950 = vrcp.f32 %v2351_v37 }
0x1756   : > { %2362 = vrot.lane.b32.xlu0 %v2358_v31, %s7327_s25  ;;  %6952 = vrcp.f32 %v2350_v38 }
0x175f   : > { %v6951_v39 = vpop.eup %6950 }
0x1760   : > { %v6953_v41 = vpop.eup %6952 }
0x17c3   : > { %v2375_v40 = vpop.permute.xlu1 %2374 }
0x17c4   : > { %v2379_v42 = vmul.f32 %v6951_v39, %v2375_v40  ;;  %v2373_v43 = vpop.permute.xlu0 %2372 }
0x17c5   : > { %v2378_v44 = vmul.f32 %v6953_v41, %v2373_v43 }
0x17c6   : > { %2384 = vrot.lane.b32.xlu1 %v2379_v42, %s7328_s28  ;;  %v219_v42 = vld [vmem:[%s7385_s24 + $0xa8] sm:$0xff] }
0x17c7   : > { %2382 = vrot.lane.b32.xlu0 %v2378_v44, %s7328_s28  ;;  %v2365_v45 = vpop.permute.xlu1 %2364 }
0x17c8   : > { %v2363_v46 = vpop.permute.xlu0 %2362  ;;  %v2369_v48 = vmul.f32 %v6951_v39, %v2365_v45 }
0x17c9   : > { %v2368_v49 = vmul.f32 %v6953_v41, %v2363_v46 }
0x1838   : > { %v2385_v50 = vpop.permute.xlu1 %2384 }
0x1839   : > { %v2389_v51 = vadd.f32 %v2385_v50, %v2369_v48  ;;  %v2383_v52 = vpop.permute.xlu0 %2382 }
0x183a   : > { %v2388_v53 = vadd.f32 %v2383_v52, %v2368_v49 }
0x183b   : > { %6954 = vtanh.f32 %v2389_v51 }
0x183c   : > { %6956 = vtanh.f32 %v2388_v53 }
0x1845   : > { %v6955_v55 = vpop.eup %6954 }
0x1846   : > { %v6957_v56 = vpop.eup %6956  ;;  %2396 = vrot.lane.b32.xlu1 %v6955_v55, %s7328_s28 }
0x1847   : > { %2394 = vrot.lane.b32.xlu0 %v6957_v56, %s7328_s28 }
0x18b8   : > { %v2397_v58 = vpop.permute.xlu1 %2396 }
0x18b9   : > { %v2401_v59 = vmul.f32 %v6951_v39, %v2397_v58  ;;  %v2395_v60 = vpop.permute.xlu0 %2394  ;;  %v218_v39 = vld [vmem:[%s7385_s24 + $0xa0] sm:$0xff] }
0x18ba   : > { %v2400_v9 = vmul.f32 %v6953_v41, %v2395_v60  ;;  %6584 = vmatprep.mubr.msk.f32.mxu0 %vm268_vm1, %v218_v39 }
0x18bb   : > { %2425 = vst.msk [vmem:[%s7421_s5 + $0x88] sm:$0xff] %vm268_vm1, %v2401_v59  ;;  %2416 = vrot.lane.b32.xlu1 %v2401_v59, %s7327_s25  ;;  %6585 = vmatmul.mubr.msk.f32.gmra.mrb[20].mxu0 %vm268_vm1, %v219_v42 }
0x18bc   : > { %2424 = vst.msk [vmem:[%s7421_s5 + $0x80] sm:$0xff] %vm268_vm1, %v2400_v9  ;;  %2414 = vrot.lane.b32.xlu0 %v2400_v9, %s7327_s25 }
0x18bf   : > { %2406 = vrot.lane.b32.xlu1 %v2389_v51, %s7328_s28 }
0x18c0   : > { %2404 = vrot.lane.b32.xlu0 %v2388_v53, %s7328_s28 }
0x192d   : > { %v2417_v61 = vpop.permute.xlu1 %2416 }
0x192e   : > { %2421 = vst.msk [vmem:[#allocation3 + $0x8] sm:$0xff] %vm1066_vm4, %v2417_v61  ;;  %v2415_v62 = vpop.permute.xlu0 %2414 }
0x192f   : > { %2423 = vst.msk [vmem:[#allocation3 + $0x9] sm:$0x7f] %vm1070_vm5, %v2401_v59 }
0x1930   : > { %2420 = vst.msk [vmem:[#allocation3] sm:$0xff] %vm1066_vm4, %v2415_v62 }
0x1931   : > { %2422 = vst.msk [vmem:[#allocation3 + $0x1] sm:$0xff] %vm268_vm1, %v2400_v9  ;;  %v2407_v63 = vpop.permute.xlu1 %2406 }
0x1932   : > { %2411 = vst.msk [vmem:[#allocation4 + $0x8] sm:$0xff] %vm268_vm1, %v2407_v63  ;;  %v2405_v0 = vpop.permute.xlu0 %2404 }
0x1933   : > { %2410 = vst.msk [vmem:[#allocation4] sm:$0xff] %vm268_vm1, %v2405_v0 }
0x1938   : > { %v2428_v2 = vld [vmem:[#allocation3] sm:$0xff]  ;;  %v2429_v3 = vld [vmem:[#allocation3 + $0x8] sm:$0xff] }
0x1939   : > { %6694 = vmatprep.mubr.msk.f32.mxu1 %vm897_vm2, %v2428_v2  ;;  %v2528_v16 = vld [vmem:[#allocation4 + $0x8] sm:$0xff] }
0x193a   : > { %6695 = vmatmul.mubr.msk.f32.vlgmr.msra.gmra.mrb[18].mxu1 %vm897_vm2, %v2429_v3  ;;  %v2527_v17 = vld [vmem:[#allocation4] sm:$0xff] }
0x193b   : > { %6698 = vmatpush3.msra.mxu1 %v7612_v47 }
0x193c   : > { %6702 = vmatprep.subr.mxu1 %v7612_v47 }
0x198e   : > { %v6586_v54 = vpop.f32.mrb[20].mxu0 }
0x198f   : > { %v631_v55 = vadd.f32 %v7653_v33, %v6586_v54  ;;  %v625_v56 = vpop.f32.mrb[21].mxu0 }
0x1990   : > { %v626_v57 = vadd.f32 %v7653_v33, %v625_v56 }
0x1991   : > { %856 = vst.msk [vmem:[#allocation2 + $0xa8] sm:$0xff] %vm834_vm3, %v631_v55 }
0x1992   : > { %855 = vst.msk [vmem:[#allocation2 + $0xa0] sm:$0xff] %vm834_vm3, %v626_v57 }
0x1998   : > { %v2596_v58 = vld [vmem:[#allocation2 + $0xa8] sm:$0xff] }
0x1999   : > { %v2595_v59 = vld [vmem:[#allocation2 + $0xa0] sm:$0xff] }
0x1a0d   : > { %v6696_v1 = vpop.f32.mrb[18].mxu1 }
0x1a0e   : > { %v2512_v11 = vadd.f32 %v6696_v1, %v2427_v8  ;;  %v2502_v12 = vpop.f32.mrb[19].mxu1 }
0x1a0f   : > { %v2511_v13 = vadd.f32 %v2502_v12, %v2426_v10 }
0x1a10   : > { %6958 = vtanh.f32 %v2512_v11  ;;  %v6309_v18 = vmul.f32 -1.442695, %v2512_v11 }
0x1a11   : > { %6960 = vtanh.f32 %v2511_v13  ;;  %v6308_v19 = vmul.f32 -1.442695, %v2511_v13 }
0x1a12   : > { %6962 = vpow2.f32 %v6309_v18 }
0x1a13   : > { %6964 = vpow2.f32 %v6308_v19 }
0x1a1a   : > { %v6959_v14 = vpop.eup %6958 }
0x1a1b   : > { %v6961_v15 = vpop.eup %6960  ;;  %2543 = vrot.lane.b32.xlu1 %v6959_v14, %s7328_s28 }
0x1a1c   : > { %2541 = vrot.lane.b32.xlu0 %v6961_v15, %s7328_s28  ;;  %v6963_v20 = vpop.eup %6962 }
0x1a1d   : > { %v6965_v21 = vpop.eup %6964  ;;  %v2520_v22 = vadd.f32 1.0, %v6963_v20 }
0x1a1e   : > { %v2519_v23 = vadd.f32 1.0, %v6965_v21 }
0x1a1f   : > { %2533 = vrot.lane.b32.xlu1 %v2528_v16, %s7327_s25  ;;  %6966 = vrcp.f32 %v2520_v22 }
0x1a20   : > { %2531 = vrot.lane.b32.xlu0 %v2527_v17, %s7327_s25  ;;  %6968 = vrcp.f32 %v2519_v23 }
0x1a29   : > { %v6967_v24 = vpop.eup %6966 }
0x1a2a   : > { %v6969_v26 = vpop.eup %6968 }
0x1a8d   : > { %v2544_v25 = vpop.permute.xlu1 %2543 }
0x1a8e   : > { %v2548_v27 = vmul.f32 %v6967_v24, %v2544_v25  ;;  %v2542_v28 = vpop.permute.xlu0 %2541 }
0x1a8f   : > { %v2547_v29 = vmul.f32 %v6969_v26, %v2542_v28 }
0x1a90   : > { %2553 = vrot.lane.b32.xlu1 %v2548_v27, %s7328_s28  ;;  %v221_v27 = vld [vmem:[%s7385_s24 + $0xb8] sm:$0xff] }
0x1a91   : > { %2551 = vrot.lane.b32.xlu0 %v2547_v29, %s7328_s28  ;;  %v2534_v30 = vpop.permute.xlu1 %2533 }
0x1a92   : > { %v2532_v31 = vpop.permute.xlu0 %2531  ;;  %v2538_v32 = vmul.f32 %v6967_v24, %v2534_v30 }
0x1a93   : > { %v2537_v34 = vmul.f32 %v6969_v26, %v2532_v31 }
0x1b02   : > { %v2554_v35 = vpop.permute.xlu1 %2553 }
0x1b03   : > { %v2558_v36 = vadd.f32 %v2554_v35, %v2538_v32  ;;  %v2552_v37 = vpop.permute.xlu0 %2551 }
0x1b04   : > { %v2557_v38 = vadd.f32 %v2552_v37, %v2537_v34 }
0x1b05   : > { %6970 = vtanh.f32 %v2558_v36 }
0x1b06   : > { %6972 = vtanh.f32 %v2557_v38 }
0x1b0f   : > { %v6971_v40 = vpop.eup %6970 }
0x1b10   : > { %v6973_v41 = vpop.eup %6972  ;;  %2565 = vrot.lane.b32.xlu1 %v6971_v40, %s7328_s28 }
0x1b11   : > { %2563 = vrot.lane.b32.xlu0 %v6973_v41, %s7328_s28 }
0x1b82   : > { %v2566_v43 = vpop.permute.xlu1 %2565 }
0x1b83   : > { %v2570_v44 = vmul.f32 %v6967_v24, %v2566_v43  ;;  %v2564_v45 = vpop.permute.xlu0 %2563  ;;  %v220_v24 = vld [vmem:[%s7385_s24 + $0xb0] sm:$0xff] }
0x1b84   : > { %v2569_v46 = vmul.f32 %v6969_v26, %v2564_v45  ;;  %6587 = vmatprep.mubr.msk.f32.mxu0 %vm268_vm1, %v220_v24 }
0x1b85   : > { %2594 = vst.msk [vmem:[%s7421_s5 + $0x98] sm:$0xff] %vm268_vm1, %v2570_v44  ;;  %2585 = vrot.lane.b32.xlu1 %v2570_v44, %s7327_s25  ;;  %6588 = vmatmul.mubr.msk.f32.gmra.mrb[22].mxu0 %vm268_vm1, %v221_v27 }
0x1b86   : > { %2593 = vst.msk [vmem:[%s7421_s5 + $0x90] sm:$0xff] %vm268_vm1, %v2569_v46  ;;  %2583 = vrot.lane.b32.xlu0 %v2569_v46, %s7327_s25 }
0x1b89   : > { %2575 = vrot.lane.b32.xlu1 %v2558_v36, %s7328_s28 }
0x1b8a   : > { %2573 = vrot.lane.b32.xlu0 %v2557_v38, %s7328_s28 }
0x1bf7   : > { %v2586_v48 = vpop.permute.xlu1 %2585 }
0x1bf8   : > { %2590 = vst.msk [vmem:[#allocation3 + $0x8] sm:$0xff] %vm1066_vm4, %v2586_v48  ;;  %v2584_v49 = vpop.permute.xlu0 %2583 }
0x1bf9   : > { %2592 = vst.msk [vmem:[#allocation3 + $0x9] sm:$0x7f] %vm1070_vm5, %v2570_v44 }
0x1bfa   : > { %2589 = vst.msk [vmem:[#allocation3] sm:$0xff] %vm1066_vm4, %v2584_v49 }
0x1bfb   : > { %2591 = vst.msk [vmem:[#allocation3 + $0x1] sm:$0xff] %vm268_vm1, %v2569_v46  ;;  %v2576_v50 = vpop.permute.xlu1 %2575 }
0x1bfc   : > { %2580 = vst.msk [vmem:[#allocation4 + $0x8] sm:$0xff] %vm268_vm1, %v2576_v50  ;;  %v2574_v51 = vpop.permute.xlu0 %2573 }
0x1bfd   : > { %2579 = vst.msk [vmem:[#allocation4] sm:$0xff] %vm268_vm1, %v2574_v51 }
0x1c02   : > { %v2597_v52 = vld [vmem:[#allocation3] sm:$0xff]  ;;  %v2598_v53 = vld [vmem:[#allocation3 + $0x8] sm:$0xff] }
0x1c03   : > { %6699 = vmatprep.mubr.msk.f32.mxu1 %vm897_vm2, %v2597_v52  ;;  %v2697_v2 = vld [vmem:[#allocation4 + $0x8] sm:$0xff] }
0x1c04   : > { %6700 = vmatmul.mubr.msk.f32.vlgmr.msra.gmra.mrb[20].mxu1 %vm897_vm2, %v2598_v53  ;;  %v2696_v3 = vld [vmem:[#allocation4] sm:$0xff] }
0x1c05   : > { %6703 = vmatpush3.msra.mxu1 %v7612_v47 }
0x1c06   : > { %6707 = vmatprep.subr.mxu1 %v7612_v47 }
0x1c58   : > { %v6589_v39 = vpop.f32.mrb[22].mxu0 }
0x1c59   : > { %v641_v40 = vadd.f32 %v7653_v33, %v6589_v39  ;;  %v635_v41 = vpop.f32.mrb[23].mxu0 }
0x1c5a   : > { %v636_v42 = vadd.f32 %v7653_v33, %v635_v41 }
0x1c5b   : > { %858 = vst.msk [vmem:[#allocation2 + $0xb8] sm:$0xff] %vm834_vm3, %v641_v40 }
0x1c5c   : > { %857 = vst.msk [vmem:[#allocation2 + $0xb0] sm:$0xff] %vm834_vm3, %v636_v42 }
0x1c62   : > { %v2765_v43 = vld [vmem:[#allocation2 + $0xb8] sm:$0xff] }
0x1c63   : > { %v2764_v44 = vld [vmem:[#allocation2 + $0xb0] sm:$0xff] }
0x1cd7   : > { %v6701_v60 = vpop.f32.mrb[20].mxu1 }
0x1cd8   : > { %v2681_v9 = vadd.f32 %v6701_v60, %v2596_v58  ;;  %v2671_v61 = vpop.f32.mrb[21].mxu1 }
0x1cd9   : > { %v2680_v62 = vadd.f32 %v2671_v61, %v2595_v59 }
0x1cda   : > { %6974 = vtanh.f32 %v2681_v9  ;;  %v6313_v4 = vmul.f32 -1.442695, %v2681_v9 }
0x1cdb   : > { %6976 = vtanh.f32 %v2680_v62  ;;  %v6312_v5 = vmul.f32 -1.442695, %v2680_v62 }
0x1cdc   : > { %6978 = vpow2.f32 %v6313_v4 }
0x1cdd   : > { %6980 = vpow2.f32 %v6312_v5 }
0x1ce4   : > { %v6975_v63 = vpop.eup %6974 }
0x1ce5   : > { %v6977_v0 = vpop.eup %6976  ;;  %2712 = vrot.lane.b32.xlu1 %v6975_v63, %s7328_s28 }
0x1ce6   : > { %2710 = vrot.lane.b32.xlu0 %v6977_v0, %s7328_s28  ;;  %v6979_v6 = vpop.eup %6978 }
0x1ce7   : > { %v6981_v7 = vpop.eup %6980  ;;  %v2689_v8 = vadd.f32 1.0, %v6979_v6 }
0x1ce8   : > { %v2688_v10 = vadd.f32 1.0, %v6981_v7 }
0x1ce9   : > { %2702 = vrot.lane.b32.xlu1 %v2697_v2, %s7327_s25  ;;  %6982 = vrcp.f32 %v2689_v8 }
0x1cea   : > { %2700 = vrot.lane.b32.xlu0 %v2696_v3, %s7327_s25  ;;  %6984 = vrcp.f32 %v2688_v10 }
0x1cf3   : > { %v6983_v1 = vpop.eup %6982 }
0x1cf4   : > { %v6985_v12 = vpop.eup %6984 }
0x1d57   : > { %v2713_v11 = vpop.permute.xlu1 %2712 }
0x1d58   : > { %v2717_v13 = vmul.f32 %v6983_v1, %v2713_v11  ;;  %v2711_v14 = vpop.permute.xlu0 %2710 }
0x1d59   : > { %v2716_v15 = vmul.f32 %v6985_v12, %v2711_v14 }
0x1d5a   : > { %2722 = vrot.lane.b32.xlu1 %v2717_v13, %s7328_s28  ;;  %v223_v13 = vld [vmem:[%s7385_s24 + $0xc8] sm:$0xff] }
0x1d5b   : > { %2720 = vrot.lane.b32.xlu0 %v2716_v15, %s7328_s28  ;;  %v2703_v16 = vpop.permute.xlu1 %2702 }
0x1d5c   : > { %v2701_v17 = vpop.permute.xlu0 %2700  ;;  %v2707_v18 = vmul.f32 %v6983_v1, %v2703_v16 }
0x1d5d   : > { %v2706_v19 = vmul.f32 %v6985_v12, %v2701_v17 }
0x1dcc   : > { %v2723_v20 = vpop.permute.xlu1 %2722 }
0x1dcd   : > { %v2727_v21 = vadd.f32 %v2723_v20, %v2707_v18  ;;  %v2721_v22 = vpop.permute.xlu0 %2720 }
0x1dce   : > { %v2726_v23 = vadd.f32 %v2721_v22, %v2706_v19 }
0x1dcf   : > { %6986 = vtanh.f32 %v2727_v21 }
0x1dd0   : > { %6988 = vtanh.f32 %v2726_v23 }
0x1dd9   : > { %v6987_v25 = vpop.eup %6986 }
0x1dda   : > { %v6989_v26 = vpop.eup %6988  ;;  %2734 = vrot.lane.b32.xlu1 %v6987_v25, %s7328_s28 }
0x1ddb   : > { %2732 = vrot.lane.b32.xlu0 %v6989_v26, %s7328_s28 }
0x1e4c   : > { %v2735_v28 = vpop.permute.xlu1 %2734 }
0x1e4d   : > { %v2739_v29 = vmul.f32 %v6983_v1, %v2735_v28  ;;  %v2733_v30 = vpop.permute.xlu0 %2732  ;;  %v222_v1 = vld [vmem:[%s7385_s24 + $0xc0] sm:$0xff] }
0x1e4e   : > { %v2738_v31 = vmul.f32 %v6985_v12, %v2733_v30  ;;  %6590 = vmatprep.mubr.msk.f32.mxu0 %vm268_vm1, %v222_v1 }
0x1e4f   : > { %2763 = vst.msk [vmem:[%s7421_s5 + $0xa8] sm:$0xff] %vm268_vm1, %v2739_v29  ;;  %2754 = vrot.lane.b32.xlu1 %v2739_v29, %s7327_s25  ;;  %6591 = vmatmul.mubr.msk.f32.gmra.mrb[24].mxu0 %vm268_vm1, %v223_v13 }
0x1e50   : > { %2762 = vst.msk [vmem:[%s7421_s5 + $0xa0] sm:$0xff] %vm268_vm1, %v2738_v31  ;;  %2752 = vrot.lane.b32.xlu0 %v2738_v31, %s7327_s25 }
0x1e53   : > { %2744 = vrot.lane.b32.xlu1 %v2727_v21, %s7328_s28 }
0x1e54   : > { %2742 = vrot.lane.b32.xlu0 %v2726_v23, %s7328_s28 }
0x1ec1   : > { %v2755_v32 = vpop.permute.xlu1 %2754 }
0x1ec2   : > { %2759 = vst.msk [vmem:[#allocation3 + $0x8] sm:$0xff] %vm1066_vm4, %v2755_v32  ;;  %v2753_v34 = vpop.permute.xlu0 %2752 }
0x1ec3   : > { %2761 = vst.msk [vmem:[#allocation3 + $0x9] sm:$0x7f] %vm1070_vm5, %v2739_v29 }
0x1ec4   : > { %2758 = vst.msk [vmem:[#allocation3] sm:$0xff] %vm1066_vm4, %v2753_v34 }
0x1ec5   : > { %2760 = vst.msk [vmem:[#allocation3 + $0x1] sm:$0xff] %vm268_vm1, %v2738_v31  ;;  %v2745_v35 = vpop.permute.xlu1 %2744 }
0x1ec6   : > { %2749 = vst.msk [vmem:[#allocation4 + $0x8] sm:$0xff] %vm268_vm1, %v2745_v35  ;;  %v2743_v36 = vpop.permute.xlu0 %2742 }
0x1ec7   : > { %2748 = vst.msk [vmem:[#allocation4] sm:$0xff] %vm268_vm1, %v2743_v36 }
0x1ecc   : > { %v2766_v37 = vld [vmem:[#allocation3] sm:$0xff]  ;;  %v2767_v38 = vld [vmem:[#allocation3 + $0x8] sm:$0xff] }
0x1ecd   : > { %6704 = vmatprep.mubr.msk.f32.mxu1 %vm897_vm2, %v2766_v37  ;;  %v2866_v52 = vld [vmem:[#allocation4 + $0x8] sm:$0xff] }
0x1ece   : > { %6705 = vmatmul.mubr.msk.f32.vlgmr.msra.gmra.mrb[22].mxu1 %vm897_vm2, %v2767_v38  ;;  %v2865_v53 = vld [vmem:[#allocation4] sm:$0xff] }
0x1ecf   : > { %6708 = vmatpush3.msra.mxu1 %v7612_v47 }
0x1ed0   : > { %6712 = vmatprep.subr.mxu1 %v7612_v47 }
0x1f22   : > { %v6592_v24 = vpop.f32.mrb[24].mxu0 }
0x1f23   : > { %v651_v25 = vadd.f32 %v7653_v33, %v6592_v24  ;;  %v645_v26 = vpop.f32.mrb[25].mxu0 }
0x1f24   : > { %v646_v27 = vadd.f32 %v7653_v33, %v645_v26 }
0x1f25   : > { %860 = vst.msk [vmem:[#allocation2 + $0xc8] sm:$0xff] %vm834_vm3, %v651_v25 }
0x1f26   : > { %859 = vst.msk [vmem:[#allocation2 + $0xc0] sm:$0xff] %vm834_vm3, %v646_v27 }
0x1f2c   : > { %v2934_v28 = vld [vmem:[#allocation2 + $0xc8] sm:$0xff] }
0x1f2d   : > { %v2933_v29 = vld [vmem:[#allocation2 + $0xc0] sm:$0xff] }
0x1fa1   : > { %v6706_v45 = vpop.f32.mrb[22].mxu1 }
0x1fa2   : > { %v2850_v46 = vadd.f32 %v6706_v45, %v2765_v43  ;;  %v2840_v48 = vpop.f32.mrb[23].mxu1 }
0x1fa3   : > { %v2849_v49 = vadd.f32 %v2840_v48, %v2764_v44 }
0x1fa4   : > { %6990 = vtanh.f32 %v2850_v46  ;;  %v6317_v54 = vmul.f32 -1.442695, %v2850_v46 }
0x1fa5   : > { %6992 = vtanh.f32 %v2849_v49  ;;  %v6316_v55 = vmul.f32 -1.442695, %v2849_v49 }
0x1fa6   : > { %6994 = vpow2.f32 %v6317_v54 }
0x1fa7   : > { %6996 = vpow2.f32 %v6316_v55 }
0x1fae   : > { %v6991_v50 = vpop.eup %6990 }
0x1faf   : > { %v6993_v51 = vpop.eup %6992  ;;  %2881 = vrot.lane.b32.xlu1 %v6991_v50, %s7328_s28 }
0x1fb0   : > { %2879 = vrot.lane.b32.xlu0 %v6993_v51, %s7328_s28  ;;  %v6995_v56 = vpop.eup %6994 }
0x1fb1   : > { %v6997_v57 = vpop.eup %6996  ;;  %v2858_v58 = vadd.f32 1.0, %v6995_v56 }
0x1fb2   : > { %v2857_v59 = vadd.f32 1.0, %v6997_v57 }
0x1fb3   : > { %2871 = vrot.lane.b32.xlu1 %v2866_v52, %s7327_s25  ;;  %6998 = vrcp.f32 %v2858_v58 }
0x1fb4   : > { %2869 = vrot.lane.b32.xlu0 %v2865_v53, %s7327_s25  ;;  %7000 = vrcp.f32 %v2857_v59  ;;  %v224_v59 = vld [vmem:[%s7385_s24 + $0xd0] sm:$0xff] }
0x1fb5   : > { %6593 = vmatprep.mubr.msk.f32.mxu0 %vm268_vm1, %v224_v59  ;;  %v7901_v59 = vld [vmem:[%s8495_s2] ss:$0 sm:$0xff] }
0x1fbd   : > { %v6999_v60 = vpop.eup %6998 }
0x1fbe   : > { %v7001_v61 = vpop.eup %7000 }
0x2021   : > { %v2882_v9 = vpop.permute.xlu1 %2881 }
0x2022   : > { %v2886_v62 = vmul.f32 %v6999_v60, %v2882_v9  ;;  %v2880_v63 = vpop.permute.xlu0 %2879 }
0x2023   : > { %v2885_v0 = vmul.f32 %v7001_v61, %v2880_v63 }
0x2024   : > { %2891 = vrot.lane.b32.xlu1 %v2886_v62, %s7328_s28 }
0x2025   : > { %2889 = vrot.lane.b32.xlu0 %v2885_v0, %s7328_s28  ;;  %v2872_v2 = vpop.permute.xlu1 %2871 }
0x2026   : > { %v2870_v3 = vpop.permute.xlu0 %2869  ;;  %v2876_v4 = vmul.f32 %v6999_v60, %v2872_v2 }
0x2027   : > { %v2875_v5 = vmul.f32 %v7001_v61, %v2870_v3 }
0x2096   : > { %v2892_v6 = vpop.permute.xlu1 %2891 }
0x2097   : > { %v2896_v7 = vadd.f32 %v2892_v6, %v2876_v4  ;;  %v2890_v8 = vpop.permute.xlu0 %2889 }
0x2098   : > { %v2895_v10 = vadd.f32 %v2890_v8, %v2875_v5 }
0x2099   : > { %7002 = vtanh.f32 %v2896_v7 }
0x209a   : > { %7004 = vtanh.f32 %v2895_v10 }
0x20a3   : > { %v7003_v11 = vpop.eup %7002 }
0x20a4   : > { %v7005_v12 = vpop.eup %7004  ;;  %2903 = vrot.lane.b32.xlu1 %v7003_v11, %s7328_s28 }
0x20a5   : > { %2901 = vrot.lane.b32.xlu0 %v7005_v12, %s7328_s28 }
0x2116   : > { %v2904_v14 = vpop.permute.xlu1 %2903 }
0x2117   : > { %v2908_v15 = vmul.f32 %v6999_v60, %v2904_v14  ;;  %v2902_v16 = vpop.permute.xlu0 %2901 }
0x2118   : > { %v2907_v17 = vmul.f32 %v7001_v61, %v2902_v16  ;;  %v225_v61 = vld [vmem:[%s7385_s24 + $0xd8] sm:$0xff] }
0x2119   : > { %2932 = vst.msk [vmem:[%s7421_s5 + $0xb8] sm:$0xff] %vm268_vm1, %v2908_v15  ;;  %2923 = vrot.lane.b32.xlu1 %v2908_v15, %s7327_s25  ;;  %6594 = vmatmul.mubr.msk.f32.gmra.mrb[26].mxu0 %vm268_vm1, %v225_v61 }
0x211a   : > { %2931 = vst.msk [vmem:[%s7421_s5 + $0xb0] sm:$0xff] %vm268_vm1, %v2907_v17  ;;  %2921 = vrot.lane.b32.xlu0 %v2907_v17, %s7327_s25 }
0x211d   : > { %2913 = vrot.lane.b32.xlu1 %v2896_v7, %s7328_s28 }
0x211e   : > { %2911 = vrot.lane.b32.xlu0 %v2895_v10, %s7328_s28  ;;  %v7860_v10 = vld [vmem:[%s8496_s3] sm:$0xff] }
0x218b   : > { %v2924_v18 = vpop.permute.xlu1 %2923 }
0x218c   : > { %2928 = vst.msk [vmem:[#allocation3 + $0x8] sm:$0xff] %vm1066_vm4, %v2924_v18  ;;  %v2922_v19 = vpop.permute.xlu0 %2921 }
0x218d   : > { %2930 = vst.msk [vmem:[#allocation3 + $0x9] sm:$0x7f] %vm1070_vm5, %v2908_v15 }
0x218e   : > { %2927 = vst.msk [vmem:[#allocation3] sm:$0xff] %vm1066_vm4, %v2922_v19 }
0x218f   : > { %2929 = vst.msk [vmem:[#allocation3 + $0x1] sm:$0xff] %vm268_vm1, %v2907_v17  ;;  %v2914_v20 = vpop.permute.xlu1 %2913 }
0x2190   : > { %2918 = vst.msk [vmem:[#allocation4 + $0x8] sm:$0xff] %vm268_vm1, %v2914_v20  ;;  %v2912_v21 = vpop.permute.xlu0 %2911 }
0x2191   : > { %2917 = vst.msk [vmem:[#allocation4] sm:$0xff] %vm268_vm1, %v2912_v21 }
0x2196   : > { %v2935_v22 = vld [vmem:[#allocation3] sm:$0xff]  ;;  %v2936_v23 = vld [vmem:[#allocation3 + $0x8] sm:$0xff] }
0x2197   : > { %6709 = vmatprep.mubr.msk.f32.mxu1 %vm897_vm2, %v2935_v22  ;;  %v3035_v36 = vld [vmem:[#allocation4 + $0x8] sm:$0xff] }
0x2198   : > { %6710 = vmatmul.mubr.msk.f32.vlgmr.msra.gmra.mrb[24].mxu1 %vm897_vm2, %v2936_v23  ;;  %v3034_v37 = vld [vmem:[#allocation4] sm:$0xff] }
0x2199   : > { %6713 = vmatpush3.msra.mxu1 %v7612_v47 }
0x219a   : > { %6717 = vmatprep.subr.mxu1 %v7612_v47 }
0x21ec   : > { %v6595_v1 = vpop.f32.mrb[26].mxu0 }
0x21ed   : > { %v661_v11 = vadd.f32 %v7653_v33, %v6595_v1  ;;  %v655_v12 = vpop.f32.mrb[27].mxu0 }
0x21ee   : > { %v656_v13 = vadd.f32 %v7653_v33, %v655_v12 }
0x21ef   : > { %862 = vst.msk [vmem:[#allocation2 + $0xd8] sm:$0xff] %vm834_vm3, %v661_v11 }
0x21f0   : > { %861 = vst.msk [vmem:[#allocation2 + $0xd0] sm:$0xff] %vm834_vm3, %v656_v13 }
0x21f6   : > { %v3103_v14 = vld [vmem:[#allocation2 + $0xd8] sm:$0xff] }
0x21f7   : > { %v3102_v15 = vld [vmem:[#allocation2 + $0xd0] sm:$0xff] }
0x226b   : > { %v6711_v30 = vpop.f32.mrb[24].mxu1 }
0x226c   : > { %v3019_v31 = vadd.f32 %v6711_v30, %v2934_v28  ;;  %v3009_v32 = vpop.f32.mrb[25].mxu1 }
0x226d   : > { %v3018_v34 = vadd.f32 %v3009_v32, %v2933_v29 }
0x226e   : > { %7006 = vtanh.f32 %v3019_v31  ;;  %v6321_v38 = vmul.f32 -1.442695, %v3019_v31 }
0x226f   : > { %7008 = vtanh.f32 %v3018_v34  ;;  %v6320_v39 = vmul.f32 -1.442695, %v3018_v34 }
0x2270   : > { %7010 = vpow2.f32 %v6321_v38 }
0x2271   : > { %7012 = vpow2.f32 %v6320_v39 }
0x2278   : > { %v7007_v35 = vpop.eup %7006 }
0x2279   : > { %v7009_v47 = vpop.eup %7008  ;;  %3050 = vrot.lane.b32.xlu1 %v7007_v35, %s7328_s28 }
0x227a   : > { %3048 = vrot.lane.b32.xlu0 %v7009_v47, %s7328_s28  ;;  %v7011_v40 = vpop.eup %7010 }
0x227b   : > { %v7013_v41 = vpop.eup %7012  ;;  %v3027_v42 = vadd.f32 1.0, %v7011_v40 }
0x227c   : > { %v3026_v43 = vadd.f32 1.0, %v7013_v41 }
0x227d   : > { %3040 = vrot.lane.b32.xlu1 %v3035_v36, %s7327_s25  ;;  %7014 = vrcp.f32 %v3027_v42 }
0x227e   : > { %3038 = vrot.lane.b32.xlu0 %v3034_v37, %s7327_s25  ;;  %7016 = vrcp.f32 %v3026_v43  ;;  %v226_v43 = vld [vmem:[%s7385_s24 + $0xe0] sm:$0xff] }
0x227f   : > { %6596 = vmatprep.mubr.msk.f32.mxu0 %vm268_vm1, %v226_v43 }
0x2287   : > { %v7015_v44 = vpop.eup %7014 }
0x2288   : > { %v7017_v46 = vpop.eup %7016 }
0x22eb   : > { %v3051_v45 = vpop.permute.xlu1 %3050 }
0x22ec   : > { %v3055_v48 = vmul.f32 %v7015_v44, %v3051_v45  ;;  %v3049_v49 = vpop.permute.xlu0 %3048 }
0x22ed   : > { %v3054_v50 = vmul.f32 %v7017_v46, %v3049_v49 }
0x22ee   : > { %3060 = vrot.lane.b32.xlu1 %v3055_v48, %s7328_s28 }
0x22ef   : > { %3058 = vrot.lane.b32.xlu0 %v3054_v50, %s7328_s28  ;;  %v3041_v51 = vpop.permute.xlu1 %3040 }
0x22f0   : > { %v3039_v52 = vpop.permute.xlu0 %3038  ;;  %v3045_v53 = vmul.f32 %v7015_v44, %v3041_v51 }
0x22f1   : > { %v3044_v54 = vmul.f32 %v7017_v46, %v3039_v52 }
0x2360   : > { %v3061_v55 = vpop.permute.xlu1 %3060 }
0x2361   : > { %v3065_v56 = vadd.f32 %v3061_v55, %v3045_v53  ;;  %v3059_v57 = vpop.permute.xlu0 %3058 }
0x2362   : > { %v3064_v58 = vadd.f32 %v3059_v57, %v3044_v54 }
0x2363   : > { %7018 = vtanh.f32 %v3065_v56 }
0x2364   : > { %7020 = vtanh.f32 %v3064_v58 }
0x236d   : > { %v7019_v60 = vpop.eup %7018 }
0x236e   : > { %v7021_v9 = vpop.eup %7020  ;;  %3072 = vrot.lane.b32.xlu1 %v7019_v60, %s7328_s28 }
0x236f   : > { %3070 = vrot.lane.b32.xlu0 %v7021_v9, %s7328_s28 }
0x23e0   : > { %v3073_v62 = vpop.permute.xlu1 %3072 }
0x23e1   : > { %v3077_v63 = vmul.f32 %v7015_v44, %v3073_v62  ;;  %v3071_v0 = vpop.permute.xlu0 %3070 }
0x23e2   : > { %v3076_v2 = vmul.f32 %v7017_v46, %v3071_v0  ;;  %v227_v46 = vld [vmem:[%s7385_s24 + $0xe8] sm:$0xff] }
0x23e3   : > { %3101 = vst.msk [vmem:[%s7421_s5 + $0xc8] sm:$0xff] %vm268_vm1, %v3077_v63  ;;  %3092 = vrot.lane.b32.xlu1 %v3077_v63, %s7327_s25  ;;  %6597 = vmatmul.mubr.msk.f32.gmra.mrb[28].mxu0 %vm268_vm1, %v227_v46 }
0x23e4   : > { %3100 = vst.msk [vmem:[%s7421_s5 + $0xc0] sm:$0xff] %vm268_vm1, %v3076_v2  ;;  %3090 = vrot.lane.b32.xlu0 %v3076_v2, %s7327_s25 }
0x23e7   : > { %3082 = vrot.lane.b32.xlu1 %v3065_v56, %s7328_s28 }
0x23e8   : > { %3080 = vrot.lane.b32.xlu0 %v3064_v58, %s7328_s28 }
0x2455   : > { %v3093_v3 = vpop.permute.xlu1 %3092 }
0x2456   : > { %3097 = vst.msk [vmem:[#allocation3 + $0x8] sm:$0xff] %vm1066_vm4, %v3093_v3  ;;  %v3091_v4 = vpop.permute.xlu0 %3090 }
0x2457   : > { %3099 = vst.msk [vmem:[#allocation3 + $0x9] sm:$0x7f] %vm1070_vm5, %v3077_v63 }
0x2458   : > { %3096 = vst.msk [vmem:[#allocation3] sm:$0xff] %vm1066_vm4, %v3091_v4 }
0x2459   : > { %3098 = vst.msk [vmem:[#allocation3 + $0x1] sm:$0xff] %vm268_vm1, %v3076_v2  ;;  %v3083_v5 = vpop.permute.xlu1 %3082 }
0x245a   : > { %3087 = vst.msk [vmem:[#allocation4 + $0x8] sm:$0xff] %vm268_vm1, %v3083_v5  ;;  %v3081_v6 = vpop.permute.xlu0 %3080 }
0x245b   : > { %3086 = vst.msk [vmem:[#allocation4] sm:$0xff] %vm268_vm1, %v3081_v6 }
0x2460   : > { %v3104_v7 = vld [vmem:[#allocation3] sm:$0xff]  ;;  %v3105_v8 = vld [vmem:[#allocation3 + $0x8] sm:$0xff] }
0x2461   : > { %6714 = vmatprep.mubr.msk.f32.mxu1 %vm897_vm2, %v3104_v7  ;;  %v3204_v22 = vld [vmem:[#allocation4 + $0x8] sm:$0xff] }
0x2462   : > { %6715 = vmatmul.mubr.msk.f32.vlgmr.msra.gmra.mrb[26].mxu1 %vm897_vm2, %v3105_v8  ;;  %v3203_v33 = vld [vmem:[#allocation4] sm:$0xff] }
0x2463   : > { %6718 = vmatpush3.msra.mxu1 %v7860_v10 }
0x2464   : > { %6722 = vmatprep.subr.mxu1 %v7860_v10 }
0x24b6   : > { %v6598_v58 = vpop.f32.mrb[28].mxu0 }
0x24b7   : > { %v671_v60 = vadd.f32 %v7901_v59, %v6598_v58  ;;  %v665_v9 = vpop.f32.mrb[29].mxu0 }
0x24b8   : > { %v666_v61 = vadd.f32 %v7901_v59, %v665_v9 }
0x24b9   : > { %864 = vst.msk [vmem:[#allocation2 + $0xe8] sm:$0xff] %vm834_vm3, %v671_v60 }
0x24ba   : > { %863 = vst.msk [vmem:[#allocation2 + $0xe0] sm:$0xff] %vm834_vm3, %v666_v61 }
0x24c0   : > { %v3272_v62 = vld [vmem:[#allocation2 + $0xe8] sm:$0xff] }
0x24c1   : > { %v3271_v63 = vld [vmem:[#allocation2 + $0xe0] sm:$0xff] }
0x2535   : > { %v6716_v16 = vpop.f32.mrb[26].mxu1 }
0x2536   : > { %v3188_v17 = vadd.f32 %v6716_v16, %v3103_v14  ;;  %v3178_v18 = vpop.f32.mrb[27].mxu1 }
0x2537   : > { %v3187_v19 = vadd.f32 %v3178_v18, %v3102_v15 }
0x2538   : > { %7022 = vtanh.f32 %v3188_v17  ;;  %v6325_v23 = vmul.f32 -1.442695, %v3188_v17 }
0x2539   : > { %7024 = vtanh.f32 %v3187_v19  ;;  %v6324_v24 = vmul.f32 -1.442695, %v3187_v19 }
0x253a   : > { %7026 = vpow2.f32 %v6325_v23 }
0x253b   : > { %7028 = vpow2.f32 %v6324_v24 }
0x2542   : > { %v7023_v20 = vpop.eup %7022 }
0x2543   : > { %v7025_v21 = vpop.eup %7024  ;;  %3219 = vrot.lane.b32.xlu1 %v7023_v20, %s7328_s28 }
0x2544   : > { %3217 = vrot.lane.b32.xlu0 %v7025_v21, %s7328_s28  ;;  %v7027_v25 = vpop.eup %7026 }
0x2545   : > { %v7029_v26 = vpop.eup %7028  ;;  %v3196_v27 = vadd.f32 1.0, %v7027_v25 }
0x2546   : > { %v3195_v28 = vadd.f32 1.0, %v7029_v26 }
0x2547   : > { %3209 = vrot.lane.b32.xlu1 %v3204_v22, %s7327_s25  ;;  %7030 = vrcp.f32 %v3196_v27 }
0x2548   : > { %3207 = vrot.lane.b32.xlu0 %v3203_v33, %s7327_s25  ;;  %7032 = vrcp.f32 %v3195_v28 }
0x2551   : > { %v7031_v29 = vpop.eup %7030 }
0x2552   : > { %v7033_v31 = vpop.eup %7032 }
0x25b5   : > { %v3220_v30 = vpop.permute.xlu1 %3219 }
0x25b6   : > { %v3224_v32 = vmul.f32 %v7031_v29, %v3220_v30  ;;  %v3218_v34 = vpop.permute.xlu0 %3217 }
0x25b7   : > { %v3223_v35 = vmul.f32 %v7033_v31, %v3218_v34 }
0x25b8   : > { %3229 = vrot.lane.b32.xlu1 %v3224_v32, %s7328_s28  ;;  %v229_v32 = vld [vmem:[%s7385_s24 + $0xf8] sm:$0xff] }
0x25b9   : > { %3227 = vrot.lane.b32.xlu0 %v3223_v35, %s7328_s28  ;;  %v3210_v47 = vpop.permute.xlu1 %3209 }
0x25ba   : > { %v3208_v36 = vpop.permute.xlu0 %3207  ;;  %v3214_v37 = vmul.f32 %v7031_v29, %v3210_v47 }
0x25bb   : > { %v3213_v38 = vmul.f32 %v7033_v31, %v3208_v36 }
0x262a   : > { %v3230_v39 = vpop.permute.xlu1 %3229 }
0x262b   : > { %v3234_v40 = vadd.f32 %v3230_v39, %v3214_v37  ;;  %v3228_v41 = vpop.permute.xlu0 %3227 }
0x262c   : > { %v3233_v42 = vadd.f32 %v3228_v41, %v3213_v38 }
0x262d   : > { %7034 = vtanh.f32 %v3234_v40 }
0x262e   : > { %7036 = vtanh.f32 %v3233_v42 }
0x2637   : > { %v7035_v44 = vpop.eup %7034 }
0x2638   : > { %v7037_v45 = vpop.eup %7036  ;;  %3241 = vrot.lane.b32.xlu1 %v7035_v44, %s7328_s28 }
0x2639   : > { %3239 = vrot.lane.b32.xlu0 %v7037_v45, %s7328_s28 }
0x26aa   : > { %v3242_v48 = vpop.permute.xlu1 %3241 }
0x26ab   : > { %v3246_v49 = vmul.f32 %v7031_v29, %v3242_v48  ;;  %v3240_v50 = vpop.permute.xlu0 %3239  ;;  %v228_v29 = vld [vmem:[%s7385_s24 + $0xf0] sm:$0xff] }
0x26ac   : > { %v3245_v51 = vmul.f32 %v7033_v31, %v3240_v50  ;;  %6599 = vmatprep.mubr.msk.f32.mxu0 %vm268_vm1, %v228_v29 }
0x26ad   : > { %3270 = vst.msk [vmem:[%s7421_s5 + $0xd8] sm:$0xff] %vm268_vm1, %v3246_v49  ;;  %3261 = vrot.lane.b32.xlu1 %v3246_v49, %s7327_s25  ;;  %6600 = vmatmul.mubr.msk.f32.gmra.mrb[30].mxu0 %vm268_vm1, %v229_v32 }
0x26ae   : > { %3269 = vst.msk [vmem:[%s7421_s5 + $0xd0] sm:$0xff] %vm268_vm1, %v3245_v51  ;;  %3259 = vrot.lane.b32.xlu0 %v3245_v51, %s7327_s25 }
0x26b1   : > { %3251 = vrot.lane.b32.xlu1 %v3234_v40, %s7328_s28 }
0x26b2   : > { %3249 = vrot.lane.b32.xlu0 %v3233_v42, %s7328_s28 }
0x271f   : > { %v3262_v52 = vpop.permute.xlu1 %3261 }
0x2720   : > { %3266 = vst.msk [vmem:[#allocation3 + $0x8] sm:$0xff] %vm1066_vm4, %v3262_v52  ;;  %v3260_v53 = vpop.permute.xlu0 %3259 }
0x2721   : > { %3268 = vst.msk [vmem:[#allocation3 + $0x9] sm:$0x7f] %vm1070_vm5, %v3246_v49 }
0x2722   : > { %3265 = vst.msk [vmem:[#allocation3] sm:$0xff] %vm1066_vm4, %v3260_v53 }
0x2723   : > { %3267 = vst.msk [vmem:[#allocation3 + $0x1] sm:$0xff] %vm268_vm1, %v3245_v51  ;;  %v3252_v54 = vpop.permute.xlu1 %3251 }
0x2724   : > { %3256 = vst.msk [vmem:[#allocation4 + $0x8] sm:$0xff] %vm268_vm1, %v3252_v54  ;;  %v3250_v55 = vpop.permute.xlu0 %3249 }
0x2725   : > { %3255 = vst.msk [vmem:[#allocation4] sm:$0xff] %vm268_vm1, %v3250_v55 }
0x272a   : > { %v3273_v56 = vld [vmem:[#allocation3] sm:$0xff]  ;;  %v3274_v57 = vld [vmem:[#allocation3 + $0x8] sm:$0xff] }
0x272b   : > { %6719 = vmatprep.mubr.msk.f32.mxu1 %vm897_vm2, %v3273_v56  ;;  %v3373_v7 = vld [vmem:[#allocation4 + $0x8] sm:$0xff] }
0x272c   : > { %6720 = vmatmul.mubr.msk.f32.vlgmr.msra.gmra.mrb[28].mxu1 %vm897_vm2, %v3274_v57  ;;  %v3372_v8 = vld [vmem:[#allocation4] sm:$0xff] }
0x272d   : > { %6723 = vmatpush3.msra.mxu1 %v7860_v10 }
0x272e   : > { %6727 = vmatprep.subr.mxu1 %v7860_v10 }
0x2780   : > { %v6601_v43 = vpop.f32.mrb[30].mxu0 }
0x2781   : > { %v681_v44 = vadd.f32 %v7901_v59, %v6601_v43  ;;  %v675_v45 = vpop.f32.mrb[31].mxu0 }
0x2782   : > { %v676_v46 = vadd.f32 %v7901_v59, %v675_v45 }
0x2783   : > { %866 = vst.msk [vmem:[#allocation2 + $0xf8] sm:$0xff] %vm834_vm3, %v681_v44 }
0x2784   : > { %865 = vst.msk [vmem:[#allocation2 + $0xf0] sm:$0xff] %vm834_vm3, %v676_v46 }
0x278a   : > { %v3441_v48 = vld [vmem:[#allocation2 + $0xf8] sm:$0xff] }
0x278b   : > { %v3440_v49 = vld [vmem:[#allocation2 + $0xf0] sm:$0xff] }
0x27ff   : > { %v6721_v0 = vpop.f32.mrb[28].mxu1 }
0x2800   : > { %v3357_v2 = vadd.f32 %v6721_v0, %v3272_v62  ;;  %v3347_v3 = vpop.f32.mrb[29].mxu1 }
0x2801   : > { %v3356_v4 = vadd.f32 %v3347_v3, %v3271_v63 }
0x2802   : > { %7038 = vtanh.f32 %v3357_v2  ;;  %v6329_v1 = vmul.f32 -1.442695, %v3357_v2 }
0x2803   : > { %7040 = vtanh.f32 %v3356_v4  ;;  %v6328_v11 = vmul.f32 -1.442695, %v3356_v4 }
0x2804   : > { %7042 = vpow2.f32 %v6329_v1 }
0x2805   : > { %7044 = vpow2.f32 %v6328_v11 }
0x280c   : > { %v7039_v5 = vpop.eup %7038 }
0x280d   : > { %v7041_v6 = vpop.eup %7040  ;;  %3388 = vrot.lane.b32.xlu1 %v7039_v5, %s7328_s28 }
0x280e   : > { %3386 = vrot.lane.b32.xlu0 %v7041_v6, %s7328_s28  ;;  %v7043_v12 = vpop.eup %7042 }
0x280f   : > { %v7045_v13 = vpop.eup %7044  ;;  %v3365_v14 = vadd.f32 1.0, %v7043_v12 }
0x2810   : > { %v3364_v15 = vadd.f32 1.0, %v7045_v13 }
0x2811   : > { %3378 = vrot.lane.b32.xlu1 %v3373_v7, %s7327_s25  ;;  %7046 = vrcp.f32 %v3365_v14 }
0x2812   : > { %3376 = vrot.lane.b32.xlu0 %v3372_v8, %s7327_s25  ;;  %7048 = vrcp.f32 %v3364_v15 }
0x281b   : > { %v7047_v16 = vpop.eup %7046 }
0x281c   : > { %v7049_v18 = vpop.eup %7048 }
0x287f   : > { %v3389_v17 = vpop.permute.xlu1 %3388 }
0x2880   : > { %v3393_v19 = vmul.f32 %v7047_v16, %v3389_v17  ;;  %v3387_v20 = vpop.permute.xlu0 %3386 }
0x2881   : > { %v3392_v21 = vmul.f32 %v7049_v18, %v3387_v20 }
0x2882   : > { %3398 = vrot.lane.b32.xlu1 %v3393_v19, %s7328_s28  ;;  %v231_v19 = vld [vmem:[%s7385_s24 + $0x108] sm:$0xff] }
0x2883   : > { %3396 = vrot.lane.b32.xlu0 %v3392_v21, %s7328_s28  ;;  %v3379_v22 = vpop.permute.xlu1 %3378 }
0x2884   : > { %v3377_v33 = vpop.permute.xlu0 %3376  ;;  %v3383_v23 = vmul.f32 %v7047_v16, %v3379_v22 }
0x2885   : > { %v3382_v24 = vmul.f32 %v7049_v18, %v3377_v33 }
0x28f4   : > { %v3399_v25 = vpop.permute.xlu1 %3398 }
0x28f5   : > { %v3403_v26 = vadd.f32 %v3399_v25, %v3383_v23  ;;  %v3397_v27 = vpop.permute.xlu0 %3396 }
0x28f6   : > { %v3402_v28 = vadd.f32 %v3397_v27, %v3382_v24 }
0x28f7   : > { %7050 = vtanh.f32 %v3403_v26 }
0x28f8   : > { %7052 = vtanh.f32 %v3402_v28 }
0x2901   : > { %v7051_v30 = vpop.eup %7050 }
0x2902   : > { %v7053_v31 = vpop.eup %7052  ;;  %3410 = vrot.lane.b32.xlu1 %v7051_v30, %s7328_s28 }
0x2903   : > { %3408 = vrot.lane.b32.xlu0 %v7053_v31, %s7328_s28 }
0x2974   : > { %v3411_v34 = vpop.permute.xlu1 %3410 }
0x2975   : > { %v3415_v35 = vmul.f32 %v7047_v16, %v3411_v34  ;;  %v3409_v47 = vpop.permute.xlu0 %3408  ;;  %v230_v16 = vld [vmem:[%s7385_s24 + $0x100] sm:$0xff] }
0x2976   : > { %v3414_v36 = vmul.f32 %v7049_v18, %v3409_v47  ;;  %6602 = vmatprep.mubr.msk.f32.mxu0 %vm268_vm1, %v230_v16 }
0x2977   : > { %3439 = vst.msk [vmem:[%s7421_s5 + $0xe8] sm:$0xff] %vm268_vm1, %v3415_v35  ;;  %3430 = vrot.lane.b32.xlu1 %v3415_v35, %s7327_s25  ;;  %6603 = vmatmul.mubr.msk.f32.gmra.mrb[32].mxu0 %vm268_vm1, %v231_v19 }
0x2978   : > { %3438 = vst.msk [vmem:[%s7421_s5 + $0xe0] sm:$0xff] %vm268_vm1, %v3414_v36  ;;  %3428 = vrot.lane.b32.xlu0 %v3414_v36, %s7327_s25 }
0x297b   : > { %3420 = vrot.lane.b32.xlu1 %v3403_v26, %s7328_s28 }
0x297c   : > { %3418 = vrot.lane.b32.xlu0 %v3402_v28, %s7328_s28 }
0x29e9   : > { %v3431_v37 = vpop.permute.xlu1 %3430 }
0x29ea   : > { %3435 = vst.msk [vmem:[#allocation3 + $0x8] sm:$0xff] %vm1066_vm4, %v3431_v37  ;;  %v3429_v38 = vpop.permute.xlu0 %3428 }
0x29eb   : > { %3437 = vst.msk [vmem:[#allocation3 + $0x9] sm:$0x7f] %vm1070_vm5, %v3415_v35 }
0x29ec   : > { %3434 = vst.msk [vmem:[#allocation3] sm:$0xff] %vm1066_vm4, %v3429_v38 }
0x29ed   : > { %3436 = vst.msk [vmem:[#allocation3 + $0x1] sm:$0xff] %vm268_vm1, %v3414_v36  ;;  %v3421_v39 = vpop.permute.xlu1 %3420 }
0x29ee   : > { %3425 = vst.msk [vmem:[#allocation4 + $0x8] sm:$0xff] %vm268_vm1, %v3421_v39  ;;  %v3419_v40 = vpop.permute.xlu0 %3418 }
0x29ef   : > { %3424 = vst.msk [vmem:[#allocation4] sm:$0xff] %vm268_vm1, %v3419_v40 }
0x29f4   : > { %v3442_v41 = vld [vmem:[#allocation3] sm:$0xff]  ;;  %v3443_v42 = vld [vmem:[#allocation3 + $0x8] sm:$0xff] }
0x29f5   : > { %6724 = vmatprep.mubr.msk.f32.mxu1 %vm897_vm2, %v3442_v41  ;;  %v3542_v56 = vld [vmem:[#allocation4 + $0x8] sm:$0xff] }
0x29f6   : > { %6725 = vmatmul.mubr.msk.f32.vlgmr.msra.gmra.mrb[30].mxu1 %vm897_vm2, %v3443_v42  ;;  %v3541_v57 = vld [vmem:[#allocation4] sm:$0xff] }
0x29f7   : > { %6728 = vmatpush3.msra.mxu1 %v7860_v10 }
0x29f8   : > { %6732 = vmatprep.subr.mxu1 %v7860_v10 }
0x2a4a   : > { %v6604_v29 = vpop.f32.mrb[32].mxu0 }
0x2a4b   : > { %v691_v30 = vadd.f32 %v7901_v59, %v6604_v29  ;;  %v685_v31 = vpop.f32.mrb[33].mxu0 }
0x2a4c   : > { %v686_v32 = vadd.f32 %v7901_v59, %v685_v31 }
0x2a4d   : > { %868 = vst.msk [vmem:[#allocation2 + $0x108] sm:$0xff] %vm834_vm3, %v691_v30 }
0x2a4e   : > { %867 = vst.msk [vmem:[#allocation2 + $0x100] sm:$0xff] %vm834_vm3, %v686_v32 }
0x2a54   : > { %v3610_v34 = vld [vmem:[#allocation2 + $0x108] sm:$0xff] }
0x2a55   : > { %v3609_v35 = vld [vmem:[#allocation2 + $0x100] sm:$0xff] }
0x2ac9   : > { %v6726_v50 = vpop.f32.mrb[30].mxu1 }
0x2aca   : > { %v3526_v51 = vadd.f32 %v6726_v50, %v3441_v48  ;;  %v3516_v52 = vpop.f32.mrb[31].mxu1 }
0x2acb   : > { %v3525_v53 = vadd.f32 %v3516_v52, %v3440_v49 }
0x2acc   : > { %7054 = vtanh.f32 %v3526_v51  ;;  %v6333_v58 = vmul.f32 -1.442695, %v3526_v51 }
0x2acd   : > { %7056 = vtanh.f32 %v3525_v53  ;;  %v6332_v60 = vmul.f32 -1.442695, %v3525_v53 }
0x2ace   : > { %7058 = vpow2.f32 %v6333_v58 }
0x2acf   : > { %7060 = vpow2.f32 %v6332_v60 }
0x2ad6   : > { %v7055_v54 = vpop.eup %7054 }
0x2ad7   : > { %v7057_v55 = vpop.eup %7056  ;;  %3557 = vrot.lane.b32.xlu1 %v7055_v54, %s7328_s28 }
0x2ad8   : > { %3555 = vrot.lane.b32.xlu0 %v7057_v55, %s7328_s28  ;;  %v7059_v9 = vpop.eup %7058 }
0x2ad9   : > { %v7061_v61 = vpop.eup %7060  ;;  %v3534_v62 = vadd.f32 1.0, %v7059_v9 }
0x2ada   : > { %v3533_v63 = vadd.f32 1.0, %v7061_v61 }
0x2adb   : > { %3547 = vrot.lane.b32.xlu1 %v3542_v56, %s7327_s25  ;;  %7062 = vrcp.f32 %v3534_v62 }
0x2adc   : > { %3545 = vrot.lane.b32.xlu0 %v3541_v57, %s7327_s25  ;;  %7064 = vrcp.f32 %v3533_v63 }
0x2ae5   : > { %v7063_v0 = vpop.eup %7062 }
0x2ae6   : > { %v7065_v3 = vpop.eup %7064 }
0x2b49   : > { %v3558_v2 = vpop.permute.xlu1 %3557 }
0x2b4a   : > { %v3562_v4 = vmul.f32 %v7063_v0, %v3558_v2  ;;  %v3556_v5 = vpop.permute.xlu0 %3555 }
0x2b4b   : > { %v3561_v6 = vmul.f32 %v7065_v3, %v3556_v5 }
0x2b4c   : > { %3567 = vrot.lane.b32.xlu1 %v3562_v4, %s7328_s28  ;;  %v233_v4 = vld [vmem:[%s7385_s24 + $0x118] sm:$0xff] }
0x2b4d   : > { %3565 = vrot.lane.b32.xlu0 %v3561_v6, %s7328_s28  ;;  %v3548_v7 = vpop.permute.xlu1 %3547 }
0x2b4e   : > { %v3546_v8 = vpop.permute.xlu0 %3545  ;;  %v3552_v1 = vmul.f32 %v7063_v0, %v3548_v7 }
0x2b4f   : > { %v3551_v11 = vmul.f32 %v7065_v3, %v3546_v8 }
0x2bbe   : > { %v3568_v12 = vpop.permute.xlu1 %3567 }
0x2bbf   : > { %v3572_v13 = vadd.f32 %v3568_v12, %v3552_v1  ;;  %v3566_v14 = vpop.permute.xlu0 %3565 }
0x2bc0   : > { %v3571_v15 = vadd.f32 %v3566_v14, %v3551_v11 }
0x2bc1   : > { %7066 = vtanh.f32 %v3572_v13 }
0x2bc2   : > { %7068 = vtanh.f32 %v3571_v15 }
0x2bcb   : > { %v7067_v17 = vpop.eup %7066 }
0x2bcc   : > { %v7069_v18 = vpop.eup %7068  ;;  %3579 = vrot.lane.b32.xlu1 %v7067_v17, %s7328_s28 }
0x2bcd   : > { %3577 = vrot.lane.b32.xlu0 %v7069_v18, %s7328_s28 }
0x2c3e   : > { %v3580_v20 = vpop.permute.xlu1 %3579 }
0x2c3f   : > { %v3584_v21 = vmul.f32 %v7063_v0, %v3580_v20  ;;  %v3578_v22 = vpop.permute.xlu0 %3577  ;;  %v232_v0 = vld [vmem:[%s7385_s24 + $0x110] sm:$0xff] }
0x2c40   : > { %v3583_v33 = vmul.f32 %v7065_v3, %v3578_v22  ;;  %6605 = vmatprep.mubr.msk.f32.mxu0 %vm268_vm1, %v232_v0 }
0x2c41   : > { %3608 = vst.msk [vmem:[%s7421_s5 + $0xf8] sm:$0xff] %vm268_vm1, %v3584_v21  ;;  %3599 = vrot.lane.b32.xlu1 %v3584_v21, %s7327_s25  ;;  %6606 = vmatmul.mubr.msk.f32.gmra.mrb[34].mxu0 %vm268_vm1, %v233_v4 }
0x2c42   : > { %3607 = vst.msk [vmem:[%s7421_s5 + $0xf0] sm:$0xff] %vm268_vm1, %v3583_v33  ;;  %3597 = vrot.lane.b32.xlu0 %v3583_v33, %s7327_s25 }
0x2c45   : > { %3589 = vrot.lane.b32.xlu1 %v3572_v13, %s7328_s28 }
0x2c46   : > { %3587 = vrot.lane.b32.xlu0 %v3571_v15, %s7328_s28 }
0x2cb3   : > { %v3600_v23 = vpop.permute.xlu1 %3599 }
0x2cb4   : > { %3604 = vst.msk [vmem:[#allocation3 + $0x8] sm:$0xff] %vm1066_vm4, %v3600_v23  ;;  %v3598_v24 = vpop.permute.xlu0 %3597 }
0x2cb5   : > { %3606 = vst.msk [vmem:[#allocation3 + $0x9] sm:$0x7f] %vm1070_vm5, %v3584_v21 }
0x2cb6   : > { %3603 = vst.msk [vmem:[#allocation3] sm:$0xff] %vm1066_vm4, %v3598_v24 }
0x2cb7   : > { %3605 = vst.msk [vmem:[#allocation3 + $0x1] sm:$0xff] %vm268_vm1, %v3583_v33  ;;  %v3590_v25 = vpop.permute.xlu1 %3589 }
0x2cb8   : > { %3594 = vst.msk [vmem:[#allocation4 + $0x8] sm:$0xff] %vm268_vm1, %v3590_v25  ;;  %v3588_v26 = vpop.permute.xlu0 %3587 }
0x2cb9   : > { %3593 = vst.msk [vmem:[#allocation4] sm:$0xff] %vm268_vm1, %v3588_v26 }
0x2cbe   : > { %v3611_v27 = vld [vmem:[#allocation3] sm:$0xff]  ;;  %v3612_v28 = vld [vmem:[#allocation3 + $0x8] sm:$0xff] }
0x2cbf   : > { %6729 = vmatprep.mubr.msk.f32.mxu1 %vm897_vm2, %v3611_v27  ;;  %v3711_v41 = vld [vmem:[#allocation4 + $0x8] sm:$0xff] }
0x2cc0   : > { %6730 = vmatmul.mubr.msk.f32.vlgmr.msra.gmra.mrb[32].mxu1 %vm897_vm2, %v3612_v28  ;;  %v3710_v42 = vld [vmem:[#allocation4] sm:$0xff] }
0x2cc1   : > { %6733 = vmatpush3.msra.mxu1 %v7860_v10 }
0x2cc2   : > { %6737 = vmatprep.subr.mxu1 %v7860_v10 }
0x2d14   : > { %v6607_v16 = vpop.f32.mrb[34].mxu0 }
0x2d15   : > { %v701_v17 = vadd.f32 %v7901_v59, %v6607_v16  ;;  %v695_v18 = vpop.f32.mrb[35].mxu0 }
0x2d16   : > { %v696_v19 = vadd.f32 %v7901_v59, %v695_v18 }
0x2d17   : > { %870 = vst.msk [vmem:[#allocation2 + $0x118] sm:$0xff] %vm834_vm3, %v701_v17 }
0x2d18   : > { %869 = vst.msk [vmem:[#allocation2 + $0x110] sm:$0xff] %vm834_vm3, %v696_v19 }
0x2d1e   : > { %v3779_v20 = vld [vmem:[#allocation2 + $0x118] sm:$0xff] }
0x2d1f   : > { %v3778_v21 = vld [vmem:[#allocation2 + $0x110] sm:$0xff] }
0x2d93   : > { %v6731_v47 = vpop.f32.mrb[32].mxu1 }
0x2d94   : > { %v3695_v36 = vadd.f32 %v6731_v47, %v3610_v34  ;;  %v3685_v37 = vpop.f32.mrb[33].mxu1 }
0x2d95   : > { %v3694_v38 = vadd.f32 %v3685_v37, %v3609_v35 }
0x2d96   : > { %7070 = vtanh.f32 %v3695_v36  ;;  %v6337_v43 = vmul.f32 -1.442695, %v3695_v36 }
0x2d97   : > { %7072 = vtanh.f32 %v3694_v38  ;;  %v6336_v44 = vmul.f32 -1.442695, %v3694_v38 }
0x2d98   : > { %7074 = vpow2.f32 %v6337_v43 }
0x2d99   : > { %7076 = vpow2.f32 %v6336_v44 }
0x2da0   : > { %v7071_v39 = vpop.eup %7070 }
0x2da1   : > { %v7073_v40 = vpop.eup %7072  ;;  %3726 = vrot.lane.b32.xlu1 %v7071_v39, %s7328_s28 }
0x2da2   : > { %3724 = vrot.lane.b32.xlu0 %v7073_v40, %s7328_s28  ;;  %v7075_v45 = vpop.eup %7074 }
0x2da3   : > { %v7077_v46 = vpop.eup %7076  ;;  %v3703_v48 = vadd.f32 1.0, %v7075_v45 }
0x2da4   : > { %v3702_v49 = vadd.f32 1.0, %v7077_v46 }
0x2da5   : > { %3716 = vrot.lane.b32.xlu1 %v3711_v41, %s7327_s25  ;;  %7078 = vrcp.f32 %v3703_v48 }
0x2da6   : > { %3714 = vrot.lane.b32.xlu0 %v3710_v42, %s7327_s25  ;;  %7080 = vrcp.f32 %v3702_v49 }
0x2daf   : > { %v7079_v50 = vpop.eup %7078 }
0x2db0   : > { %v7081_v52 = vpop.eup %7080 }
0x2e13   : > { %v3727_v51 = vpop.permute.xlu1 %3726 }
0x2e14   : > { %v3731_v53 = vmul.f32 %v7079_v50, %v3727_v51  ;;  %v3725_v54 = vpop.permute.xlu0 %3724 }
0x2e15   : > { %v3730_v55 = vmul.f32 %v7081_v52, %v3725_v54 }
0x2e16   : > { %3736 = vrot.lane.b32.xlu1 %v3731_v53, %s7328_s28  ;;  %v235_v53 = vld [vmem:[%s7385_s24 + $0x128] sm:$0xff] }
0x2e17   : > { %3734 = vrot.lane.b32.xlu0 %v3730_v55, %s7328_s28  ;;  %v3717_v56 = vpop.permute.xlu1 %3716 }
0x2e18   : > { %v3715_v57 = vpop.permute.xlu0 %3714  ;;  %v3721_v58 = vmul.f32 %v7079_v50, %v3717_v56 }
0x2e19   : > { %v3720_v60 = vmul.f32 %v7081_v52, %v3715_v57 }
0x2e88   : > { %v3737_v9 = vpop.permute.xlu1 %3736 }
0x2e89   : > { %v3741_v61 = vadd.f32 %v3737_v9, %v3721_v58  ;;  %v3735_v62 = vpop.permute.xlu0 %3734 }
0x2e8a   : > { %v3740_v63 = vadd.f32 %v3735_v62, %v3720_v60 }
0x2e8b   : > { %7082 = vtanh.f32 %v3741_v61 }
0x2e8c   : > { %7084 = vtanh.f32 %v3740_v63 }
0x2e95   : > { %v7083_v2 = vpop.eup %7082 }
0x2e96   : > { %v7085_v3 = vpop.eup %7084  ;;  %3748 = vrot.lane.b32.xlu1 %v7083_v2, %s7328_s28 }
0x2e97   : > { %3746 = vrot.lane.b32.xlu0 %v7085_v3, %s7328_s28 }
0x2f08   : > { %v3749_v5 = vpop.permute.xlu1 %3748 }
0x2f09   : > { %v3753_v6 = vmul.f32 %v7079_v50, %v3749_v5  ;;  %v3747_v7 = vpop.permute.xlu0 %3746  ;;  %v234_v50 = vld [vmem:[%s7385_s24 + $0x120] sm:$0xff] }
0x2f0a   : > { %v3752_v8 = vmul.f32 %v7081_v52, %v3747_v7  ;;  %6608 = vmatprep.mubr.msk.f32.mxu0 %vm268_vm1, %v234_v50 }
0x2f0b   : > { %3777 = vst.msk [vmem:[%s7421_s5 + $0x108] sm:$0xff] %vm268_vm1, %v3753_v6  ;;  %3768 = vrot.lane.b32.xlu1 %v3753_v6, %s7327_s25  ;;  %6609 = vmatmul.mubr.msk.f32.gmra.mrb[36].mxu0 %vm268_vm1, %v235_v53 }
0x2f0c   : > { %3776 = vst.msk [vmem:[%s7421_s5 + $0x100] sm:$0xff] %vm268_vm1, %v3752_v8  ;;  %3766 = vrot.lane.b32.xlu0 %v3752_v8, %s7327_s25 }
0x2f0f   : > { %3758 = vrot.lane.b32.xlu1 %v3741_v61, %s7328_s28 }
0x2f10   : > { %3756 = vrot.lane.b32.xlu0 %v3740_v63, %s7328_s28 }
0x2f7d   : > { %v3769_v1 = vpop.permute.xlu1 %3768 }
0x2f7e   : > { %3773 = vst.msk [vmem:[#allocation3 + $0x8] sm:$0xff] %vm1066_vm4, %v3769_v1  ;;  %v3767_v11 = vpop.permute.xlu0 %3766 }
0x2f7f   : > { %3775 = vst.msk [vmem:[#allocation3 + $0x9] sm:$0x7f] %vm1070_vm5, %v3753_v6 }
0x2f80   : > { %3772 = vst.msk [vmem:[#allocation3] sm:$0xff] %vm1066_vm4, %v3767_v11 }
0x2f81   : > { %3774 = vst.msk [vmem:[#allocation3 + $0x1] sm:$0xff] %vm268_vm1, %v3752_v8  ;;  %v3759_v12 = vpop.permute.xlu1 %3758 }
0x2f82   : > { %3763 = vst.msk [vmem:[#allocation4 + $0x8] sm:$0xff] %vm268_vm1, %v3759_v12  ;;  %v3757_v13 = vpop.permute.xlu0 %3756 }
0x2f83   : > { %3762 = vst.msk [vmem:[#allocation4] sm:$0xff] %vm268_vm1, %v3757_v13 }
0x2f88   : > { %v3780_v14 = vld [vmem:[#allocation3] sm:$0xff]  ;;  %v3781_v15 = vld [vmem:[#allocation3 + $0x8] sm:$0xff] }
0x2f89   : > { %6734 = vmatprep.mubr.msk.f32.mxu1 %vm897_vm2, %v3780_v14  ;;  %v3880_v27 = vld [vmem:[#allocation4 + $0x8] sm:$0xff] }
0x2f8a   : > { %6735 = vmatmul.mubr.msk.f32.vlgmr.msra.gmra.mrb[34].mxu1 %vm897_vm2, %v3781_v15  ;;  %v3879_v28 = vld [vmem:[#allocation4] sm:$0xff] }
0x2f8b   : > { %6738 = vmatpush3.msra.mxu1 %v7860_v10 }
0x2f8c   : > { %6742 = vmatprep.subr.mxu1 %v7860_v10 }
0x2fde   : > { %v6610_v0 = vpop.f32.mrb[36].mxu0 }
0x2fdf   : > { %v711_v2 = vadd.f32 %v7901_v59, %v6610_v0  ;;  %v705_v3 = vpop.f32.mrb[37].mxu0 }
0x2fe0   : > { %v706_v4 = vadd.f32 %v7901_v59, %v705_v3 }
0x2fe1   : > { %872 = vst.msk [vmem:[#allocation2 + $0x128] sm:$0xff] %vm834_vm3, %v711_v2 }
0x2fe2   : > { %871 = vst.msk [vmem:[#allocation2 + $0x120] sm:$0xff] %vm834_vm3, %v706_v4 }
0x2fe8   : > { %v3948_v5 = vld [vmem:[#allocation2 + $0x128] sm:$0xff] }
0x2fe9   : > { %v3947_v6 = vld [vmem:[#allocation2 + $0x120] sm:$0xff] }
0x305d   : > { %v6736_v22 = vpop.f32.mrb[34].mxu1 }
0x305e   : > { %v3864_v33 = vadd.f32 %v6736_v22, %v3779_v20  ;;  %v3854_v23 = vpop.f32.mrb[35].mxu1 }
0x305f   : > { %v3863_v24 = vadd.f32 %v3854_v23, %v3778_v21 }
0x3060   : > { %7086 = vtanh.f32 %v3864_v33  ;;  %v6341_v29 = vmul.f32 -1.442695, %v3864_v33 }
0x3061   : > { %7088 = vtanh.f32 %v3863_v24  ;;  %v6340_v30 = vmul.f32 -1.442695, %v3863_v24 }
0x3062   : > { %7090 = vpow2.f32 %v6341_v29 }
0x3063   : > { %7092 = vpow2.f32 %v6340_v30 }
0x306a   : > { %v7087_v25 = vpop.eup %7086 }
0x306b   : > { %v7089_v26 = vpop.eup %7088  ;;  %3895 = vrot.lane.b32.xlu1 %v7087_v25, %s7328_s28 }
0x306c   : > { %3893 = vrot.lane.b32.xlu0 %v7089_v26, %s7328_s28  ;;  %v7091_v31 = vpop.eup %7090 }
0x306d   : > { %v7093_v32 = vpop.eup %7092  ;;  %v3872_v34 = vadd.f32 1.0, %v7091_v31 }
0x306e   : > { %v3871_v35 = vadd.f32 1.0, %v7093_v32 }
0x306f   : > { %3885 = vrot.lane.b32.xlu1 %v3880_v27, %s7327_s25  ;;  %7094 = vrcp.f32 %v3872_v34 }
0x3070   : > { %3883 = vrot.lane.b32.xlu0 %v3879_v28, %s7327_s25  ;;  %7096 = vrcp.f32 %v3871_v35 }
0x3079   : > { %v7095_v47 = vpop.eup %7094 }
0x307a   : > { %v7097_v37 = vpop.eup %7096 }
0x30dd   : > { %v3896_v36 = vpop.permute.xlu1 %3895 }
0x30de   : > { %v3900_v38 = vmul.f32 %v7095_v47, %v3896_v36  ;;  %v3894_v39 = vpop.permute.xlu0 %3893 }
0x30df   : > { %v3899_v40 = vmul.f32 %v7097_v37, %v3894_v39 }
0x30e0   : > { %3905 = vrot.lane.b32.xlu1 %v3900_v38, %s7328_s28  ;;  %v237_v38 = vld [vmem:[%s7385_s24 + $0x138] sm:$0xff] }
0x30e1   : > { %3903 = vrot.lane.b32.xlu0 %v3899_v40, %s7328_s28  ;;  %v3886_v41 = vpop.permute.xlu1 %3885 }
0x30e2   : > { %v3884_v42 = vpop.permute.xlu0 %3883  ;;  %v3890_v43 = vmul.f32 %v7095_v47, %v3886_v41 }
0x30e3   : > { %v3889_v44 = vmul.f32 %v7097_v37, %v3884_v42 }
0x3152   : > { %v3906_v45 = vpop.permute.xlu1 %3905 }
0x3153   : > { %v3910_v46 = vadd.f32 %v3906_v45, %v3890_v43  ;;  %v3904_v48 = vpop.permute.xlu0 %3903 }
0x3154   : > { %v3909_v49 = vadd.f32 %v3904_v48, %v3889_v44 }
0x3155   : > { %7098 = vtanh.f32 %v3910_v46 }
0x3156   : > { %7100 = vtanh.f32 %v3909_v49 }
0x315f   : > { %v7099_v51 = vpop.eup %7098 }
0x3160   : > { %v7101_v52 = vpop.eup %7100  ;;  %3917 = vrot.lane.b32.xlu1 %v7099_v51, %s7328_s28 }
0x3161   : > { %3915 = vrot.lane.b32.xlu0 %v7101_v52, %s7328_s28 }
0x31d2   : > { %v3918_v54 = vpop.permute.xlu1 %3917 }
0x31d3   : > { %v3922_v55 = vmul.f32 %v7095_v47, %v3918_v54  ;;  %v3916_v56 = vpop.permute.xlu0 %3915  ;;  %v236_v47 = vld [vmem:[%s7385_s24 + $0x130] sm:$0xff] }
0x31d4   : > { %v3921_v57 = vmul.f32 %v7097_v37, %v3916_v56  ;;  %6611 = vmatprep.mubr.msk.f32.mxu0 %vm268_vm1, %v236_v47 }
0x31d5   : > { %3946 = vst.msk [vmem:[%s7421_s5 + $0x118] sm:$0xff] %vm268_vm1, %v3922_v55  ;;  %3937 = vrot.lane.b32.xlu1 %v3922_v55, %s7327_s25  ;;  %6612 = vmatmul.mubr.msk.f32.gmra.mrb[38].mxu0 %vm268_vm1, %v237_v38 }
0x31d6   : > { %3945 = vst.msk [vmem:[%s7421_s5 + $0x110] sm:$0xff] %vm268_vm1, %v3921_v57  ;;  %3935 = vrot.lane.b32.xlu0 %v3921_v57, %s7327_s25 }
0x31d9   : > { %3927 = vrot.lane.b32.xlu1 %v3910_v46, %s7328_s28 }
0x31da   : > { %3925 = vrot.lane.b32.xlu0 %v3909_v49, %s7328_s28 }
0x3247   : > { %v3938_v58 = vpop.permute.xlu1 %3937 }
0x3248   : > { %3942 = vst.msk [vmem:[#allocation3 + $0x8] sm:$0xff] %vm1066_vm4, %v3938_v58  ;;  %v3936_v60 = vpop.permute.xlu0 %3935 }
0x3249   : > { %3944 = vst.msk [vmem:[#allocation3 + $0x9] sm:$0x7f] %vm1070_vm5, %v3922_v55 }
0x324a   : > { %3941 = vst.msk [vmem:[#allocation3] sm:$0xff] %vm1066_vm4, %v3936_v60 }
0x324b   : > { %3943 = vst.msk [vmem:[#allocation3 + $0x1] sm:$0xff] %vm268_vm1, %v3921_v57  ;;  %v3928_v9 = vpop.permute.xlu1 %3927 }
0x324c   : > { %3932 = vst.msk [vmem:[#allocation4 + $0x8] sm:$0xff] %vm268_vm1, %v3928_v9  ;;  %v3926_v61 = vpop.permute.xlu0 %3925 }
0x324d   : > { %3931 = vst.msk [vmem:[#allocation4] sm:$0xff] %vm268_vm1, %v3926_v61 }
0x3252   : > { %v3949_v62 = vld [vmem:[#allocation3] sm:$0xff]  ;;  %v3950_v63 = vld [vmem:[#allocation3 + $0x8] sm:$0xff] }
0x3253   : > { %6739 = vmatprep.mubr.msk.f32.mxu1 %vm897_vm2, %v3949_v62  ;;  %v4049_v14 = vld [vmem:[#allocation4 + $0x8] sm:$0xff] }
0x3254   : > { %6740 = vmatmul.mubr.msk.f32.vlgmr.msra.gmra.mrb[36].mxu1 %vm897_vm2, %v3950_v63  ;;  %v4048_v15 = vld [vmem:[#allocation4] sm:$0xff] }
0x3255   : > { %6743 = vmatpush3.msra.mxu1 %v7860_v10 }
0x3256   : > { %6747 = vmatprep.subr.mxu1 %v7860_v10 }
0x32a8   : > { %v6613_v50 = vpop.f32.mrb[38].mxu0 }
0x32a9   : > { %v721_v51 = vadd.f32 %v7901_v59, %v6613_v50  ;;  %v715_v52 = vpop.f32.mrb[39].mxu0 }
0x32aa   : > { %v716_v53 = vadd.f32 %v7901_v59, %v715_v52 }
0x32ab   : > { %874 = vst.msk [vmem:[#allocation2 + $0x138] sm:$0xff] %vm834_vm3, %v721_v51 }
0x32ac   : > { %873 = vst.msk [vmem:[#allocation2 + $0x130] sm:$0xff] %vm834_vm3, %v716_v53 }
0x32b2   : > { %v4117_v54 = vld [vmem:[#allocation2 + $0x138] sm:$0xff] }
0x32b3   : > { %v4116_v55 = vld [vmem:[#allocation2 + $0x130] sm:$0xff] }
0x3327   : > { %v6741_v7 = vpop.f32.mrb[36].mxu1 }
0x3328   : > { %v4033_v8 = vadd.f32 %v6741_v7, %v3948_v5  ;;  %v4023_v1 = vpop.f32.mrb[37].mxu1 }
0x3329   : > { %v4032_v11 = vadd.f32 %v4023_v1, %v3947_v6 }
0x332a   : > { %7102 = vtanh.f32 %v4033_v8  ;;  %v6345_v16 = vmul.f32 -1.442695, %v4033_v8 }
0x332b   : > { %7104 = vtanh.f32 %v4032_v11  ;;  %v6344_v17 = vmul.f32 -1.442695, %v4032_v11 }
0x332c   : > { %7106 = vpow2.f32 %v6345_v16 }
0x332d   : > { %7108 = vpow2.f32 %v6344_v17 }
0x3334   : > { %v7103_v12 = vpop.eup %7102 }
0x3335   : > { %v7105_v13 = vpop.eup %7104  ;;  %4064 = vrot.lane.b32.xlu1 %v7103_v12, %s7328_s28 }
0x3336   : > { %4062 = vrot.lane.b32.xlu0 %v7105_v13, %s7328_s28  ;;  %v7107_v18 = vpop.eup %7106 }
0x3337   : > { %v7109_v19 = vpop.eup %7108  ;;  %v4041_v20 = vadd.f32 1.0, %v7107_v18 }
0x3338   : > { %v4040_v21 = vadd.f32 1.0, %v7109_v19 }
0x3339   : > { %4054 = vrot.lane.b32.xlu1 %v4049_v14, %s7327_s25  ;;  %7110 = vrcp.f32 %v4041_v20 }
0x333a   : > { %4052 = vrot.lane.b32.xlu0 %v4048_v15, %s7327_s25  ;;  %7112 = vrcp.f32 %v4040_v21  ;;  %v238_v21 = vld [vmem:[%s7385_s24 + $0x140] sm:$0xff] }
0x333b   : > { %6614 = vmatprep.mubr.msk.f32.mxu0 %vm268_vm1, %v238_v21  ;;  %v8149_v21 = vld [vmem:[%s8495_s2] ss:$0 sm:$0xff] }
0x3343   : > { %v7111_v22 = vpop.eup %7110 }
0x3344   : > { %v7113_v23 = vpop.eup %7112 }
0x33a7   : > { %v4065_v33 = vpop.permute.xlu1 %4064 }
0x33a8   : > { %v4069_v24 = vmul.f32 %v7111_v22, %v4065_v33  ;;  %v4063_v25 = vpop.permute.xlu0 %4062 }
0x33a9   : > { %v4068_v26 = vmul.f32 %v7113_v23, %v4063_v25 }
0x33aa   : > { %4074 = vrot.lane.b32.xlu1 %v4069_v24, %s7328_s28 }
0x33ab   : > { %4072 = vrot.lane.b32.xlu0 %v4068_v26, %s7328_s28  ;;  %v4055_v27 = vpop.permute.xlu1 %4054 }
0x33ac   : > { %v4053_v28 = vpop.permute.xlu0 %4052  ;;  %v4059_v29 = vmul.f32 %v7111_v22, %v4055_v27 }
0x33ad   : > { %v4058_v30 = vmul.f32 %v7113_v23, %v4053_v28 }
0x341c   : > { %v4075_v31 = vpop.permute.xlu1 %4074 }
0x341d   : > { %v4079_v32 = vadd.f32 %v4075_v31, %v4059_v29  ;;  %v4073_v34 = vpop.permute.xlu0 %4072 }
0x341e   : > { %v4078_v35 = vadd.f32 %v4073_v34, %v4058_v30 }
0x341f   : > { %7114 = vtanh.f32 %v4079_v32 }
0x3420   : > { %7116 = vtanh.f32 %v4078_v35 }
0x3429   : > { %v7115_v36 = vpop.eup %7114 }
0x342a   : > { %v7117_v37 = vpop.eup %7116  ;;  %4086 = vrot.lane.b32.xlu1 %v7115_v36, %s7328_s28 }
0x342b   : > { %4084 = vrot.lane.b32.xlu0 %v7117_v37, %s7328_s28 }
0x349c   : > { %v4087_v39 = vpop.permute.xlu1 %4086 }
0x349d   : > { %v4091_v40 = vmul.f32 %v7111_v22, %v4087_v39  ;;  %v4085_v41 = vpop.permute.xlu0 %4084 }
0x349e   : > { %v4090_v42 = vmul.f32 %v7113_v23, %v4085_v41  ;;  %v239_v23 = vld [vmem:[%s7385_s24 + $0x148] sm:$0xff] }
0x349f   : > { %4115 = vst.msk [vmem:[%s7421_s5 + $0x128] sm:$0xff] %vm268_vm1, %v4091_v40  ;;  %4106 = vrot.lane.b32.xlu1 %v4091_v40, %s7327_s25  ;;  %6615 = vmatmul.mubr.msk.f32.gmra.mrb[40].mxu0 %vm268_vm1, %v239_v23 }
0x34a0   : > { %4114 = vst.msk [vmem:[%s7421_s5 + $0x120] sm:$0xff] %vm268_vm1, %v4090_v42  ;;  %4104 = vrot.lane.b32.xlu0 %v4090_v42, %s7327_s25 }
0x34a3   : > { %4096 = vrot.lane.b32.xlu1 %v4079_v32, %s7328_s28 }
0x34a4   : > { %4094 = vrot.lane.b32.xlu0 %v4078_v35, %s7328_s28  ;;  %v8108_v35 = vld [vmem:[%s8496_s3] sm:$0xff] }
0x3511   : > { %v4107_v43 = vpop.permute.xlu1 %4106 }
0x3512   : > { %4111 = vst.msk [vmem:[#allocation3 + $0x8] sm:$0xff] %vm1066_vm4, %v4107_v43  ;;  %v4105_v44 = vpop.permute.xlu0 %4104 }
0x3513   : > { %4113 = vst.msk [vmem:[#allocation3 + $0x9] sm:$0x7f] %vm1070_vm5, %v4091_v40 }
0x3514   : > { %4110 = vst.msk [vmem:[#allocation3] sm:$0xff] %vm1066_vm4, %v4105_v44 }
0x3515   : > { %4112 = vst.msk [vmem:[#allocation3 + $0x1] sm:$0xff] %vm268_vm1, %v4090_v42  ;;  %v4097_v45 = vpop.permute.xlu1 %4096 }
0x3516   : > { %4101 = vst.msk [vmem:[#allocation4 + $0x8] sm:$0xff] %vm268_vm1, %v4097_v45  ;;  %v4095_v46 = vpop.permute.xlu0 %4094 }
0x3517   : > { %4100 = vst.msk [vmem:[#allocation4] sm:$0xff] %vm268_vm1, %v4095_v46 }
0x351c   : > { %v4118_v48 = vld [vmem:[#allocation3] sm:$0xff]  ;;  %v4119_v49 = vld [vmem:[#allocation3 + $0x8] sm:$0xff] }
0x351d   : > { %6744 = vmatprep.mubr.msk.f32.mxu1 %vm897_vm2, %v4118_v48  ;;  %v4218_v61 = vld [vmem:[#allocation4 + $0x8] sm:$0xff] }
0x351e   : > { %6745 = vmatmul.mubr.msk.f32.vlgmr.msra.gmra.mrb[38].mxu1 %vm897_vm2, %v4119_v49  ;;  %v4217_v62 = vld [vmem:[#allocation4] sm:$0xff] }
0x351f   : > { %6748 = vmatpush3.msra.mxu1 %v7860_v10 }
0x3520   : > { %6752 = vmatprep.subr.mxu1 %v7860_v10 }
0x3572   : > { %v6616_v47 = vpop.f32.mrb[40].mxu0 }
0x3573   : > { %v731_v36 = vadd.f32 %v7901_v59, %v6616_v47  ;;  %v725_v37 = vpop.f32.mrb[41].mxu0 }
0x3574   : > { %v726_v38 = vadd.f32 %v7901_v59, %v725_v37 }
0x3575   : > { %876 = vst.msk [vmem:[#allocation2 + $0x148] sm:$0xff] %vm834_vm3, %v731_v36 }
0x3576   : > { %875 = vst.msk [vmem:[#allocation2 + $0x140] sm:$0xff] %vm834_vm3, %v726_v38 }
0x357c   : > { %v4286_v39 = vld [vmem:[#allocation2 + $0x148] sm:$0xff] }
0x357d   : > { %v4285_v40 = vld [vmem:[#allocation2 + $0x140] sm:$0xff] }
0x35f1   : > { %v6746_v56 = vpop.f32.mrb[38].mxu1 }
0x35f2   : > { %v4202_v57 = vadd.f32 %v6746_v56, %v4117_v54  ;;  %v4192_v58 = vpop.f32.mrb[39].mxu1 }
0x35f3   : > { %v4201_v60 = vadd.f32 %v4192_v58, %v4116_v55 }
0x35f4   : > { %7118 = vtanh.f32 %v4202_v57  ;;  %v6349_v63 = vmul.f32 -1.442695, %v4202_v57 }
0x35f5   : > { %7120 = vtanh.f32 %v4201_v60  ;;  %v6348_v0 = vmul.f32 -1.442695, %v4201_v60 }
0x35f6   : > { %7122 = vpow2.f32 %v6349_v63 }
0x35f7   : > { %7124 = vpow2.f32 %v6348_v0 }
0x35fe   : > { %v7119_v9 = vpop.eup %7118 }
0x35ff   : > { %v7121_v10 = vpop.eup %7120  ;;  %4233 = vrot.lane.b32.xlu1 %v7119_v9, %s7328_s28 }
0x3600   : > { %4231 = vrot.lane.b32.xlu0 %v7121_v10, %s7328_s28  ;;  %v7123_v2 = vpop.eup %7122 }
0x3601   : > { %v7125_v3 = vpop.eup %7124  ;;  %v4210_v4 = vadd.f32 1.0, %v7123_v2 }
0x3602   : > { %v4209_v5 = vadd.f32 1.0, %v7125_v3 }
0x3603   : > { %4223 = vrot.lane.b32.xlu1 %v4218_v61, %s7327_s25  ;;  %7126 = vrcp.f32 %v4210_v4 }
0x3604   : > { %4221 = vrot.lane.b32.xlu0 %v4217_v62, %s7327_s25  ;;  %7128 = vrcp.f32 %v4209_v5  ;;  %v240_v5 = vld [vmem:[%s7385_s24 + $0x150] sm:$0xff] }
0x3605   : > { %6617 = vmatprep.mubr.msk.f32.mxu0 %vm268_vm1, %v240_v5 }
0x360d   : > { %v7127_v6 = vpop.eup %7126 }
0x360e   : > { %v7129_v8 = vpop.eup %7128 }
0x3671   : > { %v4234_v7 = vpop.permute.xlu1 %4233 }
0x3672   : > { %v4238_v1 = vmul.f32 %v7127_v6, %v4234_v7  ;;  %v4232_v11 = vpop.permute.xlu0 %4231 }
0x3673   : > { %v4237_v12 = vmul.f32 %v7129_v8, %v4232_v11 }
0x3674   : > { %4243 = vrot.lane.b32.xlu1 %v4238_v1, %s7328_s28 }
0x3675   : > { %4241 = vrot.lane.b32.xlu0 %v4237_v12, %s7328_s28  ;;  %v4224_v13 = vpop.permute.xlu1 %4223 }
0x3676   : > { %v4222_v14 = vpop.permute.xlu0 %4221  ;;  %v4228_v15 = vmul.f32 %v7127_v6, %v4224_v13 }
0x3677   : > { %v4227_v16 = vmul.f32 %v7129_v8, %v4222_v14 }
0x36e6   : > { %v4244_v17 = vpop.permute.xlu1 %4243 }
0x36e7   : > { %v4248_v18 = vadd.f32 %v4244_v17, %v4228_v15  ;;  %v4242_v19 = vpop.permute.xlu0 %4241 }
0x36e8   : > { %v4247_v20 = vadd.f32 %v4242_v19, %v4227_v16 }
0x36e9   : > { %7130 = vtanh.f32 %v4248_v18 }
0x36ea   : > { %7132 = vtanh.f32 %v4247_v20 }
0x36f3   : > { %v7131_v22 = vpop.eup %7130 }
0x36f4   : > { %v7133_v33 = vpop.eup %7132  ;;  %4255 = vrot.lane.b32.xlu1 %v7131_v22, %s7328_s28 }
0x36f5   : > { %4253 = vrot.lane.b32.xlu0 %v7133_v33, %s7328_s28 }
0x3766   : > { %v4256_v24 = vpop.permute.xlu1 %4255 }
0x3767   : > { %v4260_v25 = vmul.f32 %v7127_v6, %v4256_v24  ;;  %v4254_v26 = vpop.permute.xlu0 %4253 }
0x3768   : > { %v4259_v27 = vmul.f32 %v7129_v8, %v4254_v26  ;;  %v241_v8 = vld [vmem:[%s7385_s24 + $0x158] sm:$0xff] }
0x3769   : > { %4284 = vst.msk [vmem:[%s7421_s5 + $0x138] sm:$0xff] %vm268_vm1, %v4260_v25  ;;  %4275 = vrot.lane.b32.xlu1 %v4260_v25, %s7327_s25  ;;  %6618 = vmatmul.mubr.msk.f32.gmra.mrb[42].mxu0 %vm268_vm1, %v241_v8 }
0x376a   : > { %4283 = vst.msk [vmem:[%s7421_s5 + $0x130] sm:$0xff] %vm268_vm1, %v4259_v27  ;;  %4273 = vrot.lane.b32.xlu0 %v4259_v27, %s7327_s25 }
0x376d   : > { %4265 = vrot.lane.b32.xlu1 %v4248_v18, %s7328_s28 }
0x376e   : > { %4263 = vrot.lane.b32.xlu0 %v4247_v20, %s7328_s28 }
0x37db   : > { %v4276_v28 = vpop.permute.xlu1 %4275 }
0x37dc   : > { %4280 = vst.msk [vmem:[#allocation3 + $0x8] sm:$0xff] %vm1066_vm4, %v4276_v28  ;;  %v4274_v29 = vpop.permute.xlu0 %4273 }
0x37dd   : > { %4282 = vst.msk [vmem:[#allocation3 + $0x9] sm:$0x7f] %vm1070_vm5, %v4260_v25 }
0x37de   : > { %4279 = vst.msk [vmem:[#allocation3] sm:$0xff] %vm1066_vm4, %v4274_v29 }
0x37df   : > { %4281 = vst.msk [vmem:[#allocation3 + $0x1] sm:$0xff] %vm268_vm1, %v4259_v27  ;;  %v4266_v30 = vpop.permute.xlu1 %4265 }
0x37e0   : > { %4270 = vst.msk [vmem:[#allocation4 + $0x8] sm:$0xff] %vm268_vm1, %v4266_v30  ;;  %v4264_v31 = vpop.permute.xlu0 %4263 }
0x37e1   : > { %4269 = vst.msk [vmem:[#allocation4] sm:$0xff] %vm268_vm1, %v4264_v31 }
0x37e6   : > { %v4287_v32 = vld [vmem:[#allocation3] sm:$0xff]  ;;  %v4288_v34 = vld [vmem:[#allocation3 + $0x8] sm:$0xff] }
0x37e7   : > { %6749 = vmatprep.mubr.msk.f32.mxu1 %vm897_vm2, %v4287_v32  ;;  %v4387_v48 = vld [vmem:[#allocation4 + $0x8] sm:$0xff] }
0x37e8   : > { %6750 = vmatmul.mubr.msk.f32.vlgmr.msra.gmra.mrb[40].mxu1 %vm897_vm2, %v4288_v34  ;;  %v4386_v59 = vld [vmem:[#allocation4] sm:$0xff] }
0x37e9   : > { %6753 = vmatpush3.msra.mxu1 %v8108_v35 }
0x37ea   : > { %6757 = vmatprep.subr.mxu1 %v8108_v35 }
0x383c   : > { %v6619_v20 = vpop.f32.mrb[42].mxu0 }
0x383d   : > { %v741_v22 = vadd.f32 %v8149_v21, %v6619_v20  ;;  %v735_v33 = vpop.f32.mrb[43].mxu0 }
0x383e   : > { %v736_v23 = vadd.f32 %v8149_v21, %v735_v33 }
0x383f   : > { %878 = vst.msk [vmem:[#allocation2 + $0x158] sm:$0xff] %vm834_vm3, %v741_v22 }
0x3840   : > { %877 = vst.msk [vmem:[#allocation2 + $0x150] sm:$0xff] %vm834_vm3, %v736_v23 }
0x3846   : > { %v4455_v24 = vld [vmem:[#allocation2 + $0x158] sm:$0xff] }
0x3847   : > { %v4454_v25 = vld [vmem:[#allocation2 + $0x150] sm:$0xff] }
0x38bb   : > { %v6751_v41 = vpop.f32.mrb[40].mxu1 }
0x38bc   : > { %v4371_v42 = vadd.f32 %v6751_v41, %v4286_v39  ;;  %v4361_v43 = vpop.f32.mrb[41].mxu1 }
0x38bd   : > { %v4370_v44 = vadd.f32 %v4361_v43, %v4285_v40 }
0x38be   : > { %7134 = vtanh.f32 %v4371_v42  ;;  %v6353_v49 = vmul.f32 -1.442695, %v4371_v42 }
0x38bf   : > { %7136 = vtanh.f32 %v4370_v44  ;;  %v6352_v50 = vmul.f32 -1.442695, %v4370_v44 }
0x38c0   : > { %7138 = vpow2.f32 %v6353_v49 }
0x38c1   : > { %7140 = vpow2.f32 %v6352_v50 }
0x38c8   : > { %v7135_v45 = vpop.eup %7134 }
0x38c9   : > { %v7137_v46 = vpop.eup %7136  ;;  %4402 = vrot.lane.b32.xlu1 %v7135_v45, %s7328_s28 }
0x38ca   : > { %4400 = vrot.lane.b32.xlu0 %v7137_v46, %s7328_s28  ;;  %v7139_v51 = vpop.eup %7138 }
0x38cb   : > { %v7141_v52 = vpop.eup %7140  ;;  %v4379_v53 = vadd.f32 1.0, %v7139_v51 }
0x38cc   : > { %v4378_v54 = vadd.f32 1.0, %v7141_v52 }
0x38cd   : > { %4392 = vrot.lane.b32.xlu1 %v4387_v48, %s7327_s25  ;;  %7142 = vrcp.f32 %v4379_v53 }
0x38ce   : > { %4390 = vrot.lane.b32.xlu0 %v4386_v59, %s7327_s25  ;;  %7144 = vrcp.f32 %v4378_v54 }
0x38d7   : > { %v7143_v55 = vpop.eup %7142 }
0x38d8   : > { %v7145_v57 = vpop.eup %7144 }
0x393b   : > { %v4403_v56 = vpop.permute.xlu1 %4402 }
0x393c   : > { %v4407_v58 = vmul.f32 %v7143_v55, %v4403_v56  ;;  %v4401_v60 = vpop.permute.xlu0 %4400 }
0x393d   : > { %v4406_v9 = vmul.f32 %v7145_v57, %v4401_v60 }
0x393e   : > { %4412 = vrot.lane.b32.xlu1 %v4407_v58, %s7328_s28  ;;  %v243_v58 = vld [vmem:[%s7385_s24 + $0x168] sm:$0xff] }
0x393f   : > { %4410 = vrot.lane.b32.xlu0 %v4406_v9, %s7328_s28  ;;  %v4393_v10 = vpop.permute.xlu1 %4392 }
0x3940   : > { %v4391_v61 = vpop.permute.xlu0 %4390  ;;  %v4397_v62 = vmul.f32 %v7143_v55, %v4393_v10 }
0x3941   : > { %v4396_v63 = vmul.f32 %v7145_v57, %v4391_v61 }
0x39b0   : > { %v4413_v0 = vpop.permute.xlu1 %4412 }
0x39b1   : > { %v4417_v2 = vadd.f32 %v4413_v0, %v4397_v62  ;;  %v4411_v3 = vpop.permute.xlu0 %4410 }
0x39b2   : > { %v4416_v4 = vadd.f32 %v4411_v3, %v4396_v63 }
0x39b3   : > { %7146 = vtanh.f32 %v4417_v2 }
0x39b4   : > { %7148 = vtanh.f32 %v4416_v4 }
0x39bd   : > { %v7147_v6 = vpop.eup %7146 }
0x39be   : > { %v7149_v7 = vpop.eup %7148  ;;  %4424 = vrot.lane.b32.xlu1 %v7147_v6, %s7328_s28 }
0x39bf   : > { %4422 = vrot.lane.b32.xlu0 %v7149_v7, %s7328_s28 }
0x3a30   : > { %v4425_v1 = vpop.permute.xlu1 %4424 }
0x3a31   : > { %v4429_v11 = vmul.f32 %v7143_v55, %v4425_v1  ;;  %v4423_v12 = vpop.permute.xlu0 %4422  ;;  %v242_v55 = vld [vmem:[%s7385_s24 + $0x160] sm:$0xff] }
0x3a32   : > { %v4428_v13 = vmul.f32 %v7145_v57, %v4423_v12  ;;  %6620 = vmatprep.mubr.msk.f32.mxu0 %vm268_vm1, %v242_v55 }
0x3a33   : > { %4453 = vst.msk [vmem:[%s7421_s5 + $0x148] sm:$0xff] %vm268_vm1, %v4429_v11  ;;  %4444 = vrot.lane.b32.xlu1 %v4429_v11, %s7327_s25  ;;  %6621 = vmatmul.mubr.msk.f32.gmra.mrb[44].mxu0 %vm268_vm1, %v243_v58 }
0x3a34   : > { %4452 = vst.msk [vmem:[%s7421_s5 + $0x140] sm:$0xff] %vm268_vm1, %v4428_v13  ;;  %4442 = vrot.lane.b32.xlu0 %v4428_v13, %s7327_s25 }
0x3a37   : > { %4434 = vrot.lane.b32.xlu1 %v4417_v2, %s7328_s28 }
0x3a38   : > { %4432 = vrot.lane.b32.xlu0 %v4416_v4, %s7328_s28 }
0x3aa5   : > { %v4445_v14 = vpop.permute.xlu1 %4444 }
0x3aa6   : > { %4449 = vst.msk [vmem:[#allocation3 + $0x8] sm:$0xff] %vm1066_vm4, %v4445_v14  ;;  %v4443_v15 = vpop.permute.xlu0 %4442 }
0x3aa7   : > { %4451 = vst.msk [vmem:[#allocation3 + $0x9] sm:$0x7f] %vm1070_vm5, %v4429_v11 }
0x3aa8   : > { %4448 = vst.msk [vmem:[#allocation3] sm:$0xff] %vm1066_vm4, %v4443_v15 }
0x3aa9   : > { %4450 = vst.msk [vmem:[#allocation3 + $0x1] sm:$0xff] %vm268_vm1, %v4428_v13  ;;  %v4435_v16 = vpop.permute.xlu1 %4434 }
0x3aaa   : > { %4439 = vst.msk [vmem:[#allocation4 + $0x8] sm:$0xff] %vm268_vm1, %v4435_v16  ;;  %v4433_v17 = vpop.permute.xlu0 %4432 }
0x3aab   : > { %4438 = vst.msk [vmem:[#allocation4] sm:$0xff] %vm268_vm1, %v4433_v17 }
0x3ab0   : > { %v4456_v18 = vld [vmem:[#allocation3] sm:$0xff]  ;;  %v4457_v19 = vld [vmem:[#allocation3 + $0x8] sm:$0xff] }
0x3ab1   : > { %6754 = vmatprep.mubr.msk.f32.mxu1 %vm897_vm2, %v4456_v18  ;;  %v4556_v32 = vld [vmem:[#allocation4 + $0x8] sm:$0xff] }
0x3ab2   : > { %6755 = vmatmul.mubr.msk.f32.vlgmr.msra.gmra.mrb[42].mxu1 %vm897_vm2, %v4457_v19  ;;  %v4555_v34 = vld [vmem:[#allocation4] sm:$0xff] }
0x3ab3   : > { %6758 = vmatpush3.msra.mxu1 %v8108_v35 }
0x3ab4   : > { %6762 = vmatprep.subr.mxu1 %v8108_v35 }
0x3b06   : > { %v6622_v5 = vpop.f32.mrb[44].mxu0 }
0x3b07   : > { %v751_v6 = vadd.f32 %v8149_v21, %v6622_v5  ;;  %v745_v7 = vpop.f32.mrb[45].mxu0 }
0x3b08   : > { %v746_v8 = vadd.f32 %v8149_v21, %v745_v7 }
0x3b09   : > { %880 = vst.msk [vmem:[#allocation2 + $0x168] sm:$0xff] %vm834_vm3, %v751_v6 }
0x3b0a   : > { %879 = vst.msk [vmem:[#allocation2 + $0x160] sm:$0xff] %vm834_vm3, %v746_v8 }
0x3b10   : > { %v4624_v1 = vld [vmem:[#allocation2 + $0x168] sm:$0xff] }
0x3b11   : > { %v4623_v11 = vld [vmem:[#allocation2 + $0x160] sm:$0xff] }
0x3b85   : > { %v6756_v26 = vpop.f32.mrb[42].mxu1 }
0x3b86   : > { %v4540_v27 = vadd.f32 %v6756_v26, %v4455_v24  ;;  %v4530_v28 = vpop.f32.mrb[43].mxu1 }
0x3b87   : > { %v4539_v29 = vadd.f32 %v4530_v28, %v4454_v25 }
0x3b88   : > { %7150 = vtanh.f32 %v4540_v27  ;;  %v6357_v47 = vmul.f32 -1.442695, %v4540_v27 }
0x3b89   : > { %7152 = vtanh.f32 %v4539_v29  ;;  %v6356_v36 = vmul.f32 -1.442695, %v4539_v29 }
0x3b8a   : > { %7154 = vpow2.f32 %v6357_v47 }
0x3b8b   : > { %7156 = vpow2.f32 %v6356_v36 }
0x3b92   : > { %v7151_v30 = vpop.eup %7150 }
0x3b93   : > { %v7153_v31 = vpop.eup %7152  ;;  %4571 = vrot.lane.b32.xlu1 %v7151_v30, %s7328_s28 }
0x3b94   : > { %4569 = vrot.lane.b32.xlu0 %v7153_v31, %s7328_s28  ;;  %v7155_v37 = vpop.eup %7154 }
0x3b95   : > { %v7157_v38 = vpop.eup %7156  ;;  %v4548_v39 = vadd.f32 1.0, %v7155_v37 }
0x3b96   : > { %v4547_v40 = vadd.f32 1.0, %v7157_v38 }
0x3b97   : > { %4561 = vrot.lane.b32.xlu1 %v4556_v32, %s7327_s25  ;;  %7158 = vrcp.f32 %v4548_v39 }
0x3b98   : > { %4559 = vrot.lane.b32.xlu0 %v4555_v34, %s7327_s25  ;;  %7160 = vrcp.f32 %v4547_v40 }
0x3ba1   : > { %v7159_v41 = vpop.eup %7158 }
0x3ba2   : > { %v7161_v43 = vpop.eup %7160 }
0x3c05   : > { %v4572_v42 = vpop.permute.xlu1 %4571 }
0x3c06   : > { %v4576_v44 = vmul.f32 %v7159_v41, %v4572_v42  ;;  %v4570_v45 = vpop.permute.xlu0 %4569 }
0x3c07   : > { %v4575_v46 = vmul.f32 %v7161_v43, %v4570_v45 }
0x3c08   : > { %4581 = vrot.lane.b32.xlu1 %v4576_v44, %s7328_s28  ;;  %v245_v44 = vld [vmem:[%s7385_s24 + $0x178] sm:$0xff] }
0x3c09   : > { %4579 = vrot.lane.b32.xlu0 %v4575_v46, %s7328_s28  ;;  %v4562_v48 = vpop.permute.xlu1 %4561 }
0x3c0a   : > { %v4560_v59 = vpop.permute.xlu0 %4559  ;;  %v4566_v49 = vmul.f32 %v7159_v41, %v4562_v48 }
0x3c0b   : > { %v4565_v50 = vmul.f32 %v7161_v43, %v4560_v59 }
0x3c7a   : > { %v4582_v51 = vpop.permute.xlu1 %4581 }
0x3c7b   : > { %v4586_v52 = vadd.f32 %v4582_v51, %v4566_v49  ;;  %v4580_v53 = vpop.permute.xlu0 %4579 }
0x3c7c   : > { %v4585_v54 = vadd.f32 %v4580_v53, %v4565_v50 }
0x3c7d   : > { %7162 = vtanh.f32 %v4586_v52 }
0x3c7e   : > { %7164 = vtanh.f32 %v4585_v54 }
0x3c87   : > { %v7163_v56 = vpop.eup %7162 }
0x3c88   : > { %v7165_v57 = vpop.eup %7164  ;;  %4593 = vrot.lane.b32.xlu1 %v7163_v56, %s7328_s28 }
0x3c89   : > { %4591 = vrot.lane.b32.xlu0 %v7165_v57, %s7328_s28 }
0x3cfa   : > { %v4594_v60 = vpop.permute.xlu1 %4593 }
0x3cfb   : > { %v4598_v9 = vmul.f32 %v7159_v41, %v4594_v60  ;;  %v4592_v10 = vpop.permute.xlu0 %4591  ;;  %v244_v41 = vld [vmem:[%s7385_s24 + $0x170] sm:$0xff] }
0x3cfc   : > { %v4597_v61 = vmul.f32 %v7161_v43, %v4592_v10  ;;  %6623 = vmatprep.mubr.msk.f32.mxu0 %vm268_vm1, %v244_v41 }
0x3cfd   : > { %4622 = vst.msk [vmem:[%s7421_s5 + $0x158] sm:$0xff] %vm268_vm1, %v4598_v9  ;;  %4613 = vrot.lane.b32.xlu1 %v4598_v9, %s7327_s25  ;;  %6624 = vmatmul.mubr.msk.f32.gmra.mrb[46].mxu0 %vm268_vm1, %v245_v44 }
0x3cfe   : > { %4621 = vst.msk [vmem:[%s7421_s5 + $0x150] sm:$0xff] %vm268_vm1, %v4597_v61  ;;  %4611 = vrot.lane.b32.xlu0 %v4597_v61, %s7327_s25 }
0x3d01   : > { %4603 = vrot.lane.b32.xlu1 %v4586_v52, %s7328_s28 }
0x3d02   : > { %4601 = vrot.lane.b32.xlu0 %v4585_v54, %s7328_s28 }
0x3d6f   : > { %v4614_v62 = vpop.permute.xlu1 %4613 }
0x3d70   : > { %4618 = vst.msk [vmem:[#allocation3 + $0x8] sm:$0xff] %vm1066_vm4, %v4614_v62  ;;  %v4612_v63 = vpop.permute.xlu0 %4611 }
0x3d71   : > { %4620 = vst.msk [vmem:[#allocation3 + $0x9] sm:$0x7f] %vm1070_vm5, %v4598_v9 }
0x3d72   : > { %4617 = vst.msk [vmem:[#allocation3] sm:$0xff] %vm1066_vm4, %v4612_v63 }
0x3d73   : > { %4619 = vst.msk [vmem:[#allocation3 + $0x1] sm:$0xff] %vm268_vm1, %v4597_v61  ;;  %v4604_v0 = vpop.permute.xlu1 %4603 }
0x3d74   : > { %4608 = vst.msk [vmem:[#allocation4 + $0x8] sm:$0xff] %vm268_vm1, %v4604_v0  ;;  %v4602_v2 = vpop.permute.xlu0 %4601 }
0x3d75   : > { %4607 = vst.msk [vmem:[#allocation4] sm:$0xff] %vm268_vm1, %v4602_v2 }
0x3d7a   : > { %v4625_v3 = vld [vmem:[#allocation3] sm:$0xff]  ;;  %v4626_v4 = vld [vmem:[#allocation3 + $0x8] sm:$0xff] }
0x3d7b   : > { %6759 = vmatprep.mubr.msk.f32.mxu1 %vm897_vm2, %v4625_v3  ;;  %v4725_v18 = vld [vmem:[#allocation4 + $0x8] sm:$0xff] }
0x3d7c   : > { %6760 = vmatmul.mubr.msk.f32.vlgmr.msra.gmra.mrb[44].mxu1 %vm897_vm2, %v4626_v4  ;;  %v4724_v19 = vld [vmem:[#allocation4] sm:$0xff] }
0x3d7d   : > { %6763 = vmatpush3.msra.mxu1 %v8108_v35 }
0x3d7e   : > { %6767 = vmatprep.subr.mxu1 %v8108_v35 }
0x3dd0   : > { %v6625_v55 = vpop.f32.mrb[46].mxu0 }
0x3dd1   : > { %v761_v56 = vadd.f32 %v8149_v21, %v6625_v55  ;;  %v755_v57 = vpop.f32.mrb[47].mxu0 }
0x3dd2   : > { %v756_v58 = vadd.f32 %v8149_v21, %v755_v57 }
0x3dd3   : > { %882 = vst.msk [vmem:[#allocation2 + $0x178] sm:$0xff] %vm834_vm3, %v761_v56 }
0x3dd4   : > { %881 = vst.msk [vmem:[#allocation2 + $0x170] sm:$0xff] %vm834_vm3, %v756_v58 }
0x3dda   : > { %v4793_v60 = vld [vmem:[#allocation2 + $0x178] sm:$0xff] }
0x3ddb   : > { %v4792_v9 = vld [vmem:[#allocation2 + $0x170] sm:$0xff] }
0x3e4f   : > { %v6761_v12 = vpop.f32.mrb[44].mxu1 }
0x3e50   : > { %v4709_v13 = vadd.f32 %v6761_v12, %v4624_v1  ;;  %v4699_v14 = vpop.f32.mrb[45].mxu1 }
0x3e51   : > { %v4708_v15 = vadd.f32 %v4699_v14, %v4623_v11 }
0x3e52   : > { %7166 = vtanh.f32 %v4709_v13  ;;  %v6361_v20 = vmul.f32 -1.442695, %v4709_v13 }
0x3e53   : > { %7168 = vtanh.f32 %v4708_v15  ;;  %v6360_v22 = vmul.f32 -1.442695, %v4708_v15 }
0x3e54   : > { %7170 = vpow2.f32 %v6361_v20 }
0x3e55   : > { %7172 = vpow2.f32 %v6360_v22 }
0x3e5c   : > { %v7167_v16 = vpop.eup %7166 }
0x3e5d   : > { %v7169_v17 = vpop.eup %7168  ;;  %4740 = vrot.lane.b32.xlu1 %v7167_v16, %s7328_s28 }
0x3e5e   : > { %4738 = vrot.lane.b32.xlu0 %v7169_v17, %s7328_s28  ;;  %v7171_v33 = vpop.eup %7170 }
0x3e5f   : > { %v7173_v23 = vpop.eup %7172  ;;  %v4717_v24 = vadd.f32 1.0, %v7171_v33 }
0x3e60   : > { %v4716_v25 = vadd.f32 1.0, %v7173_v23 }
0x3e61   : > { %4730 = vrot.lane.b32.xlu1 %v4725_v18, %s7327_s25  ;;  %7174 = vrcp.f32 %v4717_v24 }
0x3e62   : > { %4728 = vrot.lane.b32.xlu0 %v4724_v19, %s7327_s25  ;;  %7176 = vrcp.f32 %v4716_v25 }
0x3e6b   : > { %v7175_v26 = vpop.eup %7174 }
0x3e6c   : > { %v7177_v28 = vpop.eup %7176 }
0x3ecf   : > { %v4741_v27 = vpop.permute.xlu1 %4740 }
0x3ed0   : > { %v4745_v29 = vmul.f32 %v7175_v26, %v4741_v27  ;;  %v4739_v30 = vpop.permute.xlu0 %4738 }
0x3ed1   : > { %v4744_v31 = vmul.f32 %v7177_v28, %v4739_v30 }
0x3ed2   : > { %4750 = vrot.lane.b32.xlu1 %v4745_v29, %s7328_s28  ;;  %v247_v29 = vld [vmem:[%s7385_s24 + $0x188] sm:$0xff] }
0x3ed3   : > { %4748 = vrot.lane.b32.xlu0 %v4744_v31, %s7328_s28  ;;  %v4731_v32 = vpop.permute.xlu1 %4730 }
0x3ed4   : > { %v4729_v34 = vpop.permute.xlu0 %4728  ;;  %v4735_v47 = vmul.f32 %v7175_v26, %v4731_v32 }
0x3ed5   : > { %v4734_v36 = vmul.f32 %v7177_v28, %v4729_v34 }
0x3f44   : > { %v4751_v37 = vpop.permute.xlu1 %4750 }
0x3f45   : > { %v4755_v38 = vadd.f32 %v4751_v37, %v4735_v47  ;;  %v4749_v39 = vpop.permute.xlu0 %4748 }
0x3f46   : > { %v4754_v40 = vadd.f32 %v4749_v39, %v4734_v36 }
0x3f47   : > { %7178 = vtanh.f32 %v4755_v38 }
0x3f48   : > { %7180 = vtanh.f32 %v4754_v40 }
0x3f51   : > { %v7179_v42 = vpop.eup %7178 }
0x3f52   : > { %v7181_v43 = vpop.eup %7180  ;;  %4762 = vrot.lane.b32.xlu1 %v7179_v42, %s7328_s28 }
0x3f53   : > { %4760 = vrot.lane.b32.xlu0 %v7181_v43, %s7328_s28 }
0x3fc4   : > { %v4763_v45 = vpop.permute.xlu1 %4762 }
0x3fc5   : > { %v4767_v46 = vmul.f32 %v7175_v26, %v4763_v45  ;;  %v4761_v48 = vpop.permute.xlu0 %4760  ;;  %v246_v26 = vld [vmem:[%s7385_s24 + $0x180] sm:$0xff] }
0x3fc6   : > { %v4766_v59 = vmul.f32 %v7177_v28, %v4761_v48  ;;  %6626 = vmatprep.mubr.msk.f32.mxu0 %vm268_vm1, %v246_v26 }
0x3fc7   : > { %4791 = vst.msk [vmem:[%s7421_s5 + $0x168] sm:$0xff] %vm268_vm1, %v4767_v46  ;;  %4782 = vrot.lane.b32.xlu1 %v4767_v46, %s7327_s25  ;;  %6627 = vmatmul.mubr.msk.f32.gmra.mrb[48].mxu0 %vm268_vm1, %v247_v29 }
0x3fc8   : > { %4790 = vst.msk [vmem:[%s7421_s5 + $0x160] sm:$0xff] %vm268_vm1, %v4766_v59  ;;  %4780 = vrot.lane.b32.xlu0 %v4766_v59, %s7327_s25 }
0x3fcb   : > { %4772 = vrot.lane.b32.xlu1 %v4755_v38, %s7328_s28 }
0x3fcc   : > { %4770 = vrot.lane.b32.xlu0 %v4754_v40, %s7328_s28 }
0x4039   : > { %v4783_v49 = vpop.permute.xlu1 %4782 }
0x403a   : > { %4787 = vst.msk [vmem:[#allocation3 + $0x8] sm:$0xff] %vm1066_vm4, %v4783_v49  ;;  %v4781_v50 = vpop.permute.xlu0 %4780 }
0x403b   : > { %4789 = vst.msk [vmem:[#allocation3 + $0x9] sm:$0x7f] %vm1070_vm5, %v4767_v46 }
0x403c   : > { %4786 = vst.msk [vmem:[#allocation3] sm:$0xff] %vm1066_vm4, %v4781_v50 }
0x403d   : > { %4788 = vst.msk [vmem:[#allocation3 + $0x1] sm:$0xff] %vm268_vm1, %v4766_v59  ;;  %v4773_v51 = vpop.permute.xlu1 %4772 }
0x403e   : > { %4777 = vst.msk [vmem:[#allocation4 + $0x8] sm:$0xff] %vm268_vm1, %v4773_v51  ;;  %v4771_v52 = vpop.permute.xlu0 %4770 }
0x403f   : > { %4776 = vst.msk [vmem:[#allocation4] sm:$0xff] %vm268_vm1, %v4771_v52 }
0x4044   : > { %v4794_v53 = vld [vmem:[#allocation3] sm:$0xff]  ;;  %v4795_v54 = vld [vmem:[#allocation3 + $0x8] sm:$0xff] }
0x4045   : > { %6764 = vmatprep.mubr.msk.f32.mxu1 %vm897_vm2, %v4794_v53  ;;  %v4894_v3 = vld [vmem:[#allocation4 + $0x8] sm:$0xff] }
0x4046   : > { %6765 = vmatmul.mubr.msk.f32.vlgmr.msra.gmra.mrb[46].mxu1 %vm897_vm2, %v4795_v54  ;;  %v4893_v4 = vld [vmem:[#allocation4] sm:$0xff] }
0x4047   : > { %6768 = vmatpush3.msra.mxu1 %v8108_v35 }
0x4048   : > { %6772 = vmatprep.subr.mxu1 %v8108_v35 }
0x409a   : > { %v6628_v41 = vpop.f32.mrb[48].mxu0 }
0x409b   : > { %v771_v42 = vadd.f32 %v8149_v21, %v6628_v41  ;;  %v765_v43 = vpop.f32.mrb[49].mxu0 }
0x409c   : > { %v766_v44 = vadd.f32 %v8149_v21, %v765_v43 }
0x409d   : > { %884 = vst.msk [vmem:[#allocation2 + $0x188] sm:$0xff] %vm834_vm3, %v771_v42 }
0x409e   : > { %883 = vst.msk [vmem:[#allocation2 + $0x180] sm:$0xff] %vm834_vm3, %v766_v44 }
0x40a4   : > { %v4962_v45 = vld [vmem:[#allocation2 + $0x188] sm:$0xff] }
0x40a5   : > { %v4961_v46 = vld [vmem:[#allocation2 + $0x180] sm:$0xff] }
0x4119   : > { %v6766_v10 = vpop.f32.mrb[46].mxu1 }
0x411a   : > { %v4878_v61 = vadd.f32 %v6766_v10, %v4793_v60  ;;  %v4868_v62 = vpop.f32.mrb[47].mxu1 }
0x411b   : > { %v4877_v63 = vadd.f32 %v4868_v62, %v4792_v9 }
0x411c   : > { %7182 = vtanh.f32 %v4878_v61  ;;  %v6365_v5 = vmul.f32 -1.442695, %v4878_v61 }
0x411d   : > { %7184 = vtanh.f32 %v4877_v63  ;;  %v6364_v6 = vmul.f32 -1.442695, %v4877_v63 }
0x411e   : > { %7186 = vpow2.f32 %v6365_v5 }
0x411f   : > { %7188 = vpow2.f32 %v6364_v6 }
0x4126   : > { %v7183_v0 = vpop.eup %7182 }
0x4127   : > { %v7185_v2 = vpop.eup %7184  ;;  %4909 = vrot.lane.b32.xlu1 %v7183_v0, %s7328_s28 }
0x4128   : > { %4907 = vrot.lane.b32.xlu0 %v7185_v2, %s7328_s28  ;;  %v7187_v7 = vpop.eup %7186 }
0x4129   : > { %v7189_v8 = vpop.eup %7188  ;;  %v4886_v1 = vadd.f32 1.0, %v7187_v7 }
0x412a   : > { %v4885_v11 = vadd.f32 1.0, %v7189_v8 }
0x412b   : > { %4899 = vrot.lane.b32.xlu1 %v4894_v3, %s7327_s25  ;;  %7190 = vrcp.f32 %v4886_v1 }
0x412c   : > { %4897 = vrot.lane.b32.xlu0 %v4893_v4, %s7327_s25  ;;  %7192 = vrcp.f32 %v4885_v11 }
0x4135   : > { %v7191_v12 = vpop.eup %7190 }
0x4136   : > { %v7193_v14 = vpop.eup %7192 }
0x4199   : > { %v4910_v13 = vpop.permute.xlu1 %4909 }
0x419a   : > { %v4914_v15 = vmul.f32 %v7191_v12, %v4910_v13  ;;  %v4908_v16 = vpop.permute.xlu0 %4907 }
0x419b   : > { %v4913_v17 = vmul.f32 %v7193_v14, %v4908_v16 }
0x419c   : > { %4919 = vrot.lane.b32.xlu1 %v4914_v15, %s7328_s28  ;;  %v249_v15 = vld [vmem:[%s7385_s24 + $0x198] sm:$0xff] }
0x419d   : > { %4917 = vrot.lane.b32.xlu0 %v4913_v17, %s7328_s28  ;;  %v4900_v18 = vpop.permute.xlu1 %4899 }
0x419e   : > { %v4898_v19 = vpop.permute.xlu0 %4897  ;;  %v4904_v20 = vmul.f32 %v7191_v12, %v4900_v18 }
0x419f   : > { %v4903_v22 = vmul.f32 %v7193_v14, %v4898_v19 }
0x420e   : > { %v4920_v33 = vpop.permute.xlu1 %4919 }
0x420f   : > { %v4924_v23 = vadd.f32 %v4920_v33, %v4904_v20  ;;  %v4918_v24 = vpop.permute.xlu0 %4917 }
0x4210   : > { %v4923_v25 = vadd.f32 %v4918_v24, %v4903_v22 }
0x4211   : > { %7194 = vtanh.f32 %v4924_v23 }
0x4212   : > { %7196 = vtanh.f32 %v4923_v25 }
0x421b   : > { %v7195_v27 = vpop.eup %7194 }
0x421c   : > { %v7197_v28 = vpop.eup %7196  ;;  %4931 = vrot.lane.b32.xlu1 %v7195_v27, %s7328_s28 }
0x421d   : > { %4929 = vrot.lane.b32.xlu0 %v7197_v28, %s7328_s28 }
0x428e   : > { %v4932_v30 = vpop.permute.xlu1 %4931 }
0x428f   : > { %v4936_v31 = vmul.f32 %v7191_v12, %v4932_v30  ;;  %v4930_v32 = vpop.permute.xlu0 %4929  ;;  %v248_v12 = vld [vmem:[%s7385_s24 + $0x190] sm:$0xff] }
0x4290   : > { %v4935_v34 = vmul.f32 %v7193_v14, %v4930_v32  ;;  %6629 = vmatprep.mubr.msk.f32.mxu0 %vm268_vm1, %v248_v12 }
0x4291   : > { %4960 = vst.msk [vmem:[%s7421_s5 + $0x178] sm:$0xff] %vm268_vm1, %v4936_v31  ;;  %4951 = vrot.lane.b32.xlu1 %v4936_v31, %s7327_s25  ;;  %6630 = vmatmul.mubr.msk.f32.gmra.mrb[50].mxu0 %vm268_vm1, %v249_v15 }
0x4292   : > { %4959 = vst.msk [vmem:[%s7421_s5 + $0x170] sm:$0xff] %vm268_vm1, %v4935_v34  ;;  %4949 = vrot.lane.b32.xlu0 %v4935_v34, %s7327_s25 }
0x4295   : > { %4941 = vrot.lane.b32.xlu1 %v4924_v23, %s7328_s28 }
0x4296   : > { %4939 = vrot.lane.b32.xlu0 %v4923_v25, %s7328_s28 }
0x4303   : > { %v4952_v47 = vpop.permute.xlu1 %4951 }
0x4304   : > { %4956 = vst.msk [vmem:[#allocation3 + $0x8] sm:$0xff] %vm1066_vm4, %v4952_v47  ;;  %v4950_v36 = vpop.permute.xlu0 %4949 }
0x4305   : > { %4958 = vst.msk [vmem:[#allocation3 + $0x9] sm:$0x7f] %vm1070_vm5, %v4936_v31 }
0x4306   : > { %4955 = vst.msk [vmem:[#allocation3] sm:$0xff] %vm1066_vm4, %v4950_v36 }
0x4307   : > { %4957 = vst.msk [vmem:[#allocation3 + $0x1] sm:$0xff] %vm268_vm1, %v4935_v34  ;;  %v4942_v37 = vpop.permute.xlu1 %4941 }
0x4308   : > { %4946 = vst.msk [vmem:[#allocation4 + $0x8] sm:$0xff] %vm268_vm1, %v4942_v37  ;;  %v4940_v38 = vpop.permute.xlu0 %4939 }
0x4309   : > { %4945 = vst.msk [vmem:[#allocation4] sm:$0xff] %vm268_vm1, %v4940_v38 }
0x430e   : > { %v4963_v39 = vld [vmem:[#allocation3] sm:$0xff]  ;;  %v4964_v40 = vld [vmem:[#allocation3 + $0x8] sm:$0xff] }
0x430f   : > { %6769 = vmatprep.mubr.msk.f32.mxu1 %vm897_vm2, %v4963_v39  ;;  %v5063_v53 = vld [vmem:[#allocation4 + $0x8] sm:$0xff] }
0x4310   : > { %6770 = vmatmul.mubr.msk.f32.vlgmr.msra.gmra.mrb[48].mxu1 %vm897_vm2, %v4964_v40  ;;  %v5062_v54 = vld [vmem:[#allocation4] sm:$0xff] }
0x4311   : > { %6773 = vmatpush3.msra.mxu1 %v8108_v35 }
0x4312   : > { %6777 = vmatprep.subr.mxu1 %v8108_v35 }
0x4364   : > { %v6631_v26 = vpop.f32.mrb[50].mxu0 }
0x4365   : > { %v781_v27 = vadd.f32 %v8149_v21, %v6631_v26  ;;  %v775_v28 = vpop.f32.mrb[51].mxu0 }
0x4366   : > { %v776_v29 = vadd.f32 %v8149_v21, %v775_v28 }
0x4367   : > { %886 = vst.msk [vmem:[#allocation2 + $0x198] sm:$0xff] %vm834_vm3, %v781_v27 }
0x4368   : > { %885 = vst.msk [vmem:[#allocation2 + $0x190] sm:$0xff] %vm834_vm3, %v776_v29 }
0x436e   : > { %v5131_v30 = vld [vmem:[#allocation2 + $0x198] sm:$0xff] }
0x436f   : > { %v5130_v31 = vld [vmem:[#allocation2 + $0x190] sm:$0xff] }
0x43e3   : > { %v6771_v48 = vpop.f32.mrb[48].mxu1 }
0x43e4   : > { %v5047_v59 = vadd.f32 %v6771_v48, %v4962_v45  ;;  %v5037_v49 = vpop.f32.mrb[49].mxu1 }
0x43e5   : > { %v5046_v50 = vadd.f32 %v5037_v49, %v4961_v46 }
0x43e6   : > { %7198 = vtanh.f32 %v5047_v59  ;;  %v6369_v55 = vmul.f32 -1.442695, %v5047_v59 }
0x43e7   : > { %7200 = vtanh.f32 %v5046_v50  ;;  %v6368_v56 = vmul.f32 -1.442695, %v5046_v50 }
0x43e8   : > { %7202 = vpow2.f32 %v6369_v55 }
0x43e9   : > { %7204 = vpow2.f32 %v6368_v56 }
0x43f0   : > { %v7199_v51 = vpop.eup %7198 }
0x43f1   : > { %v7201_v52 = vpop.eup %7200  ;;  %5078 = vrot.lane.b32.xlu1 %v7199_v51, %s7328_s28 }
0x43f2   : > { %5076 = vrot.lane.b32.xlu0 %v7201_v52, %s7328_s28  ;;  %v7203_v57 = vpop.eup %7202 }
0x43f3   : > { %v7205_v58 = vpop.eup %7204  ;;  %v5055_v60 = vadd.f32 1.0, %v7203_v57 }
0x43f4   : > { %v5054_v9 = vadd.f32 1.0, %v7205_v58 }
0x43f5   : > { %5068 = vrot.lane.b32.xlu1 %v5063_v53, %s7327_s25  ;;  %7206 = vrcp.f32 %v5055_v60 }
0x43f6   : > { %5066 = vrot.lane.b32.xlu0 %v5062_v54, %s7327_s25  ;;  %7208 = vrcp.f32 %v5054_v9 }
0x43ff   : > { %v7207_v10 = vpop.eup %7206 }
0x4400   : > { %v7209_v62 = vpop.eup %7208 }
0x4463   : > { %v5079_v61 = vpop.permute.xlu1 %5078 }
0x4464   : > { %v5083_v63 = vmul.f32 %v7207_v10, %v5079_v61  ;;  %v5077_v0 = vpop.permute.xlu0 %5076 }
0x4465   : > { %v5082_v2 = vmul.f32 %v7209_v62, %v5077_v0 }
0x4466   : > { %5088 = vrot.lane.b32.xlu1 %v5083_v63, %s7328_s28  ;;  %v251_v63 = vld [vmem:[%s7385_s24 + $0x1a8] sm:$0xff] }
0x4467   : > { %5086 = vrot.lane.b32.xlu0 %v5082_v2, %s7328_s28  ;;  %v5069_v3 = vpop.permute.xlu1 %5068 }
0x4468   : > { %v5067_v4 = vpop.permute.xlu0 %5066  ;;  %v5073_v5 = vmul.f32 %v7207_v10, %v5069_v3 }
0x4469   : > { %v5072_v6 = vmul.f32 %v7209_v62, %v5067_v4 }
0x44d8   : > { %v5089_v7 = vpop.permute.xlu1 %5088 }
0x44d9   : > { %v5093_v8 = vadd.f32 %v5089_v7, %v5073_v5  ;;  %v5087_v1 = vpop.permute.xlu0 %5086 }
0x44da   : > { %v5092_v11 = vadd.f32 %v5087_v1, %v5072_v6 }
0x44db   : > { %7210 = vtanh.f32 %v5093_v8 }
0x44dc   : > { %7212 = vtanh.f32 %v5092_v11 }
0x44e5   : > { %v7211_v13 = vpop.eup %7210 }
0x44e6   : > { %v7213_v14 = vpop.eup %7212  ;;  %5100 = vrot.lane.b32.xlu1 %v7211_v13, %s7328_s28 }
0x44e7   : > { %5098 = vrot.lane.b32.xlu0 %v7213_v14, %s7328_s28 }
0x4558   : > { %v5101_v16 = vpop.permute.xlu1 %5100 }
0x4559   : > { %v5105_v17 = vmul.f32 %v7207_v10, %v5101_v16  ;;  %v5099_v18 = vpop.permute.xlu0 %5098  ;;  %v250_v10 = vld [vmem:[%s7385_s24 + $0x1a0] sm:$0xff] }
0x455a   : > { %v5104_v19 = vmul.f32 %v7209_v62, %v5099_v18  ;;  %6632 = vmatprep.mubr.msk.f32.mxu0 %vm268_vm1, %v250_v10 }
0x455b   : > { %5129 = vst.msk [vmem:[%s7421_s5 + $0x188] sm:$0xff] %vm268_vm1, %v5105_v17  ;;  %5120 = vrot.lane.b32.xlu1 %v5105_v17, %s7327_s25  ;;  %6633 = vmatmul.mubr.msk.f32.gmra.mrb[52].mxu0 %vm268_vm1, %v251_v63 }
0x455c   : > { %5128 = vst.msk [vmem:[%s7421_s5 + $0x180] sm:$0xff] %vm268_vm1, %v5104_v19  ;;  %5118 = vrot.lane.b32.xlu0 %v5104_v19, %s7327_s25 }
0x455f   : > { %5110 = vrot.lane.b32.xlu1 %v5093_v8, %s7328_s28 }
0x4560   : > { %5108 = vrot.lane.b32.xlu0 %v5092_v11, %s7328_s28 }
0x45cd   : > { %v5121_v20 = vpop.permute.xlu1 %5120 }
0x45ce   : > { %5125 = vst.msk [vmem:[#allocation3 + $0x8] sm:$0xff] %vm1066_vm4, %v5121_v20  ;;  %v5119_v22 = vpop.permute.xlu0 %5118 }
0x45cf   : > { %5127 = vst.msk [vmem:[#allocation3 + $0x9] sm:$0x7f] %vm1070_vm5, %v5105_v17 }
0x45d0   : > { %5124 = vst.msk [vmem:[#allocation3] sm:$0xff] %vm1066_vm4, %v5119_v22 }
0x45d1   : > { %5126 = vst.msk [vmem:[#allocation3 + $0x1] sm:$0xff] %vm268_vm1, %v5104_v19  ;;  %v5111_v33 = vpop.permute.xlu1 %5110 }
0x45d2   : > { %5115 = vst.msk [vmem:[#allocation4 + $0x8] sm:$0xff] %vm268_vm1, %v5111_v33  ;;  %v5109_v23 = vpop.permute.xlu0 %5108 }
0x45d3   : > { %5114 = vst.msk [vmem:[#allocation4] sm:$0xff] %vm268_vm1, %v5109_v23 }
0x45d8   : > { %v5132_v24 = vld [vmem:[#allocation3] sm:$0xff]  ;;  %v5133_v25 = vld [vmem:[#allocation3 + $0x8] sm:$0xff] }
0x45d9   : > { %6774 = vmatprep.mubr.msk.f32.mxu1 %vm897_vm2, %v5132_v24  ;;  %v5232_v39 = vld [vmem:[#allocation4 + $0x8] sm:$0xff] }
0x45da   : > { %6775 = vmatmul.mubr.msk.f32.vlgmr.msra.gmra.mrb[50].mxu1 %vm897_vm2, %v5133_v25  ;;  %v5231_v40 = vld [vmem:[#allocation4] sm:$0xff] }
0x45db   : > { %6778 = vmatpush3.msra.mxu1 %v8108_v35 }
0x45dc   : > { %6782 = vmatprep.subr.mxu1 %v8108_v35 }
0x462e   : > { %v6634_v12 = vpop.f32.mrb[52].mxu0 }
0x462f   : > { %v791_v13 = vadd.f32 %v8149_v21, %v6634_v12  ;;  %v785_v14 = vpop.f32.mrb[53].mxu0 }
0x4630   : > { %v786_v15 = vadd.f32 %v8149_v21, %v785_v14 }
0x4631   : > { %888 = vst.msk [vmem:[#allocation2 + $0x1a8] sm:$0xff] %vm834_vm3, %v791_v13 }
0x4632   : > { %887 = vst.msk [vmem:[#allocation2 + $0x1a0] sm:$0xff] %vm834_vm3, %v786_v15 }
0x4638   : > { %v5300_v16 = vld [vmem:[#allocation2 + $0x1a8] sm:$0xff] }
0x4639   : > { %v5299_v17 = vld [vmem:[#allocation2 + $0x1a0] sm:$0xff] }
0x46ad   : > { %v6776_v32 = vpop.f32.mrb[50].mxu1 }
0x46ae   : > { %v5216_v34 = vadd.f32 %v6776_v32, %v5131_v30  ;;  %v5206_v47 = vpop.f32.mrb[51].mxu1 }
0x46af   : > { %v5215_v36 = vadd.f32 %v5206_v47, %v5130_v31 }
0x46b0   : > { %7214 = vtanh.f32 %v5216_v34  ;;  %v6373_v41 = vmul.f32 -1.442695, %v5216_v34 }
0x46b1   : > { %7216 = vtanh.f32 %v5215_v36  ;;  %v6372_v42 = vmul.f32 -1.442695, %v5215_v36 }
0x46b2   : > { %7218 = vpow2.f32 %v6373_v41 }
0x46b3   : > { %7220 = vpow2.f32 %v6372_v42 }
0x46ba   : > { %v7215_v37 = vpop.eup %7214 }
0x46bb   : > { %v7217_v38 = vpop.eup %7216  ;;  %5247 = vrot.lane.b32.xlu1 %v7215_v37, %s7328_s28 }
0x46bc   : > { %5245 = vrot.lane.b32.xlu0 %v7217_v38, %s7328_s28  ;;  %v7219_v43 = vpop.eup %7218 }
0x46bd   : > { %v7221_v44 = vpop.eup %7220  ;;  %v5224_v45 = vadd.f32 1.0, %v7219_v43 }
0x46be   : > { %v5223_v46 = vadd.f32 1.0, %v7221_v44 }
0x46bf   : > { %5237 = vrot.lane.b32.xlu1 %v5232_v39, %s7327_s25  ;;  %7222 = vrcp.f32 %v5224_v45 }
0x46c0   : > { %5235 = vrot.lane.b32.xlu0 %v5231_v40, %s7327_s25  ;;  %7224 = vrcp.f32 %v5223_v46  ;;  %v252_v46 = vld [vmem:[%s7385_s24 + $0x1b0] sm:$0xff] }
0x46c1   : > { %6635 = vmatprep.mubr.msk.f32.mxu0 %vm268_vm1, %v252_v46  ;;  %v8397_v46 = vld [vmem:[%s8495_s2] ss:$0 sm:$0xff] }
0x46c9   : > { %v7223_v48 = vpop.eup %7222 }
0x46ca   : > { %v7225_v49 = vpop.eup %7224 }
0x472d   : > { %v5248_v59 = vpop.permute.xlu1 %5247 }
0x472e   : > { %v5252_v50 = vmul.f32 %v7223_v48, %v5248_v59  ;;  %v5246_v51 = vpop.permute.xlu0 %5245 }
0x472f   : > { %v5251_v52 = vmul.f32 %v7225_v49, %v5246_v51 }
0x4730   : > { %5257 = vrot.lane.b32.xlu1 %v5252_v50, %s7328_s28 }
0x4731   : > { %5255 = vrot.lane.b32.xlu0 %v5251_v52, %s7328_s28  ;;  %v5238_v53 = vpop.permute.xlu1 %5237 }
0x4732   : > { %v5236_v54 = vpop.permute.xlu0 %5235  ;;  %v5242_v55 = vmul.f32 %v7223_v48, %v5238_v53 }
0x4733   : > { %v5241_v56 = vmul.f32 %v7225_v49, %v5236_v54 }
0x47a2   : > { %v5258_v57 = vpop.permute.xlu1 %5257 }
0x47a3   : > { %v5262_v58 = vadd.f32 %v5258_v57, %v5242_v55  ;;  %v5256_v60 = vpop.permute.xlu0 %5255 }
0x47a4   : > { %v5261_v9 = vadd.f32 %v5256_v60, %v5241_v56 }
0x47a5   : > { %7226 = vtanh.f32 %v5262_v58 }
0x47a6   : > { %7228 = vtanh.f32 %v5261_v9 }
0x47af   : > { %v7227_v61 = vpop.eup %7226 }
0x47b0   : > { %v7229_v62 = vpop.eup %7228  ;;  %5269 = vrot.lane.b32.xlu1 %v7227_v61, %s7328_s28 }
0x47b1   : > { %5267 = vrot.lane.b32.xlu0 %v7229_v62, %s7328_s28 }
0x4822   : > { %v5270_v0 = vpop.permute.xlu1 %5269 }
0x4823   : > { %v5274_v2 = vmul.f32 %v7223_v48, %v5270_v0  ;;  %v5268_v3 = vpop.permute.xlu0 %5267 }
0x4824   : > { %v5273_v4 = vmul.f32 %v7225_v49, %v5268_v3  ;;  %v253_v49 = vld [vmem:[%s7385_s24 + $0x1b8] sm:$0xff] }
0x4825   : > { %5298 = vst.msk [vmem:[%s7421_s5 + $0x198] sm:$0xff] %vm268_vm1, %v5274_v2  ;;  %5289 = vrot.lane.b32.xlu1 %v5274_v2, %s7327_s25  ;;  %6636 = vmatmul.mubr.msk.f32.gmra.mrb[54].mxu0 %vm268_vm1, %v253_v49 }
0x4826   : > { %5297 = vst.msk [vmem:[%s7421_s5 + $0x190] sm:$0xff] %vm268_vm1, %v5273_v4  ;;  %5287 = vrot.lane.b32.xlu0 %v5273_v4, %s7327_s25 }
0x4829   : > { %5279 = vrot.lane.b32.xlu1 %v5262_v58, %s7328_s28 }
0x482a   : > { %5277 = vrot.lane.b32.xlu0 %v5261_v9, %s7328_s28  ;;  %v8356_v9 = vld [vmem:[%s8496_s3] sm:$0xff] }
0x4897   : > { %v5290_v5 = vpop.permute.xlu1 %5289 }
0x4898   : > { %5294 = vst.msk [vmem:[#allocation3 + $0x8] sm:$0xff] %vm1066_vm4, %v5290_v5  ;;  %v5288_v6 = vpop.permute.xlu0 %5287 }
0x4899   : > { %5296 = vst.msk [vmem:[#allocation3 + $0x9] sm:$0x7f] %vm1070_vm5, %v5274_v2 }
0x489a   : > { %5293 = vst.msk [vmem:[#allocation3] sm:$0xff] %vm1066_vm4, %v5288_v6 }
0x489b   : > { %5295 = vst.msk [vmem:[#allocation3 + $0x1] sm:$0xff] %vm268_vm1, %v5273_v4  ;;  %v5280_v7 = vpop.permute.xlu1 %5279 }
0x489c   : > { %5284 = vst.msk [vmem:[#allocation4 + $0x8] sm:$0xff] %vm268_vm1, %v5280_v7  ;;  %v5278_v8 = vpop.permute.xlu0 %5277 }
0x489d   : > { %5283 = vst.msk [vmem:[#allocation4] sm:$0xff] %vm268_vm1, %v5278_v8 }
0x48a2   : > { %v5301_v1 = vld [vmem:[#allocation3] sm:$0xff]  ;;  %v5302_v11 = vld [vmem:[#allocation3 + $0x8] sm:$0xff] }
0x48a3   : > { %6779 = vmatprep.mubr.msk.f32.mxu1 %vm897_vm2, %v5301_v1  ;;  %v5401_v23 = vld [vmem:[#allocation4 + $0x8] sm:$0xff] }
0x48a4   : > { %6780 = vmatmul.mubr.msk.f32.vlgmr.msra.gmra.mrb[52].mxu1 %vm897_vm2, %v5302_v11  ;;  %v5400_v24 = vld [vmem:[#allocation4] sm:$0xff] }
0x48a5   : > { %6783 = vmatpush3.msra.mxu1 %v8108_v35 }
0x48a6   : > { %6787 = vmatprep.subr.mxu1 %v8108_v35 }
0x48f8   : > { %v6637_v10 = vpop.f32.mrb[54].mxu0 }
0x48f9   : > { %v801_v61 = vadd.f32 %v8149_v21, %v6637_v10  ;;  %v795_v62 = vpop.f32.mrb[55].mxu0 }
0x48fa   : > { %v796_v63 = vadd.f32 %v8149_v21, %v795_v62 }
0x48fb   : > { %890 = vst.msk [vmem:[#allocation2 + $0x1b8] sm:$0xff] %vm834_vm3, %v801_v61 }
0x48fc   : > { %889 = vst.msk [vmem:[#allocation2 + $0x1b0] sm:$0xff] %vm834_vm3, %v796_v63 }
0x4902   : > { %v5469_v0 = vld [vmem:[#allocation2 + $0x1b8] sm:$0xff] }
0x4903   : > { %v5468_v2 = vld [vmem:[#allocation2 + $0x1b0] sm:$0xff] }
0x4977   : > { %v6781_v18 = vpop.f32.mrb[52].mxu1 }
0x4978   : > { %v5385_v19 = vadd.f32 %v6781_v18, %v5300_v16  ;;  %v5375_v20 = vpop.f32.mrb[53].mxu1 }
0x4979   : > { %v5384_v22 = vadd.f32 %v5375_v20, %v5299_v17 }
0x497a   : > { %7230 = vtanh.f32 %v5385_v19  ;;  %v6377_v25 = vmul.f32 -1.442695, %v5385_v19 }
0x497b   : > { %7232 = vtanh.f32 %v5384_v22  ;;  %v6376_v26 = vmul.f32 -1.442695, %v5384_v22 }
0x497c   : > { %7234 = vpow2.f32 %v6377_v25 }
0x497d   : > { %7236 = vpow2.f32 %v6376_v26 }
0x4984   : > { %v7231_v33 = vpop.eup %7230 }
0x4985   : > { %v7233_v35 = vpop.eup %7232  ;;  %5416 = vrot.lane.b32.xlu1 %v7231_v33, %s7328_s28 }
0x4986   : > { %5414 = vrot.lane.b32.xlu0 %v7233_v35, %s7328_s28  ;;  %v7235_v27 = vpop.eup %7234 }
0x4987   : > { %v7237_v28 = vpop.eup %7236  ;;  %v5393_v29 = vadd.f32 1.0, %v7235_v27 }
0x4988   : > { %v5392_v30 = vadd.f32 1.0, %v7237_v28 }
0x4989   : > { %5406 = vrot.lane.b32.xlu1 %v5401_v23, %s7327_s25  ;;  %7238 = vrcp.f32 %v5393_v29 }
0x498a   : > { %5404 = vrot.lane.b32.xlu0 %v5400_v24, %s7327_s25  ;;  %7240 = vrcp.f32 %v5392_v30  ;;  %v254_v30 = vld [vmem:[%s7385_s24 + $0x1c0] sm:$0xff] }
0x498b   : > { %6638 = vmatprep.mubr.msk.f32.mxu0 %vm268_vm1, %v254_v30 }
0x4993   : > { %v7239_v31 = vpop.eup %7238 }
0x4994   : > { %v7241_v34 = vpop.eup %7240 }
0x49f7   : > { %v5417_v32 = vpop.permute.xlu1 %5416 }
0x49f8   : > { %v5421_v47 = vmul.f32 %v7239_v31, %v5417_v32  ;;  %v5415_v36 = vpop.permute.xlu0 %5414 }
0x49f9   : > { %v5420_v37 = vmul.f32 %v7241_v34, %v5415_v36 }
0x49fa   : > { %5426 = vrot.lane.b32.xlu1 %v5421_v47, %s7328_s28 }
0x49fb   : > { %5424 = vrot.lane.b32.xlu0 %v5420_v37, %s7328_s28  ;;  %v5407_v38 = vpop.permute.xlu1 %5406 }
0x49fc   : > { %v5405_v39 = vpop.permute.xlu0 %5404  ;;  %v5411_v40 = vmul.f32 %v7239_v31, %v5407_v38 }
0x49fd   : > { %v5410_v41 = vmul.f32 %v7241_v34, %v5405_v39 }
0x4a6c   : > { %v5427_v42 = vpop.permute.xlu1 %5426 }
0x4a6d   : > { %v5431_v43 = vadd.f32 %v5427_v42, %v5411_v40  ;;  %v5425_v44 = vpop.permute.xlu0 %5424 }
0x4a6e   : > { %v5430_v45 = vadd.f32 %v5425_v44, %v5410_v41 }
0x4a6f   : > { %7242 = vtanh.f32 %v5431_v43 }
0x4a70   : > { %7244 = vtanh.f32 %v5430_v45 }
0x4a79   : > { %v7243_v48 = vpop.eup %7242 }
0x4a7a   : > { %v7245_v59 = vpop.eup %7244  ;;  %5438 = vrot.lane.b32.xlu1 %v7243_v48, %s7328_s28 }
0x4a7b   : > { %5436 = vrot.lane.b32.xlu0 %v7245_v59, %s7328_s28 }
0x4aec   : > { %v5439_v50 = vpop.permute.xlu1 %5438 }
0x4aed   : > { %v5443_v51 = vmul.f32 %v7239_v31, %v5439_v50  ;;  %v5437_v52 = vpop.permute.xlu0 %5436 }
0x4aee   : > { %v5442_v53 = vmul.f32 %v7241_v34, %v5437_v52  ;;  %v255_v34 = vld [vmem:[%s7385_s24 + $0x1c8] sm:$0xff] }
0x4aef   : > { %5467 = vst.msk [vmem:[%s7421_s5 + $0x1a8] sm:$0xff] %vm268_vm1, %v5443_v51  ;;  %5458 = vrot.lane.b32.xlu1 %v5443_v51, %s7327_s25  ;;  %6639 = vmatmul.mubr.msk.f32.gmra.mrb[56].mxu0 %vm268_vm1, %v255_v34 }
0x4af0   : > { %5466 = vst.msk [vmem:[%s7421_s5 + $0x1a0] sm:$0xff] %vm268_vm1, %v5442_v53  ;;  %5456 = vrot.lane.b32.xlu0 %v5442_v53, %s7327_s25 }
0x4af3   : > { %5448 = vrot.lane.b32.xlu1 %v5431_v43, %s7328_s28 }
0x4af4   : > { %5446 = vrot.lane.b32.xlu0 %v5430_v45, %s7328_s28 }
0x4b61   : > { %v5459_v54 = vpop.permute.xlu1 %5458 }
0x4b62   : > { %5463 = vst.msk [vmem:[#allocation3 + $0x8] sm:$0xff] %vm1066_vm4, %v5459_v54  ;;  %v5457_v55 = vpop.permute.xlu0 %5456 }
0x4b63   : > { %5465 = vst.msk [vmem:[#allocation3 + $0x9] sm:$0x7f] %vm1070_vm5, %v5443_v51 }
0x4b64   : > { %5462 = vst.msk [vmem:[#allocation3] sm:$0xff] %vm1066_vm4, %v5457_v55 }
0x4b65   : > { %5464 = vst.msk [vmem:[#allocation3 + $0x1] sm:$0xff] %vm268_vm1, %v5442_v53  ;;  %v5449_v56 = vpop.permute.xlu1 %5448 }
0x4b66   : > { %5453 = vst.msk [vmem:[#allocation4 + $0x8] sm:$0xff] %vm268_vm1, %v5449_v56  ;;  %v5447_v57 = vpop.permute.xlu0 %5446 }
0x4b67   : > { %5452 = vst.msk [vmem:[#allocation4] sm:$0xff] %vm268_vm1, %v5447_v57 }
0x4b6c   : > { %v5470_v58 = vld [vmem:[#allocation3] sm:$0xff]  ;;  %v5471_v60 = vld [vmem:[#allocation3 + $0x8] sm:$0xff] }
0x4b6d   : > { %6784 = vmatprep.mubr.msk.f32.mxu1 %vm897_vm2, %v5470_v58  ;;  %v5570_v1 = vld [vmem:[#allocation4 + $0x8] sm:$0xff] }
0x4b6e   : > { %6785 = vmatmul.mubr.msk.f32.vlgmr.msra.gmra.mrb[54].mxu1 %vm897_vm2, %v5471_v60  ;;  %v5569_v21 = vld [vmem:[#allocation4] sm:$0xff] }
0x4b6f   : > { %6788 = vmatpush3.msra.mxu1 %v8356_v9 }
0x4b70   : > { %6792 = vmatprep.subr.mxu1 %v8356_v9 }
0x4bc2   : > { %v6640_v45 = vpop.f32.mrb[56].mxu0 }
0x4bc3   : > { %v811_v48 = vadd.f32 %v8397_v46, %v6640_v45  ;;  %v805_v59 = vpop.f32.mrb[57].mxu0 }
0x4bc4   : > { %v806_v49 = vadd.f32 %v8397_v46, %v805_v59 }
0x4bc5   : > { %892 = vst.msk [vmem:[#allocation2 + $0x1c8] sm:$0xff] %vm834_vm3, %v811_v48 }
0x4bc6   : > { %891 = vst.msk [vmem:[#allocation2 + $0x1c0] sm:$0xff] %vm834_vm3, %v806_v49 }
0x4bcc   : > { %v5638_v50 = vld [vmem:[#allocation2 + $0x1c8] sm:$0xff] }
0x4bcd   : > { %v5637_v51 = vld [vmem:[#allocation2 + $0x1c0] sm:$0xff] }
0x4c41   : > { %v6786_v3 = vpop.f32.mrb[54].mxu1 }
0x4c42   : > { %v5554_v4 = vadd.f32 %v6786_v3, %v5469_v0  ;;  %v5544_v5 = vpop.f32.mrb[55].mxu1 }
0x4c43   : > { %v5553_v6 = vadd.f32 %v5544_v5, %v5468_v2 }
0x4c44   : > { %7246 = vtanh.f32 %v5554_v4  ;;  %v6381_v11 = vmul.f32 -1.442695, %v5554_v4 }
0x4c45   : > { %7248 = vtanh.f32 %v5553_v6  ;;  %v6380_v12 = vmul.f32 -1.442695, %v5553_v6 }
0x4c46   : > { %7250 = vpow2.f32 %v6381_v11 }
0x4c47   : > { %7252 = vpow2.f32 %v6380_v12 }
0x4c4e   : > { %v7247_v7 = vpop.eup %7246 }
0x4c4f   : > { %v7249_v8 = vpop.eup %7248  ;;  %5585 = vrot.lane.b32.xlu1 %v7247_v7, %s7328_s28 }
0x4c50   : > { %5583 = vrot.lane.b32.xlu0 %v7249_v8, %s7328_s28  ;;  %v7251_v13 = vpop.eup %7250 }
0x4c51   : > { %v7253_v14 = vpop.eup %7252  ;;  %v5562_v15 = vadd.f32 1.0, %v7251_v13 }
0x4c52   : > { %v5561_v16 = vadd.f32 1.0, %v7253_v14 }
0x4c53   : > { %5575 = vrot.lane.b32.xlu1 %v5570_v1, %s7327_s25  ;;  %7254 = vrcp.f32 %v5562_v15 }
0x4c54   : > { %5573 = vrot.lane.b32.xlu0 %v5569_v21, %s7327_s25  ;;  %7256 = vrcp.f32 %v5561_v16 }
0x4c5d   : > { %v7255_v17 = vpop.eup %7254 }
0x4c5e   : > { %v7257_v19 = vpop.eup %7256 }
0x4cc1   : > { %v5586_v18 = vpop.permute.xlu1 %5585 }
0x4cc2   : > { %v5590_v20 = vmul.f32 %v7255_v17, %v5586_v18  ;;  %v5584_v22 = vpop.permute.xlu0 %5583 }
0x4cc3   : > { %v5589_v33 = vmul.f32 %v7257_v19, %v5584_v22 }
0x4cc4   : > { %5595 = vrot.lane.b32.xlu1 %v5590_v20, %s7328_s28  ;;  %v257_v20 = vld [vmem:[%s7385_s24 + $0x1d8] sm:$0xff] }
0x4cc5   : > { %5593 = vrot.lane.b32.xlu0 %v5589_v33, %s7328_s28  ;;  %v5576_v35 = vpop.permute.xlu1 %5575 }
0x4cc6   : > { %v5574_v23 = vpop.permute.xlu0 %5573  ;;  %v5580_v24 = vmul.f32 %v7255_v17, %v5576_v35 }
0x4cc7   : > { %v5579_v25 = vmul.f32 %v7257_v19, %v5574_v23 }
0x4d36   : > { %v5596_v26 = vpop.permute.xlu1 %5595 }
0x4d37   : > { %v5600_v27 = vadd.f32 %v5596_v26, %v5580_v24  ;;  %v5594_v28 = vpop.permute.xlu0 %5593 }
0x4d38   : > { %v5599_v29 = vadd.f32 %v5594_v28, %v5579_v25 }
0x4d39   : > { %7258 = vtanh.f32 %v5600_v27 }
0x4d3a   : > { %7260 = vtanh.f32 %v5599_v29 }
0x4d43   : > { %v7259_v31 = vpop.eup %7258 }
0x4d44   : > { %v7261_v32 = vpop.eup %7260  ;;  %5607 = vrot.lane.b32.xlu1 %v7259_v31, %s7328_s28 }
0x4d45   : > { %5605 = vrot.lane.b32.xlu0 %v7261_v32, %s7328_s28 }
0x4db6   : > { %v5608_v47 = vpop.permute.xlu1 %5607 }
0x4db7   : > { %v5612_v36 = vmul.f32 %v7255_v17, %v5608_v47  ;;  %v5606_v37 = vpop.permute.xlu0 %5605  ;;  %v256_v17 = vld [vmem:[%s7385_s24 + $0x1d0] sm:$0xff] }
0x4db8   : > { %v5611_v38 = vmul.f32 %v7257_v19, %v5606_v37  ;;  %6641 = vmatprep.mubr.msk.f32.mxu0 %vm268_vm1, %v256_v17 }
0x4db9   : > { %5636 = vst.msk [vmem:[%s7421_s5 + $0x1b8] sm:$0xff] %vm268_vm1, %v5612_v36  ;;  %5627 = vrot.lane.b32.xlu1 %v5612_v36, %s7327_s25  ;;  %6642 = vmatmul.mubr.msk.f32.gmra.mrb[58].mxu0 %vm268_vm1, %v257_v20 }
0x4dba   : > { %5635 = vst.msk [vmem:[%s7421_s5 + $0x1b0] sm:$0xff] %vm268_vm1, %v5611_v38  ;;  %5625 = vrot.lane.b32.xlu0 %v5611_v38, %s7327_s25 }
0x4dbd   : > { %5617 = vrot.lane.b32.xlu1 %v5600_v27, %s7328_s28 }
0x4dbe   : > { %5615 = vrot.lane.b32.xlu0 %v5599_v29, %s7328_s28 }
0x4e2b   : > { %v5628_v39 = vpop.permute.xlu1 %5627 }
0x4e2c   : > { %5632 = vst.msk [vmem:[#allocation3 + $0x8] sm:$0xff] %vm1066_vm4, %v5628_v39  ;;  %v5626_v40 = vpop.permute.xlu0 %5625 }
0x4e2d   : > { %5634 = vst.msk [vmem:[#allocation3 + $0x9] sm:$0x7f] %vm1070_vm5, %v5612_v36 }
0x4e2e   : > { %5631 = vst.msk [vmem:[#allocation3] sm:$0xff] %vm1066_vm4, %v5626_v40 }
0x4e2f   : > { %5633 = vst.msk [vmem:[#allocation3 + $0x1] sm:$0xff] %vm268_vm1, %v5611_v38  ;;  %v5618_v41 = vpop.permute.xlu1 %5617 }
0x4e30   : > { %5622 = vst.msk [vmem:[#allocation4 + $0x8] sm:$0xff] %vm268_vm1, %v5618_v41  ;;  %v5616_v42 = vpop.permute.xlu0 %5615 }
0x4e31   : > { %5621 = vst.msk [vmem:[#allocation4] sm:$0xff] %vm268_vm1, %v5616_v42 }
0x4e36   : > { %v5639_v43 = vld [vmem:[#allocation3] sm:$0xff]  ;;  %v5640_v44 = vld [vmem:[#allocation3 + $0x8] sm:$0xff] }
0x4e37   : > { %6789 = vmatprep.mubr.msk.f32.mxu1 %vm897_vm2, %v5639_v43  ;;  %v5739_v58 = vld [vmem:[#allocation4 + $0x8] sm:$0xff] }
0x4e38   : > { %6790 = vmatmul.mubr.msk.f32.vlgmr.msra.gmra.mrb[56].mxu1 %vm897_vm2, %v5640_v44  ;;  %v5738_v60 = vld [vmem:[#allocation4] sm:$0xff] }
0x4e39   : > { %6793 = vmatpush3.msra.mxu1 %v8356_v9 }
0x4e3a   : > { %6797 = vmatprep.subr.mxu1 %v8356_v9 }
0x4e8c   : > { %v6643_v30 = vpop.f32.mrb[58].mxu0 }
0x4e8d   : > { %v821_v31 = vadd.f32 %v8397_v46, %v6643_v30  ;;  %v815_v32 = vpop.f32.mrb[59].mxu0 }
0x4e8e   : > { %v816_v34 = vadd.f32 %v8397_v46, %v815_v32 }
0x4e8f   : > { %894 = vst.msk [vmem:[#allocation2 + $0x1d8] sm:$0xff] %vm834_vm3, %v821_v31 }
0x4e90   : > { %893 = vst.msk [vmem:[#allocation2 + $0x1d0] sm:$0xff] %vm834_vm3, %v816_v34 }
0x4e96   : > { %v5807_v47 = vld [vmem:[#allocation2 + $0x1d8] sm:$0xff] }
0x4e97   : > { %v5806_v36 = vld [vmem:[#allocation2 + $0x1d0] sm:$0xff] }
0x4f0b   : > { %v6791_v52 = vpop.f32.mrb[56].mxu1 }
0x4f0c   : > { %v5723_v53 = vadd.f32 %v6791_v52, %v5638_v50  ;;  %v5713_v54 = vpop.f32.mrb[57].mxu1 }
0x4f0d   : > { %v5722_v55 = vadd.f32 %v5713_v54, %v5637_v51 }
0x4f0e   : > { %7262 = vtanh.f32 %v5723_v53  ;;  %v6385_v10 = vmul.f32 -1.442695, %v5723_v53 }
0x4f0f   : > { %7264 = vtanh.f32 %v5722_v55  ;;  %v6384_v61 = vmul.f32 -1.442695, %v5722_v55 }
0x4f10   : > { %7266 = vpow2.f32 %v6385_v10 }
0x4f11   : > { %7268 = vpow2.f32 %v6384_v61 }
0x4f18   : > { %v7263_v56 = vpop.eup %7262 }
0x4f19   : > { %v7265_v57 = vpop.eup %7264  ;;  %5754 = vrot.lane.b32.xlu1 %v7263_v56, %s7328_s28 }
0x4f1a   : > { %5752 = vrot.lane.b32.xlu0 %v7265_v57, %s7328_s28  ;;  %v7267_v62 = vpop.eup %7266 }
0x4f1b   : > { %v7269_v63 = vpop.eup %7268  ;;  %v5731_v0 = vadd.f32 1.0, %v7267_v62 }
0x4f1c   : > { %v5730_v2 = vadd.f32 1.0, %v7269_v63 }
0x4f1d   : > { %5744 = vrot.lane.b32.xlu1 %v5739_v58, %s7327_s25  ;;  %7270 = vrcp.f32 %v5731_v0 }
0x4f1e   : > { %5742 = vrot.lane.b32.xlu0 %v5738_v60, %s7327_s25  ;;  %7272 = vrcp.f32 %v5730_v2  ;;  %v258_v2 = vld [vmem:[%s7385_s24 + $0x1e0] sm:$0xff] }
0x4f1f   : > { %6644 = vmatprep.mubr.msk.f32.mxu0 %vm268_vm1, %v258_v2 }
0x4f27   : > { %v7271_v3 = vpop.eup %7270 }
0x4f28   : > { %v7273_v5 = vpop.eup %7272 }
0x4f8b   : > { %v5755_v4 = vpop.permute.xlu1 %5754 }
0x4f8c   : > { %v5759_v6 = vmul.f32 %v7271_v3, %v5755_v4  ;;  %v5753_v7 = vpop.permute.xlu0 %5752 }
0x4f8d   : > { %v5758_v8 = vmul.f32 %v7273_v5, %v5753_v7 }
0x4f8e   : > { %5764 = vrot.lane.b32.xlu1 %v5759_v6, %s7328_s28 }
0x4f8f   : > { %5762 = vrot.lane.b32.xlu0 %v5758_v8, %s7328_s28  ;;  %v5745_v1 = vpop.permute.xlu1 %5744 }
0x4f90   : > { %v5743_v21 = vpop.permute.xlu0 %5742  ;;  %v5749_v11 = vmul.f32 %v7271_v3, %v5745_v1 }
0x4f91   : > { %v5748_v12 = vmul.f32 %v7273_v5, %v5743_v21 }
0x5000   : > { %v5765_v13 = vpop.permute.xlu1 %5764 }
0x5001   : > { %v5769_v14 = vadd.f32 %v5765_v13, %v5749_v11  ;;  %v5763_v15 = vpop.permute.xlu0 %5762 }
0x5002   : > { %v5768_v16 = vadd.f32 %v5763_v15, %v5748_v12 }
0x5003   : > { %7274 = vtanh.f32 %v5769_v14 }
0x5004   : > { %7276 = vtanh.f32 %v5768_v16 }
0x500d   : > { %v7275_v18 = vpop.eup %7274 }
0x500e   : > { %v7277_v19 = vpop.eup %7276  ;;  %5776 = vrot.lane.b32.xlu1 %v7275_v18, %s7328_s28 }
0x500f   : > { %5774 = vrot.lane.b32.xlu0 %v7277_v19, %s7328_s28 }
0x5080   : > { %v5777_v22 = vpop.permute.xlu1 %5776 }
0x5081   : > { %v5781_v33 = vmul.f32 %v7271_v3, %v5777_v22  ;;  %v5775_v35 = vpop.permute.xlu0 %5774 }
0x5082   : > { %v5780_v23 = vmul.f32 %v7273_v5, %v5775_v35  ;;  %v259_v5 = vld [vmem:[%s7385_s24 + $0x1e8] sm:$0xff] }
0x5083   : > { %5805 = vst.msk [vmem:[%s7421_s5 + $0x1c8] sm:$0xff] %vm268_vm1, %v5781_v33  ;;  %5796 = vrot.lane.b32.xlu1 %v5781_v33, %s7327_s25  ;;  %6645 = vmatmul.mubr.msk.f32.gmra.mrb[60].mxu0 %vm268_vm1, %v259_v5 }
0x5084   : > { %5804 = vst.msk [vmem:[%s7421_s5 + $0x1c0] sm:$0xff] %vm268_vm1, %v5780_v23  ;;  %5794 = vrot.lane.b32.xlu0 %v5780_v23, %s7327_s25 }
0x5087   : > { %5786 = vrot.lane.b32.xlu1 %v5769_v14, %s7328_s28 }
0x5088   : > { %5784 = vrot.lane.b32.xlu0 %v5768_v16, %s7328_s28 }
0x50f5   : > { %v5797_v24 = vpop.permute.xlu1 %5796 }
0x50f6   : > { %5801 = vst.msk [vmem:[#allocation3 + $0x8] sm:$0xff] %vm1066_vm4, %v5797_v24  ;;  %v5795_v25 = vpop.permute.xlu0 %5794 }
0x50f7   : > { %5803 = vst.msk [vmem:[#allocation3 + $0x9] sm:$0x7f] %vm1070_vm5, %v5781_v33 }
0x50f8   : > { %5800 = vst.msk [vmem:[#allocation3] sm:$0xff] %vm1066_vm4, %v5795_v25 }
0x50f9   : > { %5802 = vst.msk [vmem:[#allocation3 + $0x1] sm:$0xff] %vm268_vm1, %v5780_v23  ;;  %v5787_v26 = vpop.permute.xlu1 %5786 }
0x50fa   : > { %5791 = vst.msk [vmem:[#allocation4 + $0x8] sm:$0xff] %vm268_vm1, %v5787_v26  ;;  %v5785_v27 = vpop.permute.xlu0 %5784 }
0x50fb   : > { %5790 = vst.msk [vmem:[#allocation4] sm:$0xff] %vm268_vm1, %v5785_v27 }
0x5100   : > { %v5808_v28 = vld [vmem:[#allocation3] sm:$0xff]  ;;  %v5809_v29 = vld [vmem:[#allocation3 + $0x8] sm:$0xff] }
0x5101   : > { %6794 = vmatprep.mubr.msk.f32.mxu1 %vm897_vm2, %v5808_v28  ;;  %v5908_v42 = vld [vmem:[#allocation4 + $0x8] sm:$0xff] }
0x5102   : > { %6795 = vmatmul.mubr.msk.f32.vlgmr.msra.gmra.mrb[58].mxu1 %vm897_vm2, %v5809_v29  ;;  %v5907_v43 = vld [vmem:[#allocation4] sm:$0xff] }
0x5103   : > { %6798 = vmatpush3.msra.mxu1 %v8356_v9 }
0x5156   : > { %v6646_v16 = vpop.f32.mrb[60].mxu0 }
0x5157   : > { %v831_v17 = vadd.f32 %v8397_v46, %v6646_v16  ;;  %v825_v18 = vpop.f32.mrb[61].mxu0 }
0x5158   : > { %v826_v19 = vadd.f32 %v8397_v46, %v825_v18 }
0x5159   : > { %896 = vst.msk [vmem:[#allocation2 + $0x1e8] sm:$0xff] %vm834_vm3, %v831_v17 }
0x515a   : > { %895 = vst.msk [vmem:[#allocation2 + $0x1e0] sm:$0xff] %vm834_vm3, %v826_v19 }
0x5160   : > { %v5976_v20 = vld [vmem:[#allocation2 + $0x1e8] sm:$0xff] }
0x5161   : > { %v5975_v22 = vld [vmem:[#allocation2 + $0x1e0] sm:$0xff] }
0x51d5   : > { %v6796_v37 = vpop.f32.mrb[58].mxu1 }
0x51d6   : > { %v5892_v38 = vadd.f32 %v6796_v37, %v5807_v47  ;;  %v5882_v39 = vpop.f32.mrb[59].mxu1 }
0x51d7   : > { %v5891_v40 = vadd.f32 %v5882_v39, %v5806_v36 }
0x51d8   : > { %7278 = vtanh.f32 %v5892_v38  ;;  %v6389_v44 = vmul.f32 -1.442695, %v5892_v38 }
0x51d9   : > { %7280 = vtanh.f32 %v5891_v40  ;;  %v6388_v45 = vmul.f32 -1.442695, %v5891_v40 }
0x51da   : > { %7282 = vpow2.f32 %v6389_v44 }
0x51db   : > { %7284 = vpow2.f32 %v6388_v45 }
0x51e2   : > { %v7279_v41 = vpop.eup %7278 }
0x51e3   : > { %v7281_v9 = vpop.eup %7280  ;;  %5923 = vrot.lane.b32.xlu1 %v7279_v41, %s7328_s28 }
0x51e4   : > { %5921 = vrot.lane.b32.xlu0 %v7281_v9, %s7328_s28  ;;  %v7283_v48 = vpop.eup %7282 }
0x51e5   : > { %v7285_v59 = vpop.eup %7284  ;;  %v5900_v49 = vadd.f32 1.0, %v7283_v48 }
0x51e6   : > { %v5899_v50 = vadd.f32 1.0, %v7285_v59 }
0x51e7   : > { %5913 = vrot.lane.b32.xlu1 %v5908_v42, %s7327_s25  ;;  %7286 = vrcp.f32 %v5900_v49 }
0x51e8   : > { %5911 = vrot.lane.b32.xlu0 %v5907_v43, %s7327_s25  ;;  %7288 = vrcp.f32 %v5899_v50 }
0x51f1   : > { %v7287_v51 = vpop.eup %7286 }
0x51f2   : > { %v7289_v53 = vpop.eup %7288 }
0x5255   : > { %v5924_v52 = vpop.permute.xlu1 %5923 }
0x5256   : > { %v5928_v54 = vmul.f32 %v7287_v51, %v5924_v52  ;;  %v5922_v55 = vpop.permute.xlu0 %5921 }
0x5257   : > { %v5927_v56 = vmul.f32 %v7289_v53, %v5922_v55 }
0x5258   : > { %5933 = vrot.lane.b32.xlu1 %v5928_v54, %s7328_s28 }
0x5259   : > { %5931 = vrot.lane.b32.xlu0 %v5927_v56, %s7328_s28  ;;  %v5914_v57 = vpop.permute.xlu1 %5913 }
0x525a   : > { %v5912_v58 = vpop.permute.xlu0 %5911  ;;  %v5918_v60 = vmul.f32 %v7287_v51, %v5914_v57 }
0x525b   : > { %v5917_v10 = vmul.f32 %v7289_v53, %v5912_v58 }
0x52ca   : > { %v5934_v61 = vpop.permute.xlu1 %5933 }
0x52cb   : > { %v5938_v62 = vadd.f32 %v5934_v61, %v5918_v60  ;;  %v5932_v63 = vpop.permute.xlu0 %5931 }
0x52cc   : > { %v5937_v0 = vadd.f32 %v5932_v63, %v5917_v10 }
0x52cd   : > { %7290 = vtanh.f32 %v5938_v62 }
0x52ce   : > { %7292 = vtanh.f32 %v5937_v0 }
0x52d7   : > { %v7291_v3 = vpop.eup %7290 }
0x52d8   : > { %v7293_v4 = vpop.eup %7292  ;;  %5945 = vrot.lane.b32.xlu1 %v7291_v3, %s7328_s28 }
0x52d9   : > { %5943 = vrot.lane.b32.xlu0 %v7293_v4, %s7328_s28 }
0x534a   : > { %v5946_v6 = vpop.permute.xlu1 %5945 }
0x534b   : > { %v5950_v7 = vmul.f32 %v7287_v51, %v5946_v6  ;;  %v5944_v8 = vpop.permute.xlu0 %5943 }
0x534c   : > { %v5949_v1 = vmul.f32 %v7289_v53, %v5944_v8 }
0x534d   : > { %5974 = vst.msk [vmem:[%s7421_s5 + $0x1d8] sm:$0xff] %vm268_vm1, %v5950_v7  ;;  %5965 = vrot.lane.b32.xlu1 %v5950_v7, %s7327_s25 }
0x534e   : > { %5973 = vst.msk [vmem:[%s7421_s5 + $0x1d0] sm:$0xff] %vm268_vm1, %v5949_v1  ;;  %5963 = vrot.lane.b32.xlu0 %v5949_v1, %s7327_s25 }
0x5351   : > { %5955 = vrot.lane.b32.xlu1 %v5938_v62, %s7328_s28 }
0x5352   : > { %5953 = vrot.lane.b32.xlu0 %v5937_v0, %s7328_s28 }
0x53bf   : > { %v5966_v21 = vpop.permute.xlu1 %5965 }
0x53c0   : > { %5970 = vst.msk [vmem:[#allocation3 + $0x8] sm:$0xff] %vm1066_vm4, %v5966_v21  ;;  %v5964_v11 = vpop.permute.xlu0 %5963 }
0x53c1   : > { %5972 = vst.msk [vmem:[#allocation3 + $0x9] sm:$0x7f] %vm1070_vm5, %v5950_v7 }
0x53c2   : > { %5969 = vst.msk [vmem:[#allocation3] sm:$0xff] %vm1066_vm4, %v5964_v11 }
0x53c3   : > { %5971 = vst.msk [vmem:[#allocation3 + $0x1] sm:$0xff] %vm268_vm1, %v5949_v1  ;;  %v5956_v12 = vpop.permute.xlu1 %5955 }
0x53c4   : > { %5960 = vst.msk [vmem:[#allocation4 + $0x8] sm:$0xff] %vm268_vm1, %v5956_v12  ;;  %v5954_v13 = vpop.permute.xlu0 %5953 }
0x53c5   : > { %5959 = vst.msk [vmem:[#allocation4] sm:$0xff] %vm268_vm1, %v5954_v13 }
0x53ca   : > { %v5977_v14 = vld [vmem:[#allocation3] sm:$0xff]  ;;  %v5978_v15 = vld [vmem:[#allocation3 + $0x8] sm:$0xff] }
0x53cb   : > { %6799 = vmatprep.mubr.msk.f32.mxu1 %vm897_vm2, %v5977_v14  ;;  %v6077_v27 = vld [vmem:[#allocation4 + $0x8] sm:$0xff] }
0x53cc   : > { %6800 = vmatmul.mubr.msk.f32.vlgmr.msra.gmra.mrb[60].mxu1 %vm897_vm2, %v5978_v15  ;;  %v6076_v46 = vld [vmem:[#allocation4] sm:$0xff] }
0x549f   : > { %v6801_v33 = vpop.f32.mrb[60].mxu1 }
0x54a0   : > { %v6061_v35 = vadd.f32 %v6801_v33, %v5976_v20  ;;  %v6051_v23 = vpop.f32.mrb[61].mxu1 }
0x54a1   : > { %v6060_v24 = vadd.f32 %v6051_v23, %v5975_v22 }
0x54a2   : > { %7294 = vtanh.f32 %v6061_v35  ;;  %v6393_v28 = vmul.f32 -1.442695, %v6061_v35 }
0x54a3   : > { %7296 = vtanh.f32 %v6060_v24  ;;  %v6392_v29 = vmul.f32 -1.442695, %v6060_v24 }
0x54a4   : > { %7298 = vpow2.f32 %v6393_v28 }
0x54a5   : > { %7300 = vpow2.f32 %v6392_v29 }
0x54ac   : > { %v7295_v25 = vpop.eup %7294 }
0x54ad   : > { %v7297_v26 = vpop.eup %7296  ;;  %6092 = vrot.lane.b32.xlu1 %v7295_v25, %s7328_s28 }
0x54ae   : > { %6090 = vrot.lane.b32.xlu0 %v7297_v26, %s7328_s28  ;;  %v7299_v30 = vpop.eup %7298 }
0x54af   : > { %v7301_v31 = vpop.eup %7300  ;;  %v6069_v32 = vadd.f32 1.0, %v7299_v30 }
0x54b0   : > { %v6068_v34 = vadd.f32 1.0, %v7301_v31 }
0x54b1   : > { %6082 = vrot.lane.b32.xlu1 %v6077_v27, %s7327_s25  ;;  %7302 = vrcp.f32 %v6069_v32 }
0x54b2   : > { %6080 = vrot.lane.b32.xlu0 %v6076_v46, %s7327_s25  ;;  %7304 = vrcp.f32 %v6068_v34 }
0x54bb   : > { %v7303_v47 = vpop.eup %7302 }
0x54bc   : > { %v7305_v37 = vpop.eup %7304 }
0x551f   : > { %v6093_v36 = vpop.permute.xlu1 %6092 }
0x5520   : > { %v6097_v38 = vmul.f32 %v7303_v47, %v6093_v36  ;;  %v6091_v39 = vpop.permute.xlu0 %6090 }
0x5521   : > { %v6096_v40 = vmul.f32 %v7305_v37, %v6091_v39 }
0x5522   : > { %6102 = vrot.lane.b32.xlu1 %v6097_v38, %s7328_s28 }
0x5523   : > { %6100 = vrot.lane.b32.xlu0 %v6096_v40, %s7328_s28  ;;  %v6083_v41 = vpop.permute.xlu1 %6082 }
0x5524   : > { %v6081_v9 = vpop.permute.xlu0 %6080  ;;  %v6087_v42 = vmul.f32 %v7303_v47, %v6083_v41 }
0x5525   : > { %v6086_v43 = vmul.f32 %v7305_v37, %v6081_v9 }
0x5594   : > { %v6103_v44 = vpop.permute.xlu1 %6102 }
0x5595   : > { %v6107_v45 = vadd.f32 %v6103_v44, %v6087_v42  ;;  %v6101_v48 = vpop.permute.xlu0 %6100 }
0x5596   : > { %v6106_v59 = vadd.f32 %v6101_v48, %v6086_v43 }
0x5597   : > { %7306 = vtanh.f32 %v6107_v45 }
0x5598   : > { %7308 = vtanh.f32 %v6106_v59 }
0x55a1   : > { %v7307_v49 = vpop.eup %7306 }
0x55a2   : > { %v7309_v50 = vpop.eup %7308  ;;  %6114 = vrot.lane.b32.xlu1 %v7307_v49, %s7328_s28 }
0x55a3   : > { %6112 = vrot.lane.b32.xlu0 %v7309_v50, %s7328_s28 }
0x5614   : > { %v6115_v51 = vpop.permute.xlu1 %6114 }
0x5615   : > { %v6119_v52 = vmul.f32 %v7303_v47, %v6115_v51  ;;  %v6113_v53 = vpop.permute.xlu0 %6112 }
0x5616   : > { %v6118_v54 = vmul.f32 %v7305_v37, %v6113_v53 }
0x5617   : > { %6143 = vst.msk [vmem:[%s7421_s5 + $0x1e8] sm:$0xff] %vm268_vm1, %v6119_v52  ;;  %6134 = vrot.lane.b32.xlu1 %v6119_v52, %s7327_s25 }
0x5618   : > { %6142 = vst.msk [vmem:[%s7421_s5 + $0x1e0] sm:$0xff] %vm268_vm1, %v6118_v54  ;;  %6132 = vrot.lane.b32.xlu0 %v6118_v54, %s7327_s25 }
0x561b   : > { %6124 = vrot.lane.b32.xlu1 %v6107_v45, %s7328_s28 }
0x561c   : > { %6122 = vrot.lane.b32.xlu0 %v6106_v59, %s7328_s28 }
0x5689   : > { %v6135_v55 = vpop.permute.xlu1 %6134 }
0x568a   : > { %6139 = vst.msk [vmem:[#allocation3 + $0x8] sm:$0xff] %vm1066_vm4, %v6135_v55  ;;  %v6133_v56 = vpop.permute.xlu0 %6132 }
0x568b   : > { %6141 = vst.msk [vmem:[#allocation3 + $0x9] sm:$0x7f] %vm1070_vm5, %v6119_v52 }
0x568c   : > { %6138 = vst.msk [vmem:[#allocation3] sm:$0xff] %vm1066_vm4, %v6133_v56 }
0x568d   : > { %6140 = vst.msk [vmem:[#allocation3 + $0x1] sm:$0xff] %vm268_vm1, %v6118_v54  ;;  %v6125_v57 = vpop.permute.xlu1 %6124 }
0x568e   : > { %6129 = vst.msk [vmem:[#allocation4 + $0x8] sm:$0xff] %vm268_vm1, %v6125_v57  ;;  %v6123_v58 = vpop.permute.xlu0 %6122 }
0x568f   : > { %6128 = vst.msk [vmem:[#allocation4] sm:$0xff] %vm268_vm1, %v6123_v58 }
0x5690 PF: > { %s14_s15 = sadd.s32 1, %s7324_s15  }
0x5691   : > { %p11_p4 = scmp.ge.s32.totalorder %s14_s15, 4  }
0x5693   :  { %13 = sbr.rel (!%p11_p4) target bundleno = 1 (0x1), region = 66 }

</bundles_post_ra>
